<compile_context>
chip_gen: v6e
topology: v6e:2x2x1
jax: 0.10.0
libtpu: 0.0.40
codegen_flags: <defaults>
</compile_context>

<pallas_src>
import functools

import numpy as np
import jax
import jax.numpy as jnp
from jax import lax
from jax.experimental import pallas as pl
from jax.experimental.pallas import tpu as pltpu


# ----------------------------------------------------------------------------
# pure-jnp layernorm (used by the reference; the kernel has its own inline one)
# ----------------------------------------------------------------------------
def _layernorm(x, gamma, beta, eps=1e-5):
    mean = jnp.mean(x, axis=-1, keepdims=True)
    var = jnp.mean(jnp.square(x - mean), axis=-1, keepdims=True)
    return (x - mean) * lax.rsqrt(var + eps) * gamma + beta


# ----------------------------------------------------------------------------
# Pallas kernel: whole pre-norm decoder layer for one block of batch elements
# ----------------------------------------------------------------------------
def _decoder_layer_kernel(
    tgt_ref, mem_ref,
    # self-attention params
    wqkv_s_ref, bqkv_s_ref, bias_kv_s_ref, wo_s_ref, bo_s_ref,
    # cross-attention params
    wq_c_ref, bq_c_ref, wkv_c_ref, bkv_c_ref, bias_kv_c_ref, wo_c_ref, bo_c_ref,
    # feed-forward params
    w1_ref, b1_ref, w2_ref, b2_ref,
    # layer norms (rows: norm1, norm2, norm3)
    ln_g_ref, ln_b_ref,
    # outputs
    out_ref, tgt_attn_ref, src_attn_ref,
    *, n_head):
    f32, bf16 = jnp.float32, jnp.bfloat16
    H = n_head
    x0 = tgt_ref[...]                          # (Bb, T, E) f32
    mem = mem_ref[...]                         # (Bb, S, E) f32
    Bb, T, E = x0.shape
    S = mem.shape[1]
    dh = E // H

    def layer_norm(x, row):
        g = ln_g_ref[row:row + 1, :]           # (1, E)
        b = ln_b_ref[row:row + 1, :]
        mu = jnp.mean(x, axis=-1, keepdims=True)
        var = jnp.mean(jnp.square(x - mu), axis=-1, keepdims=True)
        return (x - mu) * lax.rsqrt(var + 1e-5) * g + b

    def split_heads(x2d, Bx, Tx, col0):
        """(Bx*Tx, >=col0+E) f32 -> (H*Bx, Tx, dh); batch index = h*Bx + b."""
        parts = [
            x2d[:, col0 + h * dh: col0 + (h + 1) * dh].reshape(1, Bx, Tx, dh)
            for h in range(H)]
        return jnp.concatenate(parts, axis=0).reshape(H * Bx, Tx, dh)

    def merge_heads(x4):
        """(H, Bx, Tx, dh) -> (Bx*Tx, H*dh = E), head-major columns."""
        _, Bx, Tx, d = x4.shape
        return jnp.concatenate(
            [x4[h].reshape(Bx * Tx, d) for h in range(H)], axis=-1)

    SCORE = (((2,), (2,)), ((0,), (0,)))       # (BH,Tq,d)x(BH,Tk,d)->(BH,Tq,Tk)
    CTX = (((2,), (1,)), ((0,), (0,)))         # (BH,Tq,Tk)x(BH,Tk,d)->(BH,Tq,d)

    def attention(qh, kh, vh, bias_kv_ref, wo_ref, bo_ref, attn_ref):
        """qh/kh/vh: (H*Bb, T*, dh) f32.  Writes the head-averaged attention
        (lane-dense padded slab) to attn_ref and returns (Bb, Tq, E) f32."""
        Tq, Tk = qh.shape[1], kh.shape[1]
        BH = H * Bb
        bias_k = bias_kv_ref[0]                # (H, dh) f32
        bias_v = bias_kv_ref[1]                # (H, dh) f32

        s_main = lax.dot_general(qh.astype(bf16), kh.astype(bf16), SCORE,
                                 preferred_element_type=f32)         # (BH,Tq,Tk)
        q4 = qh.reshape(H, Bb, Tq, dh)
        s_bias = jnp.sum(q4 * bias_k[:, None, None, :], axis=-1,
                         keepdims=True).reshape(BH, Tq, 1)           # (BH,Tq,1)

        m = jnp.maximum(jnp.max(s_main, axis=-1, keepdims=True), s_bias)
        p_main = jnp.exp(s_main - m)
        p_bias = jnp.exp(s_bias - m)
        # exact reciprocal so the returned attention rows sum to 1
        inv = 1.0 / (jnp.sum(p_main, axis=-1, keepdims=True) + p_bias)
        a_main = p_main * inv                                        # (BH,Tq,Tk)
        a_bias = p_bias * inv                                        # (BH,Tq,1)

        ctx = lax.dot_general(a_main.astype(bf16), vh.astype(bf16), CTX,
                              preferred_element_type=f32)            # (BH,Tq,dh)
        ctx = (ctx.reshape(H, Bb, Tq, dh)
               + a_bias.reshape(H, Bb, Tq, 1) * bias_v[:, None, None, :])
        ctx2d = merge_heads(ctx).astype(bf16)                        # (Bb*Tq, E)

        out = (jnp.dot(ctx2d, wo_ref[...], preferred_element_type=f32)
               + bo_ref[...]).reshape(Bb, Tq, E)

        inv_h = 1.0 / H
        am = jnp.sum(a_main.reshape(H, Bb, Tq, Tk), axis=0) * inv_h  # (Bb,Tq,Tk)
        ab = jnp.sum(a_bias.reshape(H, Bb, Tq, 1), axis=0) * inv_h   # (Bb,Tq,1)
        pad = attn_ref.shape[-1] - (Tk + 1)
        pieces = [am, ab]
        if pad > 0:
            pieces.append(jnp.zeros((Bb, Tq, pad), f32))
        attn_ref[...] = jnp.concatenate(pieces, axis=-1)             # lane-dense
        return out

    # ---- self-attention (pre-norm; q = k = v = LN1(x0)) ----------------------
    n1 = layer_norm(x0, 0)                                           # (Bb,T,E)
    qkv = (jnp.dot(n1.reshape(Bb * T, E).astype(bf16), wqkv_s_ref[...],
                   preferred_element_type=f32) + bqkv_s_ref[...])    # (Bb*T,3E)
    qh = split_heads(qkv, Bb, T, 0)
    kh = split_heads(qkv, Bb, T, E)
    vh = split_heads(qkv, Bb, T, 2 * E)
    sa_out = attention(qh, kh, vh, bias_kv_s_ref, wo_s_ref, bo_s_ref,
                       tgt_attn_ref)
    x1 = x0 + sa_out

    # ---- cross-attention (residual onto the normalized value, as in torch) --
    x2 = layer_norm(x1, 1)
    q_c = (jnp.dot(x2.reshape(Bb * T, E).astype(bf16), wq_c_ref[...],
                   preferred_element_type=f32) + bq_c_ref[...])      # (Bb*T,E)
    kv_c = (jnp.dot(mem.reshape(Bb * S, E).astype(bf16), wkv_c_ref[...],
                    preferred_element_type=f32) + bkv_c_ref[...])    # (Bb*S,2E)
    qh_c = split_heads(q_c, Bb, T, 0)
    kh_c = split_heads(kv_c, Bb, S, 0)
    vh_c = split_heads(kv_c, Bb, S, E)
    ca_out = attention(qh_c, kh_c, vh_c, bias_kv_c_ref, wo_c_ref, bo_c_ref,
                       src_attn_ref)
    x3 = x2 + ca_out

    # ---- feed-forward (ReLU), residual onto the normalized value ------------
    x4 = layer_norm(x3, 2)
    h = jnp.maximum(
        jnp.dot(x4.reshape(Bb * T, E).astype(bf16), w1_ref[...],
                preferred_element_type=f32) + b1_ref[...], 0.0)
    ff = (jnp.dot(h.astype(bf16), w2_ref[...], preferred_element_type=f32)
          + b2_ref[...])
    out_ref[...] = x4 + ff.reshape(Bb, T, E)


# ----------------------------------------------------------------------------
# wrapper
# ----------------------------------------------------------------------------
def _round_up(x, m):
    return ((x + m - 1) // m) * m


def _vmem_limit_bytes():
    cap = 128 * 1024 * 1024
    try:
        cap = int(pltpu.get_tpu_info().vmem_capacity_bytes)
    except Exception:
        pass
    # ~75% of physical VMEM, clamped (≈96 MiB on v5e/v6e, ≈48 MiB on v7x)
    return int(min(max(cap * 3 // 4, 32 * 1024 * 1024), 112 * 1024 * 1024))


def _choose_block_b(B, T, S, E, F, H, TP, SP, vmem_limit):
    # bf16 weights held once (single-buffered) + f32 biases / norms
    weight_bytes = 2 * (3 * E * E + 4 * E * E + 2 * E * E + 2 * E * F)
    weight_bytes += 4 * (12 * E + F + 4 * E)
    budget = max(vmem_limit - weight_bytes, vmem_limit // 4)
    # rough per-batch-element VMEM working set (bytes, f32)
    per_b = 4 * (
        2 * (2 * T * E + S * E + T * (TP + SP))        # blocked I/O (double-buf)
        + 6 * T * E + 3 * S * E                        # projections / ctx / resid
        + 3 * H * T * (T + 1) + 3 * H * T * (S + 1)    # scores / probs / weights
        + 2 * T * F)                                   # FFN hidden
    divisors = [d for d in range(1, B + 1) if B % d == 0]
    fit = [d for d in divisors if d * per_b <= budget] or [1]
    multi = [d for d in fit if B // d >= 2]            # keep >=2 grid steps
    return max(multi) if multi else max(fit)


def decoder_layer(tgt, memory, params, n_head, block_b=None):
    """tgt: (T,B,E), memory: (S,B,E) ->
       (out (T,B,E), tgt_attn (B,T,T+1), src_attn (B,T,S+1))."""
    T, B, E = tgt.shape
    S = memory.shape[0]
    F = params["w1"].shape[1]
    H = n_head
    assert E % H == 0
    dh = E // H
    scale = 1.0 / float(np.sqrt(dh))
    TP = _round_up(T + 1, 128)                 # lane-dense attn-weight widths
    SP = _round_up(S + 1, 128)

    vmem_limit = _vmem_limit_bytes()
    if block_b is None:
        block_b = _choose_block_b(B, T, S, E, F, H, TP, SP, vmem_limit)
    assert B % block_b == 0
    grid = (B // block_b,)

    x = jnp.transpose(tgt, (1, 0, 2)).astype(jnp.float32)     # (B, T, E)
    mem = jnp.transpose(memory, (1, 0, 2)).astype(jnp.float32)

    f32, bf16 = jnp.float32, jnp.bfloat16
    sp, cp = params["self_attn"], params["cross_attn"]

    def bias_kv(p):                                            # (2, H, dh)
        return jnp.stack([p["bias_k"].reshape(H, dh),
                          p["bias_v"].reshape(H, dh)]).astype(f32)

    flat = [
        # self-attention: fused (E,3E) qkv slab, 1/sqrt(dh) folded into q
        jnp.concatenate([sp["wq"] * scale, sp["wk"], sp["wv"]], axis=1).astype(bf16),
        jnp.concatenate([sp["bq"] * scale, sp["bk"], sp["bv"]])[None, :].astype(f32),
        bias_kv(sp),
        sp["wo"].astype(bf16),
        sp["bo"][None, :].astype(f32),
        # cross-attention: q slab + fused (E,2E) kv slab
        (cp["wq"] * scale).astype(bf16),
        (cp["bq"] * scale)[None, :].astype(f32),
        jnp.concatenate([cp["wk"], cp["wv"]], axis=1).astype(bf16),
        jnp.concatenate([cp["bk"], cp["bv"]])[None, :].astype(f32),
        bias_kv(cp),
        cp["wo"].astype(bf16),
        cp["bo"][None, :].astype(f32),
        # feed-forward
        params["w1"].astype(bf16),
        params["b1"][None, :].astype(f32),
        params["w2"].astype(bf16),
        params["b2"][None, :].astype(f32),
        # layer norms
        params["ln_gamma"].astype(f32),
        params["ln_beta"].astype(f32),
    ]

    def build_call(single_buffer_weights):
        def const_spec(shape):
            nd = len(shape)
            imap = lambda i, _nd=nd: (0,) * _nd
            if single_buffer_weights:
                # weights never change across grid steps -> one VMEM buffer
                return pl.BlockSpec(shape, imap, pipeline_mode=pl.Buffered(1))
            return pl.BlockSpec(shape, imap)

        in_specs = [
            pl.BlockSpec((block_b, T, E), lambda i: (i, 0, 0)),   # tgt block
            pl.BlockSpec((block_b, S, E), lambda i: (i, 0, 0)),   # memory block
        ] + [const_spec(a.shape) for a in flat]

        out_specs = (
            pl.BlockSpec((block_b, T, E), lambda i: (i, 0, 0)),
            pl.BlockSpec((block_b, T, TP), lambda i: (i, 0, 0)),
            pl.BlockSpec((block_b, T, SP), lambda i: (i, 0, 0)),
        )
        out_shape = (
            jax.ShapeDtypeStruct((B, T, E), f32),
            jax.ShapeDtypeStruct((B, T, TP), f32),
            jax.ShapeDtypeStruct((B, T, SP), f32),
        )
        return pl.pallas_call(
            functools.partial(_decoder_layer_kernel, n_head=n_head),
            out_shape=out_shape,
            grid=grid,
            in_specs=in_specs,
            out_specs=out_specs,
            compiler_params=pltpu.CompilerParams(
                dimension_semantics=("parallel",),     # batch blocks independent
                vmem_limit_bytes=vmem_limit),
        )

    try:
        res = build_call(True)(x, mem, *flat)
        jax.block_until_ready(res)
    except Exception:
        # fallback if single-buffered pipeline_mode is unavailable on this jax
        res = build_call(False)(x, mem, *flat)
    out_bte, ta_p, sa_p = res

    tgt_attn = ta_p[:, :, :T + 1]                 # slice off lane padding
    src_attn = sa_p[:, :, :S + 1]
    return jnp.transpose(out_bte, (1, 0, 2)), tgt_attn, src_attn


# ----------------------------------------------------------------------------
# pure-JAX reference (mirrors torch pre-norm semantics) for a correctness check
# ----------------------------------------------------------------------------
def _ref_mha(q_in, kv_in, p, n_head):
    B, Tq, E = q_in.shape
    Tk = kv_in.shape[1]
    dh = E // n_head
    scale = 1.0 / float(np.sqrt(dh))
    q = (q_in @ p["wq"] + p["bq"]) * scale
    k = kv_in @ p["wk"] + p["bk"]
    v = kv_in @ p["wv"] + p["bv"]
    k = jnp.concatenate([k, jnp.broadcast_to(p["bias_k"], (B, 1, E))], axis=1)
    v = jnp.concatenate([v, jnp.broadcast_to(p["bias_v"], (B, 1, E))], axis=1)
    qh = q.reshape(B, Tq, n_head, dh)
    kh = k.reshape(B, Tk + 1, n_head, dh)
    vh = v.reshape(B, Tk + 1, n_head, dh)
    s = jnp.einsum("bthd,bshd->bhts", qh, kh)
    a = jax.nn.softmax(s, axis=-1)
    ctx = jnp.einsum("bhts,bshd->bthd", a, vh).reshape(B, Tq, E)
    return ctx @ p["wo"] + p["bo"], a.mean(axis=1)


def reference(tgt, memory, params, n_head):
    x = jnp.transpose(tgt, (1, 0, 2))
    mem = jnp.transpose(memory, (1, 0, 2))
    g, b = params["ln_gamma"], params["ln_beta"]
    n1 = _layernorm(x, g[0], b[0])
    sa, tgt_attn = _ref_mha(n1, n1, params["self_attn"], n_head)
    x = x + sa
    x = _layernorm(x, g[1], b[1])
    ca, src_attn = _ref_mha(x, mem, params["cross_attn"], n_head)
    x = x + ca
    x = _layernorm(x, g[2], b[2])
    h = jnp.maximum(x @ params["w1"] + params["b1"], 0.0)
    ff = h @ params["w2"] + params["b2"]
    x = x + ff
    return jnp.transpose(x, (1, 0, 2)), tgt_attn, src_attn


# ----------------------------------------------------------------------------
# deterministic parameter init (mirrors module __init__ shapes / std formula)
# ----------------------------------------------------------------------------
def make_params(key, d_model, dim_ff, init_scale=256):
    E, F = d_model, dim_ff

    def std2(in_d, out_d):
        return (2.0 / (in_d + init_scale * out_d)) ** 0.5

    def nrm(k, shape, std):
        return std * jax.random.normal(k, shape, dtype=jnp.float32)

    def attn_params(k):
        ks = jax.random.split(k, 6)
        return dict(
            wq=nrm(ks[0], (E, E), std2(E, E)),
            wk=nrm(ks[1], (E, E), std2(E, E)),
            wv=nrm(ks[2], (E, E), std2(E, E)),
            bq=jnp.zeros((E,), jnp.float32),            # in_proj_bias -> 0
            bk=jnp.zeros((E,), jnp.float32),
            bv=jnp.zeros((E,), jnp.float32),
            bias_k=nrm(ks[3], (E,), std2(1, E)),
            bias_v=nrm(ks[4], (E,), std2(1, E)),
            wo=nrm(ks[5], (E, E), std2(E, E)),
            bo=jnp.zeros((E,), jnp.float32),            # out_proj.bias -> 0
        )

    keys = jax.random.split(key, 4)
    return dict(
        self_attn=attn_params(keys[0]),
        cross_attn=attn_params(keys[1]),
        w1=nrm(keys[2], (E, F), std2(F, E)),            # linear1 (transposed)
        b1=jnp.zeros((F,), jnp.float32),
        w2=nrm(keys[3], (F, E), std2(E, F)),            # linear2 (transposed)
        b2=jnp.zeros((E,), jnp.float32),
        ln_gamma=jnp.ones((3, E), jnp.float32),         # norm1..norm3 (norm4 unused)
        ln_beta=jnp.zeros((3, E), jnp.float32),
    )


if __name__ == "__main__":
    B, T, S, E, H, FF = 4, 8, 16, 128, 4, 256

    root = jax.random.PRNGKey(0)
    k_p, k_tgt, k_mem = jax.random.split(root, 3)
    params = make_params(k_p, d_model=E, dim_ff=FF)
    tgt = jax.random.normal(k_tgt, (T, B, E), dtype=jnp.float32)
    memory = jax.random.normal(k_mem, (S, B, E), dtype=jnp.float32)

    out, tgt_attn, src_attn = decoder_layer(tgt, memory, params, n_head=H)
    jax.block_until_ready((out, tgt_attn, src_attn))

    ref_out, ref_ta, ref_sa = reference(tgt, memory, params, n_head=H)
    assert out.shape == (T, B, E)
    assert tgt_attn.shape == (B, T, T + 1) and src_attn.shape == (B, T, S + 1)
    # bf16 MXU inputs -> looser tolerance vs. the f32 reference
    assert np.allclose(np.asarray(out), np.asarray(ref_out), atol=2e-2, rtol=2e-2)
    assert np.allclose(np.asarray(tgt_attn), np.asarray(ref_ta), atol=2e-2, rtol=2e-2)
    assert np.allclose(np.asarray(src_attn), np.asarray(ref_sa), atol=2e-2, rtol=2e-2)

    print("KERNEL_OK")
</pallas_src>

<mosaic_0001>
module attributes {stable_mosaic.version = 11 : i64} {
  func.func @_decoder_layer_kernel(%arg0: i32, %arg1: memref<2x8x128xf32, #tpu.memory_space<vmem>>, %arg2: memref<2x16x128xf32, #tpu.memory_space<vmem>>, %arg3: memref<128x384xbf16, #tpu.memory_space<vmem>>, %arg4: memref<1x384xf32, #tpu.memory_space<vmem>>, %arg5: memref<2x4x32xf32, #tpu.memory_space<vmem>>, %arg6: memref<128x128xbf16, #tpu.memory_space<vmem>>, %arg7: memref<1x128xf32, #tpu.memory_space<vmem>>, %arg8: memref<128x128xbf16, #tpu.memory_space<vmem>>, %arg9: memref<1x128xf32, #tpu.memory_space<vmem>>, %arg10: memref<128x256xbf16, #tpu.memory_space<vmem>>, %arg11: memref<1x256xf32, #tpu.memory_space<vmem>>, %arg12: memref<2x4x32xf32, #tpu.memory_space<vmem>>, %arg13: memref<128x128xbf16, #tpu.memory_space<vmem>>, %arg14: memref<1x128xf32, #tpu.memory_space<vmem>>, %arg15: memref<128x256xbf16, #tpu.memory_space<vmem>>, %arg16: memref<1x256xf32, #tpu.memory_space<vmem>>, %arg17: memref<256x128xbf16, #tpu.memory_space<vmem>>, %arg18: memref<1x128xf32, #tpu.memory_space<vmem>>, %arg19: memref<3x128xf32, #tpu.memory_space<vmem>>, %arg20: memref<3x128xf32, #tpu.memory_space<vmem>>, %arg21: memref<2x8x128xf32, #tpu.memory_space<vmem>>, %arg22: memref<2x8x128xf32, #tpu.memory_space<vmem>>, %arg23: memref<2x8x128xf32, #tpu.memory_space<vmem>>) attributes {dimension_semantics = [#tpu.dimension_semantics<parallel>], iteration_bounds = array<i64: 2>, scalar_prefetch = 0 : i64, scratch_operands = 0 : i64, tpu.core_type = #tpu.core_type<tc>, window_params = [{transform_indices = @transform_0, window_bounds = array<i64: 2, 8, 128>}, {transform_indices = @transform_1, window_bounds = array<i64: 2, 16, 128>}, {pipeline_mode = #tpu.pipeline_mode<synchronous>, transform_indices = @transform_2, window_bounds = array<i64: 128, 384>}, {pipeline_mode = #tpu.pipeline_mode<synchronous>, transform_indices = @transform_3, window_bounds = array<i64: 1, 384>}, {pipeline_mode = #tpu.pipeline_mode<synchronous>, transform_indices = @transform_4, window_bounds = array<i64: 2, 4, 32>}, {pipeline_mode = #tpu.pipeline_mode<synchronous>, transform_indices = @transform_5, window_bounds = array<i64: 128, 128>}, {pipeline_mode = #tpu.pipeline_mode<synchronous>, transform_indices = @transform_6, window_bounds = array<i64: 1, 128>}, {pipeline_mode = #tpu.pipeline_mode<synchronous>, transform_indices = @transform_7, window_bounds = array<i64: 128, 128>}, {pipeline_mode = #tpu.pipeline_mode<synchronous>, transform_indices = @transform_8, window_bounds = array<i64: 1, 128>}, {pipeline_mode = #tpu.pipeline_mode<synchronous>, transform_indices = @transform_9, window_bounds = array<i64: 128, 256>}, {pipeline_mode = #tpu.pipeline_mode<synchronous>, transform_indices = @transform_10, window_bounds = array<i64: 1, 256>}, {pipeline_mode = #tpu.pipeline_mode<synchronous>, transform_indices = @transform_11, window_bounds = array<i64: 2, 4, 32>}, {pipeline_mode = #tpu.pipeline_mode<synchronous>, transform_indices = @transform_12, window_bounds = array<i64: 128, 128>}, {pipeline_mode = #tpu.pipeline_mode<synchronous>, transform_indices = @transform_13, window_bounds = array<i64: 1, 128>}, {pipeline_mode = #tpu.pipeline_mode<synchronous>, transform_indices = @transform_14, window_bounds = array<i64: 128, 256>}, {pipeline_mode = #tpu.pipeline_mode<synchronous>, transform_indices = @transform_15, window_bounds = array<i64: 1, 256>}, {pipeline_mode = #tpu.pipeline_mode<synchronous>, transform_indices = @transform_16, window_bounds = array<i64: 256, 128>}, {pipeline_mode = #tpu.pipeline_mode<synchronous>, transform_indices = @transform_17, window_bounds = array<i64: 1, 128>}, {pipeline_mode = #tpu.pipeline_mode<synchronous>, transform_indices = @transform_18, window_bounds = array<i64: 3, 128>}, {pipeline_mode = #tpu.pipeline_mode<synchronous>, transform_indices = @transform_19, window_bounds = array<i64: 3, 128>}, {transform_indices = @transform_20, window_bounds = array<i64: 2, 8, 128>}, {transform_indices = @transform_21, window_bounds = array<i64: 2, 8, 128>}, {transform_indices = @transform_22, window_bounds = array<i64: 2, 8, 128>}]} {
    %c0 = arith.constant 0 : index
    %c0_0 = arith.constant 0 : index
    %c0_1 = arith.constant 0 : index
    %0 = vector.load %arg1[%c0, %c0_0, %c0_1] : memref<2x8x128xf32, #tpu.memory_space<vmem>>, vector<2x8x128xf32>
    %c0_2 = arith.constant 0 : index
    %c0_3 = arith.constant 0 : index
    %c0_4 = arith.constant 0 : index
    %1 = vector.load %arg2[%c0_2, %c0_3, %c0_4] : memref<2x16x128xf32, #tpu.memory_space<vmem>>, vector<2x16x128xf32>
    %c0_5 = arith.constant 0 : index
    %c0_6 = arith.constant 0 : index
    %2 = vector.load %arg19[%c0_5, %c0_6] : memref<3x128xf32, #tpu.memory_space<vmem>>, vector<1x128xf32>
    %c0_7 = arith.constant 0 : index
    %c0_8 = arith.constant 0 : index
    %3 = vector.load %arg20[%c0_7, %c0_8] : memref<3x128xf32, #tpu.memory_space<vmem>>, vector<1x128xf32>
    %cst = arith.constant dense<0.000000e+00> : vector<2x8xf32>
    %4 = vector.multi_reduction <add>, %0, %cst [2] : vector<2x8x128xf32> to vector<2x8xf32>
    %5 = vector.shape_cast %4 : vector<2x8xf32> to vector<2x8x1xf32>
    %cst_9 = arith.constant 1.280000e+02 : f32
    %6 = vector.broadcast %cst_9 : f32 to vector<2x8x1xf32>
    %7 = arith.divf %5, %6 : vector<2x8x1xf32>
    %8 = vector.broadcast %7 : vector<2x8x1xf32> to vector<2x8x128xf32>
    %9 = arith.subf %0, %8 : vector<2x8x128xf32>
    %10 = arith.mulf %9, %9 : vector<2x8x128xf32>
    %cst_10 = arith.constant dense<0.000000e+00> : vector<2x8xf32>
    %11 = vector.multi_reduction <add>, %10, %cst_10 [2] : vector<2x8x128xf32> to vector<2x8xf32>
    %12 = vector.shape_cast %11 : vector<2x8xf32> to vector<2x8x1xf32>
    %cst_11 = arith.constant 1.280000e+02 : f32
    %13 = vector.broadcast %cst_11 : f32 to vector<2x8x1xf32>
    %14 = arith.divf %12, %13 : vector<2x8x1xf32>
    %15 = vector.broadcast %7 : vector<2x8x1xf32> to vector<2x8x128xf32>
    %16 = arith.subf %0, %15 : vector<2x8x128xf32>
    %cst_12 = arith.constant 9.99999974E-6 : f32
    %17 = vector.broadcast %cst_12 : f32 to vector<2x8x1xf32>
    %18 = arith.addf %14, %17 : vector<2x8x1xf32>
    %19 = math.rsqrt %18 : vector<2x8x1xf32>
    %20 = vector.broadcast %19 : vector<2x8x1xf32> to vector<2x8x128xf32>
    %21 = arith.mulf %16, %20 : vector<2x8x128xf32>
    %22 = vector.shape_cast %2 : vector<1x128xf32> to vector<1x1x128xf32>
    %23 = vector.broadcast %22 : vector<1x1x128xf32> to vector<2x8x128xf32>
    %24 = arith.mulf %21, %23 : vector<2x8x128xf32>
    %25 = vector.shape_cast %3 : vector<1x128xf32> to vector<1x1x128xf32>
    %26 = vector.broadcast %25 : vector<1x1x128xf32> to vector<2x8x128xf32>
    %27 = arith.addf %24, %26 : vector<2x8x128xf32>
    %28 = vector.shape_cast %27 : vector<2x8x128xf32> to vector<16x128xf32>
    %29 = arith.truncf %28 : vector<16x128xf32> to vector<16x128xbf16>
    %c0_13 = arith.constant 0 : index
    %c0_14 = arith.constant 0 : index
    %30 = vector.load %arg3[%c0_13, %c0_14] : memref<128x384xbf16, #tpu.memory_space<vmem>>, vector<128x384xbf16>
    %cst_15 = arith.constant dense<0.000000e+00> : vector<16x384xf32>
    %31 = tpu.matmul %29, %30, %cst_15 {dimension_numbers = #tpu.dot_dimension_numbers<[1], [0], [0], [1], [0, 0, 1, 1], [], []>} : vector<16x128xbf16>, vector<128x384xbf16>, vector<16x384xf32> -> vector<16x384xf32>
    %c0_16 = arith.constant 0 : index
    %c0_17 = arith.constant 0 : index
    %32 = vector.load %arg4[%c0_16, %c0_17] : memref<1x384xf32, #tpu.memory_space<vmem>>, vector<1x384xf32>
    %33 = vector.broadcast %32 : vector<1x384xf32> to vector<16x384xf32>
    %34 = arith.addf %31, %33 : vector<16x384xf32>
    %35 = vector.extract_strided_slice %34 {offsets = [0, 0], sizes = [16, 32], strides = [1, 1]} : vector<16x384xf32> to vector<16x32xf32>
    %36 = vector.shape_cast %35 : vector<16x32xf32> to vector<1x2x8x32xf32>
    %37 = vector.extract_strided_slice %34 {offsets = [0, 32], sizes = [16, 32], strides = [1, 1]} : vector<16x384xf32> to vector<16x32xf32>
    %38 = vector.shape_cast %37 : vector<16x32xf32> to vector<1x2x8x32xf32>
    %39 = vector.extract_strided_slice %34 {offsets = [0, 64], sizes = [16, 32], strides = [1, 1]} : vector<16x384xf32> to vector<16x32xf32>
    %40 = vector.shape_cast %39 : vector<16x32xf32> to vector<1x2x8x32xf32>
    %41 = vector.extract_strided_slice %34 {offsets = [0, 96], sizes = [16, 32], strides = [1, 1]} : vector<16x384xf32> to vector<16x32xf32>
    %42 = vector.shape_cast %41 : vector<16x32xf32> to vector<1x2x8x32xf32>
    %43 = tpu.concatenate %36, %38, %40, %42 in 0 : vector<1x2x8x32xf32>, vector<1x2x8x32xf32>, vector<1x2x8x32xf32>, vector<1x2x8x32xf32> -> vector<4x2x8x32xf32>
    %44 = vector.shape_cast %43 : vector<4x2x8x32xf32> to vector<8x8x32xf32>
    %45 = vector.extract_strided_slice %34 {offsets = [0, 128], sizes = [16, 32], strides = [1, 1]} : vector<16x384xf32> to vector<16x32xf32>
    %46 = vector.shape_cast %45 : vector<16x32xf32> to vector<1x2x8x32xf32>
    %47 = vector.extract_strided_slice %34 {offsets = [0, 160], sizes = [16, 32], strides = [1, 1]} : vector<16x384xf32> to vector<16x32xf32>
    %48 = vector.shape_cast %47 : vector<16x32xf32> to vector<1x2x8x32xf32>
    %49 = vector.extract_strided_slice %34 {offsets = [0, 192], sizes = [16, 32], strides = [1, 1]} : vector<16x384xf32> to vector<16x32xf32>
    %50 = vector.shape_cast %49 : vector<16x32xf32> to vector<1x2x8x32xf32>
    %51 = vector.extract_strided_slice %34 {offsets = [0, 224], sizes = [16, 32], strides = [1, 1]} : vector<16x384xf32> to vector<16x32xf32>
    %52 = vector.shape_cast %51 : vector<16x32xf32> to vector<1x2x8x32xf32>
    %53 = tpu.concatenate %46, %48, %50, %52 in 0 : vector<1x2x8x32xf32>, vector<1x2x8x32xf32>, vector<1x2x8x32xf32>, vector<1x2x8x32xf32> -> vector<4x2x8x32xf32>
    %54 = vector.shape_cast %53 : vector<4x2x8x32xf32> to vector<8x8x32xf32>
    %55 = vector.extract_strided_slice %34 {offsets = [0, 256], sizes = [16, 32], strides = [1, 1]} : vector<16x384xf32> to vector<16x32xf32>
    %56 = vector.shape_cast %55 : vector<16x32xf32> to vector<1x2x8x32xf32>
    %57 = vector.extract_strided_slice %34 {offsets = [0, 288], sizes = [16, 32], strides = [1, 1]} : vector<16x384xf32> to vector<16x32xf32>
    %58 = vector.shape_cast %57 : vector<16x32xf32> to vector<1x2x8x32xf32>
    %59 = vector.extract_strided_slice %34 {offsets = [0, 320], sizes = [16, 32], strides = [1, 1]} : vector<16x384xf32> to vector<16x32xf32>
    %60 = vector.shape_cast %59 : vector<16x32xf32> to vector<1x2x8x32xf32>
    %61 = vector.extract_strided_slice %34 {offsets = [0, 352], sizes = [16, 32], strides = [1, 1]} : vector<16x384xf32> to vector<16x32xf32>
    %62 = vector.shape_cast %61 : vector<16x32xf32> to vector<1x2x8x32xf32>
    %63 = tpu.concatenate %56, %58, %60, %62 in 0 : vector<1x2x8x32xf32>, vector<1x2x8x32xf32>, vector<1x2x8x32xf32>, vector<1x2x8x32xf32> -> vector<4x2x8x32xf32>
    %64 = vector.shape_cast %63 : vector<4x2x8x32xf32> to vector<8x8x32xf32>
    %c0_18 = arith.constant 0 : index
    %c0_19 = arith.constant 0 : index
    %c0_20 = arith.constant 0 : index
    %65 = vector.load %arg5[%c0_18, %c0_19, %c0_20] : memref<2x4x32xf32, #tpu.memory_space<vmem>>, vector<1x4x32xf32>
    %66 = vector.shape_cast %65 : vector<1x4x32xf32> to vector<4x32xf32>
    %c1 = arith.constant 1 : index
    %c0_21 = arith.constant 0 : index
    %c0_22 = arith.constant 0 : index
    %67 = vector.load %arg5[%c1, %c0_21, %c0_22] : memref<2x4x32xf32, #tpu.memory_space<vmem>>, vector<1x4x32xf32>
    %68 = vector.shape_cast %67 : vector<1x4x32xf32> to vector<4x32xf32>
    %69 = arith.truncf %44 : vector<8x8x32xf32> to vector<8x8x32xbf16>
    %70 = arith.truncf %54 : vector<8x8x32xf32> to vector<8x8x32xbf16>
    %cst_23 = arith.constant dense<0.000000e+00> : vector<8x8x8xf32>
    %71 = tpu.matmul %69, %70, %cst_23 {dimension_numbers = #tpu.dot_dimension_numbers<[2], [2], [1], [1], [0, 0, 0, 1, 1, 1], [0], [0]>} : vector<8x8x32xbf16>, vector<8x8x32xbf16>, vector<8x8x8xf32> -> vector<8x8x8xf32>
    %72 = vector.shape_cast %44 : vector<8x8x32xf32> to vector<4x2x8x32xf32>
    %73 = vector.shape_cast %66 : vector<4x32xf32> to vector<4x1x1x32xf32>
    %74 = vector.broadcast %73 : vector<4x1x1x32xf32> to vector<4x2x8x32xf32>
    %75 = arith.mulf %72, %74 : vector<4x2x8x32xf32>
    %cst_24 = arith.constant dense<0.000000e+00> : vector<4x2x8xf32>
    %76 = vector.multi_reduction <add>, %75, %cst_24 [3] : vector<4x2x8x32xf32> to vector<4x2x8xf32>
    %77 = vector.shape_cast %76 : vector<4x2x8xf32> to vector<4x2x8x1xf32>
    %78 = vector.shape_cast %77 : vector<4x2x8x1xf32> to vector<8x8x1xf32>
    %cst_25 = arith.constant dense<0xFF800000> : vector<8x8xf32>
    %79 = vector.multi_reduction <maximumf>, %71, %cst_25 [2] : vector<8x8x8xf32> to vector<8x8xf32>
    %80 = vector.shape_cast %79 : vector<8x8xf32> to vector<8x8x1xf32>
    %81 = arith.maximumf %80, %78 : vector<8x8x1xf32>
    %82 = vector.broadcast %81 : vector<8x8x1xf32> to vector<8x8x8xf32>
    %83 = arith.subf %71, %82 : vector<8x8x8xf32>
    %84 = math.exp %83 : vector<8x8x8xf32>
    %85 = arith.subf %78, %81 : vector<8x8x1xf32>
    %86 = math.exp %85 : vector<8x8x1xf32>
    %cst_26 = arith.constant dense<0.000000e+00> : vector<8x8xf32>
    %87 = vector.multi_reduction <add>, %84, %cst_26 [2] : vector<8x8x8xf32> to vector<8x8xf32>
    %88 = vector.shape_cast %87 : vector<8x8xf32> to vector<8x8x1xf32>
    %89 = arith.addf %88, %86 : vector<8x8x1xf32>
    %cst_27 = arith.constant 1.000000e+00 : f32
    %90 = vector.broadcast %cst_27 : f32 to vector<8x8x1xf32>
    %91 = arith.divf %90, %89 : vector<8x8x1xf32>
    %92 = vector.broadcast %91 : vector<8x8x1xf32> to vector<8x8x8xf32>
    %93 = arith.mulf %84, %92 : vector<8x8x8xf32>
    %94 = arith.mulf %86, %91 : vector<8x8x1xf32>
    %95 = arith.truncf %93 : vector<8x8x8xf32> to vector<8x8x8xbf16>
    %96 = arith.truncf %64 : vector<8x8x32xf32> to vector<8x8x32xbf16>
    %cst_28 = arith.constant dense<0.000000e+00> : vector<8x8x32xf32>
    %97 = tpu.matmul %95, %96, %cst_28 {dimension_numbers = #tpu.dot_dimension_numbers<[2], [1], [1], [2], [0, 0, 0, 1, 1, 2], [0], [0]>} : vector<8x8x8xbf16>, vector<8x8x32xbf16>, vector<8x8x32xf32> -> vector<8x8x32xf32>
    %98 = vector.shape_cast %97 : vector<8x8x32xf32> to vector<4x2x8x32xf32>
    %99 = vector.shape_cast %94 : vector<8x8x1xf32> to vector<4x2x8x1xf32>
    %100 = vector.shape_cast %68 : vector<4x32xf32> to vector<4x1x1x32xf32>
    %101 = vector.broadcast %99 : vector<4x2x8x1xf32> to vector<4x2x8x32xf32>
    %102 = vector.broadcast %100 : vector<4x1x1x32xf32> to vector<4x2x8x32xf32>
    %103 = arith.mulf %101, %102 : vector<4x2x8x32xf32>
    %104 = arith.addf %98, %103 : vector<4x2x8x32xf32>
    %105 = vector.extract_strided_slice %104 {offsets = [0, 0, 0, 0], sizes = [1, 2, 8, 32], strides = [1, 1, 1, 1]} : vector<4x2x8x32xf32> to vector<1x2x8x32xf32>
    %106 = vector.shape_cast %105 : vector<1x2x8x32xf32> to vector<2x8x32xf32>
    %107 = vector.shape_cast %106 : vector<2x8x32xf32> to vector<16x32xf32>
    %108 = vector.extract_strided_slice %104 {offsets = [1, 0, 0, 0], sizes = [1, 2, 8, 32], strides = [1, 1, 1, 1]} : vector<4x2x8x32xf32> to vector<1x2x8x32xf32>
    %109 = vector.shape_cast %108 : vector<1x2x8x32xf32> to vector<2x8x32xf32>
    %110 = vector.shape_cast %109 : vector<2x8x32xf32> to vector<16x32xf32>
    %111 = vector.extract_strided_slice %104 {offsets = [2, 0, 0, 0], sizes = [1, 2, 8, 32], strides = [1, 1, 1, 1]} : vector<4x2x8x32xf32> to vector<1x2x8x32xf32>
    %112 = vector.shape_cast %111 : vector<1x2x8x32xf32> to vector<2x8x32xf32>
    %113 = vector.shape_cast %112 : vector<2x8x32xf32> to vector<16x32xf32>
    %114 = vector.extract_strided_slice %104 {offsets = [3, 0, 0, 0], sizes = [1, 2, 8, 32], strides = [1, 1, 1, 1]} : vector<4x2x8x32xf32> to vector<1x2x8x32xf32>
    %115 = vector.shape_cast %114 : vector<1x2x8x32xf32> to vector<2x8x32xf32>
    %116 = vector.shape_cast %115 : vector<2x8x32xf32> to vector<16x32xf32>
    %117 = tpu.concatenate %107, %110, %113, %116 in 1 : vector<16x32xf32>, vector<16x32xf32>, vector<16x32xf32>, vector<16x32xf32> -> vector<16x128xf32>
    %118 = arith.truncf %117 : vector<16x128xf32> to vector<16x128xbf16>
    %c0_29 = arith.constant 0 : index
    %c0_30 = arith.constant 0 : index
    %119 = vector.load %arg6[%c0_29, %c0_30] : memref<128x128xbf16, #tpu.memory_space<vmem>>, vector<128x128xbf16>
    %cst_31 = arith.constant dense<0.000000e+00> : vector<16x128xf32>
    %120 = tpu.matmul %118, %119, %cst_31 {dimension_numbers = #tpu.dot_dimension_numbers<[1], [0], [0], [1], [0, 0, 1, 1], [], []>} : vector<16x128xbf16>, vector<128x128xbf16>, vector<16x128xf32> -> vector<16x128xf32>
    %c0_32 = arith.constant 0 : index
    %c0_33 = arith.constant 0 : index
    %121 = vector.load %arg7[%c0_32, %c0_33] : memref<1x128xf32, #tpu.memory_space<vmem>>, vector<1x128xf32>
    %122 = vector.broadcast %121 : vector<1x128xf32> to vector<16x128xf32>
    %123 = arith.addf %120, %122 : vector<16x128xf32>
    %124 = vector.shape_cast %123 : vector<16x128xf32> to vector<2x8x128xf32>
    %125 = vector.shape_cast %93 : vector<8x8x8xf32> to vector<4x2x8x8xf32>
    %cst_34 = arith.constant dense<0.000000e+00> : vector<2x8x8xf32>
    %126 = vector.multi_reduction <add>, %125, %cst_34 [0] : vector<4x2x8x8xf32> to vector<2x8x8xf32>
    %cst_35 = arith.constant 2.500000e-01 : f32
    %127 = vector.broadcast %cst_35 : f32 to vector<2x8x8xf32>
    %128 = arith.mulf %126, %127 : vector<2x8x8xf32>
    %129 = vector.shape_cast %94 : vector<8x8x1xf32> to vector<4x2x8x1xf32>
    %cst_36 = arith.constant dense<0.000000e+00> : vector<2x8x1xf32>
    %130 = vector.multi_reduction <add>, %129, %cst_36 [0] : vector<4x2x8x1xf32> to vector<2x8x1xf32>
    %cst_37 = arith.constant 2.500000e-01 : f32
    %131 = vector.broadcast %cst_37 : f32 to vector<2x8x1xf32>
    %132 = arith.mulf %130, %131 : vector<2x8x1xf32>
    %cst_38 = arith.constant 0.000000e+00 : f32
    %133 = vector.broadcast %cst_38 : f32 to vector<2x8x119xf32>
    %134 = tpu.concatenate %128, %132, %133 in 2 : vector<2x8x8xf32>, vector<2x8x1xf32>, vector<2x8x119xf32> -> vector<2x8x128xf32>
    %c0_39 = arith.constant 0 : index
    %c0_40 = arith.constant 0 : index
    %c0_41 = arith.constant 0 : index
    %135 = vector.load %arg22[%c0_39, %c0_40, %c0_41] : memref<2x8x128xf32, #tpu.memory_space<vmem>>, vector<2x8x128xf32>
    tpu.vector_store %arg22[%c0_39, %c0_40, %c0_41], %134 {strides = array<i32>} : memref<2x8x128xf32, #tpu.memory_space<vmem>>, vector<2x8x128xf32>,
    %136 = arith.addf %0, %124 : vector<2x8x128xf32>
    %c1_42 = arith.constant 1 : index
    %c0_43 = arith.constant 0 : index
    %137 = vector.load %arg19[%c1_42, %c0_43] : memref<3x128xf32, #tpu.memory_space<vmem>>, vector<1x128xf32>
    %c1_44 = arith.constant 1 : index
    %c0_45 = arith.constant 0 : index
    %138 = vector.load %arg20[%c1_44, %c0_45] : memref<3x128xf32, #tpu.memory_space<vmem>>, vector<1x128xf32>
    %cst_46 = arith.constant dense<0.000000e+00> : vector<2x8xf32>
    %139 = vector.multi_reduction <add>, %136, %cst_46 [2] : vector<2x8x128xf32> to vector<2x8xf32>
    %140 = vector.shape_cast %139 : vector<2x8xf32> to vector<2x8x1xf32>
    %cst_47 = arith.constant 1.280000e+02 : f32
    %141 = vector.broadcast %cst_47 : f32 to vector<2x8x1xf32>
    %142 = arith.divf %140, %141 : vector<2x8x1xf32>
    %143 = vector.broadcast %142 : vector<2x8x1xf32> to vector<2x8x128xf32>
    %144 = arith.subf %136, %143 : vector<2x8x128xf32>
    %145 = arith.mulf %144, %144 : vector<2x8x128xf32>
    %cst_48 = arith.constant dense<0.000000e+00> : vector<2x8xf32>
    %146 = vector.multi_reduction <add>, %145, %cst_48 [2] : vector<2x8x128xf32> to vector<2x8xf32>
    %147 = vector.shape_cast %146 : vector<2x8xf32> to vector<2x8x1xf32>
    %cst_49 = arith.constant 1.280000e+02 : f32
    %148 = vector.broadcast %cst_49 : f32 to vector<2x8x1xf32>
    %149 = arith.divf %147, %148 : vector<2x8x1xf32>
    %150 = vector.broadcast %142 : vector<2x8x1xf32> to vector<2x8x128xf32>
    %151 = arith.subf %136, %150 : vector<2x8x128xf32>
    %cst_50 = arith.constant 9.99999974E-6 : f32
    %152 = vector.broadcast %cst_50 : f32 to vector<2x8x1xf32>
    %153 = arith.addf %149, %152 : vector<2x8x1xf32>
    %154 = math.rsqrt %153 : vector<2x8x1xf32>
    %155 = vector.broadcast %154 : vector<2x8x1xf32> to vector<2x8x128xf32>
    %156 = arith.mulf %151, %155 : vector<2x8x128xf32>
    %157 = vector.shape_cast %137 : vector<1x128xf32> to vector<1x1x128xf32>
    %158 = vector.broadcast %157 : vector<1x1x128xf32> to vector<2x8x128xf32>
    %159 = arith.mulf %156, %158 : vector<2x8x128xf32>
    %160 = vector.shape_cast %138 : vector<1x128xf32> to vector<1x1x128xf32>
    %161 = vector.broadcast %160 : vector<1x1x128xf32> to vector<2x8x128xf32>
    %162 = arith.addf %159, %161 : vector<2x8x128xf32>
    %163 = vector.shape_cast %162 : vector<2x8x128xf32> to vector<16x128xf32>
    %164 = arith.truncf %163 : vector<16x128xf32> to vector<16x128xbf16>
    %c0_51 = arith.constant 0 : index
    %c0_52 = arith.constant 0 : index
    %165 = vector.load %arg8[%c0_51, %c0_52] : memref<128x128xbf16, #tpu.memory_space<vmem>>, vector<128x128xbf16>
    %cst_53 = arith.constant dense<0.000000e+00> : vector<16x128xf32>
    %166 = tpu.matmul %164, %165, %cst_53 {dimension_numbers = #tpu.dot_dimension_numbers<[1], [0], [0], [1], [0, 0, 1, 1], [], []>} : vector<16x128xbf16>, vector<128x128xbf16>, vector<16x128xf32> -> vector<16x128xf32>
    %c0_54 = arith.constant 0 : index
    %c0_55 = arith.constant 0 : index
    %167 = vector.load %arg9[%c0_54, %c0_55] : memref<1x128xf32, #tpu.memory_space<vmem>>, vector<1x128xf32>
    %168 = vector.broadcast %167 : vector<1x128xf32> to vector<16x128xf32>
    %169 = arith.addf %166, %168 : vector<16x128xf32>
    %170 = vector.shape_cast %1 : vector<2x16x128xf32> to vector<32x128xf32>
    %171 = arith.truncf %170 : vector<32x128xf32> to vector<32x128xbf16>
    %c0_56 = arith.constant 0 : index
    %c0_57 = arith.constant 0 : index
    %172 = vector.load %arg10[%c0_56, %c0_57] : memref<128x256xbf16, #tpu.memory_space<vmem>>, vector<128x256xbf16>
    %cst_58 = arith.constant dense<0.000000e+00> : vector<32x256xf32>
    %173 = tpu.matmul %171, %172, %cst_58 {dimension_numbers = #tpu.dot_dimension_numbers<[1], [0], [0], [1], [0, 0, 1, 1], [], []>} : vector<32x128xbf16>, vector<128x256xbf16>, vector<32x256xf32> -> vector<32x256xf32>
    %c0_59 = arith.constant 0 : index
    %c0_60 = arith.constant 0 : index
    %174 = vector.load %arg11[%c0_59, %c0_60] : memref<1x256xf32, #tpu.memory_space<vmem>>, vector<1x256xf32>
    %175 = vector.broadcast %174 : vector<1x256xf32> to vector<32x256xf32>
    %176 = arith.addf %173, %175 : vector<32x256xf32>
    %177 = vector.extract_strided_slice %169 {offsets = [0, 0], sizes = [16, 32], strides = [1, 1]} : vector<16x128xf32> to vector<16x32xf32>
    %178 = vector.shape_cast %177 : vector<16x32xf32> to vector<1x2x8x32xf32>
    %179 = vector.extract_strided_slice %169 {offsets = [0, 32], sizes = [16, 32], strides = [1, 1]} : vector<16x128xf32> to vector<16x32xf32>
    %180 = vector.shape_cast %179 : vector<16x32xf32> to vector<1x2x8x32xf32>
    %181 = vector.extract_strided_slice %169 {offsets = [0, 64], sizes = [16, 32], strides = [1, 1]} : vector<16x128xf32> to vector<16x32xf32>
    %182 = vector.shape_cast %181 : vector<16x32xf32> to vector<1x2x8x32xf32>
    %183 = vector.extract_strided_slice %169 {offsets = [0, 96], sizes = [16, 32], strides = [1, 1]} : vector<16x128xf32> to vector<16x32xf32>
    %184 = vector.shape_cast %183 : vector<16x32xf32> to vector<1x2x8x32xf32>
    %185 = tpu.concatenate %178, %180, %182, %184 in 0 : vector<1x2x8x32xf32>, vector<1x2x8x32xf32>, vector<1x2x8x32xf32>, vector<1x2x8x32xf32> -> vector<4x2x8x32xf32>
    %186 = vector.shape_cast %185 : vector<4x2x8x32xf32> to vector<8x8x32xf32>
    %187 = vector.extract_strided_slice %176 {offsets = [0, 0], sizes = [32, 32], strides = [1, 1]} : vector<32x256xf32> to vector<32x32xf32>
    %188 = vector.shape_cast %187 : vector<32x32xf32> to vector<1x2x16x32xf32>
    %189 = vector.extract_strided_slice %176 {offsets = [0, 32], sizes = [32, 32], strides = [1, 1]} : vector<32x256xf32> to vector<32x32xf32>
    %190 = vector.shape_cast %189 : vector<32x32xf32> to vector<1x2x16x32xf32>
    %191 = vector.extract_strided_slice %176 {offsets = [0, 64], sizes = [32, 32], strides = [1, 1]} : vector<32x256xf32> to vector<32x32xf32>
    %192 = vector.shape_cast %191 : vector<32x32xf32> to vector<1x2x16x32xf32>
    %193 = vector.extract_strided_slice %176 {offsets = [0, 96], sizes = [32, 32], strides = [1, 1]} : vector<32x256xf32> to vector<32x32xf32>
    %194 = vector.shape_cast %193 : vector<32x32xf32> to vector<1x2x16x32xf32>
    %195 = tpu.concatenate %188, %190, %192, %194 in 0 : vector<1x2x16x32xf32>, vector<1x2x16x32xf32>, vector<1x2x16x32xf32>, vector<1x2x16x32xf32> -> vector<4x2x16x32xf32>
    %196 = vector.shape_cast %195 : vector<4x2x16x32xf32> to vector<8x16x32xf32>
    %197 = vector.extract_strided_slice %176 {offsets = [0, 128], sizes = [32, 32], strides = [1, 1]} : vector<32x256xf32> to vector<32x32xf32>
    %198 = vector.shape_cast %197 : vector<32x32xf32> to vector<1x2x16x32xf32>
    %199 = vector.extract_strided_slice %176 {offsets = [0, 160], sizes = [32, 32], strides = [1, 1]} : vector<32x256xf32> to vector<32x32xf32>
    %200 = vector.shape_cast %199 : vector<32x32xf32> to vector<1x2x16x32xf32>
    %201 = vector.extract_strided_slice %176 {offsets = [0, 192], sizes = [32, 32], strides = [1, 1]} : vector<32x256xf32> to vector<32x32xf32>
    %202 = vector.shape_cast %201 : vector<32x32xf32> to vector<1x2x16x32xf32>
    %203 = vector.extract_strided_slice %176 {offsets = [0, 224], sizes = [32, 32], strides = [1, 1]} : vector<32x256xf32> to vector<32x32xf32>
    %204 = vector.shape_cast %203 : vector<32x32xf32> to vector<1x2x16x32xf32>
    %205 = tpu.concatenate %198, %200, %202, %204 in 0 : vector<1x2x16x32xf32>, vector<1x2x16x32xf32>, vector<1x2x16x32xf32>, vector<1x2x16x32xf32> -> vector<4x2x16x32xf32>
    %206 = vector.shape_cast %205 : vector<4x2x16x32xf32> to vector<8x16x32xf32>
    %c0_61 = arith.constant 0 : index
    %c0_62 = arith.constant 0 : index
    %c0_63 = arith.constant 0 : index
    %207 = vector.load %arg12[%c0_61, %c0_62, %c0_63] : memref<2x4x32xf32, #tpu.memory_space<vmem>>, vector<1x4x32xf32>
    %208 = vector.shape_cast %207 : vector<1x4x32xf32> to vector<4x32xf32>
    %c1_64 = arith.constant 1 : index
    %c0_65 = arith.constant 0 : index
    %c0_66 = arith.constant 0 : index
    %209 = vector.load %arg12[%c1_64, %c0_65, %c0_66] : memref<2x4x32xf32, #tpu.memory_space<vmem>>, vector<1x4x32xf32>
    %210 = vector.shape_cast %209 : vector<1x4x32xf32> to vector<4x32xf32>
    %211 = arith.truncf %186 : vector<8x8x32xf32> to vector<8x8x32xbf16>
    %212 = arith.truncf %196 : vector<8x16x32xf32> to vector<8x16x32xbf16>
    %cst_67 = arith.constant dense<0.000000e+00> : vector<8x8x16xf32>
    %213 = tpu.matmul %211, %212, %cst_67 {dimension_numbers = #tpu.dot_dimension_numbers<[2], [2], [1], [1], [0, 0, 0, 1, 1, 1], [0], [0]>} : vector<8x8x32xbf16>, vector<8x16x32xbf16>, vector<8x8x16xf32> -> vector<8x8x16xf32>
    %214 = vector.shape_cast %186 : vector<8x8x32xf32> to vector<4x2x8x32xf32>
    %215 = vector.shape_cast %208 : vector<4x32xf32> to vector<4x1x1x32xf32>
    %216 = vector.broadcast %215 : vector<4x1x1x32xf32> to vector<4x2x8x32xf32>
    %217 = arith.mulf %214, %216 : vector<4x2x8x32xf32>
    %cst_68 = arith.constant dense<0.000000e+00> : vector<4x2x8xf32>
    %218 = vector.multi_reduction <add>, %217, %cst_68 [3] : vector<4x2x8x32xf32> to vector<4x2x8xf32>
    %219 = vector.shape_cast %218 : vector<4x2x8xf32> to vector<4x2x8x1xf32>
    %220 = vector.shape_cast %219 : vector<4x2x8x1xf32> to vector<8x8x1xf32>
    %cst_69 = arith.constant dense<0xFF800000> : vector<8x8xf32>
    %221 = vector.multi_reduction <maximumf>, %213, %cst_69 [2] : vector<8x8x16xf32> to vector<8x8xf32>
    %222 = vector.shape_cast %221 : vector<8x8xf32> to vector<8x8x1xf32>
    %223 = arith.maximumf %222, %220 : vector<8x8x1xf32>
    %224 = vector.broadcast %223 : vector<8x8x1xf32> to vector<8x8x16xf32>
    %225 = arith.subf %213, %224 : vector<8x8x16xf32>
    %226 = math.exp %225 : vector<8x8x16xf32>
    %227 = arith.subf %220, %223 : vector<8x8x1xf32>
    %228 = math.exp %227 : vector<8x8x1xf32>
    %cst_70 = arith.constant dense<0.000000e+00> : vector<8x8xf32>
    %229 = vector.multi_reduction <add>, %226, %cst_70 [2] : vector<8x8x16xf32> to vector<8x8xf32>
    %230 = vector.shape_cast %229 : vector<8x8xf32> to vector<8x8x1xf32>
    %231 = arith.addf %230, %228 : vector<8x8x1xf32>
    %cst_71 = arith.constant 1.000000e+00 : f32
    %232 = vector.broadcast %cst_71 : f32 to vector<8x8x1xf32>
    %233 = arith.divf %232, %231 : vector<8x8x1xf32>
    %234 = vector.broadcast %233 : vector<8x8x1xf32> to vector<8x8x16xf32>
    %235 = arith.mulf %226, %234 : vector<8x8x16xf32>
    %236 = arith.mulf %228, %233 : vector<8x8x1xf32>
    %237 = arith.truncf %235 : vector<8x8x16xf32> to vector<8x8x16xbf16>
    %238 = arith.truncf %206 : vector<8x16x32xf32> to vector<8x16x32xbf16>
    %cst_72 = arith.constant dense<0.000000e+00> : vector<8x8x32xf32>
    %239 = tpu.matmul %237, %238, %cst_72 {dimension_numbers = #tpu.dot_dimension_numbers<[2], [1], [1], [2], [0, 0, 0, 1, 1, 2], [0], [0]>} : vector<8x8x16xbf16>, vector<8x16x32xbf16>, vector<8x8x32xf32> -> vector<8x8x32xf32>
    %240 = vector.shape_cast %239 : vector<8x8x32xf32> to vector<4x2x8x32xf32>
    %241 = vector.shape_cast %236 : vector<8x8x1xf32> to vector<4x2x8x1xf32>
    %242 = vector.shape_cast %210 : vector<4x32xf32> to vector<4x1x1x32xf32>
    %243 = vector.broadcast %241 : vector<4x2x8x1xf32> to vector<4x2x8x32xf32>
    %244 = vector.broadcast %242 : vector<4x1x1x32xf32> to vector<4x2x8x32xf32>
    %245 = arith.mulf %243, %244 : vector<4x2x8x32xf32>
    %246 = arith.addf %240, %245 : vector<4x2x8x32xf32>
    %247 = vector.extract_strided_slice %246 {offsets = [0, 0, 0, 0], sizes = [1, 2, 8, 32], strides = [1, 1, 1, 1]} : vector<4x2x8x32xf32> to vector<1x2x8x32xf32>
    %248 = vector.shape_cast %247 : vector<1x2x8x32xf32> to vector<2x8x32xf32>
    %249 = vector.shape_cast %248 : vector<2x8x32xf32> to vector<16x32xf32>
    %250 = vector.extract_strided_slice %246 {offsets = [1, 0, 0, 0], sizes = [1, 2, 8, 32], strides = [1, 1, 1, 1]} : vector<4x2x8x32xf32> to vector<1x2x8x32xf32>
    %251 = vector.shape_cast %250 : vector<1x2x8x32xf32> to vector<2x8x32xf32>
    %252 = vector.shape_cast %251 : vector<2x8x32xf32> to vector<16x32xf32>
    %253 = vector.extract_strided_slice %246 {offsets = [2, 0, 0, 0], sizes = [1, 2, 8, 32], strides = [1, 1, 1, 1]} : vector<4x2x8x32xf32> to vector<1x2x8x32xf32>
    %254 = vector.shape_cast %253 : vector<1x2x8x32xf32> to vector<2x8x32xf32>
    %255 = vector.shape_cast %254 : vector<2x8x32xf32> to vector<16x32xf32>
    %256 = vector.extract_strided_slice %246 {offsets = [3, 0, 0, 0], sizes = [1, 2, 8, 32], strides = [1, 1, 1, 1]} : vector<4x2x8x32xf32> to vector<1x2x8x32xf32>
    %257 = vector.shape_cast %256 : vector<1x2x8x32xf32> to vector<2x8x32xf32>
    %258 = vector.shape_cast %257 : vector<2x8x32xf32> to vector<16x32xf32>
    %259 = tpu.concatenate %249, %252, %255, %258 in 1 : vector<16x32xf32>, vector<16x32xf32>, vector<16x32xf32>, vector<16x32xf32> -> vector<16x128xf32>
    %260 = arith.truncf %259 : vector<16x128xf32> to vector<16x128xbf16>
    %c0_73 = arith.constant 0 : index
    %c0_74 = arith.constant 0 : index
    %261 = vector.load %arg13[%c0_73, %c0_74] : memref<128x128xbf16, #tpu.memory_space<vmem>>, vector<128x128xbf16>
    %cst_75 = arith.constant dense<0.000000e+00> : vector<16x128xf32>
    %262 = tpu.matmul %260, %261, %cst_75 {dimension_numbers = #tpu.dot_dimension_numbers<[1], [0], [0], [1], [0, 0, 1, 1], [], []>} : vector<16x128xbf16>, vector<128x128xbf16>, vector<16x128xf32> -> vector<16x128xf32>
    %c0_76 = arith.constant 0 : index
    %c0_77 = arith.constant 0 : index
    %263 = vector.load %arg14[%c0_76, %c0_77] : memref<1x128xf32, #tpu.memory_space<vmem>>, vector<1x128xf32>
    %264 = vector.broadcast %263 : vector<1x128xf32> to vector<16x128xf32>
    %265 = arith.addf %262, %264 : vector<16x128xf32>
    %266 = vector.shape_cast %265 : vector<16x128xf32> to vector<2x8x128xf32>
    %267 = vector.shape_cast %235 : vector<8x8x16xf32> to vector<4x2x8x16xf32>
    %cst_78 = arith.constant dense<0.000000e+00> : vector<2x8x16xf32>
    %268 = vector.multi_reduction <add>, %267, %cst_78 [0] : vector<4x2x8x16xf32> to vector<2x8x16xf32>
    %cst_79 = arith.constant 2.500000e-01 : f32
    %269 = vector.broadcast %cst_79 : f32 to vector<2x8x16xf32>
    %270 = arith.mulf %268, %269 : vector<2x8x16xf32>
    %271 = vector.shape_cast %236 : vector<8x8x1xf32> to vector<4x2x8x1xf32>
    %cst_80 = arith.constant dense<0.000000e+00> : vector<2x8x1xf32>
    %272 = vector.multi_reduction <add>, %271, %cst_80 [0] : vector<4x2x8x1xf32> to vector<2x8x1xf32>
    %cst_81 = arith.constant 2.500000e-01 : f32
    %273 = vector.broadcast %cst_81 : f32 to vector<2x8x1xf32>
    %274 = arith.mulf %272, %273 : vector<2x8x1xf32>
    %cst_82 = arith.constant 0.000000e+00 : f32
    %275 = vector.broadcast %cst_82 : f32 to vector<2x8x111xf32>
    %276 = tpu.concatenate %270, %274, %275 in 2 : vector<2x8x16xf32>, vector<2x8x1xf32>, vector<2x8x111xf32> -> vector<2x8x128xf32>
    %c0_83 = arith.constant 0 : index
    %c0_84 = arith.constant 0 : index
    %c0_85 = arith.constant 0 : index
    %277 = vector.load %arg23[%c0_83, %c0_84, %c0_85] : memref<2x8x128xf32, #tpu.memory_space<vmem>>, vector<2x8x128xf32>
    tpu.vector_store %arg23[%c0_83, %c0_84, %c0_85], %276 {strides = array<i32>} : memref<2x8x128xf32, #tpu.memory_space<vmem>>, vector<2x8x128xf32>,
    %278 = arith.addf %162, %266 : vector<2x8x128xf32>
    %c2 = arith.constant 2 : index
    %c0_86 = arith.constant 0 : index
    %279 = vector.load %arg19[%c2, %c0_86] : memref<3x128xf32, #tpu.memory_space<vmem>>, vector<1x128xf32>
    %c2_87 = arith.constant 2 : index
    %c0_88 = arith.constant 0 : index
    %280 = vector.load %arg20[%c2_87, %c0_88] : memref<3x128xf32, #tpu.memory_space<vmem>>, vector<1x128xf32>
    %cst_89 = arith.constant dense<0.000000e+00> : vector<2x8xf32>
    %281 = vector.multi_reduction <add>, %278, %cst_89 [2] : vector<2x8x128xf32> to vector<2x8xf32>
    %282 = vector.shape_cast %281 : vector<2x8xf32> to vector<2x8x1xf32>
    %cst_90 = arith.constant 1.280000e+02 : f32
    %283 = vector.broadcast %cst_90 : f32 to vector<2x8x1xf32>
    %284 = arith.divf %282, %283 : vector<2x8x1xf32>
    %285 = vector.broadcast %284 : vector<2x8x1xf32> to vector<2x8x128xf32>
    %286 = arith.subf %278, %285 : vector<2x8x128xf32>
    %287 = arith.mulf %286, %286 : vector<2x8x128xf32>
    %cst_91 = arith.constant dense<0.000000e+00> : vector<2x8xf32>
    %288 = vector.multi_reduction <add>, %287, %cst_91 [2] : vector<2x8x128xf32> to vector<2x8xf32>
    %289 = vector.shape_cast %288 : vector<2x8xf32> to vector<2x8x1xf32>
    %cst_92 = arith.constant 1.280000e+02 : f32
    %290 = vector.broadcast %cst_92 : f32 to vector<2x8x1xf32>
    %291 = arith.divf %289, %290 : vector<2x8x1xf32>
    %292 = vector.broadcast %284 : vector<2x8x1xf32> to vector<2x8x128xf32>
    %293 = arith.subf %278, %292 : vector<2x8x128xf32>
    %cst_93 = arith.constant 9.99999974E-6 : f32
    %294 = vector.broadcast %cst_93 : f32 to vector<2x8x1xf32>
    %295 = arith.addf %291, %294 : vector<2x8x1xf32>
    %296 = math.rsqrt %295 : vector<2x8x1xf32>
    %297 = vector.broadcast %296 : vector<2x8x1xf32> to vector<2x8x128xf32>
    %298 = arith.mulf %293, %297 : vector<2x8x128xf32>
    %299 = vector.shape_cast %279 : vector<1x128xf32> to vector<1x1x128xf32>
    %300 = vector.broadcast %299 : vector<1x1x128xf32> to vector<2x8x128xf32>
    %301 = arith.mulf %298, %300 : vector<2x8x128xf32>
    %302 = vector.shape_cast %280 : vector<1x128xf32> to vector<1x1x128xf32>
    %303 = vector.broadcast %302 : vector<1x1x128xf32> to vector<2x8x128xf32>
    %304 = arith.addf %301, %303 : vector<2x8x128xf32>
    %305 = vector.shape_cast %304 : vector<2x8x128xf32> to vector<16x128xf32>
    %306 = arith.truncf %305 : vector<16x128xf32> to vector<16x128xbf16>
    %c0_94 = arith.constant 0 : index
    %c0_95 = arith.constant 0 : index
    %307 = vector.load %arg15[%c0_94, %c0_95] : memref<128x256xbf16, #tpu.memory_space<vmem>>, vector<128x256xbf16>
    %cst_96 = arith.constant dense<0.000000e+00> : vector<16x256xf32>
    %308 = tpu.matmul %306, %307, %cst_96 {dimension_numbers = #tpu.dot_dimension_numbers<[1], [0], [0], [1], [0, 0, 1, 1], [], []>} : vector<16x128xbf16>, vector<128x256xbf16>, vector<16x256xf32> -> vector<16x256xf32>
    %c0_97 = arith.constant 0 : index
    %c0_98 = arith.constant 0 : index
    %309 = vector.load %arg16[%c0_97, %c0_98] : memref<1x256xf32, #tpu.memory_space<vmem>>, vector<1x256xf32>
    %310 = vector.broadcast %309 : vector<1x256xf32> to vector<16x256xf32>
    %311 = arith.addf %308, %310 : vector<16x256xf32>
    %cst_99 = arith.constant 0.000000e+00 : f32
    %312 = vector.broadcast %cst_99 : f32 to vector<16x256xf32>
    %313 = arith.maximumf %311, %312 : vector<16x256xf32>
    %314 = arith.truncf %313 : vector<16x256xf32> to vector<16x256xbf16>
    %c0_100 = arith.constant 0 : index
    %c0_101 = arith.constant 0 : index
    %315 = vector.load %arg17[%c0_100, %c0_101] : memref<256x128xbf16, #tpu.memory_space<vmem>>, vector<256x128xbf16>
    %cst_102 = arith.constant dense<0.000000e+00> : vector<16x128xf32>
    %316 = tpu.matmul %314, %315, %cst_102 {dimension_numbers = #tpu.dot_dimension_numbers<[1], [0], [0], [1], [0, 0, 1, 1], [], []>} : vector<16x256xbf16>, vector<256x128xbf16>, vector<16x128xf32> -> vector<16x128xf32>
    %c0_103 = arith.constant 0 : index
    %c0_104 = arith.constant 0 : index
    %317 = vector.load %arg18[%c0_103, %c0_104] : memref<1x128xf32, #tpu.memory_space<vmem>>, vector<1x128xf32>
    %318 = vector.broadcast %317 : vector<1x128xf32> to vector<16x128xf32>
    %319 = arith.addf %316, %318 : vector<16x128xf32>
    %320 = vector.shape_cast %319 : vector<16x128xf32> to vector<2x8x128xf32>
    %321 = arith.addf %304, %320 : vector<2x8x128xf32>
    %c0_105 = arith.constant 0 : index
    %c0_106 = arith.constant 0 : index
    %c0_107 = arith.constant 0 : index
    %322 = vector.load %arg21[%c0_105, %c0_106, %c0_107] : memref<2x8x128xf32, #tpu.memory_space<vmem>>, vector<2x8x128xf32>
    tpu.vector_store %arg21[%c0_105, %c0_106, %c0_107], %321 {strides = array<i32>} : memref<2x8x128xf32, #tpu.memory_space<vmem>>, vector<2x8x128xf32>,
    return
  }
  func.func @transform_0(%arg0: i32) -> (i32, i32, i32) {
    %c0_i32 = arith.constant 0 : i32
    %c0_i32_0 = arith.constant 0 : i32
    %c0_i32_1 = arith.constant 0 : i32
    return %arg0, %c0_i32, %c0_i32_0 : i32, i32, i32
  }
  func.func @transform_1(%arg0: i32) -> (i32, i32, i32) {
    %c0_i32 = arith.constant 0 : i32
    %c0_i32_0 = arith.constant 0 : i32
    %c0_i32_1 = arith.constant 0 : i32
    return %arg0, %c0_i32, %c0_i32_0 : i32, i32, i32
  }
  func.func @transform_2(%arg0: i32) -> (i32, i32) {
    %c0_i32 = arith.constant 0 : i32
    %c0_i32_0 = arith.constant 0 : i32
    %c0_i32_1 = arith.constant 0 : i32
    return %c0_i32, %c0_i32_0 : i32, i32
  }
  func.func @transform_3(%arg0: i32) -> (i32, i32) {
    %c0_i32 = arith.constant 0 : i32
    %c0_i32_0 = arith.constant 0 : i32
    %c0_i32_1 = arith.constant 0 : i32
    return %c0_i32, %c0_i32_0 : i32, i32
  }
  func.func @transform_4(%arg0: i32) -> (i32, i32, i32) {
    %c0_i32 = arith.constant 0 : i32
    %c0_i32_0 = arith.constant 0 : i32
    %c0_i32_1 = arith.constant 0 : i32
    %c0_i32_2 = arith.constant 0 : i32
    return %c0_i32, %c0_i32_0, %c0_i32_1 : i32, i32, i32
  }
  func.func @transform_5(%arg0: i32) -> (i32, i32) {
    %c0_i32 = arith.constant 0 : i32
    %c0_i32_0 = arith.constant 0 : i32
    %c0_i32_1 = arith.constant 0 : i32
    return %c0_i32, %c0_i32_0 : i32, i32
  }
  func.func @transform_6(%arg0: i32) -> (i32, i32) {
    %c0_i32 = arith.constant 0 : i32
    %c0_i32_0 = arith.constant 0 : i32
    %c0_i32_1 = arith.constant 0 : i32
    return %c0_i32, %c0_i32_0 : i32, i32
  }
  func.func @transform_7(%arg0: i32) -> (i32, i32) {
    %c0_i32 = arith.constant 0 : i32
    %c0_i32_0 = arith.constant 0 : i32
    %c0_i32_1 = arith.constant 0 : i32
    return %c0_i32, %c0_i32_0 : i32, i32
  }
  func.func @transform_8(%arg0: i32) -> (i32, i32) {
    %c0_i32 = arith.constant 0 : i32
    %c0_i32_0 = arith.constant 0 : i32
    %c0_i32_1 = arith.constant 0 : i32
    return %c0_i32, %c0_i32_0 : i32, i32
  }
  func.func @transform_9(%arg0: i32) -> (i32, i32) {
    %c0_i32 = arith.constant 0 : i32
    %c0_i32_0 = arith.constant 0 : i32
    %c0_i32_1 = arith.constant 0 : i32
    return %c0_i32, %c0_i32_0 : i32, i32
  }
  func.func @transform_10(%arg0: i32) -> (i32, i32) {
    %c0_i32 = arith.constant 0 : i32
    %c0_i32_0 = arith.constant 0 : i32
    %c0_i32_1 = arith.constant 0 : i32
    return %c0_i32, %c0_i32_0 : i32, i32
  }
  func.func @transform_11(%arg0: i32) -> (i32, i32, i32) {
    %c0_i32 = arith.constant 0 : i32
    %c0_i32_0 = arith.constant 0 : i32
    %c0_i32_1 = arith.constant 0 : i32
    %c0_i32_2 = arith.constant 0 : i32
    return %c0_i32, %c0_i32_0, %c0_i32_1 : i32, i32, i32
  }
  func.func @transform_12(%arg0: i32) -> (i32, i32) {
    %c0_i32 = arith.constant 0 : i32
    %c0_i32_0 = arith.constant 0 : i32
    %c0_i32_1 = arith.constant 0 : i32
    return %c0_i32, %c0_i32_0 : i32, i32
  }
  func.func @transform_13(%arg0: i32) -> (i32, i32) {
    %c0_i32 = arith.constant 0 : i32
    %c0_i32_0 = arith.constant 0 : i32
    %c0_i32_1 = arith.constant 0 : i32
    return %c0_i32, %c0_i32_0 : i32, i32
  }
  func.func @transform_14(%arg0: i32) -> (i32, i32) {
    %c0_i32 = arith.constant 0 : i32
    %c0_i32_0 = arith.constant 0 : i32
    %c0_i32_1 = arith.constant 0 : i32
    return %c0_i32, %c0_i32_0 : i32, i32
  }
  func.func @transform_15(%arg0: i32) -> (i32, i32) {
    %c0_i32 = arith.constant 0 : i32
    %c0_i32_0 = arith.constant 0 : i32
    %c0_i32_1 = arith.constant 0 : i32
    return %c0_i32, %c0_i32_0 : i32, i32
  }
  func.func @transform_16(%arg0: i32) -> (i32, i32) {
    %c0_i32 = arith.constant 0 : i32
    %c0_i32_0 = arith.constant 0 : i32
    %c0_i32_1 = arith.constant 0 : i32
    return %c0_i32, %c0_i32_0 : i32, i32
  }
  func.func @transform_17(%arg0: i32) -> (i32, i32) {
    %c0_i32 = arith.constant 0 : i32
    %c0_i32_0 = arith.constant 0 : i32
    %c0_i32_1 = arith.constant 0 : i32
    return %c0_i32, %c0_i32_0 : i32, i32
  }
  func.func @transform_18(%arg0: i32) -> (i32, i32) {
    %c0_i32 = arith.constant 0 : i32
    %c0_i32_0 = arith.constant 0 : i32
    %c0_i32_1 = arith.constant 0 : i32
    return %c0_i32, %c0_i32_0 : i32, i32
  }
  func.func @transform_19(%arg0: i32) -> (i32, i32) {
    %c0_i32 = arith.constant 0 : i32
    %c0_i32_0 = arith.constant 0 : i32
    %c0_i32_1 = arith.constant 0 : i32
    return %c0_i32, %c0_i32_0 : i32, i32
  }
  func.func @transform_20(%arg0: i32) -> (i32, i32, i32) {
    %c0_i32 = arith.constant 0 : i32
    %c0_i32_0 = arith.constant 0 : i32
    %c0_i32_1 = arith.constant 0 : i32
    return %arg0, %c0_i32, %c0_i32_0 : i32, i32, i32
  }
  func.func @transform_21(%arg0: i32) -> (i32, i32, i32) {
    %c0_i32 = arith.constant 0 : i32
    %c0_i32_0 = arith.constant 0 : i32
    %c0_i32_1 = arith.constant 0 : i32
    return %arg0, %c0_i32, %c0_i32_0 : i32, i32, i32
  }
  func.func @transform_22(%arg0: i32) -> (i32, i32, i32) {
    %c0_i32 = arith.constant 0 : i32
    %c0_i32_0 = arith.constant 0 : i32
    %c0_i32_1 = arith.constant 0 : i32
    return %arg0, %c0_i32, %c0_i32_0 : i32, i32, i32
  }
}

module attributes {stable_mosaic.version = 11 : i64} {
  func.func @_decoder_layer_kernel(%arg0: i32, %arg1: memref<2x8x128xf32, #tpu.memory_space<vmem>>, %arg2: memref<2x16x128xf32, #tpu.memory_space<vmem>>, %arg3: memref<128x384xbf16, #tpu.memory_space<vmem>>, %arg4: memref<1x384xf32, #tpu.memory_space<vmem>>, %arg5: memref<2x4x32xf32, #tpu.memory_space<vmem>>, %arg6: memref<128x128xbf16, #tpu.memory_space<vmem>>, %arg7: memref<1x128xf32, #tpu.memory_space<vmem>>, %arg8: memref<128x128xbf16, #tpu.memory_space<vmem>>, %arg9: memref<1x128xf32, #tpu.memory_space<vmem>>, %arg10: memref<128x256xbf16, #tpu.memory_space<vmem>>, %arg11: memref<1x256xf32, #tpu.memory_space<vmem>>, %arg12: memref<2x4x32xf32, #tpu.memory_space<vmem>>, %arg13: memref<128x128xbf16, #tpu.memory_space<vmem>>, %arg14: memref<1x128xf32, #tpu.memory_space<vmem>>, %arg15: memref<128x256xbf16, #tpu.memory_space<vmem>>, %arg16: memref<1x256xf32, #tpu.memory_space<vmem>>, %arg17: memref<256x128xbf16, #tpu.memory_space<vmem>>, %arg18: memref<1x128xf32, #tpu.memory_space<vmem>>, %arg19: memref<3x128xf32, #tpu.memory_space<vmem>>, %arg20: memref<3x128xf32, #tpu.memory_space<vmem>>, %arg21: memref<2x8x128xf32, #tpu.memory_space<vmem>>, %arg22: memref<2x8x128xf32, #tpu.memory_space<vmem>>, %arg23: memref<2x8x128xf32, #tpu.memory_space<vmem>>) attributes {dimension_semantics = [#tpu.dimension_semantics<parallel>], iteration_bounds = array<i64: 2>, scalar_prefetch = 0 : i64, scratch_operands = 0 : i64, tpu.core_type = #tpu.core_type<tc>, window_params = [{transform_indices = @transform_0, window_bounds = array<i64: 2, 8, 128>}, {transform_indices = @transform_1, window_bounds = array<i64: 2, 16, 128>}, {pipeline_mode = #tpu.pipeline_mode<synchronous>, transform_indices = @transform_2, window_bounds = array<i64: 128, 384>}, {pipeline_mode = #tpu.pipeline_mode<synchronous>, transform_indices = @transform_3, window_bounds = array<i64: 1, 384>}, {pipeline_mode = #tpu.pipeline_mode<synchronous>, transform_indices = @transform_4, window_bounds = array<i64: 2, 4, 32>}, {pipeline_mode = #tpu.pipeline_mode<synchronous>, transform_indices = @transform_5, window_bounds = array<i64: 128, 128>}, {pipeline_mode = #tpu.pipeline_mode<synchronous>, transform_indices = @transform_6, window_bounds = array<i64: 1, 128>}, {pipeline_mode = #tpu.pipeline_mode<synchronous>, transform_indices = @transform_7, window_bounds = array<i64: 128, 128>}, {pipeline_mode = #tpu.pipeline_mode<synchronous>, transform_indices = @transform_8, window_bounds = array<i64: 1, 128>}, {pipeline_mode = #tpu.pipeline_mode<synchronous>, transform_indices = @transform_9, window_bounds = array<i64: 128, 256>}, {pipeline_mode = #tpu.pipeline_mode<synchronous>, transform_indices = @transform_10, window_bounds = array<i64: 1, 256>}, {pipeline_mode = #tpu.pipeline_mode<synchronous>, transform_indices = @transform_11, window_bounds = array<i64: 2, 4, 32>}, {pipeline_mode = #tpu.pipeline_mode<synchronous>, transform_indices = @transform_12, window_bounds = array<i64: 128, 128>}, {pipeline_mode = #tpu.pipeline_mode<synchronous>, transform_indices = @transform_13, window_bounds = array<i64: 1, 128>}, {pipeline_mode = #tpu.pipeline_mode<synchronous>, transform_indices = @transform_14, window_bounds = array<i64: 128, 256>}, {pipeline_mode = #tpu.pipeline_mode<synchronous>, transform_indices = @transform_15, window_bounds = array<i64: 1, 256>}, {pipeline_mode = #tpu.pipeline_mode<synchronous>, transform_indices = @transform_16, window_bounds = array<i64: 256, 128>}, {pipeline_mode = #tpu.pipeline_mode<synchronous>, transform_indices = @transform_17, window_bounds = array<i64: 1, 128>}, {pipeline_mode = #tpu.pipeline_mode<synchronous>, transform_indices = @transform_18, window_bounds = array<i64: 3, 128>}, {pipeline_mode = #tpu.pipeline_mode<synchronous>, transform_indices = @transform_19, window_bounds = array<i64: 3, 128>}, {transform_indices = @transform_20, window_bounds = array<i64: 2, 8, 128>}, {transform_indices = @transform_21, window_bounds = array<i64: 2, 8, 128>}, {transform_indices = @transform_22, window_bounds = array<i64: 2, 8, 128>}]} {
    %c0 = arith.constant 0 : index
    %c0_0 = arith.constant 0 : index
    %c0_1 = arith.constant 0 : index
    %0 = vector.load %arg1[%c0, %c0_0, %c0_1] : memref<2x8x128xf32, #tpu.memory_space<vmem>>, vector<2x8x128xf32>
    %c0_2 = arith.constant 0 : index
    %c0_3 = arith.constant 0 : index
    %c0_4 = arith.constant 0 : index
    %1 = vector.load %arg2[%c0_2, %c0_3, %c0_4] : memref<2x16x128xf32, #tpu.memory_space<vmem>>, vector<2x16x128xf32>
    %c0_5 = arith.constant 0 : index
    %c0_6 = arith.constant 0 : index
    %2 = vector.load %arg19[%c0_5, %c0_6] : memref<3x128xf32, #tpu.memory_space<vmem>>, vector<1x128xf32>
    %c0_7 = arith.constant 0 : index
    %c0_8 = arith.constant 0 : index
    %3 = vector.load %arg20[%c0_7, %c0_8] : memref<3x128xf32, #tpu.memory_space<vmem>>, vector<1x128xf32>
    %cst = arith.constant dense<0.000000e+00> : vector<2x8xf32>
    %4 = vector.multi_reduction <add>, %0, %cst [2] : vector<2x8x128xf32> to vector<2x8xf32>
    %5 = vector.shape_cast %4 : vector<2x8xf32> to vector<2x8x1xf32>
    %cst_9 = arith.constant 1.280000e+02 : f32
    %6 = vector.broadcast %cst_9 : f32 to vector<2x8x1xf32>
    %7 = arith.divf %5, %6 : vector<2x8x1xf32>
    %8 = vector.broadcast %7 : vector<2x8x1xf32> to vector<2x8x128xf32>
    %9 = arith.subf %0, %8 : vector<2x8x128xf32>
    %10 = arith.mulf %9, %9 : vector<2x8x128xf32>
    %cst_10 = arith.constant dense<0.000000e+00> : vector<2x8xf32>
    %11 = vector.multi_reduction <add>, %10, %cst_10 [2] : vector<2x8x128xf32> to vector<2x8xf32>
    %12 = vector.shape_cast %11 : vector<2x8xf32> to vector<2x8x1xf32>
    %cst_11 = arith.constant 1.280000e+02 : f32
    %13 = vector.broadcast %cst_11 : f32 to vector<2x8x1xf32>
    %14 = arith.divf %12, %13 : vector<2x8x1xf32>
    %15 = vector.broadcast %7 : vector<2x8x1xf32> to vector<2x8x128xf32>
    %16 = arith.subf %0, %15 : vector<2x8x128xf32>
    %cst_12 = arith.constant 9.99999974E-6 : f32
    %17 = vector.broadcast %cst_12 : f32 to vector<2x8x1xf32>
    %18 = arith.addf %14, %17 : vector<2x8x1xf32>
    %19 = math.rsqrt %18 : vector<2x8x1xf32>
    %20 = vector.broadcast %19 : vector<2x8x1xf32> to vector<2x8x128xf32>
    %21 = arith.mulf %16, %20 : vector<2x8x128xf32>
    %22 = vector.shape_cast %2 : vector<1x128xf32> to vector<1x1x128xf32>
    %23 = vector.broadcast %22 : vector<1x1x128xf32> to vector<2x8x128xf32>
    %24 = arith.mulf %21, %23 : vector<2x8x128xf32>
    %25 = vector.shape_cast %3 : vector<1x128xf32> to vector<1x1x128xf32>
    %26 = vector.broadcast %25 : vector<1x1x128xf32> to vector<2x8x128xf32>
    %27 = arith.addf %24, %26 : vector<2x8x128xf32>
    %28 = vector.shape_cast %27 : vector<2x8x128xf32> to vector<16x128xf32>
    %29 = arith.truncf %28 : vector<16x128xf32> to vector<16x128xbf16>
    %c0_13 = arith.constant 0 : index
    %c0_14 = arith.constant 0 : index
    %30 = vector.load %arg3[%c0_13, %c0_14] : memref<128x384xbf16, #tpu.memory_space<vmem>>, vector<128x384xbf16>
    %cst_15 = arith.constant dense<0.000000e+00> : vector<16x384xf32>
    %31 = tpu.matmul %29, %30, %cst_15 {dimension_numbers = #tpu.dot_dimension_numbers<[1], [0], [0], [1], [0, 0, 1, 1], [], []>} : vector<16x128xbf16>, vector<128x384xbf16>, vector<16x384xf32> -> vector<16x384xf32>
    %c0_16 = arith.constant 0 : index
    %c0_17 = arith.constant 0 : index
    %32 = vector.load %arg4[%c0_16, %c0_17] : memref<1x384xf32, #tpu.memory_space<vmem>>, vector<1x384xf32>
    %33 = vector.broadcast %32 : vector<1x384xf32> to vector<16x384xf32>
    %34 = arith.addf %31, %33 : vector<16x384xf32>
    %35 = vector.extract_strided_slice %34 {offsets = [0, 0], sizes = [16, 32], strides = [1, 1]} : vector<16x384xf32> to vector<16x32xf32>
    %36 = vector.shape_cast %35 : vector<16x32xf32> to vector<1x2x8x32xf32>
    %37 = vector.extract_strided_slice %34 {offsets = [0, 32], sizes = [16, 32], strides = [1, 1]} : vector<16x384xf32> to vector<16x32xf32>
    %38 = vector.shape_cast %37 : vector<16x32xf32> to vector<1x2x8x32xf32>
    %39 = vector.extract_strided_slice %34 {offsets = [0, 64], sizes = [16, 32], strides = [1, 1]} : vector<16x384xf32> to vector<16x32xf32>
    %40 = vector.shape_cast %39 : vector<16x32xf32> to vector<1x2x8x32xf32>
    %41 = vector.extract_strided_slice %34 {offsets = [0, 96], sizes = [16, 32], strides = [1, 1]} : vector<16x384xf32> to vector<16x32xf32>
    %42 = vector.shape_cast %41 : vector<16x32xf32> to vector<1x2x8x32xf32>
    %43 = tpu.concatenate %36, %38, %40, %42 in 0 : vector<1x2x8x32xf32>, vector<1x2x8x32xf32>, vector<1x2x8x32xf32>, vector<1x2x8x32xf32> -> vector<4x2x8x32xf32>
    %44 = vector.shape_cast %43 : vector<4x2x8x32xf32> to vector<8x8x32xf32>
    %45 = vector.extract_strided_slice %34 {offsets = [0, 128], sizes = [16, 32], strides = [1, 1]} : vector<16x384xf32> to vector<16x32xf32>
    %46 = vector.shape_cast %45 : vector<16x32xf32> to vector<1x2x8x32xf32>
    %47 = vector.extract_strided_slice %34 {offsets = [0, 160], sizes = [16, 32], strides = [1, 1]} : vector<16x384xf32> to vector<16x32xf32>
    %48 = vector.shape_cast %47 : vector<16x32xf32> to vector<1x2x8x32xf32>
    %49 = vector.extract_strided_slice %34 {offsets = [0, 192], sizes = [16, 32], strides = [1, 1]} : vector<16x384xf32> to vector<16x32xf32>
    %50 = vector.shape_cast %49 : vector<16x32xf32> to vector<1x2x8x32xf32>
    %51 = vector.extract_strided_slice %34 {offsets = [0, 224], sizes = [16, 32], strides = [1, 1]} : vector<16x384xf32> to vector<16x32xf32>
    %52 = vector.shape_cast %51 : vector<16x32xf32> to vector<1x2x8x32xf32>
    %53 = tpu.concatenate %46, %48, %50, %52 in 0 : vector<1x2x8x32xf32>, vector<1x2x8x32xf32>, vector<1x2x8x32xf32>, vector<1x2x8x32xf32> -> vector<4x2x8x32xf32>
    %54 = vector.shape_cast %53 : vector<4x2x8x32xf32> to vector<8x8x32xf32>
    %55 = vector.extract_strided_slice %34 {offsets = [0, 256], sizes = [16, 32], strides = [1, 1]} : vector<16x384xf32> to vector<16x32xf32>
    %56 = vector.shape_cast %55 : vector<16x32xf32> to vector<1x2x8x32xf32>
    %57 = vector.extract_strided_slice %34 {offsets = [0, 288], sizes = [16, 32], strides = [1, 1]} : vector<16x384xf32> to vector<16x32xf32>
    %58 = vector.shape_cast %57 : vector<16x32xf32> to vector<1x2x8x32xf32>
    %59 = vector.extract_strided_slice %34 {offsets = [0, 320], sizes = [16, 32], strides = [1, 1]} : vector<16x384xf32> to vector<16x32xf32>
    %60 = vector.shape_cast %59 : vector<16x32xf32> to vector<1x2x8x32xf32>
    %61 = vector.extract_strided_slice %34 {offsets = [0, 352], sizes = [16, 32], strides = [1, 1]} : vector<16x384xf32> to vector<16x32xf32>
    %62 = vector.shape_cast %61 : vector<16x32xf32> to vector<1x2x8x32xf32>
    %63 = tpu.concatenate %56, %58, %60, %62 in 0 : vector<1x2x8x32xf32>, vector<1x2x8x32xf32>, vector<1x2x8x32xf32>, vector<1x2x8x32xf32> -> vector<4x2x8x32xf32>
    %64 = vector.shape_cast %63 : vector<4x2x8x32xf32> to vector<8x8x32xf32>
    %c0_18 = arith.constant 0 : index
    %c0_19 = arith.constant 0 : index
    %c0_20 = arith.constant 0 : index
    %65 = vector.load %arg5[%c0_18, %c0_19, %c0_20] : memref<2x4x32xf32, #tpu.memory_space<vmem>>, vector<1x4x32xf32>
    %66 = vector.shape_cast %65 : vector<1x4x32xf32> to vector<4x32xf32>
    %c1 = arith.constant 1 : index
    %c0_21 = arith.constant 0 : index
    %c0_22 = arith.constant 0 : index
    %67 = vector.load %arg5[%c1, %c0_21, %c0_22] : memref<2x4x32xf32, #tpu.memory_space<vmem>>, vector<1x4x32xf32>
    %68 = vector.shape_cast %67 : vector<1x4x32xf32> to vector<4x32xf32>
    %69 = arith.truncf %44 : vector<8x8x32xf32> to vector<8x8x32xbf16>
    %70 = arith.truncf %54 : vector<8x8x32xf32> to vector<8x8x32xbf16>
    %cst_23 = arith.constant dense<0.000000e+00> : vector<8x8x8xf32>
    %71 = tpu.matmul %69, %70, %cst_23 {dimension_numbers = #tpu.dot_dimension_numbers<[2], [2], [1], [1], [0, 0, 0, 1, 1, 1], [0], [0]>} : vector<8x8x32xbf16>, vector<8x8x32xbf16>, vector<8x8x8xf32> -> vector<8x8x8xf32>
    %72 = vector.shape_cast %44 : vector<8x8x32xf32> to vector<4x2x8x32xf32>
    %73 = vector.shape_cast %66 : vector<4x32xf32> to vector<4x1x1x32xf32>
    %74 = vector.broadcast %73 : vector<4x1x1x32xf32> to vector<4x2x8x32xf32>
    %75 = arith.mulf %72, %74 : vector<4x2x8x32xf32>
    %cst_24 = arith.constant dense<0.000000e+00> : vector<4x2x8xf32>
    %76 = vector.multi_reduction <add>, %75, %cst_24 [3] : vector<4x2x8x32xf32> to vector<4x2x8xf32>
    %77 = vector.shape_cast %76 : vector<4x2x8xf32> to vector<4x2x8x1xf32>
    %78 = vector.shape_cast %77 : vector<4x2x8x1xf32> to vector<8x8x1xf32>
    %cst_25 = arith.constant dense<0xFF800000> : vector<8x8xf32>
    %79 = vector.multi_reduction <maximumf>, %71, %cst_25 [2] : vector<8x8x8xf32> to vector<8x8xf32>
    %80 = vector.shape_cast %79 : vector<8x8xf32> to vector<8x8x1xf32>
    %81 = arith.maximumf %80, %78 : vector<8x8x1xf32>
    %82 = vector.broadcast %81 : vector<8x8x1xf32> to vector<8x8x8xf32>
    %83 = arith.subf %71, %82 : vector<8x8x8xf32>
    %84 = math.exp %83 : vector<8x8x8xf32>
    %85 = arith.subf %78, %81 : vector<8x8x1xf32>
    %86 = math.exp %85 : vector<8x8x1xf32>
    %cst_26 = arith.constant dense<0.000000e+00> : vector<8x8xf32>
    %87 = vector.multi_reduction <add>, %84, %cst_26 [2] : vector<8x8x8xf32> to vector<8x8xf32>
    %88 = vector.shape_cast %87 : vector<8x8xf32> to vector<8x8x1xf32>
    %89 = arith.addf %88, %86 : vector<8x8x1xf32>
    %cst_27 = arith.constant 1.000000e+00 : f32
    %90 = vector.broadcast %cst_27 : f32 to vector<8x8x1xf32>
    %91 = arith.divf %90, %89 : vector<8x8x1xf32>
    %92 = vector.broadcast %91 : vector<8x8x1xf32> to vector<8x8x8xf32>
    %93 = arith.mulf %84, %92 : vector<8x8x8xf32>
    %94 = arith.mulf %86, %91 : vector<8x8x1xf32>
    %95 = arith.truncf %93 : vector<8x8x8xf32> to vector<8x8x8xbf16>
    %96 = arith.truncf %64 : vector<8x8x32xf32> to vector<8x8x32xbf16>
    %cst_28 = arith.constant dense<0.000000e+00> : vector<8x8x32xf32>
    %97 = tpu.matmul %95, %96, %cst_28 {dimension_numbers = #tpu.dot_dimension_numbers<[2], [1], [1], [2], [0, 0, 0, 1, 1, 2], [0], [0]>} : vector<8x8x8xbf16>, vector<8x8x32xbf16>, vector<8x8x32xf32> -> vector<8x8x32xf32>
    %98 = vector.shape_cast %97 : vector<8x8x32xf32> to vector<4x2x8x32xf32>
    %99 = vector.shape_cast %94 : vector<8x8x1xf32> to vector<4x2x8x1xf32>
    %100 = vector.shape_cast %68 : vector<4x32xf32> to vector<4x1x1x32xf32>
    %101 = vector.broadcast %99 : vector<4x2x8x1xf32> to vector<4x2x8x32xf32>
    %102 = vector.broadcast %100 : vector<4x1x1x32xf32> to vector<4x2x8x32xf32>
    %103 = arith.mulf %101, %102 : vector<4x2x8x32xf32>
    %104 = arith.addf %98, %103 : vector<4x2x8x32xf32>
    %105 = vector.extract_strided_slice %104 {offsets = [0, 0, 0, 0], sizes = [1, 2, 8, 32], strides = [1, 1, 1, 1]} : vector<4x2x8x32xf32> to vector<1x2x8x32xf32>
    %106 = vector.shape_cast %105 : vector<1x2x8x32xf32> to vector<2x8x32xf32>
    %107 = vector.shape_cast %106 : vector<2x8x32xf32> to vector<16x32xf32>
    %108 = vector.extract_strided_slice %104 {offsets = [1, 0, 0, 0], sizes = [1, 2, 8, 32], strides = [1, 1, 1, 1]} : vector<4x2x8x32xf32> to vector<1x2x8x32xf32>
    %109 = vector.shape_cast %108 : vector<1x2x8x32xf32> to vector<2x8x32xf32>
    %110 = vector.shape_cast %109 : vector<2x8x32xf32> to vector<16x32xf32>
    %111 = vector.extract_strided_slice %104 {offsets = [2, 0, 0, 0], sizes = [1, 2, 8, 32], strides = [1, 1, 1, 1]} : vector<4x2x8x32xf32> to vector<1x2x8x32xf32>
    %112 = vector.shape_cast %111 : vector<1x2x8x32xf32> to vector<2x8x32xf32>
    %113 = vector.shape_cast %112 : vector<2x8x32xf32> to vector<16x32xf32>
    %114 = vector.extract_strided_slice %104 {offsets = [3, 0, 0, 0], sizes = [1, 2, 8, 32], strides = [1, 1, 1, 1]} : vector<4x2x8x32xf32> to vector<1x2x8x32xf32>
    %115 = vector.shape_cast %114 : vector<1x2x8x32xf32> to vector<2x8x32xf32>
    %116 = vector.shape_cast %115 : vector<2x8x32xf32> to vector<16x32xf32>
    %117 = tpu.concatenate %107, %110, %113, %116 in 1 : vector<16x32xf32>, vector<16x32xf32>, vector<16x32xf32>, vector<16x32xf32> -> vector<16x128xf32>
    %118 = arith.truncf %117 : vector<16x128xf32> to vector<16x128xbf16>
    %c0_29 = arith.constant 0 : index
    %c0_30 = arith.constant 0 : index
    %119 = vector.load %arg6[%c0_29, %c0_30] : memref<128x128xbf16, #tpu.memory_space<vmem>>, vector<128x128xbf16>
    %cst_31 = arith.constant dense<0.000000e+00> : vector<16x128xf32>
    %120 = tpu.matmul %118, %119, %cst_31 {dimension_numbers = #tpu.dot_dimension_numbers<[1], [0], [0], [1], [0, 0, 1, 1], [], []>} : vector<16x128xbf16>, vector<128x128xbf16>, vector<16x128xf32> -> vector<16x128xf32>
    %c0_32 = arith.constant 0 : index
    %c0_33 = arith.constant 0 : index
    %121 = vector.load %arg7[%c0_32, %c0_33] : memref<1x128xf32, #tpu.memory_space<vmem>>, vector<1x128xf32>
    %122 = vector.broadcast %121 : vector<1x128xf32> to vector<16x128xf32>
    %123 = arith.addf %120, %122 : vector<16x128xf32>
    %124 = vector.shape_cast %123 : vector<16x128xf32> to vector<2x8x128xf32>
    %125 = vector.shape_cast %93 : vector<8x8x8xf32> to vector<4x2x8x8xf32>
    %cst_34 = arith.constant dense<0.000000e+00> : vector<2x8x8xf32>
    %126 = vector.multi_reduction <add>, %125, %cst_34 [0] : vector<4x2x8x8xf32> to vector<2x8x8xf32>
    %cst_35 = arith.constant 2.500000e-01 : f32
    %127 = vector.broadcast %cst_35 : f32 to vector<2x8x8xf32>
    %128 = arith.mulf %126, %127 : vector<2x8x8xf32>
    %129 = vector.shape_cast %94 : vector<8x8x1xf32> to vector<4x2x8x1xf32>
    %cst_36 = arith.constant dense<0.000000e+00> : vector<2x8x1xf32>
    %130 = vector.multi_reduction <add>, %129, %cst_36 [0] : vector<4x2x8x1xf32> to vector<2x8x1xf32>
    %cst_37 = arith.constant 2.500000e-01 : f32
    %131 = vector.broadcast %cst_37 : f32 to vector<2x8x1xf32>
    %132 = arith.mulf %130, %131 : vector<2x8x1xf32>
    %cst_38 = arith.constant 0.000000e+00 : f32
    %133 = vector.broadcast %cst_38 : f32 to vector<2x8x119xf32>
    %134 = tpu.concatenate %128, %132, %133 in 2 : vector<2x8x8xf32>, vector<2x8x1xf32>, vector<2x8x119xf32> -> vector<2x8x128xf32>
    %c0_39 = arith.constant 0 : index
    %c0_40 = arith.constant 0 : index
    %c0_41 = arith.constant 0 : index
    %135 = vector.load %arg22[%c0_39, %c0_40, %c0_41] : memref<2x8x128xf32, #tpu.memory_space<vmem>>, vector<2x8x128xf32>
    tpu.vector_store %arg22[%c0_39, %c0_40, %c0_41], %134 {strides = array<i32>} : memref<2x8x128xf32, #tpu.memory_space<vmem>>, vector<2x8x128xf32>,
    %136 = arith.addf %0, %124 : vector<2x8x128xf32>
    %c1_42 = arith.constant 1 : index
    %c0_43 = arith.constant 0 : index
    %137 = vector.load %arg19[%c1_42, %c0_43] : memref<3x128xf32, #tpu.memory_space<vmem>>, vector<1x128xf32>
    %c1_44 = arith.constant 1 : index
    %c0_45 = arith.constant 0 : index
    %138 = vector.load %arg20[%c1_44, %c0_45] : memref<3x128xf32, #tpu.memory_space<vmem>>, vector<1x128xf32>
    %cst_46 = arith.constant dense<0.000000e+00> : vector<2x8xf32>
    %139 = vector.multi_reduction <add>, %136, %cst_46 [2] : vector<2x8x128xf32> to vector<2x8xf32>
    %140 = vector.shape_cast %139 : vector<2x8xf32> to vector<2x8x1xf32>
    %cst_47 = arith.constant 1.280000e+02 : f32
    %141 = vector.broadcast %cst_47 : f32 to vector<2x8x1xf32>
    %142 = arith.divf %140, %141 : vector<2x8x1xf32>
    %143 = vector.broadcast %142 : vector<2x8x1xf32> to vector<2x8x128xf32>
    %144 = arith.subf %136, %143 : vector<2x8x128xf32>
    %145 = arith.mulf %144, %144 : vector<2x8x128xf32>
    %cst_48 = arith.constant dense<0.000000e+00> : vector<2x8xf32>
    %146 = vector.multi_reduction <add>, %145, %cst_48 [2] : vector<2x8x128xf32> to vector<2x8xf32>
    %147 = vector.shape_cast %146 : vector<2x8xf32> to vector<2x8x1xf32>
    %cst_49 = arith.constant 1.280000e+02 : f32
    %148 = vector.broadcast %cst_49 : f32 to vector<2x8x1xf32>
    %149 = arith.divf %147, %148 : vector<2x8x1xf32>
    %150 = vector.broadcast %142 : vector<2x8x1xf32> to vector<2x8x128xf32>
    %151 = arith.subf %136, %150 : vector<2x8x128xf32>
    %cst_50 = arith.constant 9.99999974E-6 : f32
    %152 = vector.broadcast %cst_50 : f32 to vector<2x8x1xf32>
    %153 = arith.addf %149, %152 : vector<2x8x1xf32>
    %154 = math.rsqrt %153 : vector<2x8x1xf32>
    %155 = vector.broadcast %154 : vector<2x8x1xf32> to vector<2x8x128xf32>
    %156 = arith.mulf %151, %155 : vector<2x8x128xf32>
    %157 = vector.shape_cast %137 : vector<1x128xf32> to vector<1x1x128xf32>
    %158 = vector.broadcast %157 : vector<1x1x128xf32> to vector<2x8x128xf32>
    %159 = arith.mulf %156, %158 : vector<2x8x128xf32>
    %160 = vector.shape_cast %138 : vector<1x128xf32> to vector<1x1x128xf32>
    %161 = vector.broadcast %160 : vector<1x1x128xf32> to vector<2x8x128xf32>
    %162 = arith.addf %159, %161 : vector<2x8x128xf32>
    %163 = vector.shape_cast %162 : vector<2x8x128xf32> to vector<16x128xf32>
    %164 = arith.truncf %163 : vector<16x128xf32> to vector<16x128xbf16>
    %c0_51 = arith.constant 0 : index
    %c0_52 = arith.constant 0 : index
    %165 = vector.load %arg8[%c0_51, %c0_52] : memref<128x128xbf16, #tpu.memory_space<vmem>>, vector<128x128xbf16>
    %cst_53 = arith.constant dense<0.000000e+00> : vector<16x128xf32>
    %166 = tpu.matmul %164, %165, %cst_53 {dimension_numbers = #tpu.dot_dimension_numbers<[1], [0], [0], [1], [0, 0, 1, 1], [], []>} : vector<16x128xbf16>, vector<128x128xbf16>, vector<16x128xf32> -> vector<16x128xf32>
    %c0_54 = arith.constant 0 : index
    %c0_55 = arith.constant 0 : index
    %167 = vector.load %arg9[%c0_54, %c0_55] : memref<1x128xf32, #tpu.memory_space<vmem>>, vector<1x128xf32>
    %168 = vector.broadcast %167 : vector<1x128xf32> to vector<16x128xf32>
    %169 = arith.addf %166, %168 : vector<16x128xf32>
    %170 = vector.shape_cast %1 : vector<2x16x128xf32> to vector<32x128xf32>
    %171 = arith.truncf %170 : vector<32x128xf32> to vector<32x128xbf16>
    %c0_56 = arith.constant 0 : index
    %c0_57 = arith.constant 0 : index
    %172 = vector.load %arg10[%c0_56, %c0_57] : memref<128x256xbf16, #tpu.memory_space<vmem>>, vector<128x256xbf16>
    %cst_58 = arith.constant dense<0.000000e+00> : vector<32x256xf32>
    %173 = tpu.matmul %171, %172, %cst_58 {dimension_numbers = #tpu.dot_dimension_numbers<[1], [0], [0], [1], [0, 0, 1, 1], [], []>} : vector<32x128xbf16>, vector<128x256xbf16>, vector<32x256xf32> -> vector<32x256xf32>
    %c0_59 = arith.constant 0 : index
    %c0_60 = arith.constant 0 : index
    %174 = vector.load %arg11[%c0_59, %c0_60] : memref<1x256xf32, #tpu.memory_space<vmem>>, vector<1x256xf32>
    %175 = vector.broadcast %174 : vector<1x256xf32> to vector<32x256xf32>
    %176 = arith.addf %173, %175 : vector<32x256xf32>
    %177 = vector.extract_strided_slice %169 {offsets = [0, 0], sizes = [16, 32], strides = [1, 1]} : vector<16x128xf32> to vector<16x32xf32>
    %178 = vector.shape_cast %177 : vector<16x32xf32> to vector<1x2x8x32xf32>
    %179 = vector.extract_strided_slice %169 {offsets = [0, 32], sizes = [16, 32], strides = [1, 1]} : vector<16x128xf32> to vector<16x32xf32>
    %180 = vector.shape_cast %179 : vector<16x32xf32> to vector<1x2x8x32xf32>
    %181 = vector.extract_strided_slice %169 {offsets = [0, 64], sizes = [16, 32], strides = [1, 1]} : vector<16x128xf32> to vector<16x32xf32>
    %182 = vector.shape_cast %181 : vector<16x32xf32> to vector<1x2x8x32xf32>
    %183 = vector.extract_strided_slice %169 {offsets = [0, 96], sizes = [16, 32], strides = [1, 1]} : vector<16x128xf32> to vector<16x32xf32>
    %184 = vector.shape_cast %183 : vector<16x32xf32> to vector<1x2x8x32xf32>
    %185 = tpu.concatenate %178, %180, %182, %184 in 0 : vector<1x2x8x32xf32>, vector<1x2x8x32xf32>, vector<1x2x8x32xf32>, vector<1x2x8x32xf32> -> vector<4x2x8x32xf32>
    %186 = vector.shape_cast %185 : vector<4x2x8x32xf32> to vector<8x8x32xf32>
    %187 = vector.extract_strided_slice %176 {offsets = [0, 0], sizes = [32, 32], strides = [1, 1]} : vector<32x256xf32> to vector<32x32xf32>
    %188 = vector.shape_cast %187 : vector<32x32xf32> to vector<1x2x16x32xf32>
    %189 = vector.extract_strided_slice %176 {offsets = [0, 32], sizes = [32, 32], strides = [1, 1]} : vector<32x256xf32> to vector<32x32xf32>
    %190 = vector.shape_cast %189 : vector<32x32xf32> to vector<1x2x16x32xf32>
    %191 = vector.extract_strided_slice %176 {offsets = [0, 64], sizes = [32, 32], strides = [1, 1]} : vector<32x256xf32> to vector<32x32xf32>
    %192 = vector.shape_cast %191 : vector<32x32xf32> to vector<1x2x16x32xf32>
    %193 = vector.extract_strided_slice %176 {offsets = [0, 96], sizes = [32, 32], strides = [1, 1]} : vector<32x256xf32> to vector<32x32xf32>
    %194 = vector.shape_cast %193 : vector<32x32xf32> to vector<1x2x16x32xf32>
    %195 = tpu.concatenate %188, %190, %192, %194 in 0 : vector<1x2x16x32xf32>, vector<1x2x16x32xf32>, vector<1x2x16x32xf32>, vector<1x2x16x32xf32> -> vector<4x2x16x32xf32>
    %196 = vector.shape_cast %195 : vector<4x2x16x32xf32> to vector<8x16x32xf32>
    %197 = vector.extract_strided_slice %176 {offsets = [0, 128], sizes = [32, 32], strides = [1, 1]} : vector<32x256xf32> to vector<32x32xf32>
    %198 = vector.shape_cast %197 : vector<32x32xf32> to vector<1x2x16x32xf32>
    %199 = vector.extract_strided_slice %176 {offsets = [0, 160], sizes = [32, 32], strides = [1, 1]} : vector<32x256xf32> to vector<32x32xf32>
    %200 = vector.shape_cast %199 : vector<32x32xf32> to vector<1x2x16x32xf32>
    %201 = vector.extract_strided_slice %176 {offsets = [0, 192], sizes = [32, 32], strides = [1, 1]} : vector<32x256xf32> to vector<32x32xf32>
    %202 = vector.shape_cast %201 : vector<32x32xf32> to vector<1x2x16x32xf32>
    %203 = vector.extract_strided_slice %176 {offsets = [0, 224], sizes = [32, 32], strides = [1, 1]} : vector<32x256xf32> to vector<32x32xf32>
    %204 = vector.shape_cast %203 : vector<32x32xf32> to vector<1x2x16x32xf32>
    %205 = tpu.concatenate %198, %200, %202, %204 in 0 : vector<1x2x16x32xf32>, vector<1x2x16x32xf32>, vector<1x2x16x32xf32>, vector<1x2x16x32xf32> -> vector<4x2x16x32xf32>
    %206 = vector.shape_cast %205 : vector<4x2x16x32xf32> to vector<8x16x32xf32>
    %c0_61 = arith.constant 0 : index
    %c0_62 = arith.constant 0 : index
    %c0_63 = arith.constant 0 : index
    %207 = vector.load %arg12[%c0_61, %c0_62, %c0_63] : memref<2x4x32xf32, #tpu.memory_space<vmem>>, vector<1x4x32xf32>
    %208 = vector.shape_cast %207 : vector<1x4x32xf32> to vector<4x32xf32>
    %c1_64 = arith.constant 1 : index
    %c0_65 = arith.constant 0 : index
    %c0_66 = arith.constant 0 : index
    %209 = vector.load %arg12[%c1_64, %c0_65, %c0_66] : memref<2x4x32xf32, #tpu.memory_space<vmem>>, vector<1x4x32xf32>
    %210 = vector.shape_cast %209 : vector<1x4x32xf32> to vector<4x32xf32>
    %211 = arith.truncf %186 : vector<8x8x32xf32> to vector<8x8x32xbf16>
    %212 = arith.truncf %196 : vector<8x16x32xf32> to vector<8x16x32xbf16>
    %cst_67 = arith.constant dense<0.000000e+00> : vector<8x8x16xf32>
    %213 = tpu.matmul %211, %212, %cst_67 {dimension_numbers = #tpu.dot_dimension_numbers<[2], [2], [1], [1], [0, 0, 0, 1, 1, 1], [0], [0]>} : vector<8x8x32xbf16>, vector<8x16x32xbf16>, vector<8x8x16xf32> -> vector<8x8x16xf32>
    %214 = vector.shape_cast %186 : vector<8x8x32xf32> to vector<4x2x8x32xf32>
    %215 = vector.shape_cast %208 : vector<4x32xf32> to vector<4x1x1x32xf32>
    %216 = vector.broadcast %215 : vector<4x1x1x32xf32> to vector<4x2x8x32xf32>
    %217 = arith.mulf %214, %216 : vector<4x2x8x32xf32>
    %cst_68 = arith.constant dense<0.000000e+00> : vector<4x2x8xf32>
    %218 = vector.multi_reduction <add>, %217, %cst_68 [3] : vector<4x2x8x32xf32> to vector<4x2x8xf32>
    %219 = vector.shape_cast %218 : vector<4x2x8xf32> to vector<4x2x8x1xf32>
    %220 = vector.shape_cast %219 : vector<4x2x8x1xf32> to vector<8x8x1xf32>
    %cst_69 = arith.constant dense<0xFF800000> : vector<8x8xf32>
    %221 = vector.multi_reduction <maximumf>, %213, %cst_69 [2] : vector<8x8x16xf32> to vector<8x8xf32>
    %222 = vector.shape_cast %221 : vector<8x8xf32> to vector<8x8x1xf32>
    %223 = arith.maximumf %222, %220 : vector<8x8x1xf32>
    %224 = vector.broadcast %223 : vector<8x8x1xf32> to vector<8x8x16xf32>
    %225 = arith.subf %213, %224 : vector<8x8x16xf32>
    %226 = math.exp %225 : vector<8x8x16xf32>
    %227 = arith.subf %220, %223 : vector<8x8x1xf32>
    %228 = math.exp %227 : vector<8x8x1xf32>
    %cst_70 = arith.constant dense<0.000000e+00> : vector<8x8xf32>
    %229 = vector.multi_reduction <add>, %226, %cst_70 [2] : vector<8x8x16xf32> to vector<8x8xf32>
    %230 = vector.shape_cast %229 : vector<8x8xf32> to vector<8x8x1xf32>
    %231 = arith.addf %230, %228 : vector<8x8x1xf32>
    %cst_71 = arith.constant 1.000000e+00 : f32
    %232 = vector.broadcast %cst_71 : f32 to vector<8x8x1xf32>
    %233 = arith.divf %232, %231 : vector<8x8x1xf32>
    %234 = vector.broadcast %233 : vector<8x8x1xf32> to vector<8x8x16xf32>
    %235 = arith.mulf %226, %234 : vector<8x8x16xf32>
    %236 = arith.mulf %228, %233 : vector<8x8x1xf32>
    %237 = arith.truncf %235 : vector<8x8x16xf32> to vector<8x8x16xbf16>
    %238 = arith.truncf %206 : vector<8x16x32xf32> to vector<8x16x32xbf16>
    %cst_72 = arith.constant dense<0.000000e+00> : vector<8x8x32xf32>
    %239 = tpu.matmul %237, %238, %cst_72 {dimension_numbers = #tpu.dot_dimension_numbers<[2], [1], [1], [2], [0, 0, 0, 1, 1, 2], [0], [0]>} : vector<8x8x16xbf16>, vector<8x16x32xbf16>, vector<8x8x32xf32> -> vector<8x8x32xf32>
    %240 = vector.shape_cast %239 : vector<8x8x32xf32> to vector<4x2x8x32xf32>
    %241 = vector.shape_cast %236 : vector<8x8x1xf32> to vector<4x2x8x1xf32>
    %242 = vector.shape_cast %210 : vector<4x32xf32> to vector<4x1x1x32xf32>
    %243 = vector.broadcast %241 : vector<4x2x8x1xf32> to vector<4x2x8x32xf32>
    %244 = vector.broadcast %242 : vector<4x1x1x32xf32> to vector<4x2x8x32xf32>
    %245 = arith.mulf %243, %244 : vector<4x2x8x32xf32>
    %246 = arith.addf %240, %245 : vector<4x2x8x32xf32>
    %247 = vector.extract_strided_slice %246 {offsets = [0, 0, 0, 0], sizes = [1, 2, 8, 32], strides = [1, 1, 1, 1]} : vector<4x2x8x32xf32> to vector<1x2x8x32xf32>
    %248 = vector.shape_cast %247 : vector<1x2x8x32xf32> to vector<2x8x32xf32>
    %249 = vector.shape_cast %248 : vector<2x8x32xf32> to vector<16x32xf32>
    %250 = vector.extract_strided_slice %246 {offsets = [1, 0, 0, 0], sizes = [1, 2, 8, 32], strides = [1, 1, 1, 1]} : vector<4x2x8x32xf32> to vector<1x2x8x32xf32>
    %251 = vector.shape_cast %250 : vector<1x2x8x32xf32> to vector<2x8x32xf32>
    %252 = vector.shape_cast %251 : vector<2x8x32xf32> to vector<16x32xf32>
    %253 = vector.extract_strided_slice %246 {offsets = [2, 0, 0, 0], sizes = [1, 2, 8, 32], strides = [1, 1, 1, 1]} : vector<4x2x8x32xf32> to vector<1x2x8x32xf32>
    %254 = vector.shape_cast %253 : vector<1x2x8x32xf32> to vector<2x8x32xf32>
    %255 = vector.shape_cast %254 : vector<2x8x32xf32> to vector<16x32xf32>
    %256 = vector.extract_strided_slice %246 {offsets = [3, 0, 0, 0], sizes = [1, 2, 8, 32], strides = [1, 1, 1, 1]} : vector<4x2x8x32xf32> to vector<1x2x8x32xf32>
    %257 = vector.shape_cast %256 : vector<1x2x8x32xf32> to vector<2x8x32xf32>
    %258 = vector.shape_cast %257 : vector<2x8x32xf32> to vector<16x32xf32>
    %259 = tpu.concatenate %249, %252, %255, %258 in 1 : vector<16x32xf32>, vector<16x32xf32>, vector<16x32xf32>, vector<16x32xf32> -> vector<16x128xf32>
    %260 = arith.truncf %259 : vector<16x128xf32> to vector<16x128xbf16>
    %c0_73 = arith.constant 0 : index
    %c0_74 = arith.constant 0 : index
    %261 = vector.load %arg13[%c0_73, %c0_74] : memref<128x128xbf16, #tpu.memory_space<vmem>>, vector<128x128xbf16>
    %cst_75 = arith.constant dense<0.000000e+00> : vector<16x128xf32>
    %262 = tpu.matmul %260, %261, %cst_75 {dimension_numbers = #tpu.dot_dimension_numbers<[1], [0], [0], [1], [0, 0, 1, 1], [], []>} : vector<16x128xbf16>, vector<128x128xbf16>, vector<16x128xf32> -> vector<16x128xf32>
    %c0_76 = arith.constant 0 : index
    %c0_77 = arith.constant 0 : index
    %263 = vector.load %arg14[%c0_76, %c0_77] : memref<1x128xf32, #tpu.memory_space<vmem>>, vector<1x128xf32>
    %264 = vector.broadcast %263 : vector<1x128xf32> to vector<16x128xf32>
    %265 = arith.addf %262, %264 : vector<16x128xf32>
    %266 = vector.shape_cast %265 : vector<16x128xf32> to vector<2x8x128xf32>
    %267 = vector.shape_cast %235 : vector<8x8x16xf32> to vector<4x2x8x16xf32>
    %cst_78 = arith.constant dense<0.000000e+00> : vector<2x8x16xf32>
    %268 = vector.multi_reduction <add>, %267, %cst_78 [0] : vector<4x2x8x16xf32> to vector<2x8x16xf32>
    %cst_79 = arith.constant 2.500000e-01 : f32
    %269 = vector.broadcast %cst_79 : f32 to vector<2x8x16xf32>
    %270 = arith.mulf %268, %269 : vector<2x8x16xf32>
    %271 = vector.shape_cast %236 : vector<8x8x1xf32> to vector<4x2x8x1xf32>
    %cst_80 = arith.constant dense<0.000000e+00> : vector<2x8x1xf32>
    %272 = vector.multi_reduction <add>, %271, %cst_80 [0] : vector<4x2x8x1xf32> to vector<2x8x1xf32>
    %cst_81 = arith.constant 2.500000e-01 : f32
    %273 = vector.broadcast %cst_81 : f32 to vector<2x8x1xf32>
    %274 = arith.mulf %272, %273 : vector<2x8x1xf32>
    %cst_82 = arith.constant 0.000000e+00 : f32
    %275 = vector.broadcast %cst_82 : f32 to vector<2x8x111xf32>
    %276 = tpu.concatenate %270, %274, %275 in 2 : vector<2x8x16xf32>, vector<2x8x1xf32>, vector<2x8x111xf32> -> vector<2x8x128xf32>
    %c0_83 = arith.constant 0 : index
    %c0_84 = arith.constant 0 : index
    %c0_85 = arith.constant 0 : index
    %277 = vector.load %arg23[%c0_83, %c0_84, %c0_85] : memref<2x8x128xf32, #tpu.memory_space<vmem>>, vector<2x8x128xf32>
    tpu.vector_store %arg23[%c0_83, %c0_84, %c0_85], %276 {strides = array<i32>} : memref<2x8x128xf32, #tpu.memory_space<vmem>>, vector<2x8x128xf32>,
    %278 = arith.addf %162, %266 : vector<2x8x128xf32>
    %c2 = arith.constant 2 : index
    %c0_86 = arith.constant 0 : index
    %279 = vector.load %arg19[%c2, %c0_86] : memref<3x128xf32, #tpu.memory_space<vmem>>, vector<1x128xf32>
    %c2_87 = arith.constant 2 : index
    %c0_88 = arith.constant 0 : index
    %280 = vector.load %arg20[%c2_87, %c0_88] : memref<3x128xf32, #tpu.memory_space<vmem>>, vector<1x128xf32>
    %cst_89 = arith.constant dense<0.000000e+00> : vector<2x8xf32>
    %281 = vector.multi_reduction <add>, %278, %cst_89 [2] : vector<2x8x128xf32> to vector<2x8xf32>
    %282 = vector.shape_cast %281 : vector<2x8xf32> to vector<2x8x1xf32>
    %cst_90 = arith.constant 1.280000e+02 : f32
    %283 = vector.broadcast %cst_90 : f32 to vector<2x8x1xf32>
    %284 = arith.divf %282, %283 : vector<2x8x1xf32>
    %285 = vector.broadcast %284 : vector<2x8x1xf32> to vector<2x8x128xf32>
    %286 = arith.subf %278, %285 : vector<2x8x128xf32>
    %287 = arith.mulf %286, %286 : vector<2x8x128xf32>
    %cst_91 = arith.constant dense<0.000000e+00> : vector<2x8xf32>
    %288 = vector.multi_reduction <add>, %287, %cst_91 [2] : vector<2x8x128xf32> to vector<2x8xf32>
    %289 = vector.shape_cast %288 : vector<2x8xf32> to vector<2x8x1xf32>
    %cst_92 = arith.constant 1.280000e+02 : f32
    %290 = vector.broadcast %cst_92 : f32 to vector<2x8x1xf32>
    %291 = arith.divf %289, %290 : vector<2x8x1xf32>
    %292 = vector.broadcast %284 : vector<2x8x1xf32> to vector<2x8x128xf32>
    %293 = arith.subf %278, %292 : vector<2x8x128xf32>
    %cst_93 = arith.constant 9.99999974E-6 : f32
    %294 = vector.broadcast %cst_93 : f32 to vector<2x8x1xf32>
    %295 = arith.addf %291, %294 : vector<2x8x1xf32>
    %296 = math.rsqrt %295 : vector<2x8x1xf32>
    %297 = vector.broadcast %296 : vector<2x8x1xf32> to vector<2x8x128xf32>
    %298 = arith.mulf %293, %297 : vector<2x8x128xf32>
    %299 = vector.shape_cast %279 : vector<1x128xf32> to vector<1x1x128xf32>
    %300 = vector.broadcast %299 : vector<1x1x128xf32> to vector<2x8x128xf32>
    %301 = arith.mulf %298, %300 : vector<2x8x128xf32>
    %302 = vector.shape_cast %280 : vector<1x128xf32> to vector<1x1x128xf32>
    %303 = vector.broadcast %302 : vector<1x1x128xf32> to vector<2x8x128xf32>
    %304 = arith.addf %301, %303 : vector<2x8x128xf32>
    %305 = vector.shape_cast %304 : vector<2x8x128xf32> to vector<16x128xf32>
    %306 = arith.truncf %305 : vector<16x128xf32> to vector<16x128xbf16>
    %c0_94 = arith.constant 0 : index
    %c0_95 = arith.constant 0 : index
    %307 = vector.load %arg15[%c0_94, %c0_95] : memref<128x256xbf16, #tpu.memory_space<vmem>>, vector<128x256xbf16>
    %cst_96 = arith.constant dense<0.000000e+00> : vector<16x256xf32>
    %308 = tpu.matmul %306, %307, %cst_96 {dimension_numbers = #tpu.dot_dimension_numbers<[1], [0], [0], [1], [0, 0, 1, 1], [], []>} : vector<16x128xbf16>, vector<128x256xbf16>, vector<16x256xf32> -> vector<16x256xf32>
    %c0_97 = arith.constant 0 : index
    %c0_98 = arith.constant 0 : index
    %309 = vector.load %arg16[%c0_97, %c0_98] : memref<1x256xf32, #tpu.memory_space<vmem>>, vector<1x256xf32>
    %310 = vector.broadcast %309 : vector<1x256xf32> to vector<16x256xf32>
    %311 = arith.addf %308, %310 : vector<16x256xf32>
    %cst_99 = arith.constant 0.000000e+00 : f32
    %312 = vector.broadcast %cst_99 : f32 to vector<16x256xf32>
    %313 = arith.maximumf %311, %312 : vector<16x256xf32>
    %314 = arith.truncf %313 : vector<16x256xf32> to vector<16x256xbf16>
    %c0_100 = arith.constant 0 : index
    %c0_101 = arith.constant 0 : index
    %315 = vector.load %arg17[%c0_100, %c0_101] : memref<256x128xbf16, #tpu.memory_space<vmem>>, vector<256x128xbf16>
    %cst_102 = arith.constant dense<0.000000e+00> : vector<16x128xf32>
    %316 = tpu.matmul %314, %315, %cst_102 {dimension_numbers = #tpu.dot_dimension_numbers<[1], [0], [0], [1], [0, 0, 1, 1], [], []>} : vector<16x256xbf16>, vector<256x128xbf16>, vector<16x128xf32> -> vector<16x128xf32>
    %c0_103 = arith.constant 0 : index
    %c0_104 = arith.constant 0 : index
    %317 = vector.load %arg18[%c0_103, %c0_104] : memref<1x128xf32, #tpu.memory_space<vmem>>, vector<1x128xf32>
    %318 = vector.broadcast %317 : vector<1x128xf32> to vector<16x128xf32>
    %319 = arith.addf %316, %318 : vector<16x128xf32>
    %320 = vector.shape_cast %319 : vector<16x128xf32> to vector<2x8x128xf32>
    %321 = arith.addf %304, %320 : vector<2x8x128xf32>
    %c0_105 = arith.constant 0 : index
    %c0_106 = arith.constant 0 : index
    %c0_107 = arith.constant 0 : index
    %322 = vector.load %arg21[%c0_105, %c0_106, %c0_107] : memref<2x8x128xf32, #tpu.memory_space<vmem>>, vector<2x8x128xf32>
    tpu.vector_store %arg21[%c0_105, %c0_106, %c0_107], %321 {strides = array<i32>} : memref<2x8x128xf32, #tpu.memory_space<vmem>>, vector<2x8x128xf32>,
    return
  }
  func.func @transform_0(%arg0: i32) -> (i32, i32, i32) {
    %c0_i32 = arith.constant 0 : i32
    %c0_i32_0 = arith.constant 0 : i32
    %c0_i32_1 = arith.constant 0 : i32
    return %arg0, %c0_i32, %c0_i32_0 : i32, i32, i32
  }
  func.func @transform_1(%arg0: i32) -> (i32, i32, i32) {
    %c0_i32 = arith.constant 0 : i32
    %c0_i32_0 = arith.constant 0 : i32
    %c0_i32_1 = arith.constant 0 : i32
    return %arg0, %c0_i32, %c0_i32_0 : i32, i32, i32
  }
  func.func @transform_2(%arg0: i32) -> (i32, i32) {
    %c0_i32 = arith.constant 0 : i32
    %c0_i32_0 = arith.constant 0 : i32
    %c0_i32_1 = arith.constant 0 : i32
    return %c0_i32, %c0_i32_0 : i32, i32
  }
  func.func @transform_3(%arg0: i32) -> (i32, i32) {
    %c0_i32 = arith.constant 0 : i32
    %c0_i32_0 = arith.constant 0 : i32
    %c0_i32_1 = arith.constant 0 : i32
    return %c0_i32, %c0_i32_0 : i32, i32
  }
  func.func @transform_4(%arg0: i32) -> (i32, i32, i32) {
    %c0_i32 = arith.constant 0 : i32
    %c0_i32_0 = arith.constant 0 : i32
    %c0_i32_1 = arith.constant 0 : i32
    %c0_i32_2 = arith.constant 0 : i32
    return %c0_i32, %c0_i32_0, %c0_i32_1 : i32, i32, i32
  }
  func.func @transform_5(%arg0: i32) -> (i32, i32) {
    %c0_i32 = arith.constant 0 : i32
    %c0_i32_0 = arith.constant 0 : i32
    %c0_i32_1 = arith.constant 0 : i32
    return %c0_i32, %c0_i32_0 : i32, i32
  }
  func.func @transform_6(%arg0: i32) -> (i32, i32) {
    %c0_i32 = arith.constant 0 : i32
    %c0_i32_0 = arith.constant 0 : i32
    %c0_i32_1 = arith.constant 0 : i32
    return %c0_i32, %c0_i32_0 : i32, i32
  }
  func.func @transform_7(%arg0: i32) -> (i32, i32) {
    %c0_i32 = arith.constant 0 : i32
    %c0_i32_0 = arith.constant 0 : i32
    %c0_i32_1 = arith.constant 0 : i32
    return %c0_i32, %c0_i32_0 : i32, i32
  }
  func.func @transform_8(%arg0: i32) -> (i32, i32) {
    %c0_i32 = arith.constant 0 : i32
    %c0_i32_0 = arith.constant 0 : i32
    %c0_i32_1 = arith.constant 0 : i32
    return %c0_i32, %c0_i32_0 : i32, i32
  }
  func.func @transform_9(%arg0: i32) -> (i32, i32) {
    %c0_i32 = arith.constant 0 : i32
    %c0_i32_0 = arith.constant 0 : i32
    %c0_i32_1 = arith.constant 0 : i32
    return %c0_i32, %c0_i32_0 : i32, i32
  }
  func.func @transform_10(%arg0: i32) -> (i32, i32) {
    %c0_i32 = arith.constant 0 : i32
    %c0_i32_0 = arith.constant 0 : i32
    %c0_i32_1 = arith.constant 0 : i32
    return %c0_i32, %c0_i32_0 : i32, i32
  }
  func.func @transform_11(%arg0: i32) -> (i32, i32, i32) {
    %c0_i32 = arith.constant 0 : i32
    %c0_i32_0 = arith.constant 0 : i32
    %c0_i32_1 = arith.constant 0 : i32
    %c0_i32_2 = arith.constant 0 : i32
    return %c0_i32, %c0_i32_0, %c0_i32_1 : i32, i32, i32
  }
  func.func @transform_12(%arg0: i32) -> (i32, i32) {
    %c0_i32 = arith.constant 0 : i32
    %c0_i32_0 = arith.constant 0 : i32
    %c0_i32_1 = arith.constant 0 : i32
    return %c0_i32, %c0_i32_0 : i32, i32
  }
  func.func @transform_13(%arg0: i32) -> (i32, i32) {
    %c0_i32 = arith.constant 0 : i32
    %c0_i32_0 = arith.constant 0 : i32
    %c0_i32_1 = arith.constant 0 : i32
    return %c0_i32, %c0_i32_0 : i32, i32
  }
  func.func @transform_14(%arg0: i32) -> (i32, i32) {
    %c0_i32 = arith.constant 0 : i32
    %c0_i32_0 = arith.constant 0 : i32
    %c0_i32_1 = arith.constant 0 : i32
    return %c0_i32, %c0_i32_0 : i32, i32
  }
  func.func @transform_15(%arg0: i32) -> (i32, i32) {
    %c0_i32 = arith.constant 0 : i32
    %c0_i32_0 = arith.constant 0 : i32
    %c0_i32_1 = arith.constant 0 : i32
    return %c0_i32, %c0_i32_0 : i32, i32
  }
  func.func @transform_16(%arg0: i32) -> (i32, i32) {
    %c0_i32 = arith.constant 0 : i32
    %c0_i32_0 = arith.constant 0 : i32
    %c0_i32_1 = arith.constant 0 : i32
    return %c0_i32, %c0_i32_0 : i32, i32
  }
  func.func @transform_17(%arg0: i32) -> (i32, i32) {
    %c0_i32 = arith.constant 0 : i32
    %c0_i32_0 = arith.constant 0 : i32
    %c0_i32_1 = arith.constant 0 : i32
    return %c0_i32, %c0_i32_0 : i32, i32
  }
  func.func @transform_18(%arg0: i32) -> (i32, i32) {
    %c0_i32 = arith.constant 0 : i32
    %c0_i32_0 = arith.constant 0 : i32
    %c0_i32_1 = arith.constant 0 : i32
    return %c0_i32, %c0_i32_0 : i32, i32
  }
  func.func @transform_19(%arg0: i32) -> (i32, i32) {
    %c0_i32 = arith.constant 0 : i32
    %c0_i32_0 = arith.constant 0 : i32
    %c0_i32_1 = arith.constant 0 : i32
    return %c0_i32, %c0_i32_0 : i32, i32
  }
  func.func @transform_20(%arg0: i32) -> (i32, i32, i32) {
    %c0_i32 = arith.constant 0 : i32
    %c0_i32_0 = arith.constant 0 : i32
    %c0_i32_1 = arith.constant 0 : i32
    return %arg0, %c0_i32, %c0_i32_0 : i32, i32, i32
  }
  func.func @transform_21(%arg0: i32) -> (i32, i32, i32) {
    %c0_i32 = arith.constant 0 : i32
    %c0_i32_0 = arith.constant 0 : i32
    %c0_i32_1 = arith.constant 0 : i32
    return %arg0, %c0_i32, %c0_i32_0 : i32, i32, i32
  }
  func.func @transform_22(%arg0: i32) -> (i32, i32, i32) {
    %c0_i32 = arith.constant 0 : i32
    %c0_i32_0 = arith.constant 0 : i32
    %c0_i32_1 = arith.constant 0 : i32
    return %arg0, %c0_i32, %c0_i32_0 : i32, i32, i32
  }
}

</mosaic_0001>

<bundles_post_ra>
// kernel: tpu_custom_call.1
= control target key start
LH: loop header
LB: loop body
LE: loop exit
PB: predicated region body
PF: predicated region fallthrough
CT: control target
= control target key end

     0   :  { %s7920_s0 = inlined_call_operand.hbm [shape: f32[4,8,128], index: 0, kind: input, shape index: {}]   ;;  %s7921_s1 = inlined_call_operand.hbm [shape: f32[4,16,128], index: 1, kind: input, shape index: {}]   ;;  %s7922_s2 = inlined_call_operand.hbm [shape: bf16[128,384], index: 2, kind: input, shape index: {}]   ;;  %s7923_s3 = inlined_call_operand.hbm [shape: f32[1,384], index: 3, kind: input, shape index: {}]   ;;  %s7924_s4 = inlined_call_operand.hbm [shape: f32[2,4,32], index: 4, kind: input, shape index: {}]   ;;  %s7925_s5 = inlined_call_operand.hbm [shape: bf16[128,128], index: 5, kind: input, shape index: {}]   ;;  %s7926_s6 = inlined_call_operand.hbm [shape: f32[1,128], index: 6, kind: input, shape index: {}]   ;;  %s7927_s7 = inlined_call_operand.hbm [shape: bf16[128,128], index: 7, kind: input, shape index: {}]   ;;  %s7928_s8 = inlined_call_operand.hbm [shape: f32[1,128], index: 8, kind: input, shape index: {}]   ;;  %s7929_s9 = inlined_call_operand.hbm [shape: bf16[128,256], index: 9, kind: input, shape index: {}]   ;;  %s7930_s10 = inlined_call_operand.vmem [shape: f32[1,256], index: 10, kind: input, shape index: {}]   ;;  %s7931_s11 = inlined_call_operand.vmem [shape: f32[2,4,32], index: 11, kind: input, shape index: {}]   ;;  %s7932_s12 = inlined_call_operand.hbm [shape: bf16[128,128], index: 12, kind: input, shape index: {}]   ;;  %s7933_s13 = inlined_call_operand.vmem [shape: f32[1,128], index: 13, kind: input, shape index: {}]   ;;  %s7934_s14 = inlined_call_operand.hbm [shape: bf16[128,256], index: 14, kind: input, shape index: {}]   ;;  %s7935_s15 = inlined_call_operand.vmem [shape: f32[1,256], index: 15, kind: input, shape index: {}]   ;;  %s7936_s16 = inlined_call_operand.hbm [shape: bf16[256,128], index: 16, kind: input, shape index: {}]   ;;  %s7937_s17 = inlined_call_operand.vmem [shape: f32[1,128], index: 17, kind: input, shape index: {}]   ;;  %s7938_s18 = inlined_call_operand.vmem [shape: f32[3,128], index: 18, kind: input, shape index: {}]   ;;  %s7939_s19 = inlined_call_operand.vmem [shape: f32[3,128], index: 19, kind: input, shape index: {}]   ;;  %s7940_s20 = inlined_call_operand.hbm [shape: f32[4,8,128], index: 20, kind: output, shape index: {0}]   ;;  %s7941_s21 = inlined_call_operand.hbm [shape: f32[4,8,128], index: 21, kind: output, shape index: {1}]   ;;  %s7942_s22 = inlined_call_operand.hbm [shape: f32[4,8,128], index: 22, kind: output, shape index: {2}]  }
   0x1   :  { %7958 = sst [smem:[#allocation39_spill]] %s7920_s0 }
   0x2   :  { %7959 = sst [smem:[#allocation40_spill]] %s7921_s1 }
   0x3   :  { %7960 = sst [smem:[#allocation41_spill]] %s7922_s2 }
   0x4   :  { %7961 = sst [smem:[#allocation42_spill]] %s7923_s3 }
   0x5   :  { %7962 = sst [smem:[#allocation43_spill]] %s7924_s4 }
   0x6   :  { %7963 = sst [smem:[#allocation44_spill]] %s7925_s5 }
   0x7   :  { %7964 = sst [smem:[#allocation45_spill]] %s7926_s6 }
   0x8   :  { %7965 = sst [smem:[#allocation46_spill]] %s7927_s7 }
   0x9   :  { %7966 = sst [smem:[#allocation47_spill]] %s7928_s8 }
   0xa   :  { %7967 = sst [smem:[#allocation48_spill]] %s7929_s9 }
   0xb   :  { %7968 = sst [smem:[#allocation49_spill]] %s7932_s12 }
   0xc   :  { %7969 = sst [smem:[#allocation50_spill]] %s7933_s13 }
   0xd   :  { %7970 = sst [smem:[#allocation51_spill]] %s7934_s14 }
   0xe   :  { %7971 = sst [smem:[#allocation52_spill]] %s7935_s15 }
   0xf   :  { %7972 = sst [smem:[#allocation53_spill]] %s7936_s16 }
  0x10   :  { %7973 = sst [smem:[#allocation54_spill]] %s7937_s17 }
  0x11   :  { %7974 = sst [smem:[#allocation55_spill]] %s7940_s20 }
  0x12   :  { %7975 = sst [smem:[#allocation56_spill]] %s7941_s21 }
  0x13   :  { %7976 = sst [smem:[#allocation57_spill]] %s7942_s22 }
  0x14   :  { %28 = vsyncpa [#allocation3], 0 }
  0x15   :  { %30 = vsyncpa [#allocation3 + $0x1], 0 }
  0x16   :  { %31 = vsyncpa [#allocation6], 0 }
  0x17   :  { %33 = vsyncpa [#allocation6 + $0x1], 0 }
  0x18   :  { %34 = vsyncpa [#allocation9], 0 }
  0x19   :  { %35 = vsyncpa [#allocation12], 0 }
  0x1a   :  { %36 = vsyncpa [#allocation15], 0 }
  0x1b   :  { %37 = vsyncpa [#allocation18], 0 }
  0x1c   :  { %38 = vsyncpa [#allocation21], 0 }
  0x1d   :  { %39 = vsyncpa [#allocation4], 0 }
  0x1e   :  { %41 = vsyncpa [#allocation4 + $0x1], 0 }
  0x1f   :  { %42 = vsyncpa [#allocation25], 0 }
  0x20   :  { %44 = vsyncpa [#allocation25 + $0x1], 0  ;;  %s6595_s3 = smov 0   ;;  %s6597_s28 = smov 0  }
  0x21   :  { %s6599_s29 = smov 0   ;;  %s6601_s30 = smov 0  }
  0x22 LB: > { %7977 = sst [smem:[#allocation37_spill]] %s6443_s29  ;;  %s6449_s4 = smov [#allocation7]   ;;  %s6447_s30 = sphi %s6601_s30, %s8031_s30   ;;  %s6443_s29 = sphi %s6599_s29, %s8028_s29   ;;  %s6439_s28 = sphi %s6597_s28, %s8030_s28   ;;  %s6435_s3 = sphi %s6595_s3, %s8029_s3  }
  0x23   : > { %s575_s0 = sshll.u32 %s6449_s4, 4  ;;  %s6616_s23 = sadd.s32 4294967295, %s6447_s30   ;;  %s576_s0 = int_to_ptr.vmem [resolvable:$true] %s575_s0 }
  0x24   : > { %p4829_p0 = scmp.ge.s32.totalorder %s6447_s30, 1  ;;  %p7948_p1 = scmp.eq.s32.totalorder %s6616_s23, 0 }
  0x25   : > { %p563_p2 = scmp.lt.s32.totalorder %s6447_s30, 3  ;;  %s6450_s5 = smov [#allocation8]  }
  0x26   : > { %s589_s24 = sshll.u32 %s6450_s5, 4  ;;  %s6451_s25 = smov [#allocation11]   ;;  %s590_s24 = int_to_ptr.vmem [resolvable:$true] %s589_s24 }
  0x27   : > { %p6621_p3 = pnand %p4829_p0, %p563_p2  ;;  %s612_s26 = sshll.u32 %s6451_s25, 4  ;;  %s613_s26 = int_to_ptr.vmem [resolvable:$true] %s612_s26 }
  0x28   : > { %s5968_s27 = scalar_lea.vmem %s576_s0, 3072  ;;  %p5976_p11 = scmp.lt.s32.totalorder %s576_s0, %s576_s0 }
  0x29   : > { %s7978_s1 = scalar_select %p6621_p3, 1, 0 }
  0x2a   : > { %p5474_p5 = pneg %p6621_p3  ;;  %p5969_p8 = scmp.ne.s32.totalorder %s576_s0, %s5968_s27 }
  0x2b   : > { %p5977_p12 = scmp.lt.s32.totalorder %s5968_s27, %s5968_s27 }
  0x2c   : > { %p6630_p6 = pnand %p5474_p5, %p7948_p1 }
  0x2d   : > { %p5978_p13 = por %p5977_p12, %p5976_p11 }
  0x2e   : > { %p6636_p7 = pneg %p6630_p6 }
  0x30   : > { %p5971_p9 = pnand %p5969_p8, %p6636_p7 }
  0x32   : > { %p5972_p10 = pneg %p5971_p9 }
  0x34   : > { %p5979_p0 = pnand %p5978_p13, %p5972_p10 }
  0x36   : > { %5982 = shalt.err (!%p5979_p0)
}
  0x37   : > { %s6452_s4 = smov 192   ;;  %s6453_s5 = smov 12  }
  0x38   : > { %s7981_s17 = sld [smem:[#allocation41_spill]]  ;;  %s5994_s22 = scalar_lea.vmem %s590_s24, 48 }
  0x39   : > { %p5995_p2 = scmp.ne.s32.totalorder %s590_s24, %s5994_s22  ;;  %s6001_s21 = scalar_lea.vmem %s590_s24, 64 }
  0x3a   : > { %p6002_p9 = scmp.lt.s32.totalorder %s590_s24, %s590_s24  ;;  %p6003_p4 = scmp.lt.s32.totalorder %s6001_s21, %s5994_s22 }
  0x3b   : > { %p5997_p5 = pnand %p5995_p2, %p6636_p7 }
  0x3c   : > { %p6004_p11 = por %p6003_p4, %p6002_p9 }
  0x3d   : > { %p5998_p8 = pneg %p5997_p5 }
  0x3e   : > { %5477 = dma.hbm_to_vmem [thread:$0]  (!%p6630_p6), %s7981_s17, 3072, %s576_s0, [#allocation6], %s6452_s4, %s6452_s4, %s6453_s5  }
  0x3f   : > { %p6005_p10 = pnand %p6004_p11, %p5998_p8 }
  0x41   : > { %6008 = shalt.err (!%p6005_p10)
}
  0x42   : > { %s7982_s13 = sld [smem:[#allocation42_spill]]  ;;  %s6020_s17 = scalar_lea.vmem %s613_s26, 1024 }
  0x43   : > { %p6021_p12 = scmp.ne.s32.totalorder %s613_s26, %s6020_s17  ;;  %p6028_p2 = scmp.lt.s32.totalorder %s613_s26, %s613_s26 }
  0x44   : > { %p6029_p5 = scmp.lt.s32.totalorder %s6020_s17, %s6020_s17 }
  0x45   : > { %p6023_p13 = pnand %p6021_p12, %p6636_p7 }
  0x46   : > { %p6030_p1 = por %p6029_p5, %p6028_p2 }
  0x47   : > { %p6024_p0 = pneg %p6023_p13 }
  0x48   : > { %5480 = dma.hbm_to_vmem [thread:$0]  (!%p6630_p6), %s7982_s13, 48, %s590_s24, [#allocation9]  }
  0x49   : > { %p6031_p3 = pnand %p6030_p1, %p6024_p0 }
  0x4b   : > { %6034 = shalt.err (!%p6031_p3)
}
  0x4c   : > { %s6454_s20 = smov 64   ;;  %s6455_s21 = smov 4  }
  0x4d   : > { %s7983_s22 = sld [smem:[#allocation44_spill]]  ;;  %s6456_s0 = smov [#allocation14]  }
  0x4e   : > { %s636_s24 = sshll.u32 %s6456_s0, 4  ;;  %s6457_s4 = smov [#allocation17]   ;;  %s637_s24 = int_to_ptr.vmem [resolvable:$true] %s636_s24 }
  0x4f   : > { %s660_s5 = sshll.u32 %s6457_s4, 4  ;;  %s6046_s25 = scalar_lea.vmem %s637_s24, 1024  ;;  %s661_s5 = int_to_ptr.vmem [resolvable:$true] %s660_s5 }
  0x50   : > { %p6047_p1 = scmp.ne.s32.totalorder %s637_s24, %s6046_s25  ;;  %p6054_p8 = scmp.lt.s32.totalorder %s637_s24, %s637_s24 }
  0x51   : > { %p6055_p9 = scmp.lt.s32.totalorder %s6046_s25, %s6046_s25 }
  0x52   : > { %p6049_p3 = pnand %p6047_p1, %p6636_p7 }
  0x53   : > { %5486 = dma.hbm_to_vmem [thread:$0]  (!%p6630_p6), %s7983_s22, 1024, %s613_s26, [#allocation12], %s6454_s20, %s6454_s20, %s6455_s21  }
  0x54   : > { %p6050_p4 = pneg %p6049_p3  ;;  %p6056_p11 = por %p6055_p9, %p6054_p8 }
  0x56   : > { %p6057_p10 = pnand %p6056_p11, %p6050_p4 }
  0x58   : > { %6060 = shalt.err (!%p6057_p10)
}
  0x59   : > { %s7984_s7 = sld [smem:[#allocation46_spill]]  ;;  %s6072_s17 = scalar_lea.vmem %s661_s5, 2048 }
  0x5a   : > { %p6073_p12 = scmp.ne.s32.totalorder %s661_s5, %s6072_s17  ;;  %p6080_p2 = scmp.lt.s32.totalorder %s661_s5, %s661_s5 }
  0x5b   : > { %p6081_p5 = scmp.lt.s32.totalorder %s6072_s17, %s6072_s17 }
  0x5c   : > { %p6075_p13 = pnand %p6073_p12, %p6636_p7 }
  0x5d   : > { %p6082_p1 = por %p6081_p5, %p6080_p2 }
  0x5e   : > { %p6076_p0 = pneg %p6075_p13 }
  0x5f   : > { %5492 = dma.hbm_to_vmem [thread:$0]  (!%p6630_p6), %s7984_s7, 1024, %s637_s24, [#allocation15], %s6454_s20, %s6454_s20, %s6455_s21  }
  0x60   : > { %p6083_p3 = pnand %p6082_p1, %p6076_p0 }
  0x62   : > { %6086 = shalt.err (!%p6083_p3)
}
  0x63   : > { %s7950_s13 = smov 128   ;;  %s7953_s15 = smov 8  }
  0x64   : > { %s7985_s9 = sld [smem:[#allocation48_spill]]  ;;  %s6460_s24 = smov [#allocation20]  }
  0x65   : > { %s695_s4 = sshll.u32 %s6460_s24, 4  ;;  %s6461_s25 = smov [#allocation10]   ;;  %s696_s4 = int_to_ptr.vmem [resolvable:$true] %s695_s4 }
  0x66   : > { %s599_s26 = sshll.u32 %s6461_s25, 4  ;;  %s6098_s27 = scalar_lea.vmem %s696_s4, 2048  ;;  %s600_s26 = int_to_ptr.vmem [resolvable:$true] %s599_s26 }
  0x67   : > { %p6099_p4 = scmp.ne.s32.totalorder %s696_s4, %s6098_s27  ;;  %p6106_p11 = scmp.lt.s32.totalorder %s696_s4, %s696_s4 }
  0x68   : > { %p6107_p10 = scmp.lt.s32.totalorder %s6098_s27, %s6098_s27 }
  0x69   : > { %p6101_p8 = pnand %p6099_p4, %p6636_p7 }
  0x6a   : > { %5498 = dma.hbm_to_vmem [thread:$0]  (!%p6630_p6), %s7985_s9, 2048, %s661_s5, [#allocation18], %s7950_s13, %s7950_s13, %s7953_s15  }
  0x6b   : > { %p6102_p9 = pneg %p6101_p8  ;;  %p6108_p12 = por %p6107_p10, %p6106_p11 }
  0x6d   : > { %p6109_p13 = pnand %p6108_p12, %p6102_p9 }
  0x6f   : > { %6112 = shalt.err (!%p6109_p13)
}
  0x70   : > { %s7986_s14 = sld [smem:[#allocation51_spill]]  ;;  %s6124_s22 = scalar_lea.vmem %s600_s26, 128 }
  0x71   : > { %p6125_p0 = scmp.ne.s32.totalorder %s600_s26, %s6124_s22  ;;  %p6132_p1 = scmp.lt.s32.totalorder %s600_s26, %s600_s26 }
  0x72   : > { %p6133_p3 = scmp.lt.s32.totalorder %s6124_s22, %s6124_s22 }
  0x73   : > { %p6127_p2 = pnand %p6125_p0, %p6636_p7 }
  0x74   : > { %p6134_p4 = por %p6133_p3, %p6132_p1 }
  0x75   : > { %p6128_p5 = pneg %p6127_p2 }
  0x76   : > { %5504 = dma.hbm_to_vmem [thread:$0]  (!%p6630_p6), %s7986_s14, 2048, %s696_s4, [#allocation21], %s7950_s13, %s7950_s13, %s7953_s15  }
  0x77   : > { %p6135_p8 = pnand %p6134_p4, %p6128_p5 }
  0x79   : > { %6138 = shalt.err (!%p6135_p8)
}
  0x7a   : > { %s7987_s25 = sld [smem:[#allocation43_spill]]  ;;  %s6462_s4 = smov [#allocation13]  }
  0x7b   : > { %s626_s27 = sshll.u32 %s6462_s4, 4  ;;  %s6463_s5 = smov [#allocation16]   ;;  %s627_s27 = int_to_ptr.vmem [resolvable:$true] %s626_s27 }
  0x7c   : > { %s650_s17 = sshll.u32 %s6463_s5, 4  ;;  %s6150_s13 = scalar_lea.vmem %s627_s27, 16  ;;  %s651_s17 = int_to_ptr.vmem [resolvable:$true] %s650_s17 }
  0x7d   : > { %p6151_p9 = scmp.ne.s32.totalorder %s627_s27, %s6150_s13  ;;  %s6157_s22 = scalar_lea.vmem %s627_s27, 32 }
  0x7e   : > { %p6158_p12 = scmp.lt.s32.totalorder %s627_s27, %s627_s27  ;;  %p6159_p13 = scmp.lt.s32.totalorder %s6157_s22, %s6150_s13 }
  0x7f   : > { %p6153_p11 = pnand %p6151_p9, %p6636_p7 }
  0x80   : > { %5483 = dma.hbm_to_vmem [thread:$0]  (!%p6630_p6), %s7987_s25, 128, %s600_s26, [#allocation9], %s6454_s20, %s6454_s20, %s6455_s21  }
  0x81   : > { %p6154_p10 = pneg %p6153_p11  ;;  %p6160_p0 = por %p6159_p13, %p6158_p12 }
  0x83   : > { %p6161_p2 = pnand %p6160_p0, %p6154_p10 }
  0x85   : > { %6164 = shalt.err (!%p6161_p2)
}
  0x86   : > { %s7988_s24 = sld [smem:[#allocation45_spill]]  ;;  %s6176_s25 = scalar_lea.vmem %s651_s17, 16 }
  0x87   : > { %p6177_p5 = scmp.ne.s32.totalorder %s651_s17, %s6176_s25  ;;  %s6183_s4 = scalar_lea.vmem %s651_s17, 32 }
  0x88   : > { %p6184_p4 = scmp.lt.s32.totalorder %s651_s17, %s651_s17  ;;  %p6185_p8 = scmp.lt.s32.totalorder %s6183_s4, %s6176_s25 }
  0x89   : > { %p6179_p1 = pnand %p6177_p5, %p6636_p7 }
  0x8a   : > { %p6186_p9 = por %p6185_p8, %p6184_p4 }
  0x8b   : > { %p6180_p3 = pneg %p6179_p1 }
  0x8c   : > { %5489 = dma.hbm_to_vmem [thread:$0]  (!%p6630_p6), %s7988_s24, 16, %s627_s27, [#allocation12]  }
  0x8d   : > { %p6187_p11 = pnand %p6186_p9, %p6180_p3 }
  0x8f   : > { %6190 = shalt.err (!%p6187_p11)
}
  0x90   : > { %s7989_s8 = sld [smem:[#allocation47_spill]]  ;;  %s6464_s27 = smov [#allocation19]  }
  0x91   : > { %s679_s22 = sshll.u32 %s6464_s27, 4  ;;  %s6465_s0 = smov [#allocation22]   ;;  %s680_s22 = int_to_ptr.vmem [resolvable:$true] %s679_s22 }
  0x92   : > { %s711_s26 = sshll.u32 %s6465_s0, 4  ;;  %s6202_s24 = scalar_lea.vmem %s680_s22, 1024  ;;  %s712_s26 = int_to_ptr.vmem [resolvable:$true] %s711_s26 }
  0x93   : > { %p6203_p10 = scmp.ne.s32.totalorder %s680_s22, %s6202_s24  ;;  %p6210_p0 = scmp.lt.s32.totalorder %s680_s22, %s680_s22 }
  0x94   : > { %p6211_p2 = scmp.lt.s32.totalorder %s6202_s24, %s6202_s24 }
  0x95   : > { %p6205_p12 = pnand %p6203_p10, %p6636_p7 }
  0x96   : > { %5495 = dma.hbm_to_vmem [thread:$0]  (!%p6630_p6), %s7989_s8, 16, %s651_s17, [#allocation15]  }
  0x97   : > { %p6206_p13 = pneg %p6205_p12  ;;  %p6212_p5 = por %p6211_p2, %p6210_p0 }
  0x99   : > { %p6213_p1 = pnand %p6212_p5, %p6206_p13 }
  0x9b   : > { %6216 = shalt.err (!%p6213_p1)
}
  0x9c   : > { %s7990_s12 = sld [smem:[#allocation49_spill]]  ;;  %s6228_s4 = scalar_lea.vmem %s712_s26, 2048 }
  0x9d   : > { %p6229_p3 = scmp.ne.s32.totalorder %s712_s26, %s6228_s4  ;;  %p6236_p9 = scmp.lt.s32.totalorder %s712_s26, %s712_s26 }
  0x9e   : > { %p6237_p11 = scmp.lt.s32.totalorder %s6228_s4, %s6228_s4 }
  0x9f   : > { %p6231_p4 = pnand %p6229_p3, %p6636_p7 }
  0xa0   : > { %p6238_p10 = por %p6237_p11, %p6236_p9 }
  0xa1   : > { %p6232_p8 = pneg %p6231_p4 }
  0xa2   : > { %5501 = dma.hbm_to_vmem [thread:$0]  (!%p6630_p6), %s7990_s12, 1024, %s680_s22, [#allocation18], %s6454_s20, %s6454_s20, %s6455_s21  }
  0xa3   : > { %p6239_p12 = pnand %p6238_p10, %p6232_p8 }
  0xa5   : > { %6242 = shalt.err (!%p6239_p12)
}
  0xa6   : > { %s7991_s16 = sld [smem:[#allocation53_spill]]  ;;  %s7952_s6 = sadd.s32 4294967294, %s6447_s30  }
  0xa7   : > { %s6740_s2 = sadd.s32 1, %s6447_s30   ;;  %s57_s27 = sadd.s32 1, %s6443_s29 }
  0xa8   : > { %s54_s22 = ssub.s32 %s6447_s30, %s6740_s2  ;;  %p64_p7 = scmp.ne.s32.totalorder %s6443_s29, %s6439_s28 }
  0xa9   : > { %p55_p13 = scmp.eq.s32.totalorder %s54_s22, 0  ;;  %p65_p0 = scmp.eq.s32.totalorder %s6447_s30, 0 }
  0xaa   : > { %p70_p2 = scmp.ne.s32.totalorder %s6439_s28, %s6435_s3  ;;  %p498_p5 = scmp.eq.s32.totalorder %s6616_s23, 1 }
  0xab   : > { %s6752_s0 = scalar_select %p55_p13, %s6443_s29, %s57_s27  }
  0xac   : > { %5507 = dma.hbm_to_vmem [thread:$0]  (!%p6630_p6), %s7991_s16, 2048, %s712_s26, [#allocation21], %s6454_s20, %s6454_s20, %s6455_s21  }
  0xad   : > { %7992 = sst [smem:[#allocation38_spill]] %s6752_s0  ;;  %p66_p1 = por %p65_p0, %p64_p7 }
  0xae   : > { %p7993_p3 = scmp.eq.s32.totalorder %s6616_s23, 0  ;;  %p6760_p6 = por %p498_p5, %p64_p7 }
  0xaf   : > { %p504_p8 = scmp.eq.s32.totalorder %s7952_s6, 1  ;;  %p5536_p9 = scmp.lt.s32.totalorder %s6447_s30, 2 }
  0xb0   : > { %p6756_p4 = por %p7993_p3, %p70_p2  ;;  %s6768_s26 = sand.u32 1, %s6443_s29  }
  0xb1   : > { %s7995_s21 = scalar_select %p6760_p6, 1, 0 }
  0xb2   : > { %p6770_p11 = por %p504_p8, %p70_p2  ;;  %s4842_s17 = sshll.u32 %s6768_s26, 4 }
  0xb3   : > { %s5020_s25 = sshll.u32 %s6447_s30, 8  ;;  %s7997_s5 = sld [smem:[#allocation39_spill]] }
  0xb4   : > { %s7996_s24 = scalar_select %p6770_p11, 1, 0 }
  0xb5   : > { %s738_s22 = scalar_lea.vmem [#allocation2], %s4842_s17  ;;  %p6781_p10 = pnand %p5536_p9, %p66_p1 }
  0xb6   : > { %s745_s6 = sshll.u32 %s738_s22, 4  ;;  %s6785_s6 = int_to_ptr.vmem [resolvable:$true] %s745_s6 }
  0xb7   : > { %p6245_p7 = pneg %p6781_p10 }
  0xb9   : > { %s6779_s27 = scalar_lea.hbm %s7997_s5, %s5020_s25  ;;  %s6248_s4 = scalar_lea.hbm %s7997_s5, 512 }
  0xba   : > { %s6243_s9 = scalar_lea.hbm %s6779_s27, 256  ;;  %p6249_p2 = scmp.lt.s32.totalorder %s6779_s27, %s7997_s5 }
  0xbb   : > { %p6244_p12 = scmp.ne.s32.totalorder %s6779_s27, %s6243_s9  ;;  %p6250_p5 = scmp.lt.s32.totalorder %s6248_s4, %s6243_s9 }
  0xbd   : > { %p6246_p13 = pnand %p6245_p7, %p6244_p12  ;;  %p6251_p1 = por %p6250_p5, %p6249_p2 }
  0xbf   : > { %p6247_p0 = pneg %p6246_p13 }
  0xc1   : > { %p6252_p3 = pnand %p6251_p1, %p6247_p0 }
  0xc3   : > { %6255 = shalt.err (!%p6252_p3)
}
  0xc4   : > { %s6256_s7 = scalar_lea.vmem %s6785_s6, 256  ;;  %s6466_s17 = smov [#allocation2]  }
  0xc5   : > { %p6257_p8 = scmp.ne.s32.totalorder %s6785_s6, %s6256_s7  ;;  %s6261_s25 = sshll.u32 %s6466_s17, 4  ;;  %s6262_s25 = int_to_ptr.vmem [resolvable:$false] %s6261_s25 }
  0xc6   : > { %s6263_s8 = scalar_lea.vmem %s6262_s25, 512  ;;  %p6264_p13 = scmp.lt.s32.totalorder %s6785_s6, %s6262_s25 }
  0xc7   : > { %p6259_p9 = pnand %p6257_p8, %p6245_p7  ;;  %p6265_p11 = scmp.lt.s32.totalorder %s6263_s8, %s6256_s7 }
  0xc9   : > { %p6260_p12 = pneg %p6259_p9  ;;  %p6266_p6 = por %p6265_p11, %p6264_p13 }
  0xcb   : > { %p6267_p2 = pnand %p6266_p6, %p6260_p12 }
  0xcd   : > { %6270 = shalt.err (!%p6267_p2)
}
  0xce   : > { %s7999_s9 = smov 8   ;;  %s8000_s4 = smov 128  }
  0xcf   : > { %s8001_s13 = scalar_lea.sflag [#allocation3], %s6768_s26  ;;  %s4845_s22 = sshll.u32 %s6768_s26, 5 }
  0xd0   : > { %5511 = dma.hbm_to_vmem [thread:$0]  (!%p6781_p10), %s6779_s27, 256, %s6785_s6, %s8001_s13, %s8000_s4, %s8000_s4, %s7999_s9  }
  0xd1   : > { %s5022_s17 = sshll.u32 %s6447_s30, 9  ;;  %s8002_s25 = sld [smem:[#allocation40_spill]] }
  0xd2   : > { %s759_s12 = scalar_lea.vmem [#allocation5], %s4845_s22  ;;  %s8003_s16 = sand.u32 1, %s6447_s30  }
  0xd3   : > { %s767_s14 = sshll.u32 %s759_s12, 4  ;;  %s756_s0 = scalar_lea.sflag [#allocation6], %s8003_s16  ;;  %s6825_s14 = int_to_ptr.vmem [resolvable:$true] %s767_s14 }
  0xd7   : > { %s6823_s5 = scalar_lea.hbm %s8002_s25, %s5022_s17  ;;  %s6276_s27 = scalar_lea.hbm %s8002_s25, 1024 }
  0xd8   : > { %s6271_s29 = scalar_lea.hbm %s6823_s5, 512  ;;  %p6277_p5 = scmp.lt.s32.totalorder %s6823_s5, %s8002_s25 }
  0xd9   : > { %p6272_p6 = scmp.ne.s32.totalorder %s6823_s5, %s6271_s29  ;;  %p6278_p1 = scmp.lt.s32.totalorder %s6276_s27, %s6271_s29 }
  0xdb   : > { %p6274_p11 = pnand %p6272_p6, %p6245_p7  ;;  %p6279_p3 = por %p6278_p1, %p6277_p5 }
  0xdd   : > { %p6275_p0 = pneg %p6274_p11 }
  0xdf   : > { %p6280_p8 = pnand %p6279_p3, %p6275_p0 }
  0xe1   : > { %6283 = shalt.err (!%p6280_p8)
}
  0xe2   : > { %s6284_s12 = scalar_lea.vmem %s6825_s14, 512  ;;  %s6467_s16 = smov [#allocation5]  }
  0xe3   : > { %p6285_p9 = scmp.ne.s32.totalorder %s6825_s14, %s6284_s12  ;;  %s6289_s22 = sshll.u32 %s6467_s16, 4  ;;  %s6290_s22 = int_to_ptr.vmem [resolvable:$false] %s6289_s22 }
  0xe4   : > { %s6291_s7 = scalar_lea.vmem %s6290_s22, 1024  ;;  %p6292_p2 = scmp.lt.s32.totalorder %s6825_s14, %s6290_s22 }
  0xe5   : > { %p6287_p12 = pnand %p6285_p9, %p6245_p7  ;;  %p6293_p6 = scmp.lt.s32.totalorder %s6291_s7, %s6284_s12 }
  0xe7   : > { %p6288_p13 = pneg %p6287_p12  ;;  %p6294_p11 = por %p6293_p6, %p6292_p2 }
  0xe9   : > { %p6295_p5 = pnand %p6294_p11, %p6288_p13 }
  0xeb   : > { %6298 = shalt.err (!%p6295_p5)
}
  0xec   : > { %5514 = dma.hbm_to_vmem [thread:$0]  (!%p6781_p10), %s6823_s5, 512, %s6825_s14, %s756_s0, %s8000_s4, %s8000_s4, %s7999_s9  }
  0xed   : > { %p8004_p7 = scmp.ne.s32.totalorder %s7978_s1, 0 }
  0xee   : > { %s6857_s29 = sand.u32 (!%p8004_p7), 1, %s6439_s28  }
  0xef   : > { %779 = sbr.rel (%p8004_p7) target bundleno = 4411 (0x113b), region = 100  ;;  %s6860_s8 = sshll.u32 (!%p8004_p7), %s6857_s29, 4 }
  0xf0   : > { %s782_s6 = scalar_lea.sflag (!%p8004_p7), [#allocation3], %s6857_s29  ;;  %s6864_s15 = scalar_lea.vmem (!%p8004_p7), [#allocation2], %s6860_s8 }
  0xf4   : > { %6394 = dma.done.wait (%p6756_p4), %s782_s6, 256  }
  0xf5   : > { %6396 = vsyncadd (%p6756_p4), %s782_s6, 4294967040  ;;  %s790_s14 = sand.u32 1, %s6616_s23   ;;  %s4851_s1 = sshll.u32 %s6857_s29, 5 }
  0xf6   : > { %s791_s0 = scalar_lea.sflag [#allocation6], %s790_s14  ;;  %s6874_s5 = scalar_lea.vmem [#allocation5], %s4851_s1 }
  0xf7   : > { %6398 = dma.done.wait (%p6756_p4), %s791_s0, 512  }
  0xf8   : > { %6400 = vsyncadd (%p6756_p4), %s791_s0, 4294966784  ;;  %p8005_p10 = scmp.eq.s32.totalorder %s6616_s23, 0 }
  0xfa   : > { %6402 = dma.done.wait (%p8005_p10), [#allocation6], 3072   ;;  %p8006_p0 = pmov %p8005_p10 }
  0xfc   : > { %6404 = vsyncadd (%p8006_p0), [#allocation6], 4294964224  ;;  %p8007_p1 = pmov %p8006_p0 }
  0xfd   : > { %p8008_p3 = pmov %p8006_p0 }
  0xfe   : > { %6406 = dma.done.wait (%p8007_p1), [#allocation9], 176  }
  0xff   : > { %6408 = vsyncadd (%p8008_p3), [#allocation9], 4294967120  ;;  %p8009_p8 = pmov %p8006_p0 }
 0x100   : > { %p8010_p9 = pmov %p8006_p0 }
 0x101   : > { %6410 = dma.done.wait (%p8009_p8), [#allocation12], 1040  }
 0x102   : > { %6412 = vsyncadd (%p8010_p9), [#allocation12], 4294966256  ;;  %p8011_p4 = pmov %p8006_p0 }
 0x103   : > { %p8012_p12 = pmov %p8006_p0 }
 0x104   : > { %6414 = dma.done.wait (%p8011_p4), [#allocation15], 1040  }
 0x105   : > { %6416 = vsyncadd (%p8012_p12), [#allocation15], 4294966256  ;;  %p8013_p13 = pmov %p8006_p0 }
 0x106   : > { %p8014_p2 = pmov %p8006_p0 }
 0x107   : > { %6418 = dma.done.wait (%p8013_p13), [#allocation18], 3072  }
 0x108   : > { %6420 = vsyncadd (%p8014_p2), [#allocation18], 4294964224  ;;  %p8015_p6 = pmov %p8006_p0 }
 0x109   : > { %p8016_p11 = pmov %p8006_p0 }
 0x10a   : > { %6422 = dma.done.wait (%p8015_p6), [#allocation21], 4096  }
 0x10b   : > { %6424 = vsyncadd (%p8016_p11), [#allocation21], 4294963200  ;;  %v920_v0 = vld [vmem:[%s6864_s15] sm:$0xff]  ;;  %v921_v1 = vld [vmem:[%s6864_s15 + $0x8] sm:$0xff]  ;;  %v6468_v4 = vmov 0.0   ;;  %v6469_v27 = vmov 0   ;;  %v998_v53 = vlaneseq }
 0x10c   : > { %928 = vadd.xlane.f32.xlu0 %v920_v0  ;;  %v5727_v2 = vld [vmem:[#allocation7 + $0xac] ss:$12 sps:$4 sm:$0xff]   ;;  %v5729_v3 = vld [vmem:[#allocation7 + $0xa8] ss:$12 sps:$4 sm:$0xff]   ;;  %5148 = vmatprep.subr.bf16.mxu1 %v6468_v4  ;;  %v5730_v5 = vld [vmem:[#allocation7 + $0xb0] ss:$12 sps:$4 sm:$0xff]  }
 0x10d   : > { %1141 = vmatprep.subr.bf16.mxu0 %v5727_v2  ;;  %5149 = vmatpush3.bf16.msra.mxu1 %v5730_v5  ;;  %v5731_v14 = vld [vmem:[#allocation7 + $0x94] ss:$12 sps:$4 sm:$0xff]   ;;  %v5733_v15 = vld [vmem:[#allocation7 + $0x90] ss:$12 sps:$4 sm:$0xff]   ;;  %v5734_v16 = vld [vmem:[#allocation7 + $0x98] ss:$12 sps:$4 sm:$0xff]  }
 0x10e   : > { %1142 = vmatpush1.bf16.msra.mxu0 %v5729_v3  ;;  %5150 = vmatprep.subr.bf16.mxu1 %v6468_v4  ;;  %v5735_v17 = vld [vmem:[#allocation7 + $0x7c] ss:$12 sps:$4 sm:$0xff]   ;;  %v5737_v18 = vld [vmem:[#allocation7 + $0x78] ss:$12 sps:$4 sm:$0xff]   ;;  %v5738_v19 = vld [vmem:[#allocation7 + $0x80] ss:$12 sps:$4 sm:$0xff]  }
 0x10f   : > { %1143 = vmatprep.subr.bf16.mxu0 %v5731_v14  ;;  %v5739_v20 = vld [vmem:[#allocation7 + $0x64] ss:$12 sps:$4 sm:$0xff]   ;;  %v5741_v21 = vld [vmem:[#allocation7 + $0x60] ss:$12 sps:$4 sm:$0xff]   ;;  %v5742_v22 = vld [vmem:[#allocation7 + $0x68] ss:$12 sps:$4 sm:$0xff]   ;;  %1173 = vmatprep.mubr.bf16.mxu0 %v6469_v27 }
 0x110   : > { %930 = vadd.xlane.f32.xlu0 %v921_v1  ;;  %v5743_v23 = vld [vmem:[#allocation7 + $0x4c] ss:$12 sps:$4 sm:$0xff]   ;;  %v5745_v24 = vld [vmem:[#allocation7 + $0x48] ss:$12 sps:$4 sm:$0xff]   ;;  %v5746_v25 = vld [vmem:[#allocation7 + $0x50] ss:$12 sps:$4 sm:$0xff]  }
 0x111   : > { %5151 = vmatpush3.bf16.msra.mxu1 %v5734_v16  ;;  %v5747_v26 = vld [vmem:[#allocation7 + $0x34] ss:$12 sps:$4 sm:$0xff]   ;;  %vm6470_vm0 = vmmov 0   ;;  %v5749_v28 = vld [vmem:[#allocation7 + $0x30] ss:$12 sps:$4 sm:$0xff]   ;;  %v999_v54 = vshrl.u32 %v998_v53, 7 }
 0x112   : > { %1144 = vmatpush1.bf16.msra.mxu0 %v5733_v15  ;;  %5152 = vmatprep.subr.bf16.mxu1 %v6468_v4  ;;  %v5750_v29 = vld [vmem:[#allocation7 + $0x38] ss:$12 sps:$4 sm:$0xff]   ;;  %v5751_v30 = vld [vmem:[#allocation7 + $0x1c] ss:$12 sps:$4 sm:$0xff]   ;;  %v5754_v32 = vld [vmem:[#allocation7 + $0x20] ss:$12 sps:$4 sm:$0xff]  }
 0x113   : > { %1145 = vmatprep.subr.bf16.mxu0 %v5735_v17  ;;  %5164 = vmatprep.mubr.msk.bf16.mxu1 %vm6470_vm0, %v6468_v4  ;;  %v5753_v31 = vld [vmem:[#allocation7 + $0x18] ss:$12 sps:$4 sm:$0xff]   ;;  %v5757_v34 = vld [vmem:[#allocation7] ss:$12 sps:$4 sm:$0xff]   ;;  %v5758_v35 = vld [vmem:[#allocation7 + $0x8] ss:$12 sps:$4 sm:$0xff]  }
 0x114   : > { %v5755_v33 = vld [vmem:[#allocation7 + $0x4] ss:$12 sps:$4 sm:$0xff]   ;;  %v4866_v44 = vld [vmem:[%s7938_s18] ss:$0 sm:$0xff]  ;;  %v6939_v55 = vsub.s32 0, %v999_v54  ;;  %v6941_v57 = vsub.s32 1, %v999_v54 }
 0x115   : > { %5153 = vmatpush3.bf16.msra.mxu1 %v5738_v19  ;;  %v4867_v48 = vld [vmem:[%s7939_s19] ss:$0 sm:$0xff]  ;;  %v1008_v59 = vsub.s32 2, %v999_v54  ;;  %s6471_s27 = smov 96   ;;  %vm1304_vm1 = vcmask 261120   ;;  %s6472_s13 = smov 64  }
 0x116   : > { %1146 = vmatpush1.bf16.msra.mxu0 %v5737_v18  ;;  %5154 = vmatprep.subr.bf16.mxu1 %v6468_v4  ;;  %v996_v56 = vld [vmem:[#allocation8] sm:$0x7]  ;;  %s6473_s17 = smov 32   ;;  %vm1914_vm2 = vcmask 1043456   ;;  %vm1750_vm3 = vcmask 64512   ;;  %vm2512_vm4 = vcmask 72704  }
 0x117   : > { %1147 = vmatprep.subr.bf16.mxu0 %v5739_v20  ;;  %v1001_v58 = vrot.slane %v996_v56, %v6939_v55  ;;  %v1005_v60 = vrot.slane %v996_v56, %v6941_v57  ;;  %s7292_s12 = scalar_lea.vmem [#allocation24], %s6860_s8  ;;  %vm2367_vm5 = vcmask 523264   ;;  %vm2370_vm6 = vcmask 785408   ;;  %s7707_s20 = scalar_lea.vmem [#allocation26], %s6860_s8 }
 0x118   : > { %vm3395_vm7 = vcmask 130048   ;;  %vm4130_vm8 = vcmask 138240   ;;  %s8018_s1 = sld [smem:[#allocation52_spill]]  ;;  %s4567_s0 = sshll.u32 %s7707_s20, 4  ;;  %s7806_s0 = int_to_ptr.vmem [resolvable:$true] %s4567_s0 }
 0x119   : > { %5155 = vmatpush3.bf16.msra.mxu1 %v5742_v22  ;;  %s8019_s26 = sld [smem:[#allocation56_spill]]  ;;  %p8020_p7 = scmp.ne.s32.totalorder %s7995_s21, 0 }
 0x11a   : > { %1148 = vmatpush1.bf16.msra.mxu0 %v5741_v21  ;;  %5156 = vmatprep.subr.bf16.mxu1 %v6468_v4  ;;  %v6474_v21 = vmov 1966171168   ;;  %s6475_s16 = smov [#allocation24]  }
 0x11b   : > { %1149 = vmatprep.subr.bf16.mxu0 %v5743_v23  ;;  %v1683_v22 = vunpack.c.l.s4 %v6474_v21  ;;  %s6303_s22 = sshll.u32 %s6475_s16, 4  ;;  %s6304_s22 = int_to_ptr.vmem [resolvable:$false] %s6303_s22 }
 0x11c   : > { %s6305_s7 = scalar_lea.vmem %s6304_s22, 512 }
 0x11d   : > { %5157 = vmatpush3.bf16.msra.mxu1 %v5746_v25  ;;  %v1684_v23 = vunpack.c.0.s8 %v1683_v22  ;;  %v4900_v25 = vld.sshfl [vmem:[#allocation10] sm:$0x33 pattern:$0x75316420] }
 0x11e   : > { %1150 = vmatpush1.bf16.msra.mxu0 %v5745_v24  ;;  %5158 = vmatprep.subr.bf16.mxu1 %v6468_v4 }
 0x11f   : > { %1151 = vmatprep.subr.bf16.mxu0 %v5747_v26  ;;  %v6972_v24 = vsub.s32 %v1684_v23, %v999_v54 }
 0x121   : > { %5159 = vmatpush3.bf16.msra.mxu1 %v5750_v29  ;;  %v6975_v26 = vrot.slane %v4900_v25, %v6972_v24 }
 0x122   : > { %1152 = vmatpush1.bf16.msra.mxu0 %v5749_v28  ;;  %5160 = vmatprep.subr.bf16.mxu1 %v6468_v4 }
 0x123   : > { %1153 = vmatprep.subr.bf16.mxu0 %v5751_v30  ;;  %v1701_v28 = vrot.slane %v6975_v26, %v6939_v55 }
 0x125   : > { %5161 = vmatpush3.bf16.msra.mxu1 %v5754_v32 }
 0x126   : > { %1154 = vmatpush1.bf16.msra.mxu0 %v5753_v31  ;;  %5162 = vmatprep.subr.bf16.mxu1 %v6468_v4 }
 0x127   : > { %1155 = vmatprep.subr.bf16.mxu0 %v5755_v33  ;;  %v1681_v33 = vcombine.high %v4900_v25, %v4900_v25 }
 0x129   : > { %5163 = vmatpush3.bf16.msra.mxu1 %v5758_v35 }
 0x12a   : > { %1156 = vmatpush1.bf16.msra.mxu0 %v5757_v34  ;;  %5186 = vmatprep.subr.bf16.mxu1 %v6468_v4  ;;  %v6982_v34 = vrot.slane %v1681_v33, %v6972_v24 }
 0x12b   : > { %5168 = vmatprep.subr.bf16.mxu0 %v6468_v4 }
 0x12c   : > { %v1705_v35 = vrot.slane %v6982_v34, %v6939_v55 }
 0x195   : > { %v929_v6 = vpop.xlane.xlu0 %928 }
 0x196   : > { %v933_v7 = vmul.f32 0.0078125, %v929_v6 }
 0x198   : > { %v6908_v8 = vsub.f32 %v920_v0, %v933_v7  ;;  %v1009_v0 = vrot.slane %v996_v56, %v1008_v59 }
 0x199   : > { %v931_v9 = vpop.xlane.xlu0 %930 }
 0x19a   : > { %v934_v10 = vmul.f32 0.0078125, %v931_v9  ;;  %v937_v11 = vmul.f32 %v6908_v8, %v6908_v8 }
 0x19c   : > { %v6912_v12 = vsub.f32 %v921_v1, %v934_v10  ;;  %939 = vadd.xlane.f32.xlu1 %v937_v11 }
 0x19e   : > { %v938_v13 = vmul.f32 %v6912_v12, %v6912_v12 }
 0x1a0   : > { %941 = vadd.xlane.f32.xlu1 %v938_v13 }
 0x225   : > { %v940_v36 = vpop.xlane.xlu1 %939 }
 0x226   : > { %v943_v37 = vmul.f32 0.0078125, %v940_v36 }
 0x228   : > { %v945_v38 = vadd.f32 1e-05, %v943_v37 }
 0x229   : > { %v942_v39 = vpop.xlane.xlu1 %941 }
 0x22a   : > { %5847 = vrsqrt.f32 %v945_v38  ;;  %v944_v40 = vmul.f32 0.0078125, %v942_v39 }
 0x22c   : > { %v946_v41 = vadd.f32 1e-05, %v944_v40 }
 0x22e   : > { %5849 = vrsqrt.f32 %v946_v41 }
 0x237   : > { %v5848_v42 = vpop.eup %5847 }
 0x238   : > { %v949_v43 = vmul.f32 %v5848_v42, %v6908_v8 }
 0x23a   : > { %v955_v47 = vmul.f32 %v4866_v44, %v949_v43 }
 0x23b   : > { %v5850_v45 = vpop.eup %5849 }
 0x23c   : > { %v950_v46 = vmul.f32 %v5850_v45, %v6912_v12  ;;  %v961_v50 = vadd.f32 %v4867_v48, %v955_v47 }
 0x23e   : > { %v956_v49 = vmul.f32 %v4866_v44, %v950_v46 }
 0x240   : > { %v962_v51 = vadd.f32 %v4867_v48, %v956_v49 }
 0x242   : > { %v963_v52 = vpack.c.bf16 %v962_v51, %v961_v50 }
 0x244   : > { %1174 = vmatmul.mubr.bf16.vlgmr.msra.gmra.mxu0 %v963_v52  ;;  %5165 = vmatmul.mubr.bf16.vlgmr.msra.gmra.mxu1 %v963_v52 }
 0x245   : > { %5170 = vmatprep.mubr.msk.bf16.mxu0 %vm6470_vm0, %v6468_v4  ;;  %5188 = vmatprep.mubr.msk.bf16.mxu1 %vm6470_vm0, %v6468_v4 }
 0x304   : > { %v1175_v61 = vpop.f32.mrf.mxu0  ;;  %v1218_v62 = vpop.f32.mrf.mxu1 }
 0x305   : > { %v1176_v63 = vadd.f32 %v1175_v61, %v1001_v58  ;;  %v6948_v10 = vadd.f32 %v1218_v62, %v1009_v0 }
 0x306   : > { %v1177_v1 = vpop.f32.mrf.mxu0  ;;  %v5166_v2 = vpop.f32.mrf.mxu1 }
 0x307   : > { %v1178_v3 = vadd.f32 %v1177_v1, %v1005_v60  ;;  %1227 = vrot.lane.b32.xlu1 %v1176_v63, %s6471_s27  ;;  %v1288_v18 = vpack.c.bf16 %v1176_v63, %v1176_v63  ;;  %v1718_v30 = vmul.f32 %v1701_v28, %v1176_v63 }
 0x308   : > { %v1179_v5 = vpop.f32.mrf.mxu0  ;;  %v1221_v6 = vpop.f32.mrf.mxu1 }
 0x309   : > { %v1180_v7 = vadd.f32 %v1179_v5, %v1001_v58  ;;  %v6946_v8 = vadd.f32 %v1221_v6, %v1009_v0  ;;  %v1296_v9 = vpack.c.bf16 %v1178_v3, %v1178_v3  ;;  %v1726_v32 = vsel %vm1304_vm1, %v1718_v30, 0.0 }
 0x30a   : > { %v1181_v11 = vpop.f32.mrf.mxu0  ;;  %v5167_v12 = vpop.f32.mrf.mxu1  ;;  %v1696_v30 = vcombine.high %v6975_v26, %v6975_v26 }
 0x30b   : > { %v1182_v13 = vadd.f32 %v1181_v11, %v1005_v60  ;;  %1229 = vrot.lane.b32.xlu1 %v1180_v7, %s6471_s27  ;;  %v1309_v14 = vsel %vm1304_vm1, %v1296_v9, 0  ;;  %v6954_v15 = vpack.i.bf16 %v6946_v8, %v6948_v10  ;;  %v1289_v20 = vpack.c.bf16 %v1180_v7, %v1180_v7 }
 0x30c   : > { %5169 = vmatpush3.bf16.xpose.msra.mxu0 %v1309_v14  ;;  %v1719_v29 = vmul.f32 %v1701_v28, %v1180_v7  ;;  %v1903_v11 = vpack.c.bf16 %v6948_v10, %v6948_v10  ;;  %v1904_v12 = vpack.c.bf16 %v6946_v8, %v6946_v8 }
 0x30d   : > { %v5607_v16 = vpack.i.bf16 %v1182_v13, %v1178_v3  ;;  %5174 = vmatprep.subr.bf16.mxu0 %v6468_v4  ;;  %v1297_v17 = vpack.c.bf16 %v1182_v13, %v1182_v13 }
 0x30e   : > { %v1729_v31 = vsel %vm1304_vm1, %v1719_v29, 0.0 }
 0x30f   : > { %5608 = vrot.lane.b32.xlu0 %v5607_v16, %s6471_s27  ;;  %5613 = vrot.lane.b32.xlu1 %v5607_v16, %s6472_s13  ;;  %v1355_v19 = vsel %vm1304_vm1, %v1297_v17, 0  ;;  %v1962_v17 = vsel %vm1914_vm2, %v1904_v12, 0 }
 0x313   : > { %1233 = vrot.lane.b32.xlu0 %v1176_v63, %s6472_s13  ;;  %1235 = vrot.lane.b32.xlu1 %v1180_v7, %s6472_s13 }
 0x314   : > { %5171 = vmatmul.mubr.msk.bf16.vlgmr.msra.gmra.mxu0 %vm1304_vm1, %v1288_v18 }
 0x315   : > { %5175 = vmatpush3.bf16.xpose.msra.mxu0 %v1355_v19  ;;  %5176 = vmatprep.mubr.msk.bf16.mxu0 %vm6470_vm0, %v6468_v4 }
 0x316   : > { %5180 = vmatprep.subr.bf16.mxu0 %v6468_v4 }
 0x317   : > { %5618 = vrot.lane.b32.xlu0 %v5607_v16, %s6473_s17  ;;  %1239 = vrot.lane.b32.xlu1 %v1176_v63, %s6473_s17  ;;  %v1916_v16 = vsel %vm1914_vm2, %v1903_v11, 0 }
 0x31b   : > { %1241 = vrot.lane.b32.xlu0 %v1180_v7, %s6473_s17 }
 0x31c   : > { %5177 = vmatmul.mubr.msk.bf16.vlgmr.msra.gmra.mxu0 %vm1304_vm1, %v1289_v20 }
 0x31d   : > { %5182 = vmatprep.mubr.msk.bf16.mxu0 %vm6470_vm0, %v6468_v4 }
 0x33a   : > { %1730 = vadd.xlane.f32.xlu0 %v1729_v31  ;;  %v1709_v31 = vrot.slane %v1696_v30, %v6939_v55 }
 0x33b   : > { %1727 = vadd.xlane.f32.xlu1 %v1726_v32  ;;  %v1697_v32 = vcombine.high %v6982_v34, %v6982_v34 }
 0x33d   : > { %v1713_v34 = vrot.slane %v1697_v32, %v6939_v55 }
 0x379   : > { %v1228_v36 = vpop.permute.xlu1 %1227 }
 0x37a   : > { %v1720_v37 = vmul.f32 %v1705_v35, %v1228_v36  ;;  %v1290_v56 = vpack.c.bf16 %v1228_v36, %v1228_v36 }
 0x37c   : > { %v1732_v38 = vsel %vm1304_vm1, %v1720_v37, 0.0 }
 0x37d   : > { %v1230_v39 = vpop.permute.xlu1 %1229  ;;  %1733 = vadd.xlane.f32.xlu1 %v1732_v38 }
 0x37e   : > { %v6987_v40 = vmul.f32 %v1705_v35, %v1230_v39  ;;  %v1291_v58 = vpack.c.bf16 %v1230_v39, %v1230_v39 }
 0x380   : > { %v1735_v28 = vsel %vm1304_vm1, %v6987_v40, 0.0 }
 0x381   : > { %v5609_v41 = vpop.permute.xlu0 %5608  ;;  %v5614_v46 = vpop.permute.xlu1 %5613 }
 0x382   : > { %v5611_v42 = vunpack.i.h.bf16 %v5609_v41  ;;  %v5610_v43 = vunpack.i.l.bf16 %v5609_v41  ;;  %v5616_v48 = vunpack.i.h.bf16 %v5614_v46  ;;  %v5615_v49 = vunpack.i.l.bf16 %v5614_v46 }
 0x384   : > { %v1299_v44 = vpack.c.bf16 %v5611_v42, %v5611_v42  ;;  %v1298_v45 = vpack.c.bf16 %v5610_v43, %v5610_v43  ;;  %v1301_v52 = vpack.c.bf16 %v5616_v48, %v5616_v48  ;;  %v1300_v53 = vpack.c.bf16 %v5615_v49, %v5615_v49 }
 0x385   : > { %v6989_v47 = vpop.permute.xlu0 %1233  ;;  %v1236_v63 = vpop.permute.xlu1 %1235 }
 0x386   : > { %v1401_v50 = vsel %vm1304_vm1, %v1298_v45, 0  ;;  %v1447_v51 = vsel %vm1304_vm1, %v1299_v44, 0  ;;  %v1493_v61 = vsel %vm1304_vm1, %v1300_v53, 0  ;;  %v1539_v62 = vsel %vm1304_vm1, %v1301_v52, 0 }
 0x387   : > { %5181 = vmatpush3.bf16.xpose.msra.mxu0 %v1401_v50  ;;  %5187 = vmatpush3.bf16.xpose.msra.mxu1 %v1447_v51  ;;  %v1292_v2 = vpack.c.bf16 %v6989_v47, %v6989_v47  ;;  %v1293_v3 = vpack.c.bf16 %v1236_v63, %v1236_v63  ;;  %v1722_v36 = vmul.f32 %v1709_v31, %v6989_v47 }
 0x388   : > { %5192 = vmatprep.subr.bf16.mxu0 %v6468_v4  ;;  %5198 = vmatprep.subr.bf16.mxu1 %v6468_v4  ;;  %v1723_v37 = vmul.f32 %v1709_v31, %v1236_v63 }
 0x389   : > { %v5619_v54 = vpop.permute.xlu0 %5618  ;;  %v1240_v7 = vpop.permute.xlu1 %1239  ;;  %v1738_v44 = vsel %vm1304_vm1, %v1722_v36, 0.0 }
 0x38a   : > { %v5621_v59 = vunpack.i.h.bf16 %v5619_v54  ;;  %v5620_v60 = vunpack.i.l.bf16 %v5619_v54  ;;  %v1294_v13 = vpack.c.bf16 %v1240_v7, %v1240_v7  ;;  %v1741_v43 = vsel %vm1304_vm1, %v1723_v37, 0.0 }
 0x38b   : > { %v1724_v49 = vmul.f32 %v1713_v34, %v1240_v7 }
 0x38c   : > { %v1303_v0 = vpack.c.bf16 %v5621_v59, %v5621_v59  ;;  %v1302_v1 = vpack.c.bf16 %v5620_v60, %v5620_v60 }
 0x38d   : > { %v1242_v9 = vpop.permute.xlu0 %1241 }
 0x38e   : > { %5183 = vmatmul.mubr.msk.bf16.vlgmr.msra.gmra.mxu0 %vm1304_vm1, %v1290_v56  ;;  %5189 = vmatmul.mubr.msk.bf16.vlgmr.msra.gmra.mxu1 %vm1304_vm1, %v1291_v58  ;;  %v1585_v5 = vsel %vm1304_vm1, %v1302_v1, 0  ;;  %v1631_v6 = vsel %vm1304_vm1, %v1303_v0, 0  ;;  %v1295_v14 = vpack.c.bf16 %v1242_v9, %v1242_v9  ;;  %v1725_v50 = vmul.f32 %v1713_v34, %v1242_v9 }
 0x38f   : > { %5193 = vmatpush3.bf16.xpose.msra.mxu0 %v1493_v61  ;;  %5199 = vmatpush3.bf16.xpose.msra.mxu1 %v1539_v62  ;;  %v1744_v61 = vsel %vm1304_vm1, %v1724_v49, 0.0 }
 0x390   : > { %5194 = vmatprep.mubr.msk.bf16.mxu0 %vm6470_vm0, %v6468_v4  ;;  %5200 = vmatprep.mubr.msk.bf16.mxu1 %vm6470_vm0, %v6468_v4  ;;  %v1747_v60 = vsel %vm1304_vm1, %v1725_v50, 0.0 }
 0x391   : > { %5204 = vmatprep.subr.bf16.mxu0 %v6468_v4  ;;  %5210 = vmatprep.subr.bf16.mxu1 %v6468_v4 }
 0x396   : > { %5195 = vmatmul.mubr.msk.bf16.vlgmr.msra.gmra.mxu0 %vm1304_vm1, %v1292_v2  ;;  %5201 = vmatmul.mubr.msk.bf16.vlgmr.msra.gmra.mxu1 %vm1304_vm1, %v1293_v3 }
 0x397   : > { %5205 = vmatpush3.bf16.xpose.msra.mxu0 %v1585_v5  ;;  %5211 = vmatpush3.bf16.xpose.msra.mxu1 %v1631_v6 }
 0x398   : > { %5206 = vmatprep.mubr.msk.bf16.mxu0 %vm6470_vm0, %v6468_v4  ;;  %5212 = vmatprep.mubr.msk.bf16.mxu1 %vm6470_vm0, %v6468_v4 }
 0x399   : > { %5216 = vmatprep.subr.bf16.mxu0 %v6468_v4  ;;  %5222 = vmatprep.subr.bf16.mxu1 %v6468_v4 }
 0x39e   : > { %5207 = vmatmul.mubr.msk.bf16.vlgmr.msra.gmra.mxu0 %vm1304_vm1, %v1294_v13  ;;  %5213 = vmatmul.mubr.msk.bf16.vlgmr.msra.gmra.mxu1 %vm1304_vm1, %v1295_v14 }
 0x39f   : > { %5217 = vmatpush3.bf16.msra.mxu0 %v1916_v16  ;;  %5223 = vmatpush3.bf16.msra.mxu1 %v1962_v17 }
 0x3a0   : > { %5218 = vmatprep.mubr.msk.bf16.mxu0 %vm6470_vm0, %v6468_v4  ;;  %5228 = vmatprep.subr.bf16.mxu0 %v6468_v4 }
 0x3a1   : > { %5224 = vmatprep.mubr.msk.bf16.mxu1 %vm6470_vm0, %v6468_v4  ;;  %5234 = vmatprep.subr.bf16.mxu1 %v6468_v4 }
 0x3c3   : > { %v7066_v56 = vpop.xlane.xlu0 %1730 }
 0x3c4   : > { %v7070_v0 = vpop.xlane.xlu1 %1727 }
 0x3d4   : > { %v7031_v8 = vpop.f32.mrf.mxu0 }
 0x3d5   : > { %v1751_v10 = vsel %vm1750_vm3, %v7031_v8, -inf }
 0x3d6   : > { %1752 = vmax.xlane.f32.xlu0 %v1751_v10  ;;  %v5172_v18 = vpop.f32.mrf.mxu0 }
 0x3d8   : > { %v1348_v19 = vpop.f32.mrf.mxu0 }
 0x3da   : > { %v5173_v20 = vpop.f32.mrf.mxu0 }
 0x3dc   : > { %v7035_v21 = vpop.f32.mrf.mxu0 }
 0x3dd   : > { %v1754_v22 = vsel %vm1750_vm3, %v7035_v21, -inf }
 0x3de   : > { %1755 = vmax.xlane.f32.xlu0 %v1754_v22  ;;  %v5178_v23 = vpop.f32.mrf.mxu0 }
 0x3e0   : > { %v1394_v25 = vpop.f32.mrf.mxu0 }
 0x3e2   : > { %1736 = vadd.xlane.f32.xlu0 %v1735_v28  ;;  %v5179_v29 = vpop.f32.mrf.mxu0 }
 0x44e   : > { %v7046_v33 = vpop.f32.mrf.mxu0  ;;  %v7048_v35 = vpop.f32.mrf.mxu1 }
 0x44f   : > { %v1760_v38 = vsel %vm1750_vm3, %v7048_v35, -inf  ;;  %v1757_v39 = vsel %vm1750_vm3, %v7046_v33, -inf }
 0x450   : > { %v5190_v40 = vpop.f32.mrf.mxu1  ;;  %1761 = vmax.xlane.f32.xlu0 %v1760_v38  ;;  %1758 = vmax.xlane.f32.xlu1 %v1757_v39  ;;  %v5184_v26 = vpop.f32.mrf.mxu0 }
 0x452   : > { %v1440_v41 = vpop.f32.mrf.mxu0  ;;  %v1486_v42 = vpop.f32.mrf.mxu1 }
 0x454   : > { %v5191_v45 = vpop.f32.mrf.mxu1  ;;  %1742 = vadd.xlane.f32.xlu0 %v1741_v43  ;;  %1739 = vadd.xlane.f32.xlu1 %v1738_v44  ;;  %v5185_v46 = vpop.f32.mrf.mxu0 }
 0x456   : > { %v7058_v47 = vpop.f32.mrf.mxu0  ;;  %v7060_v48 = vpop.f32.mrf.mxu1 }
 0x457   : > { %v1766_v51 = vsel %vm1750_vm3, %v7060_v48, -inf  ;;  %v1763_v52 = vsel %vm1750_vm3, %v7058_v47, -inf }
 0x458   : > { %v5202_v53 = vpop.f32.mrf.mxu1  ;;  %1767 = vmax.xlane.f32.xlu0 %v1766_v51  ;;  %1764 = vmax.xlane.f32.xlu1 %v1763_v52  ;;  %v5196_v54 = vpop.f32.mrf.mxu0 }
 0x45a   : > { %v1532_v58 = vpop.f32.mrf.mxu0  ;;  %v1578_v59 = vpop.f32.mrf.mxu1 }
 0x45c   : > { %v5203_v62 = vpop.f32.mrf.mxu1  ;;  %1748 = vadd.xlane.f32.xlu0 %v1747_v60  ;;  %1745 = vadd.xlane.f32.xlu1 %v1744_v61  ;;  %v5197_v63 = vpop.f32.mrf.mxu0 }
 0x45e   : > { %v7072_v1 = vpop.f32.mrf.mxu1  ;;  %v7075_v5 = vpop.f32.mrf.mxu0 }
 0x45f   : > { %v1753_v2 = vpop.xlane.xlu0 %1752  ;;  %v1772_v6 = vsel %vm1750_vm3, %v7072_v1, -inf  ;;  %v1769_v9 = vsel %vm1750_vm3, %v7075_v5, -inf }
 0x460   : > { %v1775_v3 = vmax.f32 %v1753_v2, %v7070_v0  ;;  %v5214_v7 = vpop.f32.mrf.mxu1  ;;  %1773 = vmax.xlane.f32.xlu0 %v1772_v6  ;;  %1770 = vmax.xlane.f32.xlu1 %v1769_v9  ;;  %v5208_v12 = vpop.f32.mrf.mxu0 }
 0x462   : > { %v1783_v11 = vsub.f32 %v7031_v8, %v1775_v3  ;;  %v1670_v13 = vpop.f32.mrf.mxu1  ;;  %v1624_v16 = vpop.f32.mrf.mxu0  ;;  %v1807_v58 = vsub.f32 %v7070_v0, %v1775_v3 }
 0x464   : > { %v1791_v14 = vmul.f32 1.442695, %v1783_v11  ;;  %v5215_v17 = vpop.f32.mrf.mxu1  ;;  %v5209_v10 = vpop.f32.mrf.mxu0  ;;  %v1815_v61 = vmul.f32 1.442695, %v1807_v58 }
 0x466   : > { %5851 = vpow2.f32 %v1791_v14 }
 0x467   : > { %v1756_v18 = vpop.xlane.xlu0 %1755 }
 0x468   : > { %v7083_v19 = vmax.f32 %v1756_v18, %v7066_v56 }
 0x46a   : > { %v1784_v20 = vsub.f32 %v7035_v21, %v7083_v19  ;;  %v1808_v22 = vsub.f32 %v7066_v56, %v7083_v19  ;;  %v7099_v21 = vpop.xlane.xlu1 %1733 }
 0x46b   : > { %v7101_v30 = vpop.xlane.xlu0 %1736 }
 0x46c   : > { %v1793_v23 = vmul.f32 1.442695, %v1784_v20  ;;  %v1817_v12 = vmul.f32 1.442695, %v1808_v22 }
 0x46e   : > { %5853 = vpow2.f32 %v1793_v23 }
 0x473   : > { %v7089_v8 = vpop.eup %5851 }
 0x474   : > { %v1831_v25 = vsel %vm1750_vm3, %v7089_v8, 0.0 }
 0x475   : > { %1832 = vadd.xlane.f32.xlu1 %v1831_v25 }
 0x47b   : > { %v7093_v28 = vpop.eup %5853 }
 0x47c   : > { %v1834_v29 = vsel %vm1750_vm3, %v7093_v28, 0.0 }
 0x47d   : > { %1835 = vadd.xlane.f32.xlu0 %v1834_v29 }
 0x486   : > { %5623 = vrot.lane.b32.xlu1 %v6954_v15, %s6471_s27 }
 0x4d9   : > { %v1762_v31 = vpop.xlane.xlu0 %1761  ;;  %v1759_v32 = vpop.xlane.xlu1 %1758 }
 0x4da   : > { %v7104_v36 = vmax.f32 %v1762_v31, %v7101_v30  ;;  %v7107_v37 = vmax.f32 %v1759_v32, %v7099_v21 }
 0x4dc   : > { %v1786_v38 = vsub.f32 %v7048_v35, %v7104_v36  ;;  %v1810_v39 = vsub.f32 %v7101_v30, %v7104_v36  ;;  %v1785_v40 = vsub.f32 %v7046_v33, %v7107_v37  ;;  %v1809_v26 = vsub.f32 %v7099_v21, %v7107_v37 }
 0x4dd   : > { %v7117_v41 = vpop.xlane.xlu0 %1742  ;;  %v7119_v42 = vpop.xlane.xlu1 %1739 }
 0x4de   : > { %v1797_v34 = vmul.f32 1.442695, %v1786_v38  ;;  %v1795_v43 = vmul.f32 1.442695, %v1785_v40 }
 0x4e0   : > { %5855 = vpow2.f32 %v1797_v34 }
 0x4e1   : > { %v1768_v44 = vpop.xlane.xlu0 %1767  ;;  %v1765_v45 = vpop.xlane.xlu1 %1764  ;;  %5857 = vpow2.f32 %v1795_v43 }
 0x4e2   : > { %v7122_v35 = vmax.f32 %v1768_v44, %v7117_v41  ;;  %v7125_v46 = vmax.f32 %v1765_v45, %v7119_v42 }
 0x4e4   : > { %v1788_v33 = vsub.f32 %v7060_v48, %v7122_v35  ;;  %v1812_v49 = vsub.f32 %v7117_v41, %v7122_v35  ;;  %v1787_v50 = vsub.f32 %v7058_v47, %v7125_v46  ;;  %v1811_v51 = vsub.f32 %v7119_v42, %v7125_v46 }
 0x4e5   : > { %v7135_v52 = vpop.xlane.xlu0 %1748  ;;  %v7137_v53 = vpop.xlane.xlu1 %1745 }
 0x4e6   : > { %v1801_v54 = vmul.f32 1.442695, %v1788_v33  ;;  %v1799_v56 = vmul.f32 1.442695, %v1787_v50 }
 0x4e8   : > { %5859 = vpow2.f32 %v1801_v54 }
 0x4e9   : > { %v1774_v59 = vpop.xlane.xlu0 %1773  ;;  %5861 = vpow2.f32 %v1799_v56  ;;  %v1771_v60 = vpop.xlane.xlu1 %1770 }
 0x4ea   : > { %v7141_v48 = vmax.f32 %v1774_v59, %v7135_v52  ;;  %v7144_v47 = vmax.f32 %v1771_v60, %v7137_v53  ;;  %5863 = vpow2.f32 %v1815_v61  ;;  %v1825_v61 = vmul.f32 1.442695, %v1812_v49 }
 0x4ec   : > { %v1790_v62 = vsub.f32 %v7072_v1, %v7141_v48  ;;  %v1814_v63 = vsub.f32 %v7135_v52, %v7141_v48  ;;  %v1789_v0 = vsub.f32 %v7075_v5, %v7144_v47  ;;  %v1813_v3 = vsub.f32 %v7137_v53, %v7144_v47 }
 0x4ed   : > { %v7150_v2 = vpop.eup %5855 }
 0x4ee   : > { %v1805_v6 = vmul.f32 1.442695, %v1790_v62  ;;  %v1840_v7 = vsel %vm1750_vm3, %v7150_v2, 0.0  ;;  %v7158_v9 = vpop.eup %5857  ;;  %v1803_v11 = vmul.f32 1.442695, %v1789_v0 }
 0x4ef   : > { %1841 = vadd.xlane.f32.xlu0 %v1840_v7  ;;  %v1837_v1 = vsel %vm1750_vm3, %v7158_v9, 0.0  ;;  %v1823_v62 = vmul.f32 1.442695, %v1811_v51  ;;  %v1829_v30 = vmul.f32 1.442695, %v1814_v63 }
 0x4f0   : > { %5865 = vpow2.f32 %v1805_v6  ;;  %1838 = vadd.xlane.f32.xlu1 %v1837_v1  ;;  %v1827_v21 = vmul.f32 1.442695, %v1813_v3 }
 0x4f1   : > { %5867 = vpow2.f32 %v1803_v11 }
 0x4f2   : > { %5869 = vpow2.f32 %v1817_v12 }
 0x4f5   : > { %v7162_v5 = vpop.eup %5859 }
 0x4f6   : > { %v1846_v13 = vsel %vm1750_vm3, %v7162_v5, 0.0  ;;  %v7166_v14 = vpop.eup %5861 }
 0x4f7   : > { %1847 = vadd.xlane.f32.xlu0 %v1846_v13  ;;  %v1843_v16 = vsel %vm1750_vm3, %v7166_v14, 0.0  ;;  %v5864_v17 = vpop.eup %5863 }
 0x4f8   : > { %1844 = vadd.xlane.f32.xlu1 %v1843_v16 }
 0x4fd   : > { %v7170_v10 = vpop.eup %5865 }
 0x4fe   : > { %v1833_v18 = vpop.xlane.xlu1 %1832  ;;  %v1852_v20 = vsel %vm1750_vm3, %v7170_v10, 0.0  ;;  %v7174_v22 = vpop.eup %5867 }
 0x4ff   : > { %v1855_v19 = vadd.f32 %v5864_v17, %v1833_v18  ;;  %1853 = vadd.xlane.f32.xlu0 %v1852_v20  ;;  %v1849_v23 = vsel %vm1750_vm3, %v7174_v22, 0.0  ;;  %v5870_v25 = vpop.eup %5869 }
 0x500   : > { %1850 = vadd.xlane.f32.xlu1 %v1849_v23 }
 0x501   : > { %5871 = vrcp.f32 %v1855_v19 }
 0x502   : > { %v5624_v32 = vpop.permute.xlu1 %5623 }
 0x503   : > { %v5625_v38 = vunpack.i.l.bf16 %v5624_v32  ;;  %v5626_v33 = vunpack.i.h.bf16 %v5624_v32 }
 0x505   : > { %v1905_v34 = vpack.c.bf16 %v5625_v38, %v5625_v38  ;;  %v1906_v54 = vpack.c.bf16 %v5626_v33, %v5626_v33 }
 0x506   : > { %v1836_v29 = vpop.xlane.xlu0 %1835 }
 0x507   : > { %v1856_v31 = vadd.f32 %v5870_v25, %v1836_v29  ;;  %v2008_v50 = vsel %vm1914_vm2, %v1905_v34, 0  ;;  %v2054_v60 = vsel %vm1914_vm2, %v1906_v54, 0 }
 0x509   : > { %5873 = vrcp.f32 %v1856_v31 }
 0x50e   : > { %v5872_v40 = vpop.eup %5871 }
 0x50f   : > { %v7179_v43 = vmul.f32 %v5872_v40, %v7089_v8  ;;  %v7181_v44 = vmul.f32 %v5872_v40, %v5864_v17 }
 0x511   : > { %v1895_v45 = vpack.c.bf16 %v7179_v43, %v7179_v43  ;;  %5633 = vrot.lane.b32.xlu1 %v6954_v15, %s6473_s17 }
 0x513   : > { %5219 = vmatmul.mubr.msk.bf16.vlgmr.msra.gmra.mxu0 %vm1750_vm3, %v1895_v45 }
 0x514   : > { %5229 = vmatpush3.bf16.msra.mxu0 %v2008_v50  ;;  %5230 = vmatprep.mubr.msk.bf16.mxu0 %vm6470_vm0, %v6468_v4 }
 0x515   : > { %5240 = vmatprep.subr.bf16.mxu0 %v6468_v4  ;;  %5628 = vrot.lane.b32.xlu0 %v6954_v15, %s6472_s13  ;;  %v1821_v15 = vmul.f32 1.442695, %v1810_v39 }
 0x516   : > { %v5874_v8 = vpop.eup %5873 }
 0x517   : > { %v1880_v56 = vmul.f32 %v5874_v8, %v7093_v28  ;;  %v7195_v58 = vmul.f32 %v5874_v8, %v5870_v25  ;;  %v1819_v28 = vmul.f32 1.442695, %v1809_v26  ;;  %5875 = vpow2.f32 %v1821_v15 }
 0x519   : > { %v1896_v59 = vpack.c.bf16 %v1880_v56, %v1880_v56  ;;  %5877 = vpow2.f32 %v1819_v28  ;;  %v2493_v16 = vsel %vm1750_vm3, %v1880_v56, 0.0 }
 0x51a   : > { %5879 = vpow2.f32 %v1825_v61 }
 0x51b   : > { %5225 = vmatmul.mubr.msk.bf16.vlgmr.msra.gmra.mxu1 %vm1750_vm3, %v1896_v59  ;;  %5881 = vpow2.f32 %v1823_v62 }
 0x51c   : > { %5235 = vmatpush3.bf16.msra.mxu1 %v2054_v60  ;;  %5236 = vmatprep.mubr.msk.bf16.mxu1 %vm6470_vm0, %v6468_v4  ;;  %5883 = vpow2.f32 %v1829_v30 }
 0x51d   : > { %5246 = vmatprep.subr.bf16.mxu1 %v6468_v4 }
 0x524   : > { %v5876_v36 = vpop.eup %5875 }
 0x526   : > { %v5878_v26 = vpop.eup %5877 }
 0x527   : > { %v5880_v42 = vpop.eup %5879 }
 0x528   : > { %v5882_v51 = vpop.eup %5881 }
 0x529   : > { %v7220_v63 = vpop.eup %5883 }
 0x578   : > { %v1842_v37 = vpop.xlane.xlu0 %1841 }
 0x579   : > { %v1858_v39 = vadd.f32 %v5876_v36, %v1842_v37  ;;  %v1839_v41 = vpop.xlane.xlu1 %1838 }
 0x57a   : > { %v1857_v35 = vadd.f32 %v5878_v26, %v1839_v41 }
 0x57b   : > { %5885 = vrcp.f32 %v1858_v39 }
 0x57c   : > { %5887 = vpow2.f32 %v1827_v21 }
 0x57d   : > { %5889 = vrcp.f32 %v1857_v35 }
 0x580   : > { %v1848_v46 = vpop.xlane.xlu0 %1847 }
 0x581   : > { %v1860_v49 = vadd.f32 %v5880_v42, %v1848_v46  ;;  %v1845_v52 = vpop.xlane.xlu1 %1844 }
 0x582   : > { %v1859_v48 = vadd.f32 %v5882_v51, %v1845_v52 }
 0x583   : > { %5891 = vrcp.f32 %v1860_v49 }
 0x584   : > { %5893 = vrcp.f32 %v1859_v48 }
 0x588   : > { %v5886_v53 = vpop.eup %5885  ;;  %v1854_v47 = vpop.xlane.xlu0 %1853 }
 0x589   : > { %v7222_v0 = vpop.eup %5887  ;;  %v1862_v3 = vadd.f32 %v7220_v63, %v1854_v47  ;;  %v1882_v6 = vmul.f32 %v5886_v53, %v7150_v2  ;;  %v1851_v11 = vpop.xlane.xlu1 %1850  ;;  %v7230_v19 = vmul.f32 %v5886_v53, %v5876_v36  ;;  %v2486_v2 = vsel %vm1750_vm3, %v7179_v43, 0.0 }
 0x58a   : > { %v5890_v7 = vpop.eup %5889  ;;  %v1861_v1 = vadd.f32 %v7222_v0, %v1851_v11 }
 0x58b   : > { %5895 = vrcp.f32 %v1862_v3  ;;  %v1881_v12 = vmul.f32 %v5890_v7, %v7158_v9  ;;  %v1898_v13 = vpack.c.bf16 %v1882_v6, %v1882_v6  ;;  %v2494_v18 = vsel %vm1750_vm3, %v1882_v6, 0.0 }
 0x58c   : > { %v5629_v17 = vpop.permute.xlu0 %5628  ;;  %5897 = vrcp.f32 %v1861_v1  ;;  %v2495_v31 = vadd.f32 %v2494_v18, %v2493_v16  ;;  %v7241_v50 = vmul.f32 %v5890_v7, %v5878_v26  ;;  %v2505_v54 = vadd.f32 %v7230_v19, %v7195_v58 }
 0x58d   : > { %v5631_v20 = vunpack.i.h.bf16 %v5629_v17  ;;  %v5630_v23 = vunpack.i.l.bf16 %v5629_v17  ;;  %v1897_v25 = vpack.c.bf16 %v1881_v12, %v1881_v12  ;;  %5237 = vmatmul.mubr.msk.bf16.vlgmr.msra.gmra.mxu1 %vm1750_vm3, %v1898_v13  ;;  %v5634_v29 = vpop.permute.xlu1 %5633  ;;  %v2487_v9 = vsel %vm1750_vm3, %v1881_v12, 0.0 }
 0x58e   : > { %5248 = vmatprep.mubr.msk.bf16.mxu1 %vm6470_vm0, %v6468_v4  ;;  %v5636_v40 = vunpack.i.h.bf16 %v5634_v29  ;;  %v5635_v34 = vunpack.i.l.bf16 %v5634_v29  ;;  %v2488_v33 = vadd.f32 %v2487_v9, %v2486_v2  ;;  %v2502_v21 = vadd.f32 %v7241_v50, %v7181_v44 }
 0x58f   : > { %v1908_v32 = vpack.c.bf16 %v5631_v20, %v5631_v20  ;;  %v1907_v38 = vpack.c.bf16 %v5630_v23, %v5630_v23  ;;  %5231 = vmatmul.mubr.msk.bf16.vlgmr.msra.gmra.mxu0 %vm1750_vm3, %v1897_v25 }
 0x590   : > { %v5892_v45 = vpop.eup %5891  ;;  %5242 = vmatprep.mubr.msk.bf16.mxu0 %vm6470_vm0, %v6468_v4  ;;  %v1910_v59 = vpack.c.bf16 %v5636_v40, %v5636_v40  ;;  %v1909_v28 = vpack.c.bf16 %v5635_v34, %v5635_v34  ;;  %v5759_v40 = vld [vmem:[#allocation11 + $0x38] sm:$0xff]   ;;  %v5760_v34 = vld [vmem:[#allocation11 + $0x30] sm:$0xff]  }
 0x591   : > { %v2100_v43 = vsel %vm1914_vm2, %v1907_v38, 0  ;;  %v2146_v8 = vsel %vm1914_vm2, %v1908_v32, 0  ;;  %v5894_v56 = vpop.eup %5893  ;;  %v1884_v60 = vmul.f32 %v5892_v45, %v7162_v5  ;;  %v7248_v15 = vmul.f32 %v5892_v45, %v5880_v42  ;;  %v5761_v45 = vld [vmem:[#allocation11 + $0x28] sm:$0xff]  }
 0x592   : > { %5241 = vmatpush3.bf16.msra.mxu0 %v2100_v43  ;;  %5247 = vmatpush3.bf16.msra.mxu1 %v2146_v8  ;;  %v1883_v61 = vmul.f32 %v5894_v56, %v7166_v14  ;;  %v7253_v62 = vmul.f32 %v5894_v56, %v5882_v51  ;;  %v2238_v14 = vsel %vm1914_vm2, %v1910_v59, 0  ;;  %v2192_v42 = vsel %vm1914_vm2, %v1909_v28, 0  ;;  %v5762_v56 = vld [vmem:[#allocation11 + $0x20] sm:$0xff]  }
 0x593   : > { %5252 = vmatprep.subr.bf16.mxu0 %v6468_v4  ;;  %5258 = vmatprep.subr.bf16.mxu1 %v6468_v4  ;;  %v1900_v30 = vpack.c.bf16 %v1884_v60, %v1884_v60  ;;  %v2496_v36 = vsel %vm1750_vm3, %v1884_v60, 0.0  ;;  %v2506_v37 = vadd.f32 %v2505_v54, %v7248_v15  ;;  %v5763_v60 = vld [vmem:[#allocation11 + $0x18] sm:$0xff]  }
 0x594   : > { %v1899_v5 = vpack.c.bf16 %v1883_v61, %v1883_v61  ;;  %v2489_v39 = vsel %vm1750_vm3, %v1883_v61, 0.0  ;;  %v2497_v26 = vadd.f32 %v2496_v36, %v2495_v31  ;;  %v2503_v35 = vadd.f32 %v2502_v21, %v7253_v62 }
 0x595   : > { %v2490_v41 = vadd.f32 %v2489_v39, %v2488_v33  ;;  %5249 = vmatmul.mubr.msk.bf16.vlgmr.msra.gmra.mxu1 %vm1750_vm3, %v1900_v30  ;;  %v4909_v33 = vld.sshfl [vmem:[#allocation10 + $0x4] sm:$0x33 pattern:$0x75316420] }
 0x596   : > { %5259 = vmatpush3.bf16.msra.mxu1 %v2238_v14  ;;  %5260 = vmatprep.mubr.msk.bf16.mxu1 %vm6470_vm0, %v6468_v4  ;;  %v2288_v43 = vcombine.high %v4909_v33, %v4909_v33  ;;  %v2295_v59 = vrot.slane %v4909_v33, %v6972_v24 }
 0x597   : > { %5243 = vmatmul.mubr.msk.bf16.vlgmr.msra.gmra.mxu0 %vm1750_vm3, %v1899_v5  ;;  %5284 = vmatprep.subr.bf16.mxu1 %v6468_v4 }
 0x598   : > { %v5896_v46 = vpop.eup %5895  ;;  %5253 = vmatpush3.bf16.msra.mxu0 %v2192_v42  ;;  %5254 = vmatprep.mubr.msk.bf16.mxu0 %vm6470_vm0, %v6468_v4  ;;  %v2302_v8 = vrot.slane %v2288_v43, %v6972_v24  ;;  %v2303_v30 = vcombine.high %v2295_v59, %v2295_v59  ;;  %v2308_v43 = vrot.slane %v2295_v59, %v6939_v55 }
 0x599   : > { %v1886_v49 = vmul.f32 %v5896_v46, %v7170_v10  ;;  %v7271_v51 = vmul.f32 %v5896_v46, %v7220_v63  ;;  %5264 = vmatprep.subr.bf16.mxu0 %v6468_v4  ;;  %v5898_v52 = vpop.eup %5897 }
 0x59a   : > { %v1885_v48 = vmul.f32 %v5898_v52, %v7174_v22  ;;  %v7278_v3 = vmul.f32 %v5898_v52, %v7222_v0  ;;  %v2312_v54 = vrot.slane %v2302_v8, %v6939_v55  ;;  %v2316_v14 = vrot.slane %v2303_v30, %v6939_v55 }
 0x59b   : > { %v1902_v53 = vpack.c.bf16 %v1886_v49, %v1886_v49  ;;  %v2498_v47 = vsel %vm1750_vm3, %v1886_v49, 0.0  ;;  %v2507_v7 = vadd.f32 %v2506_v37, %v7271_v51  ;;  %v5765_v49 = vld [vmem:[#allocation11 + $0x8] sm:$0xff]  }
 0x59c   : > { %v2499_v6 = vadd.f32 %v2498_v47, %v2497_v26  ;;  %v1901_v10 = vpack.c.bf16 %v1885_v48, %v1885_v48  ;;  %v2491_v63 = vsel %vm1750_vm3, %v1885_v48, 0.0  ;;  %v2504_v11 = vadd.f32 %v2503_v35, %v7278_v3  ;;  %v5764_v35 = vld [vmem:[#allocation11 + $0x10] sm:$0xff]  }
 0x59d   : > { %5261 = vmatmul.mubr.msk.bf16.vlgmr.msra.gmra.mxu1 %vm1750_vm3, %v1902_v53  ;;  %v2492_v1 = vadd.f32 %v2491_v63, %v2490_v41  ;;  %v2509_v12 = vmul.f32 0.25, %v2507_v7  ;;  %v2328_v28 = vmul.f32 %v2312_v54, %v7230_v19  ;;  %v2327_v36 = vmul.f32 %v2312_v54, %v7241_v50 }
 0x59e   : > { %v2501_v22 = vmul.f32 0.25, %v2499_v6  ;;  %v2508_v13 = vmul.f32 0.25, %v2504_v11  ;;  %5300 = vmatprep.mubr.msk.bf16.mxu1 %vm6470_vm0, %v6468_v4  ;;  %v2330_v52 = vmul.f32 %v2316_v14, %v7248_v15  ;;  %v2304_v48 = vcombine.high %v2302_v8, %v2302_v8 }
 0x59f   : > { %5255 = vmatmul.mubr.msk.bf16.vlgmr.msra.gmra.mxu0 %vm1750_vm3, %v1901_v10  ;;  %v2500_v0 = vmul.f32 0.25, %v2492_v1  ;;  %v2329_v53 = vmul.f32 %v2316_v14, %v7253_v62 }
 0x5a0   : > { %v2511_v16 = vsel %vm1750_vm3, %v2501_v22, %v2509_v12  ;;  %5280 = vmatprep.mubr.msk.bf16.mxu0 %vm6470_vm0, %v6468_v4  ;;  %5265 = vmatpush3.bf16.msra.mxu0 %v5759_v40  ;;  %v2320_v1 = vrot.slane %v2304_v48, %v6939_v55  ;;  %v5766_v22 = vld [vmem:[#allocation11] sm:$0xff]  }
 0x5a1   : > { %v2514_v17 = vsel %vm2512_vm4, %v2511_v16, 0.0  ;;  %v2510_v18 = vsel %vm1750_vm3, %v2500_v0, %v2508_v13  ;;  %5266 = vmatprep.subr.bf16.mxu0 %v6468_v4 }
 0x5a2   : > { %2516 = vst [vmem:[%s7292_s12 + $0x8] sm:$0xff] %v2514_v17  ;;  %v2513_v20 = vsel %vm2512_vm4, %v2510_v18, 0.0  ;;  %v2332_v16 = vmul.f32 %v2320_v1, %v7271_v51  ;;  %v2331_v17 = vmul.f32 %v2320_v1, %v7278_v3  ;;  %v2325_v51 = vmul.f32 %v2308_v43, %v7181_v44  ;;  %v5778_v1 = vld [vmem:[#allocation17 + $0x44] ss:$8 sps:$4 sm:$0xff]  }
 0x5a3   : > { %2515 = vst [vmem:[%s7292_s12] sm:$0xff] %v2513_v20  ;;  %v2326_v3 = vmul.f32 %v2308_v43, %v7195_v58  ;;  %v5792_v43 = vld [vmem:[#allocation14 + $0x30] sm:$0xff]  }
 0x5a4   : > { %5267 = vmatpush3.bf16.msra.mxu0 %v5760_v34 }
 0x5a5   : > { %5268 = vmatprep.subr.bf16.mxu0 %v6468_v4 }
 0x5a8   : > { %5269 = vmatpush3.bf16.msra.mxu0 %v5761_v45 }
 0x5a9   : > { %5270 = vmatprep.subr.bf16.mxu0 %v6468_v4 }
 0x5ac   : > { %5271 = vmatpush3.bf16.msra.mxu0 %v5762_v56 }
 0x5ad   : > { %5272 = vmatprep.subr.bf16.mxu0 %v6468_v4 }
 0x5b0   : > { %5273 = vmatpush3.bf16.msra.mxu0 %v5763_v60 }
 0x5b1   : > { %5274 = vmatprep.subr.bf16.mxu0 %v6468_v4 }
 0x5b4   : > { %5275 = vmatpush3.bf16.msra.mxu0 %v5764_v35 }
 0x5b5   : > { %5276 = vmatprep.subr.bf16.mxu0 %v6468_v4 }
 0x5b8   : > { %5277 = vmatpush3.bf16.msra.mxu0 %v5765_v49 }
 0x5b9   : > { %5278 = vmatprep.subr.bf16.mxu0 %v6468_v4 }
 0x5bc   : > { %5279 = vmatpush3.bf16.msra.mxu0 %v5766_v22  ;;  %v5776_v22 = vld [vmem:[#allocation17 + $0x40] ss:$8 sps:$4 sm:$0xff]  }
 0x5d3   : > { %v7296_v23 = vpop.f32.mrf.mxu0 }
 0x5d5   : > { %v5220_v25 = vpop.f32.mrf.mxu0 }
 0x5d7   : > { %v1955_v2 = vpop.f32.mrf.mxu0 }
 0x5d9   : > { %v5221_v29 = vpop.f32.mrf.mxu0 }
 0x5db   : > { %v7298_v9 = vpop.f32.mrf.mxu1 }
 0x5dc   : > { %v2334_v30 = vadd.f32 %v2326_v3, %v7298_v9 }
 0x5dd   : > { %v5226_v31 = vpop.f32.mrf.mxu1 }
 0x5df   : > { %v2001_v32 = vpop.f32.mrf.mxu1 }
 0x5e1   : > { %v5227_v38 = vpop.f32.mrf.mxu1 }
 0x64d   : > { %v2090_v61 = vpop.f32.mrf.mxu1 }
 0x64e   : > { %v2336_v21 = vadd.f32 %v2328_v28, %v2090_v61  ;;  %v2333_v61 = vadd.f32 %v2325_v51, %v7296_v23  ;;  %v925_v51 = vld [vmem:[%s6874_s5 + $0x18] sm:$0xff] }
 0x64f   : > { %v2044_v37 = vpop.f32.mrf.mxu0  ;;  %v5238_v5 = vpop.f32.mrf.mxu1 }
 0x650   : > { %v2335_v39 = vadd.f32 %v2327_v36, %v2044_v37 }
 0x651   : > { %v5232_v26 = vpop.f32.mrf.mxu0  ;;  %v2093_v41 = vpop.f32.mrf.mxu1 }
 0x652   : > { %v5637_v42 = vpack.i.bf16 %v2336_v21, %v2335_v39  ;;  %v4910_v26 = vld [vmem:[#allocation13] ss:$0 sm:$0xff] }
 0x653   : > { %v2047_v19 = vpop.f32.mrf.mxu0  ;;  %v5239_v46 = vpop.f32.mrf.mxu1 }
 0x654   : > { %5638 = vrot.lane.b32.xlu1 %v5637_v42, %s6473_s17  ;;  %v5955_v42 = vld [vmem:[%s6864_s15] sm:$0xff] }
 0x655   : > { %v5233_v50 = vpop.f32.mrf.mxu0  ;;  %v2182_v47 = vpop.f32.mrf.mxu1 }
 0x656   : > { %v2338_v7 = vadd.f32 %v2330_v52, %v2182_v47  ;;  %v5956_v52 = vld [vmem:[%s6864_s15 + $0x8] sm:$0xff] }
 0x657   : > { %v2136_v6 = vpop.f32.mrf.mxu0  ;;  %v5250_v63 = vpop.f32.mrf.mxu1  ;;  %v5769_v47 = vld [vmem:[#allocation17 + $0x74] ss:$8 sps:$4 sm:$0xff]  }
 0x658   : > { %v2337_v10 = vadd.f32 %v2329_v53, %v2136_v6  ;;  %v5767_v53 = vld [vmem:[#allocation17 + $0x70] ss:$8 sps:$4 sm:$0xff]   ;;  %v5772_v6 = vld [vmem:[#allocation17 + $0x64] ss:$8 sps:$4 sm:$0xff]   ;;  %2778 = vmatprep.subr.bf16.mxu0 %v5769_v47 }
 0x659   : > { %v5244_v11 = vpop.f32.mrf.mxu0  ;;  %v2185_v13 = vpop.f32.mrf.mxu1  ;;  %v5788_v63 = vld [vmem:[#allocation14 + $0x38] sm:$0xff]  }
 0x65a   : > { %v5642_v12 = vpack.i.bf16 %v2338_v7, %v2337_v10  ;;  %v5770_v7 = vld [vmem:[#allocation17 + $0x60] ss:$8 sps:$4 sm:$0xff]   ;;  %v5775_v10 = vld [vmem:[#allocation17 + $0x54] ss:$8 sps:$4 sm:$0xff]   ;;  %5285 = vmatpush3.bf16.msra.mxu1 %v5788_v63  ;;  %v5773_v11 = vld [vmem:[#allocation17 + $0x50] ss:$8 sps:$4 sm:$0xff]  }
 0x65b   : > { %v2139_v0 = vpop.f32.mrf.mxu0  ;;  %v5251_v15 = vpop.f32.mrf.mxu1  ;;  %5286 = vmatprep.subr.bf16.mxu1 %v6468_v4  ;;  %v5779_v13 = vld [vmem:[#allocation17 + $0x30] ss:$8 sps:$4 sm:$0xff]  }
 0x65c   : > { %5643 = vrot.lane.b32.xlu1 %v5642_v12, %s6472_s13  ;;  %v5781_v12 = vld [vmem:[#allocation17 + $0x34] ss:$8 sps:$4 sm:$0xff]   ;;  %v5784_v0 = vld [vmem:[#allocation17 + $0x24] ss:$8 sps:$4 sm:$0xff]   ;;  %v5782_v15 = vld [vmem:[#allocation17 + $0x20] ss:$8 sps:$4 sm:$0xff]  }
 0x65d   : > { %v5245_v62 = vpop.f32.mrf.mxu0  ;;  %v2274_v18 = vpop.f32.mrf.mxu1 }
 0x65e   : > { %v2340_v25 = vadd.f32 %v2332_v16, %v2274_v18  ;;  %v5787_v62 = vld [vmem:[#allocation17 + $0x14] ss:$8 sps:$4 sm:$0xff]   ;;  %v5785_v16 = vld [vmem:[#allocation17 + $0x10] ss:$8 sps:$4 sm:$0xff]   ;;  %5287 = vmatpush3.bf16.msra.mxu1 %v5792_v43 }
 0x65f   : > { %v2228_v20 = vpop.f32.mrf.mxu0  ;;  %v5262_v29 = vpop.f32.mrf.mxu1  ;;  %5288 = vmatprep.subr.bf16.mxu1 %v6468_v4 }
 0x660   : > { %v2339_v2 = vadd.f32 %v2331_v17, %v2228_v20 }
 0x661   : > { %v5256_v31 = vpop.f32.mrf.mxu0  ;;  %v2277_v38 = vpop.f32.mrf.mxu1 }
 0x662   : > { %v5647_v32 = vpack.i.bf16 %v2340_v25, %v2339_v2  ;;  %v5791_v38 = vld [vmem:[#allocation17 + $0x4] ss:$8 sps:$4 sm:$0xff]  }
 0x663   : > { %v2231_v40 = vpop.f32.mrf.mxu0  ;;  %v5263_v34 = vpop.f32.mrf.mxu1 }
 0x664   : > { %5648 = vrot.lane.b32.xlu0 %v5647_v32, %s6471_s27  ;;  %v5789_v40 = vld [vmem:[#allocation17] ss:$8 sps:$4 sm:$0xff]   ;;  %v922_v34 = vld [vmem:[%s6874_s5] sm:$0xff] }
 0x665   : > { %v5257_v45 = vpop.f32.mrf.mxu0 }
 0x666   : > { %v923_v45 = vld [vmem:[%s6874_s5 + $0x8] sm:$0xff] }
 0x6c6   : > { %v5639_v33 = vpop.permute.xlu1 %5638 }
 0x6c7   : > { %v5641_v54 = vunpack.i.h.bf16 %v5639_v33  ;;  %v5640_v56 = vunpack.i.l.bf16 %v5639_v33  ;;  %v2668_v33 = vpack.c.bf16 %v923_v45, %v922_v34 }
 0x6c9   : > { %v2366_v21 = vsel %vm1304_vm1, %v2334_v30, %v5641_v54  ;;  %v2365_v59 = vsel %vm1304_vm1, %v2333_v61, %v5640_v56  ;;  %v5793_v54 = vld [vmem:[#allocation14 + $0x28] sm:$0xff]   ;;  %v5794_v56 = vld [vmem:[#allocation14 + $0x20] sm:$0xff]  }
 0x6ca   : > { %5289 = vmatpush3.bf16.msra.mxu1 %v5793_v54  ;;  %v5797_v61 = vld [vmem:[#allocation14 + $0x8] sm:$0xff]   ;;  %v5798_v30 = vld [vmem:[#allocation14] sm:$0xff]  }
 0x6cb   : > { %5290 = vmatprep.subr.bf16.mxu1 %v6468_v4 }
 0x6ce   : > { %v5644_v8 = vpop.permute.xlu1 %5643  ;;  %5291 = vmatpush3.bf16.msra.mxu1 %v5794_v56 }
 0x6cf   : > { %v5646_v60 = vunpack.i.h.bf16 %v5644_v8  ;;  %v5645_v28 = vunpack.i.l.bf16 %v5644_v8  ;;  %v924_v8 = vld [vmem:[%s6874_s5 + $0x10] sm:$0xff]  ;;  %5292 = vmatprep.subr.bf16.mxu1 %v6468_v4  ;;  %s7797_s5 = sshll.u32 %s6616_s23, 8 }
 0x6d0   : > { %v2669_v3 = vpack.c.bf16 %v925_v51, %v924_v8 }
 0x6d1   : > { %v2369_v58 = vsel %vm2367_vm5, %v2366_v21, %v5646_v60  ;;  %v2368_v5 = vsel %vm2367_vm5, %v2365_v59, %v5645_v28  ;;  %v5795_v60 = vld [vmem:[#allocation14 + $0x18] sm:$0xff]   ;;  %v5796_v28 = vld [vmem:[#allocation14 + $0x10] sm:$0xff]  }
 0x6d2   : > { %5293 = vmatpush3.bf16.msra.mxu1 %v5795_v60 }
 0x6d3   : > { %5294 = vmatprep.subr.bf16.mxu1 %v6468_v4 }
 0x6d6   : > { %v5649_v36 = vpop.permute.xlu0 %5648  ;;  %5295 = vmatpush3.bf16.msra.mxu1 %v5796_v28 }
 0x6d7   : > { %v5651_v37 = vunpack.i.h.bf16 %v5649_v36  ;;  %v5650_v44 = vunpack.i.l.bf16 %v5649_v36  ;;  %5296 = vmatprep.subr.bf16.mxu1 %v6468_v4 }
 0x6d9   : > { %v2372_v39 = vsel %vm2370_vm6, %v2369_v58, %v5651_v37  ;;  %v2371_v23 = vsel %vm2370_vm6, %v2368_v5, %v5650_v44 }
 0x6da   : > { %v2373_v9 = vpack.c.bf16 %v2372_v39, %v2371_v23  ;;  %5297 = vmatpush3.bf16.msra.mxu1 %v5797_v61  ;;  %v4919_v23 = vld [vmem:[%s7938_s18 + $0x1] ss:$0 sm:$0xff] }
 0x6db   : > { %5298 = vmatprep.subr.bf16.mxu1 %v6468_v4 }
 0x6dc   : > { %5281 = vmatmul.mubr.bf16.vlgmr.msra.gmra.mxu0 %v2373_v9 }
 0x6dd   : > { %2810 = vmatprep.mubr.bf16.mxu0 %v6469_v27  ;;  %2779 = vmatpush1.bf16.msra.mxu0 %v5767_v53 }
 0x6de   : > { %2780 = vmatprep.subr.bf16.mxu0 %v5772_v6  ;;  %5299 = vmatpush3.bf16.msra.mxu1 %v5798_v30 }
 0x6df   : > { %5304 = vmatprep.subr.bf16.mxu1 %v6468_v4 }
 0x6e1   : > { %2781 = vmatpush1.bf16.msra.mxu0 %v5770_v7 }
 0x6e2   : > { %2782 = vmatprep.subr.bf16.mxu0 %v5775_v10 }
 0x6e5   : > { %2783 = vmatpush1.bf16.msra.mxu0 %v5773_v11 }
 0x6e6   : > { %2784 = vmatprep.subr.bf16.mxu0 %v5778_v1 }
 0x6e9   : > { %2785 = vmatpush1.bf16.msra.mxu0 %v5776_v22 }
 0x6ea   : > { %2786 = vmatprep.subr.bf16.mxu0 %v5781_v12 }
 0x6ed   : > { %2787 = vmatpush1.bf16.msra.mxu0 %v5779_v13 }
 0x6ee   : > { %2788 = vmatprep.subr.bf16.mxu0 %v5784_v0 }
 0x6f1   : > { %2789 = vmatpush1.bf16.msra.mxu0 %v5782_v15 }
 0x6f2   : > { %2790 = vmatprep.subr.bf16.mxu0 %v5787_v62 }
 0x6f5   : > { %2791 = vmatpush1.bf16.msra.mxu0 %v5785_v16 }
 0x6f6   : > { %2792 = vmatprep.subr.bf16.mxu0 %v5791_v38 }
 0x6f9   : > { %2793 = vmatpush1.bf16.msra.mxu0 %v5789_v40  ;;  %v4921_v40 = vld [vmem:[#allocation16] ss:$0 sm:$0xff] }
 0x6fa   : > { %5334 = vmatprep.subr.bf16.mxu0 %v6468_v4 }
 0x6fc   : > { %2811 = vmatmul.mubr.bf16.vlgmr.msra.gmra.mxu0 %v2668_v33 }
 0x6fd   : > { %2820 = vmatprep.mubr.bf16.mxu0 %v6469_v27 }
 0x704   : > { %2821 = vmatmul.mubr.bf16.gmra.mxu0 %v2669_v3 }
 0x705   : > { %5336 = vmatprep.mubr.msk.bf16.mxu0 %vm6470_vm0, %v6468_v4 }
 0x79c   : > { %v2479_v41 = vpop.f32.mrf.mxu0 }
 0x79d   : > { %v2480_v14 = vadd.f32 %v4910_v26, %v2479_v41 }
 0x79e   : > { %v5282_v35 = vpop.f32.mrf.mxu0 }
 0x79f   : > { %v2517_v19 = vadd.f32 %v5955_v42, %v2480_v14  ;;  %v4920_v14 = vld [vmem:[%s7939_s19 + $0x1] ss:$0 sm:$0xff] }
 0x7a0   : > { %v2482_v46 = vpop.f32.mrf.mxu0 }
 0x7a1   : > { %v2483_v49 = vadd.f32 %v4910_v26, %v2482_v46  ;;  %2521 = vadd.xlane.f32.xlu1 %v2517_v19 }
 0x7a2   : > { %v5283_v50 = vpop.f32.mrf.mxu0 }
 0x7a3   : > { %v2518_v48 = vadd.f32 %v5956_v52, %v2483_v49  ;;  %v2686_v49 = vld [vmem:[%s7930_s10] sm:$0x3] }
 0x7a4   : > { %v2691_v50 = vrot.slane %v2686_v49, %v6939_v55  ;;  %v2695_v52 = vrot.slane %v2686_v49, %v6941_v57 }
 0x7a5   : > { %2523 = vadd.xlane.f32.xlu0 %v2518_v48 }
 0x82a   : > { %v2522_v17 = vpop.xlane.xlu1 %2521 }
 0x82b   : > { %v2525_v18 = vmul.f32 0.0078125, %v2522_v17 }
 0x82d   : > { %v2527_v20 = vsub.f32 %v2517_v19, %v2525_v18 }
 0x82e   : > { %v2524_v25 = vpop.xlane.xlu0 %2523 }
 0x82f   : > { %v2526_v2 = vmul.f32 0.0078125, %v2524_v25  ;;  %v2529_v29 = vmul.f32 %v2527_v20, %v2527_v20 }
 0x831   : > { %v2528_v31 = vsub.f32 %v2518_v48, %v2526_v2  ;;  %2531 = vadd.xlane.f32.xlu0 %v2529_v29  ;;  %v2812_v48 = vpop.f32.mrf.mxu0 }
 0x832   : > { %v2813_v47 = vadd.f32 %v2812_v48, %v2691_v50 }
 0x833   : > { %v2530_v32 = vmul.f32 %v2528_v31, %v2528_v31  ;;  %v2814_v53 = vpop.f32.mrf.mxu0 }
 0x834   : > { %v7370_v6 = vadd.f32 %v2814_v53, %v2695_v52 }
 0x835   : > { %2533 = vadd.xlane.f32.xlu0 %v2530_v32  ;;  %v2816_v7 = vpop.f32.mrf.mxu0 }
 0x836   : > { %v2817_v10 = vadd.f32 %v2816_v7, %v2691_v50 }
 0x837   : > { %v2818_v63 = vpop.f32.mrf.mxu0 }
 0x838   : > { %v7372_v11 = vadd.f32 %v2818_v63, %v2695_v52  ;;  %v5652_v1 = vpack.i.bf16 %v2817_v10, %v2813_v47  ;;  %v2942_v22 = vpack.c.bf16 %v2817_v10, %v2813_v47 }
 0x839   : > { %v2822_v12 = vpop.f32.mrf.mxu0 }
 0x83a   : > { %5653 = vrot.lane.b32.xlu1 %v5652_v1, %s6471_s27  ;;  %v2954_v13 = vsel %vm1304_vm1, %v2942_v22, 0  ;;  %v2823_v15 = vadd.f32 %v2822_v12, %v2691_v50  ;;  %v7384_v25 = vpack.i.bf16 %v7372_v11, %v7370_v6 }
 0x83b   : > { %v2824_v0 = vpop.f32.mrf.mxu0 }
 0x83c   : > { %v7376_v62 = vadd.f32 %v2824_v0, %v2695_v52 }
 0x83d   : > { %v2826_v16 = vpop.f32.mrf.mxu0 }
 0x83e   : > { %v2827_v17 = vadd.f32 %v2826_v16, %v2691_v50 }
 0x83f   : > { %v2828_v2 = vpop.f32.mrf.mxu0 }
 0x840   : > { %v5657_v18 = vpack.i.bf16 %v2827_v17, %v2823_v15  ;;  %v7387_v29 = vadd.f32 %v2828_v2, %v2695_v52 }
 0x842   : > { %5658 = vrot.lane.b32.xlu1 %v5657_v18, %s6471_s27  ;;  %v3549_v32 = vpack.c.bf16 %v7387_v29, %v7376_v62  ;;  %v7393_v38 = vpack.i.bf16 %v7387_v29, %v7376_v62 }
 0x846   : > { %5663 = vrot.lane.b32.xlu1 %v5652_v1, %s6472_s13 }
 0x8ac   : > { %v5654_v43 = vpop.permute.xlu1 %5653 }
 0x8ad   : > { %v5656_v51 = vunpack.i.h.bf16 %v5654_v43  ;;  %v5655_v3 = vunpack.i.l.bf16 %v5654_v43 }
 0x8af   : > { %v2944_v61 = vpack.c.bf16 %v5656_v51, %v5655_v3 }
 0x8ba   : > { %v2532_v36 = vpop.xlane.xlu0 %2531 }
 0x8bb   : > { %v2535_v21 = vmul.f32 0.0078125, %v2532_v36  ;;  %v3046_v36 = vsel %vm1304_vm1, %v2944_v61, 0 }
 0x8bd   : > { %v2537_v59 = vadd.f32 1e-05, %v2535_v21  ;;  %v4955_v21 = vld.sshfl [vmem:[%s7931_s11] sm:$0x33 pattern:$0x75316420] }
 0x8be   : > { %v2534_v37 = vpop.xlane.xlu0 %2533 }
 0x8bf   : > { %5899 = vrsqrt.f32 %v2537_v59  ;;  %v2536_v44 = vmul.f32 0.0078125, %v2534_v37  ;;  %v3333_v59 = vrot.slane %v4955_v21, %v6972_v24 }
 0x8c1   : > { %v2538_v58 = vadd.f32 1e-05, %v2536_v44  ;;  %v3346_v37 = vrot.slane %v3333_v59, %v6939_v55  ;;  %v3341_v53 = vcombine.high %v3333_v59, %v3333_v59 }
 0x8c3   : > { %5901 = vrsqrt.f32 %v2538_v58 }
 0x8cc   : > { %v5900_v5 = vpop.eup %5899 }
 0x8cd   : > { %v2541_v39 = vmul.f32 %v5900_v5, %v2527_v20  ;;  %v3548_v20 = vpack.c.bf16 %v7372_v11, %v7370_v6 }
 0x8cf   : > { %v2547_v41 = vmul.f32 %v4919_v23, %v2541_v39 }
 0x8d0   : > { %v5902_v9 = vpop.eup %5901 }
 0x8d1   : > { %v2542_v26 = vmul.f32 %v5902_v9, %v2528_v31  ;;  %v7357_v42 = vadd.f32 %v4920_v14, %v2547_v41  ;;  %v2943_v31 = vpack.c.bf16 %v2827_v17, %v2823_v15  ;;  %v3354_v15 = vrot.slane %v3341_v53, %v6939_v55 }
 0x8d3   : > { %v2548_v35 = vmul.f32 %v4919_v23, %v2542_v26  ;;  %v3000_v60 = vsel %vm1304_vm1, %v2943_v31, 0  ;;  %v3326_v23 = vcombine.high %v4955_v21, %v4955_v21  ;;  %v5659_v26 = vpop.permute.xlu1 %5658 }
 0x8d4   : > { %v5661_v41 = vunpack.i.h.bf16 %v5659_v26 }
 0x8d5   : > { %v7359_v19 = vadd.f32 %v4920_v14, %v2548_v35  ;;  %v7422_v9 = vrot.slane %v3326_v23, %v6972_v24  ;;  %v5660_v14 = vunpack.i.l.bf16 %v5659_v26 }
 0x8d7   : > { %v2555_v46 = vpack.c.bf16 %v7359_v19, %v7357_v42  ;;  %v3350_v35 = vrot.slane %v7422_v9, %v6939_v55  ;;  %v5664_v49 = vpop.permute.xlu1 %5663 }
 0x8d8   : > { %v5666_v47 = vunpack.i.h.bf16 %v5664_v49  ;;  %v5665_v7 = vunpack.i.l.bf16 %v5664_v49 }
 0x8d9   : > { %5301 = vmatmul.mubr.bf16.vlgmr.msra.gmra.mxu1 %v2555_v46  ;;  %v2945_v46 = vpack.c.bf16 %v5661_v41, %v5660_v14 }
 0x8da   : > { %5306 = vmatprep.mubr.msk.bf16.mxu1 %vm6470_vm0, %v6468_v4  ;;  %5305 = vmatpush3.bf16.xpose.msra.mxu1 %v2954_v13  ;;  %v2946_v16 = vpack.c.bf16 %v5666_v47, %v5665_v7 }
 0x8db   : > { %5310 = vmatprep.subr.bf16.mxu1 %v6468_v4  ;;  %v3092_v10 = vsel %vm1304_vm1, %v2945_v46, 0 }
 0x999   : > { %v2661_v34 = vpop.f32.mrf.mxu1 }
 0x99a   : > { %v2662_v45 = vadd.f32 %v4921_v40, %v2661_v34 }
 0x99b   : > { %v5302_v33 = vpop.f32.mrf.mxu1 }
 0x99c   : > { %2833 = vrot.lane.b32.xlu0 %v2662_v45, %s6471_s27  ;;  %v2934_v8 = vpack.c.bf16 %v2662_v45, %v2662_v45  ;;  %v3363_v5 = vmul.f32 %v3346_v37, %v2662_v45  ;;  %v3138_v33 = vsel %vm1304_vm1, %v2946_v16, 0 }
 0x99d   : > { %v2664_v54 = vpop.f32.mrf.mxu1 }
 0x99e   : > { %v2665_v56 = vadd.f32 %v4921_v40, %v2664_v54  ;;  %5307 = vmatmul.mubr.msk.bf16.vlgmr.msra.gmra.mxu1 %vm1304_vm1, %v2934_v8  ;;  %v3371_v39 = vsel %vm1304_vm1, %v3363_v5, 0.0 }
 0x99f   : > { %5311 = vmatpush3.bf16.xpose.msra.mxu1 %v3000_v60  ;;  %v5303_v28 = vpop.f32.mrf.mxu1  ;;  %5312 = vmatprep.mubr.msk.bf16.mxu1 %vm6470_vm0, %v6468_v4 }
 0x9a0   : > { %5668 = vrot.lane.b32.xlu0 %v5657_v18, %s6472_s13  ;;  %2835 = vrot.lane.b32.xlu1 %v2665_v56, %s6471_s27  ;;  %v2935_v30 = vpack.c.bf16 %v2665_v56, %v2665_v56  ;;  %v3364_v44 = vmul.f32 %v3346_v37, %v2665_v56 }
 0x9a1   : > { %5316 = vmatprep.subr.bf16.mxu1 %v6468_v4 }
 0x9a2   : > { %v3374_v58 = vsel %vm1304_vm1, %v3364_v44, 0.0 }
 0x9a4   : > { %2841 = vrot.lane.b32.xlu0 %v2665_v56, %s6472_s13  ;;  %2839 = vrot.lane.b32.xlu1 %v2662_v45, %s6472_s13 }
 0x9a6   : > { %5313 = vmatmul.mubr.msk.bf16.vlgmr.msra.gmra.mxu1 %vm1304_vm1, %v2935_v30 }
 0x9a7   : > { %5317 = vmatpush3.bf16.xpose.msra.mxu1 %v3046_v36  ;;  %5318 = vmatprep.mubr.msk.bf16.mxu1 %vm6470_vm0, %v6468_v4 }
 0x9a8   : > { %5678 = vrot.lane.b32.xlu0 %v5657_v18, %s6473_s17  ;;  %5673 = vrot.lane.b32.xlu1 %v5652_v1, %s6473_s17 }
 0x9a9   : > { %5322 = vmatprep.subr.bf16.mxu1 %v6468_v4 }
 0x9ac   : > { %2847 = vrot.lane.b32.xlu0 %v2665_v56, %s6473_s17  ;;  %2845 = vrot.lane.b32.xlu1 %v2662_v45, %s6473_s17 }
 0x9cb   : > { %3375 = vadd.xlane.f32.xlu0 %v3374_v58 }
 0x9d0   : > { %3372 = vadd.xlane.f32.xlu1 %v3371_v39 }
 0xa0e   : > { %v2834_v50 = vpop.permute.xlu0 %2833 }
 0xa0f   : > { %v2936_v52 = vpack.c.bf16 %v2834_v50, %v2834_v50  ;;  %v3365_v48 = vmul.f32 %v3350_v35, %v2834_v50 }
 0xa11   : > { %5319 = vmatmul.mubr.msk.bf16.vlgmr.msra.gmra.mxu1 %vm1304_vm1, %v2936_v52  ;;  %v3377_v63 = vsel %vm1304_vm1, %v3365_v48, 0.0 }
 0xa12   : > { %5323 = vmatpush3.bf16.xpose.msra.mxu1 %v3092_v10  ;;  %v5669_v1 = vpop.permute.xlu0 %5668  ;;  %3378 = vadd.xlane.f32.xlu1 %v3377_v63  ;;  %v2836_v22 = vpop.permute.xlu1 %2835 }
 0xa13   : > { %v5671_v12 = vunpack.i.h.bf16 %v5669_v1  ;;  %v5670_v13 = vunpack.i.l.bf16 %v5669_v1  ;;  %v7429_v0 = vmul.f32 %v3350_v35, %v2836_v22  ;;  %5324 = vmatprep.mubr.msk.bf16.mxu1 %vm6470_vm0, %v6468_v4  ;;  %5328 = vmatprep.subr.bf16.mxu1 %v6468_v4  ;;  %v2937_v31 = vpack.c.bf16 %v2836_v22, %v2836_v22 }
 0xa14   : > { %v3342_v35 = vcombine.high %v7422_v9, %v7422_v9 }
 0xa15   : > { %v2947_v17 = vpack.c.bf16 %v5671_v12, %v5670_v13  ;;  %v3380_v41 = vsel %vm1304_vm1, %v7429_v0, 0.0 }
 0xa16   : > { %v2842_v18 = vpop.permute.xlu0 %2841  ;;  %v2840_v2 = vpop.permute.xlu1 %2839  ;;  %v3358_v46 = vrot.slane %v3342_v35, %v6939_v55 }
 0xa17   : > { %v7435_v40 = vmul.f32 %v3354_v15, %v2842_v18  ;;  %v3367_v34 = vmul.f32 %v3354_v15, %v2840_v2  ;;  %v3184_v45 = vsel %vm1304_vm1, %v2947_v17, 0  ;;  %v2939_v30 = vpack.c.bf16 %v2842_v18, %v2842_v18 }
 0xa18   : > { %5335 = vmatpush3.bf16.xpose.msra.mxu0 %v3184_v45  ;;  %v2938_v36 = vpack.c.bf16 %v2840_v2, %v2840_v2 }
 0xa19   : > { %5325 = vmatmul.mubr.msk.bf16.vlgmr.msra.gmra.mxu1 %vm1304_vm1, %v2937_v31  ;;  %v3383_v43 = vsel %vm1304_vm1, %v3367_v34, 0.0  ;;  %5346 = vmatprep.subr.bf16.mxu0 %v6468_v4  ;;  %v3386_v22 = vsel %vm1304_vm1, %v7435_v40, 0.0 }
 0xa1a   : > { %5329 = vmatpush3.bf16.xpose.msra.mxu1 %v3138_v33  ;;  %v5679_v8 = vpop.permute.xlu0 %5678  ;;  %3384 = vadd.xlane.f32.xlu1 %v3383_v43  ;;  %v5674_v51 = vpop.permute.xlu1 %5673 }
 0xa1b   : > { %v5681_v3 = vunpack.i.h.bf16 %v5679_v8  ;;  %v5680_v54 = vunpack.i.l.bf16 %v5679_v8  ;;  %v5676_v56 = vunpack.i.h.bf16 %v5674_v51  ;;  %v5675_v60 = vunpack.i.l.bf16 %v5674_v51  ;;  %5330 = vmatprep.mubr.msk.bf16.mxu1 %vm6470_vm0, %v6468_v4  ;;  %5340 = vmatprep.subr.bf16.mxu1 %v6468_v4 }
 0xa1d   : > { %v2949_v28 = vpack.c.bf16 %v5681_v3, %v5680_v54  ;;  %v2948_v61 = vpack.c.bf16 %v5676_v56, %v5675_v60 }
 0xa1e   : > { %v2848_v37 = vpop.permute.xlu0 %2847  ;;  %v2846_v44 = vpop.permute.xlu1 %2845 }
 0xa1f   : > { %5337 = vmatmul.mubr.msk.bf16.vlgmr.msra.gmra.mxu0 %vm1304_vm1, %v2939_v30  ;;  %v3276_v21 = vsel %vm1304_vm1, %v2949_v28, 0  ;;  %v3230_v59 = vsel %vm1304_vm1, %v2948_v61, 0  ;;  %v2941_v58 = vpack.c.bf16 %v2848_v37, %v2848_v37  ;;  %v2940_v5 = vpack.c.bf16 %v2846_v44, %v2846_v44 }
 0xa20   : > { %5347 = vmatpush3.bf16.xpose.msra.mxu0 %v3276_v21  ;;  %5348 = vmatprep.mubr.msk.bf16.mxu0 %vm6470_vm0, %v6468_v4  ;;  %v3369_v50 = vmul.f32 %v3358_v46, %v2846_v44  ;;  %v3370_v15 = vmul.f32 %v3358_v46, %v2848_v37 }
 0xa21   : > { %5331 = vmatmul.mubr.msk.bf16.vlgmr.msra.gmra.mxu1 %vm1304_vm1, %v2938_v36  ;;  %5358 = vmatprep.subr.bf16.mxu0 %v6468_v4 }
 0xa22   : > { %5341 = vmatpush3.bf16.xpose.msra.mxu1 %v3230_v59  ;;  %5342 = vmatprep.mubr.msk.bf16.mxu1 %vm6470_vm0, %v6468_v4  ;;  %v3389_v47 = vsel %vm1304_vm1, %v3369_v50, 0.0  ;;  %v3392_v45 = vsel %vm1304_vm1, %v3370_v15, 0.0 }
 0xa23   : > { %5352 = vmatprep.subr.bf16.mxu1 %v6468_v4 }
 0xa27   : > { %5349 = vmatmul.mubr.msk.bf16.vlgmr.msra.gmra.mxu0 %vm1304_vm1, %v2941_v58 }
 0xa28   : > { %5359 = vmatpush3.bf16.msra.mxu0 %v3549_v32  ;;  %5360 = vmatprep.mubr.msk.bf16.mxu0 %vm6470_vm0, %v6468_v4 }
 0xa29   : > { %5343 = vmatmul.mubr.msk.bf16.vlgmr.msra.gmra.mxu1 %vm1304_vm1, %v2940_v5  ;;  %5370 = vmatprep.subr.bf16.mxu0 %v6468_v4 }
 0xa2a   : > { %5353 = vmatpush3.bf16.msra.mxu1 %v3548_v20  ;;  %5354 = vmatprep.mubr.msk.bf16.mxu1 %vm6470_vm0, %v6468_v4 }
 0xa2b   : > { %5364 = vmatprep.subr.bf16.mxu1 %v6468_v4 }
 0xa54   : > { %v7501_v8 = vpop.xlane.xlu0 %3375 }
 0xa5e   : > { %v7469_v39 = vpop.f32.mrf.mxu1 }
 0xa5f   : > { %v3396_v62 = vsel %vm3395_vm7, %v7469_v39, -inf }
 0xa60   : > { %3397 = vmax.xlane.f32.xlu0 %v3396_v62  ;;  %v5308_v29 = vpop.f32.mrf.mxu1  ;;  %v7513_v62 = vpop.xlane.xlu1 %3372 }
 0xa62   : > { %v2993_v6 = vpop.f32.mrf.mxu1 }
 0xa64   : > { %v5309_v11 = vpop.f32.mrf.mxu1 }
 0xa66   : > { %v3036_v20 = vpop.f32.mrf.mxu1 }
 0xa67   : > { %v3399_v32 = vsel %vm3395_vm7, %v3036_v20, -inf }
 0xa68   : > { %3400 = vmax.xlane.f32.xlu0 %v3399_v32  ;;  %v5314_v23 = vpop.f32.mrf.mxu1 }
 0xa6a   : > { %v3039_v26 = vpop.f32.mrf.mxu1 }
 0xa6c   : > { %3381 = vadd.xlane.f32.xlu0 %v3380_v41  ;;  %v5315_v14 = vpop.f32.mrf.mxu1 }
 0xa9b   : > { %v7528_v41 = vpop.xlane.xlu1 %3378 }
 0xaa3   : > { %v7530_v14 = vpop.xlane.xlu1 %3384 }
 0xad1   : > { %v7479_v49 = vpop.f32.mrf.mxu1 }
 0xad2   : > { %v3402_v52 = vsel %vm3395_vm7, %v7479_v49, -inf }
 0xad3   : > { %3403 = vmax.xlane.f32.xlu1 %v3402_v52  ;;  %v5320_v48 = vpop.f32.mrf.mxu1 }
 0xad5   : > { %v3085_v53 = vpop.f32.mrf.mxu1 }
 0xad7   : > { %3390 = vadd.xlane.f32.xlu1 %v3389_v47  ;;  %v5321_v7 = vpop.f32.mrf.mxu1 }
 0xad9   : > { %v7484_v10 = vpop.f32.mrf.mxu1 }
 0xada   : > { %v3405_v9 = vsel %vm3395_vm7, %v7484_v10, -inf }
 0xadb   : > { %3406 = vmax.xlane.f32.xlu0 %v3405_v9  ;;  %v5326_v63 = vpop.f32.mrf.mxu1 }
 0xadd   : > { %v3131_v1 = vpop.f32.mrf.mxu1 }
 0xadf   : > { %3387 = vadd.xlane.f32.xlu0 %v3386_v22  ;;  %v5327_v12 = vpop.f32.mrf.mxu1  ;;  %v7490_v13 = vpop.f32.mrf.mxu0 }
 0xae0   : > { %v3411_v17 = vsel %vm3395_vm7, %v7490_v13, -inf }
 0xae1   : > { %v7492_v0 = vpop.f32.mrf.mxu1  ;;  %v5338_v16 = vpop.f32.mrf.mxu0 }
 0xae2   : > { %v3408_v18 = vsel %vm3395_vm7, %v7492_v0, -inf }
 0xae3   : > { %3412 = vmax.xlane.f32.xlu0 %v3411_v17  ;;  %3409 = vmax.xlane.f32.xlu1 %v3408_v18  ;;  %v5332_v2 = vpop.f32.mrf.mxu1  ;;  %v3223_v31 = vpop.f32.mrf.mxu0 }
 0xae5   : > { %v3177_v34 = vpop.f32.mrf.mxu1  ;;  %v5339_v40 = vpop.f32.mrf.mxu0 }
 0xae7   : > { %3393 = vadd.xlane.f32.xlu0 %v3392_v45  ;;  %v5333_v33 = vpop.f32.mrf.mxu1  ;;  %v7499_v43 = vpop.f32.mrf.mxu0 }
 0xae8   : > { %v3417_v54 = vsel %vm3395_vm7, %v7499_v43, -inf }
 0xae9   : > { %v7503_v51 = vpop.f32.mrf.mxu1  ;;  %v5350_v3 = vpop.f32.mrf.mxu0 }
 0xaea   : > { %v3414_v56 = vsel %vm3395_vm7, %v7503_v51, -inf  ;;  %v3398_v61 = vpop.xlane.xlu0 %3397 }
 0xaeb   : > { %3418 = vmax.xlane.f32.xlu0 %v3417_v54  ;;  %3415 = vmax.xlane.f32.xlu1 %v3414_v56  ;;  %v5344_v60 = vpop.f32.mrf.mxu1  ;;  %v3315_v28 = vpop.f32.mrf.mxu0  ;;  %v7516_v29 = vmax.f32 %v3398_v61, %v7513_v62 }
 0xaed   : > { %v3269_v30 = vpop.f32.mrf.mxu1  ;;  %v5351_v36 = vpop.f32.mrf.mxu0 }
 0xaef   : > { %v5345_v21 = vpop.f32.mrf.mxu1 }
 0xaf1   : > { %v3401_v59 = vpop.xlane.xlu0 %3400 }
 0xaf2   : > { %v3421_v37 = vmax.f32 %v3401_v59, %v7501_v8 }
 0xaf4   : > { %v3429_v44 = vsub.f32 %v3036_v20, %v3421_v37  ;;  %v3453_v58 = vsub.f32 %v7501_v8, %v3421_v37  ;;  %v3428_v20 = vsub.f32 %v7469_v39, %v7516_v29  ;;  %v3452_v37 = vsub.f32 %v7513_v62, %v7516_v29 }
 0xaf5   : > { %v7537_v50 = vpop.xlane.xlu0 %3381 }
 0xaf6   : > { %v3438_v5 = vmul.f32 1.442695, %v3429_v44  ;;  %v3436_v32 = vmul.f32 1.442695, %v3428_v20  ;;  %v3462_v54 = vmul.f32 1.442695, %v3453_v58 }
 0xaf8   : > { %5903 = vpow2.f32 %v3438_v5  ;;  %v3460_v5 = vmul.f32 1.442695, %v3452_v37 }
 0xaf9   : > { %5905 = vpow2.f32 %v3436_v32 }
 0xafc   : > { %5683 = vrot.lane.b32.xlu1 %v7384_v25, %s6471_s27 }
 0xb05   : > { %v7518_v6 = vpop.eup %5903 }
 0xb06   : > { %v3479_v11 = vsel %vm3395_vm7, %v7518_v6, 0.0  ;;  %v7524_v23 = vpop.eup %5905 }
 0xb07   : > { %3480 = vadd.xlane.f32.xlu0 %v3479_v11  ;;  %v3476_v26 = vsel %vm3395_vm7, %v7524_v23, 0.0 }
 0xb20   : > { %3477 = vadd.xlane.f32.xlu1 %v3476_v26 }
 0xb5c   : > { %v3404_v35 = vpop.xlane.xlu1 %3403 }
 0xb5d   : > { %v7533_v46 = vmax.f32 %v3404_v35, %v7528_v41 }
 0xb5f   : > { %v3430_v39 = vsub.f32 %v7479_v49, %v7533_v46 }
 0xb60   : > { %v7544_v7 = vpop.xlane.xlu1 %3390 }
 0xb61   : > { %v3440_v52 = vmul.f32 1.442695, %v3430_v39 }
 0xb63   : > { %5907 = vpow2.f32 %v3440_v52 }
 0xb64   : > { %v3407_v48 = vpop.xlane.xlu0 %3406 }
 0xb65   : > { %v7540_v53 = vmax.f32 %v3407_v48, %v7537_v50 }
 0xb67   : > { %v3455_v47 = vsub.f32 %v7537_v50, %v7540_v53  ;;  %v3431_v49 = vsub.f32 %v7484_v10, %v7540_v53 }
 0xb68   : > { %v7546_v9 = vpop.xlane.xlu0 %3387 }
 0xb69   : > { %v3442_v10 = vmul.f32 1.442695, %v3431_v49 }
 0xb6c   : > { %v3413_v63 = vpop.xlane.xlu0 %3412  ;;  %v3410_v1 = vpop.xlane.xlu1 %3409 }
 0xb6d   : > { %v7551_v22 = vmax.f32 %v3413_v63, %v7546_v9  ;;  %v7554_v12 = vmax.f32 %v3410_v1, %v7530_v14 }
 0xb6f   : > { %v3433_v15 = vsub.f32 %v7490_v13, %v7551_v22  ;;  %v3457_v16 = vsub.f32 %v7546_v9, %v7551_v22  ;;  %v3456_v17 = vsub.f32 %v7530_v14, %v7554_v12  ;;  %v3432_v59 = vsub.f32 %v7492_v0, %v7554_v12 }
 0xb70   : > { %v7562_v18 = vpop.eup %5907  ;;  %v7564_v2 = vpop.xlane.xlu0 %3393 }
 0xb71   : > { %v3446_v31 = vmul.f32 1.442695, %v3433_v15  ;;  %v3482_v34 = vsel %vm3395_vm7, %v7562_v18, 0.0  ;;  %v3444_v44 = vmul.f32 1.442695, %v3432_v59 }
 0xb72   : > { %3483 = vadd.xlane.f32.xlu1 %v3482_v34  ;;  %v3466_v59 = vmul.f32 1.442695, %v3455_v47 }
 0xb73   : > { %5909 = vpow2.f32 %v3446_v31 }
 0xb74   : > { %v3419_v40 = vpop.xlane.xlu0 %3418  ;;  %v3416_v45 = vpop.xlane.xlu1 %3415  ;;  %5911 = vpow2.f32 %v3442_v10 }
 0xb75   : > { %v7569_v13 = vmax.f32 %v3419_v40, %v7564_v2  ;;  %v7572_v33 = vmax.f32 %v3416_v45, %v7544_v7  ;;  %5913 = vpow2.f32 %v3462_v54 }
 0xb77   : > { %v3459_v8 = vsub.f32 %v7564_v2, %v7569_v13  ;;  %v3458_v3 = vsub.f32 %v7544_v7, %v7572_v33  ;;  %v3434_v58 = vsub.f32 %v7503_v51, %v7572_v33  ;;  %v3435_v62 = vsub.f32 %v7499_v43, %v7569_v13 }
 0xb78   : > { %v5684_v29 = vpop.permute.xlu1 %5683 }
 0xb79   : > { %v3448_v11 = vmul.f32 1.442695, %v3434_v58  ;;  %v3450_v26 = vmul.f32 1.442695, %v3435_v62  ;;  %v5686_v15 = vunpack.i.h.bf16 %v5684_v29  ;;  %v5685_v10 = vunpack.i.l.bf16 %v5684_v29 }
 0xb7a   : > { %v3472_v14 = vmul.f32 1.442695, %v3458_v3 }
 0xb7b   : > { %v3550_v54 = vpack.c.bf16 %v5686_v15, %v5685_v10 }
 0xb80   : > { %v7578_v56 = vpop.eup %5909 }
 0xb81   : > { %v3491_v60 = vsel %vm3395_vm7, %v7578_v56, 0.0  ;;  %v7582_v28 = vpop.eup %5911 }
 0xb82   : > { %3492 = vadd.xlane.f32.xlu0 %v3491_v60  ;;  %v3485_v61 = vsel %vm3395_vm7, %v7582_v28, 0.0  ;;  %v5914_v30 = vpop.eup %5913 }
 0xb83   : > { %5693 = vrot.lane.b32.xlu1 %v7384_v25, %s6472_s13 }
 0xb86   : > { %3486 = vadd.xlane.f32.xlu0 %v3485_v61  ;;  %v3470_v61 = vmul.f32 1.442695, %v3457_v16 }
 0xb87   : > { %5698 = vrot.lane.b32.xlu1 %v7393_v38, %s6472_s13 }
 0xb90   : > { %v3481_v36 = vpop.xlane.xlu0 %3480 }
 0xb91   : > { %v3501_v21 = vadd.f32 %v5914_v30, %v3481_v36 }
 0xb93   : > { %5915 = vrcp.f32 %v3501_v21 }
 0xb94   : > { %5917 = vpow2.f32 %v3444_v44 }
 0xb95   : > { %5919 = vpow2.f32 %v3460_v5 }
 0xb96   : > { %5921 = vpow2.f32 %v3448_v11 }
 0xb97   : > { %5923 = vpow2.f32 %v3450_v26 }
 0xb9c   : > { %5688 = vrot.lane.b32.xlu0 %v7393_v38, %s6471_s27 }
 0xba0   : > { %v5916_v20 = vpop.eup %5915 }
 0xba1   : > { %v7599_v32 = vmul.f32 %v5916_v20, %v7518_v6  ;;  %v7601_v0 = vmul.f32 %v5916_v20, %v5914_v30  ;;  %v7610_v35 = vpop.eup %5917 }
 0xba2   : > { %v5920_v39 = vpop.eup %5919  ;;  %v3488_v48 = vsel %vm3395_vm7, %v7610_v35, 0.0 }
 0xba3   : > { %v3541_v51 = vpack.c.bf16 %v7599_v32, %v7599_v32  ;;  %v7614_v43 = vpop.eup %5921 }
 0xba4   : > { %v3494_v63 = vsel %vm3395_vm7, %v7614_v43, 0.0  ;;  %v7618_v1 = vpop.eup %5923 }
 0xba5   : > { %5361 = vmatmul.mubr.msk.bf16.vlgmr.msra.gmra.mxu0 %vm3395_vm7, %v3541_v51  ;;  %v3497_v31 = vsel %vm3395_vm7, %v7618_v1, 0.0 }
 0xba6   : > { %5372 = vmatprep.mubr.msk.bf16.mxu0 %vm6470_vm0, %v6468_v4 }
 0xba9   : > { %v3478_v6 = vpop.xlane.xlu1 %3477 }
 0xbaa   : > { %v3500_v52 = vadd.f32 %v5920_v39, %v3478_v6 }
 0xbab   : > { %3489 = vadd.xlane.f32.xlu1 %v3488_v48 }
 0xbac   : > { %5925 = vrcp.f32 %v3500_v52 }
 0xbaf   : > { %3495 = vadd.xlane.f32.xlu1 %v3494_v63 }
 0xbb9   : > { %v5926_v49 = vpop.eup %5925 }
 0xbba   : > { %v3524_v34 = vmul.f32 %v5926_v49, %v7524_v23  ;;  %v7623_v40 = vmul.f32 %v5926_v49, %v5920_v39  ;;  %v3454_v23 = vsub.f32 %v7528_v41, %v7533_v46 }
 0xbbb   : > { %3498 = vadd.xlane.f32.xlu0 %v3497_v31 }
 0xbbc   : > { %v3540_v45 = vpack.c.bf16 %v3524_v34, %v3524_v34  ;;  %v3464_v60 = vmul.f32 1.442695, %v3454_v23  ;;  %v4104_v5 = vsel %vm3395_vm7, %v3524_v34, 0.0  ;;  %v4111_v34 = vsel %vm3395_vm7, %v7599_v32, 0.0 }
 0xbbe   : > { %5355 = vmatmul.mubr.msk.bf16.vlgmr.msra.gmra.mxu1 %vm3395_vm7, %v3540_v45  ;;  %5927 = vpow2.f32 %v3464_v60 }
 0xbbf   : > { %5365 = vmatpush3.bf16.msra.mxu1 %v3550_v54  ;;  %5366 = vmatprep.mubr.msk.bf16.mxu1 %vm6470_vm0, %v6468_v4  ;;  %5929 = vpow2.f32 %v3470_v61 }
 0xbc0   : > { %5376 = vmatprep.subr.bf16.mxu1 %v6468_v4  ;;  %5703 = vrot.lane.b32.xlu1 %v7384_v25, %s6473_s17 }
 0xbcb   : > { %v5928_v30 = vpop.eup %5927 }
 0xbd1   : > { %5708 = vrot.lane.b32.xlu0 %v7393_v38, %s6473_s17  ;;  %v5930_v38 = vpop.eup %5929 }
 0xbfb   : > { %v3484_v36 = vpop.xlane.xlu1 %3483 }
 0xbfc   : > { %v3502_v21 = vadd.f32 %v5928_v30, %v3484_v36 }
 0xbfe   : > { %5931 = vrcp.f32 %v3502_v21 }
 0xbff   : > { %5933 = vpow2.f32 %v3466_v59  ;;  %v5694_v25 = vpop.permute.xlu1 %5693 }
 0xc00   : > { %v5696_v46 = vunpack.i.h.bf16 %v5694_v25  ;;  %v5695_v44 = vunpack.i.l.bf16 %v5694_v25 }
 0xc02   : > { %v3552_v11 = vpack.c.bf16 %v5696_v46, %v5695_v44 }
 0xc03   : > { %v5699_v6 = vpop.permute.xlu1 %5698 }
 0xc04   : > { %v5701_v63 = vunpack.i.h.bf16 %v5699_v6  ;;  %v5700_v49 = vunpack.i.l.bf16 %v5699_v6 }
 0xc06   : > { %v3553_v60 = vpack.c.bf16 %v5701_v63, %v5700_v49 }
 0xc0b   : > { %v3493_v37 = vpop.xlane.xlu0 %3492  ;;  %v5932_v41 = vpop.eup %5931 }
 0xc0c   : > { %v3505_v58 = vadd.f32 %v5930_v38, %v3493_v37  ;;  %v3526_v9 = vmul.f32 %v5932_v41, %v7562_v18  ;;  %v7642_v22 = vmul.f32 %v5932_v41, %v5928_v30  ;;  %v5934_v16 = vpop.eup %5933  ;;  %v3468_v30 = vmul.f32 1.442695, %v3456_v17 }
 0xc0d   : > { %v3474_v17 = vmul.f32 1.442695, %v3459_v8 }
 0xc0e   : > { %5935 = vrcp.f32 %v3505_v58  ;;  %v3542_v53 = vpack.c.bf16 %v3526_v9, %v3526_v9  ;;  %v4105_v47 = vsel %vm3395_vm7, %v3526_v9, 0.0  ;;  %v4120_v2 = vadd.f32 %v7642_v22, %v7623_v40 }
 0xc0f   : > { %v3487_v50 = vpop.xlane.xlu0 %3486  ;;  %v7646_v62 = vadd.f32 %v4105_v47, %v4104_v5 }
 0xc10   : > { %v3503_v20 = vadd.f32 %v5934_v16, %v3487_v50  ;;  %5367 = vmatmul.mubr.msk.bf16.vlgmr.msra.gmra.mxu1 %vm3395_vm7, %v3542_v53 }
 0xc11   : > { %5377 = vmatpush3.bf16.msra.mxu1 %v3552_v11  ;;  %5378 = vmatprep.mubr.msk.bf16.mxu1 %vm6470_vm0, %v6468_v4 }
 0xc12   : > { %5937 = vrcp.f32 %v3503_v20  ;;  %5388 = vmatprep.subr.bf16.mxu1 %v6468_v4 }
 0xc13   : > { %v5689_v18 = vpop.permute.xlu0 %5688  ;;  %5939 = vpow2.f32 %v3468_v30 }
 0xc14   : > { %v5691_v51 = vunpack.i.h.bf16 %v5689_v18  ;;  %v5690_v29 = vunpack.i.l.bf16 %v5689_v18  ;;  %5941 = vpow2.f32 %v3472_v14 }
 0xc15   : > { %5943 = vpow2.f32 %v3474_v17 }
 0xc16   : > { %v3551_v26 = vpack.c.bf16 %v5691_v51, %v5690_v29 }
 0xc18   : > { %5371 = vmatpush3.bf16.msra.mxu0 %v3551_v26 }
 0xc19   : > { %5382 = vmatprep.subr.bf16.mxu0 %v6468_v4 }
 0xc1b   : > { %v5936_v39 = vpop.eup %5935 }
 0xc1c   : > { %v7653_v52 = vmul.f32 %v5936_v39, %v5930_v38  ;;  %v3529_v10 = vmul.f32 %v5936_v39, %v7578_v56 }
 0xc1e   : > { %v4114_v56 = vsel %vm3395_vm7, %v3529_v10, 0.0  ;;  %v3545_v12 = vpack.c.bf16 %v3529_v10, %v3529_v10 }
 0xc1f   : > { %v5938_v48 = vpop.eup %5937 }
 0xc20   : > { %v3527_v15 = vmul.f32 %v5938_v48, %v7582_v28  ;;  %v7657_v31 = vmul.f32 %v5938_v48, %v5934_v16  ;;  %v5940_v36 = vpop.eup %5939 }
 0xc21   : > { %v5942_v25 = vpop.eup %5941 }
 0xc22   : > { %v3543_v45 = vpack.c.bf16 %v3527_v15, %v3527_v15  ;;  %v4112_v54 = vsel %vm3395_vm7, %v3527_v15, 0.0  ;;  %v4123_v23 = vadd.f32 %v7657_v31, %v7601_v0  ;;  %v5944_v3 = vpop.eup %5943 }
 0xc23   : > { %v4113_v61 = vadd.f32 %v4112_v54, %v4111_v34 }
 0xc24   : > { %5373 = vmatmul.mubr.msk.bf16.vlgmr.msra.gmra.mxu0 %vm3395_vm7, %v3543_v45  ;;  %v7670_v28 = vadd.f32 %v4123_v23, %v7653_v52 }
 0xc25   : > { %5383 = vmatpush3.bf16.msra.mxu0 %v3553_v60  ;;  %5384 = vmatprep.mubr.msk.bf16.mxu0 %vm6470_vm0, %v6468_v4  ;;  %v7674_v32 = vadd.f32 %v4114_v56, %v4113_v61 }
 0xc26   : > { %5394 = vmatprep.subr.bf16.mxu0 %v6468_v4 }
 0xc2c   : > { %5385 = vmatmul.mubr.msk.bf16.vlgmr.msra.gmra.mxu0 %vm3395_vm7, %v3545_v12 }
 0xc2d   : > { %5396 = vmatprep.mubr.msk.bf16.mxu0 %vm6470_vm0, %v6468_v4 }
 0xc34   : > { %v3490_v21 = vpop.xlane.xlu1 %3489 }
 0xc35   : > { %v3504_v59 = vadd.f32 %v5940_v36, %v3490_v21 }
 0xc37   : > { %5945 = vrcp.f32 %v3504_v59 }
 0xc38   : > { %v3496_v38 = vpop.xlane.xlu1 %3495 }
 0xc39   : > { %v3506_v7 = vadd.f32 %v5942_v25, %v3496_v38 }
 0xc3b   : > { %5947 = vrcp.f32 %v3506_v7 }
 0xc3c   : > { %v5704_v33 = vpop.permute.xlu1 %5703 }
 0xc3d   : > { %v5706_v46 = vunpack.i.h.bf16 %v5704_v33  ;;  %v5705_v44 = vunpack.i.l.bf16 %v5704_v33 }
 0xc3f   : > { %v3554_v47 = vpack.c.bf16 %v5706_v46, %v5705_v44  ;;  %v5800_v44 = vld [vmem:[#allocation19 + $0x30] sm:$0xff]  }
 0xc44   : > { %v3499_v37 = vpop.xlane.xlu0 %3498  ;;  %v5946_v41 = vpop.eup %5945 }
 0xc45   : > { %v3507_v58 = vadd.f32 %v5944_v3, %v3499_v37  ;;  %v3528_v9 = vmul.f32 %v5946_v41, %v7610_v35  ;;  %v7689_v13 = vmul.f32 %v5946_v41, %v5940_v36  ;;  %v5799_v41 = vld [vmem:[#allocation19 + $0x38] sm:$0xff]  }
 0xc47   : > { %5949 = vrcp.f32 %v3507_v58  ;;  %v3544_v16 = vpack.c.bf16 %v3528_v9, %v3528_v9  ;;  %v4107_v5 = vsel %vm3395_vm7, %v3528_v9, 0.0  ;;  %v4121_v50 = vadd.f32 %v4120_v2, %v7689_v13 }
 0xc48   : > { %v5709_v8 = vpop.permute.xlu0 %5708  ;;  %v5948_v53 = vpop.eup %5947  ;;  %v4108_v18 = vadd.f32 %v4107_v5, %v7646_v62 }
 0xc49   : > { %v5711_v11 = vunpack.i.h.bf16 %v5709_v8  ;;  %v5710_v20 = vunpack.i.l.bf16 %v5709_v8  ;;  %5379 = vmatmul.mubr.msk.bf16.vlgmr.msra.gmra.mxu1 %vm3395_vm7, %v3544_v16  ;;  %v3530_v35 = vmul.f32 %v5948_v53, %v7614_v43  ;;  %v7696_v51 = vmul.f32 %v5948_v53, %v5942_v25  ;;  %v5801_v8 = vld [vmem:[#allocation19 + $0x28] sm:$0xff]  }
 0xc4a   : > { %5389 = vmatpush3.bf16.msra.mxu1 %v3554_v47  ;;  %5390 = vmatprep.mubr.msk.bf16.mxu1 %vm6470_vm0, %v6468_v4 }
 0xc4b   : > { %v3555_v29 = vpack.c.bf16 %v5711_v11, %v5710_v20  ;;  %v4109_v26 = vsel %vm3395_vm7, %v3530_v35, 0.0  ;;  %v4122_v39 = vadd.f32 %v4121_v50, %v7696_v51  ;;  %5400 = vmatprep.subr.bf16.mxu1 %v6468_v4  ;;  %v3546_v43 = vpack.c.bf16 %v3530_v35, %v3530_v35 }
 0xc4c   : > { %v4110_v62 = vadd.f32 %v4109_v26, %v4108_v18  ;;  %v5802_v26 = vld [vmem:[#allocation19 + $0x20] sm:$0xff]  }
 0xc4d   : > { %5395 = vmatpush3.bf16.msra.mxu0 %v3555_v29  ;;  %v4126_v6 = vmul.f32 0.25, %v4122_v39 }
 0xc4e   : > { %v4118_v48 = vmul.f32 0.25, %v4110_v62  ;;  %v5803_v62 = vld [vmem:[#allocation19 + $0x18] sm:$0xff]  }
 0xc50   : > { %v4128_v63 = vsel %vm3395_vm7, %v4118_v48, %v4126_v6 }
 0xc51   : > { %5391 = vmatmul.mubr.msk.bf16.vlgmr.msra.gmra.mxu1 %vm3395_vm7, %v3546_v43  ;;  %v4131_v49 = vsel %vm4130_vm8, %v4128_v63, 0.0  ;;  %v5804_v63 = vld [vmem:[#allocation19 + $0x10] sm:$0xff]  }
 0xc52   : > { %4133 = vst [vmem:[%s7707_s20] sm:$0xff] %v4131_v49  ;;  %5416 = vmatprep.mubr.msk.bf16.mxu1 %vm6470_vm0, %v6468_v4  ;;  %5401 = vmatpush3.bf16.msra.mxu1 %v5799_v41 }
 0xc53   : > { %5402 = vmatprep.subr.bf16.mxu1 %v6468_v4 }
 0xc54   : > { %v5950_v15 = vpop.eup %5949 }
 0xc55   : > { %v3531_v10 = vmul.f32 %v5950_v15, %v7618_v1  ;;  %v7713_v34 = vmul.f32 %v5950_v15, %v5944_v3 }
 0xc56   : > { %5403 = vmatpush3.bf16.msra.mxu1 %v5800_v44 }
 0xc57   : > { %v3547_v45 = vpack.c.bf16 %v3531_v10, %v3531_v10  ;;  %v4116_v54 = vsel %vm3395_vm7, %v3531_v10, 0.0  ;;  %v4125_v23 = vadd.f32 %v7670_v28, %v7713_v34  ;;  %5404 = vmatprep.subr.bf16.mxu1 %v6468_v4 }
 0xc58   : > { %v4117_v60 = vadd.f32 %v4116_v54, %v7674_v32  ;;  %v5805_v54 = vld [vmem:[#allocation19 + $0x8] sm:$0xff]  }
 0xc59   : > { %5397 = vmatmul.mubr.msk.bf16.vlgmr.msra.gmra.mxu0 %vm3395_vm7, %v3547_v45  ;;  %v4127_v61 = vmul.f32 0.25, %v4125_v23 }
 0xc5a   : > { %v4119_v30 = vmul.f32 0.25, %v4117_v60  ;;  %4314 = vmatprep.mubr.bf16.mxu0 %v6469_v27  ;;  %v4964_v27 = vld.sshfl [vmem:[%s7931_s11 + $0x4] sm:$0x33 pattern:$0x75316420]  ;;  %5405 = vmatpush3.bf16.msra.mxu1 %v5801_v8 }
 0xc5b   : > { %v3908_v33 = vcombine.high %v4964_v27, %v4964_v27  ;;  %5406 = vmatprep.subr.bf16.mxu1 %v6468_v4  ;;  %v3915_v35 = vrot.slane %v4964_v27, %v6972_v24 }
 0xc5c   : > { %v4129_v56 = vsel %vm3395_vm7, %v4119_v30, %v4127_v61  ;;  %v5806_v30 = vld [vmem:[#allocation19] sm:$0xff]  }
 0xc5d   : > { %v4132_v1 = vsel %vm4130_vm8, %v4129_v56, 0.0  ;;  %v3922_v37 = vrot.slane %v3908_v33, %v6972_v24  ;;  %v3923_v29 = vcombine.high %v3915_v35, %v3915_v35 }
 0xc5e   : > { %4134 = vst [vmem:[%s7707_s20 + $0x8] sm:$0xff] %v4132_v1  ;;  %5407 = vmatpush3.bf16.msra.mxu1 %v5802_v26  ;;  %v5807_v26 = vld [vmem:[#allocation20 + $0x70] ss:$8 sps:$4 sm:$0xff]  }
 0xc5f   : > { %v3932_v46 = vrot.slane %v3922_v37, %v6939_v55  ;;  %v3936_v39 = vrot.slane %v3923_v29, %v6939_v55  ;;  %5408 = vmatprep.subr.bf16.mxu1 %v6468_v4 }
 0xc61   : > { %v3947_v58 = vmul.f32 %v3932_v46, %v7642_v22  ;;  %v3948_v9 = vmul.f32 %v3932_v46, %v7657_v31  ;;  %v3950_v6 = vmul.f32 %v3936_v39, %v7653_v52  ;;  %v3949_v48 = vmul.f32 %v3936_v39, %v7689_v13  ;;  %v5809_v39 = vld [vmem:[#allocation20 + $0x74] ss:$8 sps:$4 sm:$0xff]  }
 0xc62   : > { %5409 = vmatpush3.bf16.msra.mxu1 %v5803_v62  ;;  %v3924_v52 = vcombine.high %v3922_v37, %v3922_v37  ;;  %4282 = vmatprep.subr.bf16.mxu0 %v5809_v39 }
 0xc63   : > { %5410 = vmatprep.subr.bf16.mxu1 %v6468_v4  ;;  %4283 = vmatpush1.bf16.msra.mxu0 %v5807_v26 }
 0xc64   : > { %v3940_v13 = vrot.slane %v3924_v52, %v6939_v55  ;;  %v5821_v52 = vld [vmem:[#allocation20 + $0x34] ss:$8 sps:$4 sm:$0xff]  }
 0xc65   : > { %v7724_v14 = vpop.f32.mrf.mxu0 }
 0xc66   : > { %5411 = vmatpush3.bf16.msra.mxu1 %v5804_v63  ;;  %v3951_v1 = vmul.f32 %v3940_v13, %v7696_v51 }
 0xc67   : > { %v5362_v12 = vpop.f32.mrf.mxu0  ;;  %5412 = vmatprep.subr.bf16.mxu1 %v6468_v4 }
 0xc69   : > { %v3639_v17 = vpop.f32.mrf.mxu0 }
 0xc6a   : > { %5413 = vmatpush3.bf16.msra.mxu1 %v5805_v54  ;;  %v3952_v17 = vmul.f32 %v3940_v13, %v7713_v34  ;;  %v5818_v54 = vld [vmem:[#allocation20 + $0x44] ss:$8 sps:$4 sm:$0xff]  }
 0xc6b   : > { %v5363_v36 = vpop.f32.mrf.mxu0  ;;  %5414 = vmatprep.subr.bf16.mxu1 %v6468_v4  ;;  %v5824_v13 = vld [vmem:[#allocation20 + $0x24] ss:$8 sps:$4 sm:$0xff]  }
 0xc6e   : > { %5415 = vmatpush3.bf16.msra.mxu1 %v5806_v30  ;;  %v5827_v30 = vld [vmem:[#allocation20 + $0x14] ss:$8 sps:$4 sm:$0xff]  }
 0xc7e   : > { %v7726_v21 = vpop.f32.mrf.mxu1 }
 0xc80   : > { %v5356_v28 = vpop.f32.mrf.mxu1 }
 0xc82   : > { %v3596_v32 = vpop.f32.mrf.mxu1 }
 0xc84   : > { %v5357_v59 = vpop.f32.mrf.mxu1 }
 0xcd0   : > { %v3679_v25 = vpop.f32.mrf.mxu1 }
 0xcd1   : > { %v3955_v16 = vadd.f32 %v3947_v58, %v3679_v25 }
 0xcd2   : > { %v5368_v38 = vpop.f32.mrf.mxu1 }
 0xcd4   : > { %v3682_v7 = vpop.f32.mrf.mxu1 }
 0xcd5   : > { %v3928_v7 = vrot.slane %v3915_v35, %v6939_v55 }
 0xcd6   : > { %v5369_v3 = vpop.f32.mrf.mxu1 }
 0xcd7   : > { %v3946_v3 = vmul.f32 %v3928_v7, %v7601_v0  ;;  %v3945_v51 = vmul.f32 %v3928_v7, %v7623_v40  ;;  %v5839_v7 = vld [vmem:[#allocation22 + $0x58] sm:$0xff]  }
 0xcd9   : > { %v3954_v44 = vadd.f32 %v3946_v3, %v7724_v14  ;;  %v3953_v58 = vadd.f32 %v3945_v51, %v7726_v21 }
 0xce4   : > { %v3722_v2 = vpop.f32.mrf.mxu0 }
 0xce5   : > { %v3956_v5 = vadd.f32 %v3948_v9, %v3722_v2 }
 0xce6   : > { %v5374_v50 = vpop.f32.mrf.mxu0 }
 0xce7   : > { %v5712_v53 = vpack.i.bf16 %v3956_v5, %v3955_v16 }
 0xce8   : > { %v3725_v47 = vpop.f32.mrf.mxu0 }
 0xce9   : > { %5713 = vrot.lane.b32.xlu1 %v5712_v53, %s6473_s17  ;;  %s7812_s17 = scalar_lea.sflag [#allocation25], %s790_s14 }
 0xcea   : > { %v5375_v11 = vpop.f32.mrf.mxu0 }
 0xcec   : > { %v3808_v20 = vpop.f32.mrf.mxu0 }
 0xced   : > { %v3958_v49 = vadd.f32 %v3950_v6, %v3808_v20 }
 0xcee   : > { %v5386_v22 = vpop.f32.mrf.mxu0 }
 0xcf0   : > { %v3811_v18 = vpop.f32.mrf.mxu0 }
 0xcf2   : > { %v5387_v31 = vpop.f32.mrf.mxu0 }
 0xd09   : > { %v3765_v43 = vpop.f32.mrf.mxu1 }
 0xd0a   : > { %v3957_v15 = vadd.f32 %v3949_v48, %v3765_v43 }
 0xd0b   : > { %v5380_v24 = vpop.f32.mrf.mxu1 }
 0xd0c   : > { %v5717_v10 = vpack.i.bf16 %v3958_v49, %v3957_v15  ;;  %v5812_v15 = vld [vmem:[#allocation20 + $0x64] ss:$8 sps:$4 sm:$0xff]   ;;  %v5810_v24 = vld [vmem:[#allocation20 + $0x60] ss:$8 sps:$4 sm:$0xff]  }
 0xd0d   : > { %v3768_v45 = vpop.f32.mrf.mxu1  ;;  %4284 = vmatprep.subr.bf16.mxu0 %v5812_v15 }
 0xd0e   : > { %5718 = vrot.lane.b32.xlu0 %v5717_v10, %s6472_s13  ;;  %s8017_s13 = sld [smem:[#allocation50_spill]]  ;;  %4285 = vmatpush1.bf16.msra.mxu0 %v5810_v24  ;;  %v5815_v10 = vld [vmem:[#allocation20 + $0x54] ss:$8 sps:$4 sm:$0xff]   ;;  %v5813_v45 = vld [vmem:[#allocation20 + $0x50] ss:$8 sps:$4 sm:$0xff]  }
 0xd0f   : > { %v5381_v23 = vpop.f32.mrf.mxu1  ;;  %4286 = vmatprep.subr.bf16.mxu0 %v5815_v10 }
 0xd10   : > { %v5816_v23 = vld [vmem:[#allocation20 + $0x40] ss:$8 sps:$4 sm:$0xff]  }
 0xd11   : > { %v3851_v60 = vpop.f32.mrf.mxu1 }
 0xd12   : > { %v3959_v28 = vadd.f32 %v3951_v1, %v3851_v60  ;;  %4287 = vmatpush1.bf16.msra.mxu0 %v5813_v45  ;;  %v5819_v60 = vld [vmem:[#allocation20 + $0x30] ss:$8 sps:$4 sm:$0xff]   ;;  %v5830_v1 = vld [vmem:[#allocation20 + $0x4] ss:$8 sps:$4 sm:$0xff]  }
 0xd13   : > { %v5392_v61 = vpop.f32.mrf.mxu1  ;;  %4288 = vmatprep.subr.bf16.mxu0 %v5818_v54 }
 0xd14   : > { %v4965_v14 = vld [vmem:[%s8017_s13] ss:$0 sm:$0xff]  ;;  %v5822_v61 = vld [vmem:[#allocation20 + $0x20] ss:$8 sps:$4 sm:$0xff]   ;;  %s4551_s13 = sshll.u32 %s7292_s12, 4  ;;  %s7808_s13 = int_to_ptr.vmem [resolvable:$true] %s4551_s13 }
 0xd15   : > { %v3854_v56 = vpop.f32.mrf.mxu1  ;;  %s6299_s20 = scalar_lea.vmem %s7808_s13, 256  ;;  %p6306_p1 = scmp.lt.s32.totalorder %s7808_s13, %s6304_s22 }
 0xd16   : > { %4289 = vmatpush1.bf16.msra.mxu0 %v5816_v23  ;;  %v5825_v56 = vld [vmem:[#allocation20 + $0x10] ss:$8 sps:$4 sm:$0xff]   ;;  %p6300_p5 = scmp.ne.s32.totalorder %s7808_s13, %s6299_s20  ;;  %p6307_p3 = scmp.lt.s32.totalorder %s6305_s7, %s6299_s20 }
 0xd17   : > { %v5393_v12 = vpop.f32.mrf.mxu1  ;;  %4290 = vmatprep.subr.bf16.mxu0 %v5821_v52 }
 0xd18   : > { %v5828_v12 = vld [vmem:[#allocation20] ss:$8 sps:$4 sm:$0xff]   ;;  %p6301_p10 = pnand %p6300_p5, %p8020_p7  ;;  %p6308_p8 = por %p6307_p3, %p6306_p1 }
 0xd19   : > { %v3894_v36 = vpop.f32.mrf.mxu0 }
 0xd1a   : > { %v3960_v32 = vadd.f32 %v3952_v17, %v3894_v36  ;;  %4291 = vmatpush1.bf16.msra.mxu0 %v5819_v60  ;;  %v5831_v17 = vld [vmem:[#allocation22 + $0x78] sm:$0xff]   ;;  %p6302_p0 = pneg %p6301_p10 }
 0xd1b   : > { %v5398_v59 = vpop.f32.mrf.mxu0  ;;  %4292 = vmatprep.subr.bf16.mxu0 %v5824_v13  ;;  %v5832_v36 = vld [vmem:[#allocation22 + $0x38] sm:$0xff]   ;;  %5126 = vmatprep.subr.bf16.mxu1 %v5831_v17 }
 0xd1c   : > { %v5722_v25 = vpack.i.bf16 %v3960_v32, %v3959_v28  ;;  %v5833_v28 = vld [vmem:[#allocation22 + $0x70] sm:$0xff]   ;;  %v5835_v59 = vld [vmem:[#allocation22 + $0x68] sm:$0xff]   ;;  %p6309_p9 = pnand %p6308_p8, %p6302_p0 }
 0xd1d   : > { %v3897_v38 = vpop.f32.mrf.mxu0  ;;  %v5834_v32 = vld [vmem:[#allocation22 + $0x30] sm:$0xff]  }
 0xd1e   : > { %5723 = vrot.lane.b32.xlu1 %v5722_v25, %s6471_s27  ;;  %4293 = vmatpush1.bf16.msra.mxu0 %v5822_v61  ;;  %v5836_v25 = vld [vmem:[#allocation22 + $0x28] sm:$0xff]   ;;  %v5837_v38 = vld [vmem:[#allocation22 + $0x60] sm:$0xff]   ;;  %s7803_s27 = scalar_lea.hbm %s8019_s26, %s7797_s5 }
 0xd1f   : > { %v5399_v4 = vpop.f32.mrf.mxu0  ;;  %4294 = vmatprep.subr.bf16.mxu0 %v5827_v30 }
 0xd20   : > { %v5838_v4 = vld [vmem:[#allocation22 + $0x20] sm:$0xff]  }
 0xd22   : > { %4295 = vmatpush1.bf16.msra.mxu0 %v5825_v56 }
 0xd23   : > { %4296 = vmatprep.subr.bf16.mxu0 %v5830_v1 }
 0xd26   : > { %4297 = vmatpush1.bf16.msra.mxu0 %v5828_v12 }
 0xd5b   : > { %v5714_v27 = vpop.permute.xlu1 %5713 }
 0xd5c   : > { %v5716_v37 = vunpack.i.h.bf16 %v5714_v27  ;;  %v5715_v41 = vunpack.i.l.bf16 %v5714_v27  ;;  %v5840_v27 = vld [vmem:[#allocation22 + $0x18] sm:$0xff]  }
 0xd5e   : > { %v3986_v2 = vsel %vm1304_vm1, %v3954_v44, %v5716_v37  ;;  %v3985_v8 = vsel %vm1304_vm1, %v3953_v58, %v5715_v41  ;;  %v4974_v58 = vld [vmem:[%s7938_s18 + $0x2] ss:$0 sm:$0xff] }
 0xd80   : > { %v5719_v33 = vpop.permute.xlu0 %5718 }
 0xd81   : > { %v5721_v34 = vunpack.i.h.bf16 %v5719_v33  ;;  %v5720_v46 = vunpack.i.l.bf16 %v5719_v33 }
 0xd83   : > { %v3988_v50 = vsel %vm2367_vm5, %v3986_v2, %v5721_v34  ;;  %v3987_v0 = vsel %vm2367_vm5, %v3985_v8, %v5720_v46 }
 0xd90   : > { %v5724_v9 = vpop.permute.xlu1 %5723 }
 0xd91   : > { %v5726_v16 = vunpack.i.h.bf16 %v5724_v9  ;;  %v5725_v5 = vunpack.i.l.bf16 %v5724_v9 }
 0xd93   : > { %v3990_v40 = vsel %vm2370_vm6, %v3988_v50, %v5726_v16  ;;  %v3989_v53 = vsel %vm2370_vm6, %v3987_v0, %v5725_v5  ;;  %v4975_v16 = vld [vmem:[%s7939_s19 + $0x2] ss:$0 sm:$0xff] }
 0xd94   : > { %v3991_v47 = vpack.c.bf16 %v3990_v40, %v3989_v53  ;;  %v5841_v53 = vld [vmem:[#allocation22 + $0x50] sm:$0xff]  }
 0xd96   : > { %5417 = vmatmul.mubr.bf16.vlgmr.msra.gmra.mxu1 %v3991_v47  ;;  %v5842_v47 = vld [vmem:[#allocation22 + $0x10] sm:$0xff]  }
 0xd97   : > { %5127 = vmatpush3.bf16.msra.mxu1 %v5832_v36 }
 0xd98   : > { %5128 = vmatprep.subr.bf16.mxu1 %v5833_v28 }
 0xd9b   : > { %5129 = vmatpush3.bf16.msra.mxu1 %v5834_v32 }
 0xd9c   : > { %5130 = vmatprep.subr.bf16.mxu1 %v5835_v59 }
 0xd9f   : > { %5131 = vmatpush3.bf16.msra.mxu1 %v5836_v25 }
 0xda0   : > { %5132 = vmatprep.subr.bf16.mxu1 %v5837_v38 }
 0xda3   : > { %5133 = vmatpush3.bf16.msra.mxu1 %v5838_v4 }
 0xda4   : > { %5134 = vmatprep.subr.bf16.mxu1 %v5839_v7 }
 0xda7   : > { %5135 = vmatpush3.bf16.msra.mxu1 %v5840_v27 }
 0xda8   : > { %5136 = vmatprep.subr.bf16.mxu1 %v5841_v53 }
 0xdab   : > { %5137 = vmatpush3.bf16.msra.mxu1 %v5842_v47 }
 0xe56   : > { %v4097_v21 = vpop.f32.mrf.mxu1 }
 0xe57   : > { %v4098_v11 = vadd.f32 %v4965_v14, %v4097_v21  ;;  %v5844_v21 = vld [vmem:[#allocation22 + $0x8] sm:$0xff]  }
 0xe58   : > { %v5418_v20 = vpop.f32.mrf.mxu1 }
 0xe59   : > { %v4135_v22 = vadd.f32 %v4098_v11, %v7357_v42  ;;  %v5845_v11 = vld [vmem:[#allocation22 + $0x40] sm:$0xff]  }
 0xe5a   : > { %v4100_v18 = vpop.f32.mrf.mxu1  ;;  %v5846_v20 = vld [vmem:[#allocation22] sm:$0xff]  }
 0xe5b   : > { %v4101_v31 = vadd.f32 %v4965_v14, %v4100_v18  ;;  %4139 = vadd.xlane.f32.xlu0 %v4135_v22  ;;  %v5843_v14 = vld [vmem:[#allocation22 + $0x48] sm:$0xff]  }
 0xe5c   : > { %v5419_v35 = vpop.f32.mrf.mxu1  ;;  %5138 = vmatprep.subr.bf16.mxu1 %v5843_v14 }
 0xe5d   : > { %v4136_v29 = vadd.f32 %v4101_v31, %v7359_v19  ;;  %5139 = vmatpush3.bf16.msra.mxu1 %v5844_v21 }
 0xe5e   : > { %5140 = vmatprep.subr.bf16.mxu1 %v5845_v11 }
 0xe5f   : > { %4141 = vadd.xlane.f32.xlu1 %v4136_v29 }
 0xe61   : > { %5141 = vmatpush3.bf16.msra.mxu1 %v5846_v20 }
 0xee4   : > { %v4140_v62 = vpop.xlane.xlu0 %4139 }
 0xee5   : > { %v4143_v6 = vmul.f32 0.0078125, %v4140_v62 }
 0xee7   : > { %v7768_v48 = vsub.f32 %v4135_v22, %v4143_v6  ;;  %v4190_v22 = vld [vmem:[%s8018_s1] sm:$0x3] }
 0xee8   : > { %v4142_v43 = vpop.xlane.xlu1 %4141  ;;  %v4199_v31 = vrot.slane %v4190_v22, %v6941_v57  ;;  %v4195_v35 = vrot.slane %v4190_v22, %v6939_v55 }
 0xee9   : > { %v4144_v63 = vmul.f32 0.0078125, %v4142_v43  ;;  %v4147_v42 = vmul.f32 %v7768_v48, %v7768_v48 }
 0xeeb   : > { %v7772_v49 = vsub.f32 %v4136_v29, %v4144_v63  ;;  %4149 = vadd.xlane.f32.xlu0 %v4147_v42 }
 0xeed   : > { %v4148_v19 = vmul.f32 %v7772_v49, %v7772_v49 }
 0xeef   : > { %4151 = vadd.xlane.f32.xlu0 %v4148_v19 }
 0xf74   : > { %v4150_v33 = vpop.xlane.xlu0 %4149 }
 0xf75   : > { %v4153_v3 = vmul.f32 0.0078125, %v4150_v33 }
 0xf77   : > { %v4155_v51 = vadd.f32 1e-05, %v4153_v3 }
 0xf78   : > { %v4152_v37 = vpop.xlane.xlu0 %4151 }
 0xf79   : > { %5951 = vrsqrt.f32 %v4155_v51  ;;  %v4154_v41 = vmul.f32 0.0078125, %v4152_v37 }
 0xf7b   : > { %v4156_v34 = vadd.f32 1e-05, %v4154_v41 }
 0xf7d   : > { %5953 = vrsqrt.f32 %v4156_v34 }
 0xf86   : > { %v5952_v46 = vpop.eup %5951 }
 0xf87   : > { %v4159_v44 = vmul.f32 %v5952_v46, %v7768_v48 }
 0xf89   : > { %v4165_v8 = vmul.f32 %v4974_v58, %v4159_v44 }
 0xf8a   : > { %v5954_v9 = vpop.eup %5953 }
 0xf8b   : > { %v4160_v2 = vmul.f32 %v5954_v9, %v7772_v49  ;;  %v7784_v50 = vadd.f32 %v4975_v16, %v4165_v8 }
 0xf8d   : > { %v4166_v5 = vmul.f32 %v4974_v58, %v4160_v2 }
 0xf8f   : > { %v7786_v0 = vadd.f32 %v4975_v16, %v4166_v5 }
 0xf91   : > { %v4173_v40 = vpack.c.bf16 %v7786_v0, %v7784_v50 }
 0xf93   : > { %4315 = vmatmul.mubr.bf16.vlgmr.msra.gmra.mxu0 %v4173_v40 }
0x1053   : > { %v4316_v18 = vpop.f32.mrf.mxu0 }
0x1054   : > { %v4317_v6 = vadd.f32 %v4316_v18, %v4195_v35 }
0x1055   : > { %v4318_v29 = vpop.f32.mrf.mxu0 }
0x1056   : > { %v4319_v39 = vadd.f32 %v4318_v29, %v4199_v31  ;;  %v4325_v19 = vmax.f32 %v4317_v6, 0.0 }
0x1057   : > { %v4320_v26 = vpop.f32.mrf.mxu0 }
0x1058   : > { %v4321_v62 = vadd.f32 %v4320_v26, %v4195_v35  ;;  %v4326_v42 = vmax.f32 %v4319_v39, 0.0 }
0x1059   : > { %v4322_v48 = vpop.f32.mrf.mxu0 }
0x105a   : > { %v4323_v43 = vadd.f32 %v4322_v48, %v4199_v31  ;;  %v4327_v63 = vmax.f32 %v4321_v62, 0.0 }
0x105c   : > { %v4328_v49 = vmax.f32 %v4323_v43, 0.0  ;;  %v4329_v57 = vpack.c.bf16 %v4327_v63, %v4325_v19 }
0x105e   : > { %v4330_v15 = vpack.c.bf16 %v4328_v49, %v4326_v42 }
0x1060   : > { %4498 = vmatprep.mubr.bf16.mxu1 %v4330_v15 }
0x1061   : > { %4499 = vmatmul.mubr.bf16.vlgmr.msra.gmra.mxu1 %v4329_v57 }
0x1062   : > { %6312 = shalt.err (!%p6309_p9)
}
0x1063   : > { %s6313_s23 = scalar_lea.hbm %s7803_s27, 256  ;;  %s6317_s6 = scalar_lea.hbm %s8019_s26, 512 }
0x1064   : > { %p6314_p4 = scmp.ne.s32.totalorder %s7803_s27, %s6313_s23  ;;  %p6318_p2 = scmp.lt.s32.totalorder %s7803_s27, %s8019_s26 }
0x1065   : > { %p6319_p6 = scmp.lt.s32.totalorder %s6317_s6, %s6313_s23 }
0x1066   : > { %p6315_p12 = pnand %p6314_p4, %p8020_p7 }
0x1067   : > { %p6320_p11 = por %p6319_p6, %p6318_p2 }
0x1068   : > { %p6316_p13 = pneg %p6315_p12 }
0x106a   : > { %p6321_p5 = pnand %p6320_p11, %p6316_p13 }
0x106c   : > { %6324 = shalt.err (!%p6321_p5)
}
0x106d   : > { %s6476_s9 = smov 128   ;;  %s6477_s4 = smov 8  }
0x106e   : > { %5469 = dma.vmem_to_hbm [thread:$0]  (%p8020_p7), %s7808_s13, 256, %s7803_s27, %s7812_s17, %s6476_s9, %s6476_s9, %s6477_s4  }
0x106f   : > { %s8021_s22 = sld [smem:[#allocation57_spill]]  ;;  %s6325_s23 = scalar_lea.vmem %s7806_s0, 256 }
0x1070   : > { %p6326_p10 = scmp.ne.s32.totalorder %s7806_s0, %s6325_s23  ;;  %s6478_s14 = smov [#allocation26]  }
0x1071   : > { %s6329_s12 = sshll.u32 %s6478_s14, 4  ;;  %s6330_s12 = int_to_ptr.vmem [resolvable:$false] %s6329_s12 }
0x1072   : > { %p6327_p0 = pnand %p6326_p10, %p8020_p7  ;;  %s6331_s6 = scalar_lea.vmem %s6330_s12, 512 }
0x1073   : > { %p6332_p3 = scmp.lt.s32.totalorder %s7806_s0, %s6330_s12  ;;  %p6333_p8 = scmp.lt.s32.totalorder %s6331_s6, %s6325_s23 }
0x1074   : > { %p6328_p1 = pneg %p6327_p0 }
0x1075   : > { %s4566_s7 = scalar_lea.hbm %s8021_s22, %s7797_s5  ;;  %p6334_p9 = por %p6333_p8, %p6332_p3 }
0x1077   : > { %p6335_p4 = pnand %p6334_p9, %p6328_p1 }
0x1079   : > { %6338 = shalt.err (!%p6335_p4)
}
0x107a   : > { %s6339_s15 = scalar_lea.hbm %s4566_s7, 256  ;;  %s6343_s1 = scalar_lea.hbm %s8021_s22, 512 }
0x107b   : > { %p6340_p12 = scmp.ne.s32.totalorder %s4566_s7, %s6339_s15  ;;  %p6344_p6 = scmp.lt.s32.totalorder %s4566_s7, %s8021_s22 }
0x107c   : > { %p6345_p11 = scmp.lt.s32.totalorder %s6343_s1, %s6339_s15 }
0x107d   : > { %p6341_p13 = pnand %p6340_p12, %p8020_p7 }
0x107e   : > { %p6346_p5 = por %p6345_p11, %p6344_p6 }
0x107f   : > { %p6342_p2 = pneg %p6341_p13 }
0x1081   : > { %p6347_p10 = pnand %p6346_p5, %p6342_p2 }
0x1083   : > { %6350 = shalt.err (!%p6347_p10)
}
0x1084   : > { %5470 = dma.vmem_to_hbm [thread:$0]  (%p8020_p7), %s7806_s0, 256, %s4566_s7, %s7812_s17, %s6476_s9, %s6476_s9, %s6477_s4  }
0x1085   : > { %s8022_s12 = sld [smem:[#allocation54_spill]]  ;;  %s899_s6 = scalar_lea.vmem [#allocation23], %s6860_s8 }
0x1086   : > { %s4535_s15 = sshll.u32 %s899_s6, 4  ;;  %s8023_s7 = sld [smem:[#allocation55_spill]]  ;;  %s7867_s15 = int_to_ptr.vmem [resolvable:$true] %s4535_s15 }
0x1087   : > { %s4512_s13 = scalar_lea.sflag [#allocation4], %s6857_s29  ;;  %s6351_s1 = scalar_lea.vmem %s7867_s15, 256 }
0x1088   : > { %p6352_p0 = scmp.ne.s32.totalorder %s7867_s15, %s6351_s1  ;;  %s6479_s8 = smov [#allocation23]  }
0x1089   : > { %s6355_s20 = sshll.u32 %s6479_s8, 4  ;;  %s6356_s20 = int_to_ptr.vmem [resolvable:$false] %s6355_s20 }
0x108a   : > { %p6353_p1 = pnand %p6352_p0, %p8020_p7  ;;  %s6357_s16 = scalar_lea.vmem %s6356_s20, 512 }
0x108b   : > { %v4992_v24 = vld [vmem:[%s8022_s12] ss:$0 sm:$0xff]  ;;  %p6358_p8 = scmp.lt.s32.totalorder %s7867_s15, %s6356_s20  ;;  %p6359_p9 = scmp.lt.s32.totalorder %s6357_s16, %s6351_s1 }
0x108c   : > { %s7874_s27 = scalar_lea.hbm %s8023_s7, %s7797_s5  ;;  %p6354_p3 = pneg %p6353_p1 }
0x108d   : > { %p6360_p4 = por %p6359_p9, %p6358_p8 }
0x108f   : > { %p6361_p12 = pnand %p6360_p4, %p6354_p3 }
0x1121   : > { %v5142_v55 = vpop.f32.mrf.mxu1 }
0x1123   : > { %v5143_v10 = vpop.f32.mrf.mxu1 }
0x1124   : > { %v5144_v45 = vadd.f32 %v5143_v10, %v5142_v55 }
0x1125   : > { %v5145_v54 = vpop.f32.mrf.mxu1 }
0x1126   : > { %v4501_v23 = vadd.f32 %v5144_v45, %v4992_v24 }
0x1127   : > { %v5146_v52 = vpop.f32.mrf.mxu1 }
0x1128   : > { %v4507_v60 = vadd.f32 %v4501_v23, %v7784_v50  ;;  %v5147_v13 = vadd.f32 %v5146_v52, %v5145_v54 }
0x112a   : > { %4509 = vst [vmem:[%s899_s6] sm:$0xff] %v4507_v60  ;;  %v4504_v61 = vadd.f32 %v5147_v13, %v4992_v24 }
0x112c   : > { %v4508_v30 = vadd.f32 %v4504_v61, %v7786_v0 }
0x112e   : > { %4510 = vst [vmem:[%s899_s6 + $0x8] sm:$0xff] %v4508_v30 }
0x112f   : > { %6364 = shalt.err (!%p6361_p12)
}
0x1130   : > { %s6365_s5 = scalar_lea.hbm %s7874_s27, 256  ;;  %s6369_s14 = scalar_lea.hbm %s8023_s7, 512 }
0x1131   : > { %p6366_p13 = scmp.ne.s32.totalorder %s7874_s27, %s6365_s5  ;;  %p6370_p11 = scmp.lt.s32.totalorder %s7874_s27, %s8023_s7 }
0x1132   : > { %p6371_p5 = scmp.lt.s32.totalorder %s6369_s14, %s6365_s5 }
0x1133   : > { %p6367_p2 = pnand %p6366_p13, %p8020_p7 }
0x1134   : > { %p6372_p10 = por %p6371_p5, %p6370_p11 }
0x1135   : > { %p6368_p6 = pneg %p6367_p2 }
0x1137   : > { %p6373_p0 = pnand %p6372_p10, %p6368_p6 }
0x1139   : > { %6376 = shalt.err (!%p6373_p0)
}
0x113a   : > { %5468 = dma.vmem_to_hbm [thread:$0]  (%p8020_p7), %s7867_s15, 256, %s7874_s27, %s4512_s13, %s6476_s9, %s6476_s9, %s6477_s4  }
0x113b PF: > { %s4582_s0 = sand.u32 1, %s6435_s3   ;;  %p8024_p1 = scmp.ne.s32.totalorder %s7996_s24, 0 }
0x113c   : > { %p8025_p3 = scmp.ge.s32.totalorder %s6447_s30, 2  ;;  %s4583_s17 = scalar_lea.sflag [#allocation4], %s4582_s0 }
0x113e   : > { %p5516_p8 = pnand %p8025_p3, %p8024_p1 }
0x1140   : > { %p5517_p9 = pneg %p5516_p8 }
0x1142   : > { %6426 = dma.done.wait (%p5517_p9), %s4583_s17, 256  }
0x1143   : > { %6428 = vsyncadd (%p5517_p9), %s4583_s17, 4294967040  ;;  %s8026_s21 = sadd.s32 4294967294, %s6447_s30  }
0x1144   : > { %s4591_s1 = sand.u32 1, %s8026_s21  }
0x1145   : > { %s4592_s8 = scalar_lea.sflag [#allocation25], %s4591_s1 }
0x1146   : > { %6430 = dma.done.wait (%p5517_p9), %s4592_s8, 512  }
0x1147   : > { %6432 = vsyncadd (%p5517_p9), %s4592_s8, 4294966784  ;;  %s8027_s9 = sld [smem:[#allocation37_spill]]  ;;  %p47_p7 = scmp.ge.s32.totalorder %s6740_s2, 4  }
0x1148   : > { %s8028_s29 = sld [smem:[#allocation38_spill]]  ;;  %s8029_s3 = smov %s6439_s28 }
0x1149   : > { %s8031_s30 = smov %s6740_s2  ;;  %49 = sbr.rel (!%p47_p7) target bundleno = 34 (0x22), region = 236 }
0x114d   : > { %s8030_s28 = smov %s8027_s9 }
0x114e   :  { %4606 = vsyncpa [#allocation3], 1 }
0x114f   :  { %4608 = vsyncpa [#allocation3 + $0x1], 1 }
0x1150   :  { %4609 = vsyncpa [#allocation6], 1 }
0x1151   :  { %4611 = vsyncpa [#allocation6 + $0x1], 1 }
0x1152   :  { %4612 = vsyncpa [#allocation9], 1 }
0x1153   :  { %4613 = vsyncpa [#allocation12], 1 }
0x1154   :  { %4614 = vsyncpa [#allocation15], 1 }
0x1155   :  { %4615 = vsyncpa [#allocation18], 1 }
0x1156   :  { %4616 = vsyncpa [#allocation21], 1 }
0x1157   :  { %4617 = vsyncpa [#allocation4], 1 }
0x1158   :  { %4619 = vsyncpa [#allocation4 + $0x1], 1 }
0x1159   :  { %4620 = vsyncpa [#allocation25], 1 }
0x115a   :  { %4622 = vsyncpa [#allocation25 + $0x1], 1 }

// kernel: tpu_custom_call.1
= control target key start
LH: loop header
LB: loop body
LE: loop exit
PB: predicated region body
PF: predicated region fallthrough
CT: control target
= control target key end

     0   :  { %s7920_s0 = inlined_call_operand.hbm [shape: f32[4,8,128], index: 0, kind: input, shape index: {}]   ;;  %s7921_s1 = inlined_call_operand.hbm [shape: f32[4,16,128], index: 1, kind: input, shape index: {}]   ;;  %s7922_s2 = inlined_call_operand.hbm [shape: bf16[128,384], index: 2, kind: input, shape index: {}]   ;;  %s7923_s3 = inlined_call_operand.hbm [shape: f32[1,384], index: 3, kind: input, shape index: {}]   ;;  %s7924_s4 = inlined_call_operand.hbm [shape: f32[2,4,32], index: 4, kind: input, shape index: {}]   ;;  %s7925_s5 = inlined_call_operand.hbm [shape: bf16[128,128], index: 5, kind: input, shape index: {}]   ;;  %s7926_s6 = inlined_call_operand.hbm [shape: f32[1,128], index: 6, kind: input, shape index: {}]   ;;  %s7927_s7 = inlined_call_operand.hbm [shape: bf16[128,128], index: 7, kind: input, shape index: {}]   ;;  %s7928_s8 = inlined_call_operand.hbm [shape: f32[1,128], index: 8, kind: input, shape index: {}]   ;;  %s7929_s9 = inlined_call_operand.hbm [shape: bf16[128,256], index: 9, kind: input, shape index: {}]   ;;  %s7930_s10 = inlined_call_operand.vmem [shape: f32[1,256], index: 10, kind: input, shape index: {}]   ;;  %s7931_s11 = inlined_call_operand.vmem [shape: f32[2,4,32], index: 11, kind: input, shape index: {}]   ;;  %s7932_s12 = inlined_call_operand.hbm [shape: bf16[128,128], index: 12, kind: input, shape index: {}]   ;;  %s7933_s13 = inlined_call_operand.vmem [shape: f32[1,128], index: 13, kind: input, shape index: {}]   ;;  %s7934_s14 = inlined_call_operand.hbm [shape: bf16[128,256], index: 14, kind: input, shape index: {}]   ;;  %s7935_s15 = inlined_call_operand.vmem [shape: f32[1,256], index: 15, kind: input, shape index: {}]   ;;  %s7936_s16 = inlined_call_operand.hbm [shape: bf16[256,128], index: 16, kind: input, shape index: {}]   ;;  %s7937_s17 = inlined_call_operand.vmem [shape: f32[1,128], index: 17, kind: input, shape index: {}]   ;;  %s7938_s18 = inlined_call_operand.vmem [shape: f32[3,128], index: 18, kind: input, shape index: {}]   ;;  %s7939_s19 = inlined_call_operand.vmem [shape: f32[3,128], index: 19, kind: input, shape index: {}]   ;;  %s7940_s20 = inlined_call_operand.hbm [shape: f32[4,8,128], index: 20, kind: output, shape index: {0}]   ;;  %s7941_s21 = inlined_call_operand.hbm [shape: f32[4,8,128], index: 21, kind: output, shape index: {1}]   ;;  %s7942_s22 = inlined_call_operand.hbm [shape: f32[4,8,128], index: 22, kind: output, shape index: {2}]  }
   0x1   :  { %7958 = sst [smem:[#allocation39_spill]] %s7920_s0 }
   0x2   :  { %7959 = sst [smem:[#allocation40_spill]] %s7921_s1 }
   0x3   :  { %7960 = sst [smem:[#allocation41_spill]] %s7922_s2 }
   0x4   :  { %7961 = sst [smem:[#allocation42_spill]] %s7923_s3 }
   0x5   :  { %7962 = sst [smem:[#allocation43_spill]] %s7924_s4 }
   0x6   :  { %7963 = sst [smem:[#allocation44_spill]] %s7925_s5 }
   0x7   :  { %7964 = sst [smem:[#allocation45_spill]] %s7926_s6 }
   0x8   :  { %7965 = sst [smem:[#allocation46_spill]] %s7927_s7 }
   0x9   :  { %7966 = sst [smem:[#allocation47_spill]] %s7928_s8 }
   0xa   :  { %7967 = sst [smem:[#allocation48_spill]] %s7929_s9 }
   0xb   :  { %7968 = sst [smem:[#allocation49_spill]] %s7932_s12 }
   0xc   :  { %7969 = sst [smem:[#allocation50_spill]] %s7933_s13 }
   0xd   :  { %7970 = sst [smem:[#allocation51_spill]] %s7934_s14 }
   0xe   :  { %7971 = sst [smem:[#allocation52_spill]] %s7935_s15 }
   0xf   :  { %7972 = sst [smem:[#allocation53_spill]] %s7936_s16 }
  0x10   :  { %7973 = sst [smem:[#allocation54_spill]] %s7937_s17 }
  0x11   :  { %7974 = sst [smem:[#allocation55_spill]] %s7940_s20 }
  0x12   :  { %7975 = sst [smem:[#allocation56_spill]] %s7941_s21 }
  0x13   :  { %7976 = sst [smem:[#allocation57_spill]] %s7942_s22 }
  0x14   :  { %28 = vsyncpa [#allocation3], 0 }
  0x15   :  { %30 = vsyncpa [#allocation3 + $0x1], 0 }
  0x16   :  { %31 = vsyncpa [#allocation6], 0 }
  0x17   :  { %33 = vsyncpa [#allocation6 + $0x1], 0 }
  0x18   :  { %34 = vsyncpa [#allocation9], 0 }
  0x19   :  { %35 = vsyncpa [#allocation12], 0 }
  0x1a   :  { %36 = vsyncpa [#allocation15], 0 }
  0x1b   :  { %37 = vsyncpa [#allocation18], 0 }
  0x1c   :  { %38 = vsyncpa [#allocation21], 0 }
  0x1d   :  { %39 = vsyncpa [#allocation4], 0 }
  0x1e   :  { %41 = vsyncpa [#allocation4 + $0x1], 0 }
  0x1f   :  { %42 = vsyncpa [#allocation25], 0 }
  0x20   :  { %44 = vsyncpa [#allocation25 + $0x1], 0  ;;  %s6595_s3 = smov 0   ;;  %s6597_s28 = smov 0  }
  0x21   :  { %s6599_s29 = smov 0   ;;  %s6601_s30 = smov 0  }
  0x22 LB: > { %7977 = sst [smem:[#allocation37_spill]] %s6443_s29  ;;  %s6449_s4 = smov [#allocation7]   ;;  %s6447_s30 = sphi %s6601_s30, %s8031_s30   ;;  %s6443_s29 = sphi %s6599_s29, %s8028_s29   ;;  %s6439_s28 = sphi %s6597_s28, %s8030_s28   ;;  %s6435_s3 = sphi %s6595_s3, %s8029_s3  }
  0x23   : > { %s575_s0 = sshll.u32 %s6449_s4, 4  ;;  %s6616_s23 = sadd.s32 4294967295, %s6447_s30   ;;  %s576_s0 = int_to_ptr.vmem [resolvable:$true] %s575_s0 }
  0x24   : > { %p4829_p0 = scmp.ge.s32.totalorder %s6447_s30, 1  ;;  %p7948_p1 = scmp.eq.s32.totalorder %s6616_s23, 0 }
  0x25   : > { %p563_p2 = scmp.lt.s32.totalorder %s6447_s30, 3  ;;  %s6450_s5 = smov [#allocation8]  }
  0x26   : > { %s589_s24 = sshll.u32 %s6450_s5, 4  ;;  %s6451_s25 = smov [#allocation11]   ;;  %s590_s24 = int_to_ptr.vmem [resolvable:$true] %s589_s24 }
  0x27   : > { %p6621_p3 = pnand %p4829_p0, %p563_p2  ;;  %s612_s26 = sshll.u32 %s6451_s25, 4  ;;  %s613_s26 = int_to_ptr.vmem [resolvable:$true] %s612_s26 }
  0x28   : > { %s5968_s27 = scalar_lea.vmem %s576_s0, 3072  ;;  %p5976_p11 = scmp.lt.s32.totalorder %s576_s0, %s576_s0 }
  0x29   : > { %s7978_s1 = scalar_select %p6621_p3, 1, 0 }
  0x2a   : > { %p5474_p5 = pneg %p6621_p3  ;;  %p5969_p8 = scmp.ne.s32.totalorder %s576_s0, %s5968_s27 }
  0x2b   : > { %p5977_p12 = scmp.lt.s32.totalorder %s5968_s27, %s5968_s27 }
  0x2c   : > { %p6630_p6 = pnand %p5474_p5, %p7948_p1 }
  0x2d   : > { %p5978_p13 = por %p5977_p12, %p5976_p11 }
  0x2e   : > { %p6636_p7 = pneg %p6630_p6 }
  0x30   : > { %p5971_p9 = pnand %p5969_p8, %p6636_p7 }
  0x32   : > { %p5972_p10 = pneg %p5971_p9 }
  0x34   : > { %p5979_p0 = pnand %p5978_p13, %p5972_p10 }
  0x36   : > { %5982 = shalt.err (!%p5979_p0)
}
  0x37   : > { %s6452_s4 = smov 192   ;;  %s6453_s5 = smov 12  }
  0x38   : > { %s7981_s17 = sld [smem:[#allocation41_spill]]  ;;  %s5994_s22 = scalar_lea.vmem %s590_s24, 48 }
  0x39   : > { %p5995_p2 = scmp.ne.s32.totalorder %s590_s24, %s5994_s22  ;;  %s6001_s21 = scalar_lea.vmem %s590_s24, 64 }
  0x3a   : > { %p6002_p9 = scmp.lt.s32.totalorder %s590_s24, %s590_s24  ;;  %p6003_p4 = scmp.lt.s32.totalorder %s6001_s21, %s5994_s22 }
  0x3b   : > { %p5997_p5 = pnand %p5995_p2, %p6636_p7 }
  0x3c   : > { %p6004_p11 = por %p6003_p4, %p6002_p9 }
  0x3d   : > { %p5998_p8 = pneg %p5997_p5 }
  0x3e   : > { %5477 = dma.hbm_to_vmem [thread:$0]  (!%p6630_p6), %s7981_s17, 3072, %s576_s0, [#allocation6], %s6452_s4, %s6452_s4, %s6453_s5  }
  0x3f   : > { %p6005_p10 = pnand %p6004_p11, %p5998_p8 }
  0x41   : > { %6008 = shalt.err (!%p6005_p10)
}
  0x42   : > { %s7982_s13 = sld [smem:[#allocation42_spill]]  ;;  %s6020_s17 = scalar_lea.vmem %s613_s26, 1024 }
  0x43   : > { %p6021_p12 = scmp.ne.s32.totalorder %s613_s26, %s6020_s17  ;;  %p6028_p2 = scmp.lt.s32.totalorder %s613_s26, %s613_s26 }
  0x44   : > { %p6029_p5 = scmp.lt.s32.totalorder %s6020_s17, %s6020_s17 }
  0x45   : > { %p6023_p13 = pnand %p6021_p12, %p6636_p7 }
  0x46   : > { %p6030_p1 = por %p6029_p5, %p6028_p2 }
  0x47   : > { %p6024_p0 = pneg %p6023_p13 }
  0x48   : > { %5480 = dma.hbm_to_vmem [thread:$0]  (!%p6630_p6), %s7982_s13, 48, %s590_s24, [#allocation9]  }
  0x49   : > { %p6031_p3 = pnand %p6030_p1, %p6024_p0 }
  0x4b   : > { %6034 = shalt.err (!%p6031_p3)
}
  0x4c   : > { %s6454_s20 = smov 64   ;;  %s6455_s21 = smov 4  }
  0x4d   : > { %s7983_s22 = sld [smem:[#allocation44_spill]]  ;;  %s6456_s0 = smov [#allocation14]  }
  0x4e   : > { %s636_s24 = sshll.u32 %s6456_s0, 4  ;;  %s6457_s4 = smov [#allocation17]   ;;  %s637_s24 = int_to_ptr.vmem [resolvable:$true] %s636_s24 }
  0x4f   : > { %s660_s5 = sshll.u32 %s6457_s4, 4  ;;  %s6046_s25 = scalar_lea.vmem %s637_s24, 1024  ;;  %s661_s5 = int_to_ptr.vmem [resolvable:$true] %s660_s5 }
  0x50   : > { %p6047_p1 = scmp.ne.s32.totalorder %s637_s24, %s6046_s25  ;;  %p6054_p8 = scmp.lt.s32.totalorder %s637_s24, %s637_s24 }
  0x51   : > { %p6055_p9 = scmp.lt.s32.totalorder %s6046_s25, %s6046_s25 }
  0x52   : > { %p6049_p3 = pnand %p6047_p1, %p6636_p7 }
  0x53   : > { %5486 = dma.hbm_to_vmem [thread:$0]  (!%p6630_p6), %s7983_s22, 1024, %s613_s26, [#allocation12], %s6454_s20, %s6454_s20, %s6455_s21  }
  0x54   : > { %p6050_p4 = pneg %p6049_p3  ;;  %p6056_p11 = por %p6055_p9, %p6054_p8 }
  0x56   : > { %p6057_p10 = pnand %p6056_p11, %p6050_p4 }
  0x58   : > { %6060 = shalt.err (!%p6057_p10)
}
  0x59   : > { %s7984_s7 = sld [smem:[#allocation46_spill]]  ;;  %s6072_s17 = scalar_lea.vmem %s661_s5, 2048 }
  0x5a   : > { %p6073_p12 = scmp.ne.s32.totalorder %s661_s5, %s6072_s17  ;;  %p6080_p2 = scmp.lt.s32.totalorder %s661_s5, %s661_s5 }
  0x5b   : > { %p6081_p5 = scmp.lt.s32.totalorder %s6072_s17, %s6072_s17 }
  0x5c   : > { %p6075_p13 = pnand %p6073_p12, %p6636_p7 }
  0x5d   : > { %p6082_p1 = por %p6081_p5, %p6080_p2 }
  0x5e   : > { %p6076_p0 = pneg %p6075_p13 }
  0x5f   : > { %5492 = dma.hbm_to_vmem [thread:$0]  (!%p6630_p6), %s7984_s7, 1024, %s637_s24, [#allocation15], %s6454_s20, %s6454_s20, %s6455_s21  }
  0x60   : > { %p6083_p3 = pnand %p6082_p1, %p6076_p0 }
  0x62   : > { %6086 = shalt.err (!%p6083_p3)
}
  0x63   : > { %s7950_s13 = smov 128   ;;  %s7953_s15 = smov 8  }
  0x64   : > { %s7985_s9 = sld [smem:[#allocation48_spill]]  ;;  %s6460_s24 = smov [#allocation20]  }
  0x65   : > { %s695_s4 = sshll.u32 %s6460_s24, 4  ;;  %s6461_s25 = smov [#allocation10]   ;;  %s696_s4 = int_to_ptr.vmem [resolvable:$true] %s695_s4 }
  0x66   : > { %s599_s26 = sshll.u32 %s6461_s25, 4  ;;  %s6098_s27 = scalar_lea.vmem %s696_s4, 2048  ;;  %s600_s26 = int_to_ptr.vmem [resolvable:$true] %s599_s26 }
  0x67   : > { %p6099_p4 = scmp.ne.s32.totalorder %s696_s4, %s6098_s27  ;;  %p6106_p11 = scmp.lt.s32.totalorder %s696_s4, %s696_s4 }
  0x68   : > { %p6107_p10 = scmp.lt.s32.totalorder %s6098_s27, %s6098_s27 }
  0x69   : > { %p6101_p8 = pnand %p6099_p4, %p6636_p7 }
  0x6a   : > { %5498 = dma.hbm_to_vmem [thread:$0]  (!%p6630_p6), %s7985_s9, 2048, %s661_s5, [#allocation18], %s7950_s13, %s7950_s13, %s7953_s15  }
  0x6b   : > { %p6102_p9 = pneg %p6101_p8  ;;  %p6108_p12 = por %p6107_p10, %p6106_p11 }
  0x6d   : > { %p6109_p13 = pnand %p6108_p12, %p6102_p9 }
  0x6f   : > { %6112 = shalt.err (!%p6109_p13)
}
  0x70   : > { %s7986_s14 = sld [smem:[#allocation51_spill]]  ;;  %s6124_s22 = scalar_lea.vmem %s600_s26, 128 }
  0x71   : > { %p6125_p0 = scmp.ne.s32.totalorder %s600_s26, %s6124_s22  ;;  %p6132_p1 = scmp.lt.s32.totalorder %s600_s26, %s600_s26 }
  0x72   : > { %p6133_p3 = scmp.lt.s32.totalorder %s6124_s22, %s6124_s22 }
  0x73   : > { %p6127_p2 = pnand %p6125_p0, %p6636_p7 }
  0x74   : > { %p6134_p4 = por %p6133_p3, %p6132_p1 }
  0x75   : > { %p6128_p5 = pneg %p6127_p2 }
  0x76   : > { %5504 = dma.hbm_to_vmem [thread:$0]  (!%p6630_p6), %s7986_s14, 2048, %s696_s4, [#allocation21], %s7950_s13, %s7950_s13, %s7953_s15  }
  0x77   : > { %p6135_p8 = pnand %p6134_p4, %p6128_p5 }
  0x79   : > { %6138 = shalt.err (!%p6135_p8)
}
  0x7a   : > { %s7987_s25 = sld [smem:[#allocation43_spill]]  ;;  %s6462_s4 = smov [#allocation13]  }
  0x7b   : > { %s626_s27 = sshll.u32 %s6462_s4, 4  ;;  %s6463_s5 = smov [#allocation16]   ;;  %s627_s27 = int_to_ptr.vmem [resolvable:$true] %s626_s27 }
  0x7c   : > { %s650_s17 = sshll.u32 %s6463_s5, 4  ;;  %s6150_s13 = scalar_lea.vmem %s627_s27, 16  ;;  %s651_s17 = int_to_ptr.vmem [resolvable:$true] %s650_s17 }
  0x7d   : > { %p6151_p9 = scmp.ne.s32.totalorder %s627_s27, %s6150_s13  ;;  %s6157_s22 = scalar_lea.vmem %s627_s27, 32 }
  0x7e   : > { %p6158_p12 = scmp.lt.s32.totalorder %s627_s27, %s627_s27  ;;  %p6159_p13 = scmp.lt.s32.totalorder %s6157_s22, %s6150_s13 }
  0x7f   : > { %p6153_p11 = pnand %p6151_p9, %p6636_p7 }
  0x80   : > { %5483 = dma.hbm_to_vmem [thread:$0]  (!%p6630_p6), %s7987_s25, 128, %s600_s26, [#allocation9], %s6454_s20, %s6454_s20, %s6455_s21  }
  0x81   : > { %p6154_p10 = pneg %p6153_p11  ;;  %p6160_p0 = por %p6159_p13, %p6158_p12 }
  0x83   : > { %p6161_p2 = pnand %p6160_p0, %p6154_p10 }
  0x85   : > { %6164 = shalt.err (!%p6161_p2)
}
  0x86   : > { %s7988_s24 = sld [smem:[#allocation45_spill]]  ;;  %s6176_s25 = scalar_lea.vmem %s651_s17, 16 }
  0x87   : > { %p6177_p5 = scmp.ne.s32.totalorder %s651_s17, %s6176_s25  ;;  %s6183_s4 = scalar_lea.vmem %s651_s17, 32 }
  0x88   : > { %p6184_p4 = scmp.lt.s32.totalorder %s651_s17, %s651_s17  ;;  %p6185_p8 = scmp.lt.s32.totalorder %s6183_s4, %s6176_s25 }
  0x89   : > { %p6179_p1 = pnand %p6177_p5, %p6636_p7 }
  0x8a   : > { %p6186_p9 = por %p6185_p8, %p6184_p4 }
  0x8b   : > { %p6180_p3 = pneg %p6179_p1 }
  0x8c   : > { %5489 = dma.hbm_to_vmem [thread:$0]  (!%p6630_p6), %s7988_s24, 16, %s627_s27, [#allocation12]  }
  0x8d   : > { %p6187_p11 = pnand %p6186_p9, %p6180_p3 }
  0x8f   : > { %6190 = shalt.err (!%p6187_p11)
}
  0x90   : > { %s7989_s8 = sld [smem:[#allocation47_spill]]  ;;  %s6464_s27 = smov [#allocation19]  }
  0x91   : > { %s679_s22 = sshll.u32 %s6464_s27, 4  ;;  %s6465_s0 = smov [#allocation22]   ;;  %s680_s22 = int_to_ptr.vmem [resolvable:$true] %s679_s22 }
  0x92   : > { %s711_s26 = sshll.u32 %s6465_s0, 4  ;;  %s6202_s24 = scalar_lea.vmem %s680_s22, 1024  ;;  %s712_s26 = int_to_ptr.vmem [resolvable:$true] %s711_s26 }
  0x93   : > { %p6203_p10 = scmp.ne.s32.totalorder %s680_s22, %s6202_s24  ;;  %p6210_p0 = scmp.lt.s32.totalorder %s680_s22, %s680_s22 }
  0x94   : > { %p6211_p2 = scmp.lt.s32.totalorder %s6202_s24, %s6202_s24 }
  0x95   : > { %p6205_p12 = pnand %p6203_p10, %p6636_p7 }
  0x96   : > { %5495 = dma.hbm_to_vmem [thread:$0]  (!%p6630_p6), %s7989_s8, 16, %s651_s17, [#allocation15]  }
  0x97   : > { %p6206_p13 = pneg %p6205_p12  ;;  %p6212_p5 = por %p6211_p2, %p6210_p0 }
  0x99   : > { %p6213_p1 = pnand %p6212_p5, %p6206_p13 }
  0x9b   : > { %6216 = shalt.err (!%p6213_p1)
}
  0x9c   : > { %s7990_s12 = sld [smem:[#allocation49_spill]]  ;;  %s6228_s4 = scalar_lea.vmem %s712_s26, 2048 }
  0x9d   : > { %p6229_p3 = scmp.ne.s32.totalorder %s712_s26, %s6228_s4  ;;  %p6236_p9 = scmp.lt.s32.totalorder %s712_s26, %s712_s26 }
  0x9e   : > { %p6237_p11 = scmp.lt.s32.totalorder %s6228_s4, %s6228_s4 }
  0x9f   : > { %p6231_p4 = pnand %p6229_p3, %p6636_p7 }
  0xa0   : > { %p6238_p10 = por %p6237_p11, %p6236_p9 }
  0xa1   : > { %p6232_p8 = pneg %p6231_p4 }
  0xa2   : > { %5501 = dma.hbm_to_vmem [thread:$0]  (!%p6630_p6), %s7990_s12, 1024, %s680_s22, [#allocation18], %s6454_s20, %s6454_s20, %s6455_s21  }
  0xa3   : > { %p6239_p12 = pnand %p6238_p10, %p6232_p8 }
  0xa5   : > { %6242 = shalt.err (!%p6239_p12)
}
  0xa6   : > { %s7991_s16 = sld [smem:[#allocation53_spill]]  ;;  %s7952_s6 = sadd.s32 4294967294, %s6447_s30  }
  0xa7   : > { %s6740_s2 = sadd.s32 1, %s6447_s30   ;;  %s57_s27 = sadd.s32 1, %s6443_s29 }
  0xa8   : > { %s54_s22 = ssub.s32 %s6447_s30, %s6740_s2  ;;  %p64_p7 = scmp.ne.s32.totalorder %s6443_s29, %s6439_s28 }
  0xa9   : > { %p55_p13 = scmp.eq.s32.totalorder %s54_s22, 0  ;;  %p65_p0 = scmp.eq.s32.totalorder %s6447_s30, 0 }
  0xaa   : > { %p70_p2 = scmp.ne.s32.totalorder %s6439_s28, %s6435_s3  ;;  %p498_p5 = scmp.eq.s32.totalorder %s6616_s23, 1 }
  0xab   : > { %s6752_s0 = scalar_select %p55_p13, %s6443_s29, %s57_s27  }
  0xac   : > { %5507 = dma.hbm_to_vmem [thread:$0]  (!%p6630_p6), %s7991_s16, 2048, %s712_s26, [#allocation21], %s6454_s20, %s6454_s20, %s6455_s21  }
  0xad   : > { %7992 = sst [smem:[#allocation38_spill]] %s6752_s0  ;;  %p66_p1 = por %p65_p0, %p64_p7 }
  0xae   : > { %p7993_p3 = scmp.eq.s32.totalorder %s6616_s23, 0  ;;  %p6760_p6 = por %p498_p5, %p64_p7 }
  0xaf   : > { %p504_p8 = scmp.eq.s32.totalorder %s7952_s6, 1  ;;  %p5536_p9 = scmp.lt.s32.totalorder %s6447_s30, 2 }
  0xb0   : > { %p6756_p4 = por %p7993_p3, %p70_p2  ;;  %s6768_s26 = sand.u32 1, %s6443_s29  }
  0xb1   : > { %s7995_s21 = scalar_select %p6760_p6, 1, 0 }
  0xb2   : > { %p6770_p11 = por %p504_p8, %p70_p2  ;;  %s4842_s17 = sshll.u32 %s6768_s26, 4 }
  0xb3   : > { %s5020_s25 = sshll.u32 %s6447_s30, 8  ;;  %s7997_s5 = sld [smem:[#allocation39_spill]] }
  0xb4   : > { %s7996_s24 = scalar_select %p6770_p11, 1, 0 }
  0xb5   : > { %s738_s22 = scalar_lea.vmem [#allocation2], %s4842_s17  ;;  %p6781_p10 = pnand %p5536_p9, %p66_p1 }
  0xb6   : > { %s745_s6 = sshll.u32 %s738_s22, 4  ;;  %s6785_s6 = int_to_ptr.vmem [resolvable:$true] %s745_s6 }
  0xb7   : > { %p6245_p7 = pneg %p6781_p10 }
  0xb9   : > { %s6779_s27 = scalar_lea.hbm %s7997_s5, %s5020_s25  ;;  %s6248_s4 = scalar_lea.hbm %s7997_s5, 512 }
  0xba   : > { %s6243_s9 = scalar_lea.hbm %s6779_s27, 256  ;;  %p6249_p2 = scmp.lt.s32.totalorder %s6779_s27, %s7997_s5 }
  0xbb   : > { %p6244_p12 = scmp.ne.s32.totalorder %s6779_s27, %s6243_s9  ;;  %p6250_p5 = scmp.lt.s32.totalorder %s6248_s4, %s6243_s9 }
  0xbd   : > { %p6246_p13 = pnand %p6245_p7, %p6244_p12  ;;  %p6251_p1 = por %p6250_p5, %p6249_p2 }
  0xbf   : > { %p6247_p0 = pneg %p6246_p13 }
  0xc1   : > { %p6252_p3 = pnand %p6251_p1, %p6247_p0 }
  0xc3   : > { %6255 = shalt.err (!%p6252_p3)
}
  0xc4   : > { %s6256_s7 = scalar_lea.vmem %s6785_s6, 256  ;;  %s6466_s17 = smov [#allocation2]  }
  0xc5   : > { %p6257_p8 = scmp.ne.s32.totalorder %s6785_s6, %s6256_s7  ;;  %s6261_s25 = sshll.u32 %s6466_s17, 4  ;;  %s6262_s25 = int_to_ptr.vmem [resolvable:$false] %s6261_s25 }
  0xc6   : > { %s6263_s8 = scalar_lea.vmem %s6262_s25, 512  ;;  %p6264_p13 = scmp.lt.s32.totalorder %s6785_s6, %s6262_s25 }
  0xc7   : > { %p6259_p9 = pnand %p6257_p8, %p6245_p7  ;;  %p6265_p11 = scmp.lt.s32.totalorder %s6263_s8, %s6256_s7 }
  0xc9   : > { %p6260_p12 = pneg %p6259_p9  ;;  %p6266_p6 = por %p6265_p11, %p6264_p13 }
  0xcb   : > { %p6267_p2 = pnand %p6266_p6, %p6260_p12 }
  0xcd   : > { %6270 = shalt.err (!%p6267_p2)
}
  0xce   : > { %s7999_s9 = smov 8   ;;  %s8000_s4 = smov 128  }
  0xcf   : > { %s8001_s13 = scalar_lea.sflag [#allocation3], %s6768_s26  ;;  %s4845_s22 = sshll.u32 %s6768_s26, 5 }
  0xd0   : > { %5511 = dma.hbm_to_vmem [thread:$0]  (!%p6781_p10), %s6779_s27, 256, %s6785_s6, %s8001_s13, %s8000_s4, %s8000_s4, %s7999_s9  }
  0xd1   : > { %s5022_s17 = sshll.u32 %s6447_s30, 9  ;;  %s8002_s25 = sld [smem:[#allocation40_spill]] }
  0xd2   : > { %s759_s12 = scalar_lea.vmem [#allocation5], %s4845_s22  ;;  %s8003_s16 = sand.u32 1, %s6447_s30  }
  0xd3   : > { %s767_s14 = sshll.u32 %s759_s12, 4  ;;  %s756_s0 = scalar_lea.sflag [#allocation6], %s8003_s16  ;;  %s6825_s14 = int_to_ptr.vmem [resolvable:$true] %s767_s14 }
  0xd7   : > { %s6823_s5 = scalar_lea.hbm %s8002_s25, %s5022_s17  ;;  %s6276_s27 = scalar_lea.hbm %s8002_s25, 1024 }
  0xd8   : > { %s6271_s29 = scalar_lea.hbm %s6823_s5, 512  ;;  %p6277_p5 = scmp.lt.s32.totalorder %s6823_s5, %s8002_s25 }
  0xd9   : > { %p6272_p6 = scmp.ne.s32.totalorder %s6823_s5, %s6271_s29  ;;  %p6278_p1 = scmp.lt.s32.totalorder %s6276_s27, %s6271_s29 }
  0xdb   : > { %p6274_p11 = pnand %p6272_p6, %p6245_p7  ;;  %p6279_p3 = por %p6278_p1, %p6277_p5 }
  0xdd   : > { %p6275_p0 = pneg %p6274_p11 }
  0xdf   : > { %p6280_p8 = pnand %p6279_p3, %p6275_p0 }
  0xe1   : > { %6283 = shalt.err (!%p6280_p8)
}
  0xe2   : > { %s6284_s12 = scalar_lea.vmem %s6825_s14, 512  ;;  %s6467_s16 = smov [#allocation5]  }
  0xe3   : > { %p6285_p9 = scmp.ne.s32.totalorder %s6825_s14, %s6284_s12  ;;  %s6289_s22 = sshll.u32 %s6467_s16, 4  ;;  %s6290_s22 = int_to_ptr.vmem [resolvable:$false] %s6289_s22 }
  0xe4   : > { %s6291_s7 = scalar_lea.vmem %s6290_s22, 1024  ;;  %p6292_p2 = scmp.lt.s32.totalorder %s6825_s14, %s6290_s22 }
  0xe5   : > { %p6287_p12 = pnand %p6285_p9, %p6245_p7  ;;  %p6293_p6 = scmp.lt.s32.totalorder %s6291_s7, %s6284_s12 }
  0xe7   : > { %p6288_p13 = pneg %p6287_p12  ;;  %p6294_p11 = por %p6293_p6, %p6292_p2 }
  0xe9   : > { %p6295_p5 = pnand %p6294_p11, %p6288_p13 }
  0xeb   : > { %6298 = shalt.err (!%p6295_p5)
}
  0xec   : > { %5514 = dma.hbm_to_vmem [thread:$0]  (!%p6781_p10), %s6823_s5, 512, %s6825_s14, %s756_s0, %s8000_s4, %s8000_s4, %s7999_s9  }
  0xed   : > { %p8004_p7 = scmp.ne.s32.totalorder %s7978_s1, 0 }
  0xee   : > { %s6857_s29 = sand.u32 (!%p8004_p7), 1, %s6439_s28  }
  0xef   : > { %779 = sbr.rel (%p8004_p7) target bundleno = 4411 (0x113b), region = 100  ;;  %s6860_s8 = sshll.u32 (!%p8004_p7), %s6857_s29, 4 }
  0xf0   : > { %s782_s6 = scalar_lea.sflag (!%p8004_p7), [#allocation3], %s6857_s29  ;;  %s6864_s15 = scalar_lea.vmem (!%p8004_p7), [#allocation2], %s6860_s8 }
  0xf4   : > { %6394 = dma.done.wait (%p6756_p4), %s782_s6, 256  }
  0xf5   : > { %6396 = vsyncadd (%p6756_p4), %s782_s6, 4294967040  ;;  %s790_s14 = sand.u32 1, %s6616_s23   ;;  %s4851_s1 = sshll.u32 %s6857_s29, 5 }
  0xf6   : > { %s791_s0 = scalar_lea.sflag [#allocation6], %s790_s14  ;;  %s6874_s5 = scalar_lea.vmem [#allocation5], %s4851_s1 }
  0xf7   : > { %6398 = dma.done.wait (%p6756_p4), %s791_s0, 512  }
  0xf8   : > { %6400 = vsyncadd (%p6756_p4), %s791_s0, 4294966784  ;;  %p8005_p10 = scmp.eq.s32.totalorder %s6616_s23, 0 }
  0xfa   : > { %6402 = dma.done.wait (%p8005_p10), [#allocation6], 3072   ;;  %p8006_p0 = pmov %p8005_p10 }
  0xfc   : > { %6404 = vsyncadd (%p8006_p0), [#allocation6], 4294964224  ;;  %p8007_p1 = pmov %p8006_p0 }
  0xfd   : > { %p8008_p3 = pmov %p8006_p0 }
  0xfe   : > { %6406 = dma.done.wait (%p8007_p1), [#allocation9], 176  }
  0xff   : > { %6408 = vsyncadd (%p8008_p3), [#allocation9], 4294967120  ;;  %p8009_p8 = pmov %p8006_p0 }
 0x100   : > { %p8010_p9 = pmov %p8006_p0 }
 0x101   : > { %6410 = dma.done.wait (%p8009_p8), [#allocation12], 1040  }
 0x102   : > { %6412 = vsyncadd (%p8010_p9), [#allocation12], 4294966256  ;;  %p8011_p4 = pmov %p8006_p0 }
 0x103   : > { %p8012_p12 = pmov %p8006_p0 }
 0x104   : > { %6414 = dma.done.wait (%p8011_p4), [#allocation15], 1040  }
 0x105   : > { %6416 = vsyncadd (%p8012_p12), [#allocation15], 4294966256  ;;  %p8013_p13 = pmov %p8006_p0 }
 0x106   : > { %p8014_p2 = pmov %p8006_p0 }
 0x107   : > { %6418 = dma.done.wait (%p8013_p13), [#allocation18], 3072  }
 0x108   : > { %6420 = vsyncadd (%p8014_p2), [#allocation18], 4294964224  ;;  %p8015_p6 = pmov %p8006_p0 }
 0x109   : > { %p8016_p11 = pmov %p8006_p0 }
 0x10a   : > { %6422 = dma.done.wait (%p8015_p6), [#allocation21], 4096  }
 0x10b   : > { %6424 = vsyncadd (%p8016_p11), [#allocation21], 4294963200  ;;  %v920_v0 = vld [vmem:[%s6864_s15] sm:$0xff]  ;;  %v921_v1 = vld [vmem:[%s6864_s15 + $0x8] sm:$0xff]  ;;  %v6468_v4 = vmov 0.0   ;;  %v6469_v27 = vmov 0   ;;  %v998_v53 = vlaneseq }
 0x10c   : > { %928 = vadd.xlane.f32.xlu0 %v920_v0  ;;  %v5727_v2 = vld [vmem:[#allocation7 + $0xac] ss:$12 sps:$4 sm:$0xff]   ;;  %v5729_v3 = vld [vmem:[#allocation7 + $0xa8] ss:$12 sps:$4 sm:$0xff]   ;;  %5148 = vmatprep.subr.bf16.mxu1 %v6468_v4  ;;  %v5730_v5 = vld [vmem:[#allocation7 + $0xb0] ss:$12 sps:$4 sm:$0xff]  }
 0x10d   : > { %1141 = vmatprep.subr.bf16.mxu0 %v5727_v2  ;;  %5149 = vmatpush3.bf16.msra.mxu1 %v5730_v5  ;;  %v5731_v14 = vld [vmem:[#allocation7 + $0x94] ss:$12 sps:$4 sm:$0xff]   ;;  %v5733_v15 = vld [vmem:[#allocation7 + $0x90] ss:$12 sps:$4 sm:$0xff]   ;;  %v5734_v16 = vld [vmem:[#allocation7 + $0x98] ss:$12 sps:$4 sm:$0xff]  }
 0x10e   : > { %1142 = vmatpush1.bf16.msra.mxu0 %v5729_v3  ;;  %5150 = vmatprep.subr.bf16.mxu1 %v6468_v4  ;;  %v5735_v17 = vld [vmem:[#allocation7 + $0x7c] ss:$12 sps:$4 sm:$0xff]   ;;  %v5737_v18 = vld [vmem:[#allocation7 + $0x78] ss:$12 sps:$4 sm:$0xff]   ;;  %v5738_v19 = vld [vmem:[#allocation7 + $0x80] ss:$12 sps:$4 sm:$0xff]  }
 0x10f   : > { %1143 = vmatprep.subr.bf16.mxu0 %v5731_v14  ;;  %v5739_v20 = vld [vmem:[#allocation7 + $0x64] ss:$12 sps:$4 sm:$0xff]   ;;  %v5741_v21 = vld [vmem:[#allocation7 + $0x60] ss:$12 sps:$4 sm:$0xff]   ;;  %v5742_v22 = vld [vmem:[#allocation7 + $0x68] ss:$12 sps:$4 sm:$0xff]   ;;  %1173 = vmatprep.mubr.bf16.mxu0 %v6469_v27 }
 0x110   : > { %930 = vadd.xlane.f32.xlu0 %v921_v1  ;;  %v5743_v23 = vld [vmem:[#allocation7 + $0x4c] ss:$12 sps:$4 sm:$0xff]   ;;  %v5745_v24 = vld [vmem:[#allocation7 + $0x48] ss:$12 sps:$4 sm:$0xff]   ;;  %v5746_v25 = vld [vmem:[#allocation7 + $0x50] ss:$12 sps:$4 sm:$0xff]  }
 0x111   : > { %5151 = vmatpush3.bf16.msra.mxu1 %v5734_v16  ;;  %v5747_v26 = vld [vmem:[#allocation7 + $0x34] ss:$12 sps:$4 sm:$0xff]   ;;  %vm6470_vm0 = vmmov 0   ;;  %v5749_v28 = vld [vmem:[#allocation7 + $0x30] ss:$12 sps:$4 sm:$0xff]   ;;  %v999_v54 = vshrl.u32 %v998_v53, 7 }
 0x112   : > { %1144 = vmatpush1.bf16.msra.mxu0 %v5733_v15  ;;  %5152 = vmatprep.subr.bf16.mxu1 %v6468_v4  ;;  %v5750_v29 = vld [vmem:[#allocation7 + $0x38] ss:$12 sps:$4 sm:$0xff]   ;;  %v5751_v30 = vld [vmem:[#allocation7 + $0x1c] ss:$12 sps:$4 sm:$0xff]   ;;  %v5754_v32 = vld [vmem:[#allocation7 + $0x20] ss:$12 sps:$4 sm:$0xff]  }
 0x113   : > { %1145 = vmatprep.subr.bf16.mxu0 %v5735_v17  ;;  %5164 = vmatprep.mubr.msk.bf16.mxu1 %vm6470_vm0, %v6468_v4  ;;  %v5753_v31 = vld [vmem:[#allocation7 + $0x18] ss:$12 sps:$4 sm:$0xff]   ;;  %v5757_v34 = vld [vmem:[#allocation7] ss:$12 sps:$4 sm:$0xff]   ;;  %v5758_v35 = vld [vmem:[#allocation7 + $0x8] ss:$12 sps:$4 sm:$0xff]  }
 0x114   : > { %v5755_v33 = vld [vmem:[#allocation7 + $0x4] ss:$12 sps:$4 sm:$0xff]   ;;  %v4866_v44 = vld [vmem:[%s7938_s18] ss:$0 sm:$0xff]  ;;  %v6939_v55 = vsub.s32 0, %v999_v54  ;;  %v6941_v57 = vsub.s32 1, %v999_v54 }
 0x115   : > { %5153 = vmatpush3.bf16.msra.mxu1 %v5738_v19  ;;  %v4867_v48 = vld [vmem:[%s7939_s19] ss:$0 sm:$0xff]  ;;  %v1008_v59 = vsub.s32 2, %v999_v54  ;;  %s6471_s27 = smov 96   ;;  %vm1304_vm1 = vcmask 261120   ;;  %s6472_s13 = smov 64  }
 0x116   : > { %1146 = vmatpush1.bf16.msra.mxu0 %v5737_v18  ;;  %5154 = vmatprep.subr.bf16.mxu1 %v6468_v4  ;;  %v996_v56 = vld [vmem:[#allocation8] sm:$0x7]  ;;  %s6473_s17 = smov 32   ;;  %vm1914_vm2 = vcmask 1043456   ;;  %vm1750_vm3 = vcmask 64512   ;;  %vm2512_vm4 = vcmask 72704  }
 0x117   : > { %1147 = vmatprep.subr.bf16.mxu0 %v5739_v20  ;;  %v1001_v58 = vrot.slane %v996_v56, %v6939_v55  ;;  %v1005_v60 = vrot.slane %v996_v56, %v6941_v57  ;;  %s7292_s12 = scalar_lea.vmem [#allocation24], %s6860_s8  ;;  %vm2367_vm5 = vcmask 523264   ;;  %vm2370_vm6 = vcmask 785408   ;;  %s7707_s20 = scalar_lea.vmem [#allocation26], %s6860_s8 }
 0x118   : > { %vm3395_vm7 = vcmask 130048   ;;  %vm4130_vm8 = vcmask 138240   ;;  %s8018_s1 = sld [smem:[#allocation52_spill]]  ;;  %s4567_s0 = sshll.u32 %s7707_s20, 4  ;;  %s7806_s0 = int_to_ptr.vmem [resolvable:$true] %s4567_s0 }
 0x119   : > { %5155 = vmatpush3.bf16.msra.mxu1 %v5742_v22  ;;  %s8019_s26 = sld [smem:[#allocation56_spill]]  ;;  %p8020_p7 = scmp.ne.s32.totalorder %s7995_s21, 0 }
 0x11a   : > { %1148 = vmatpush1.bf16.msra.mxu0 %v5741_v21  ;;  %5156 = vmatprep.subr.bf16.mxu1 %v6468_v4  ;;  %v6474_v21 = vmov 1966171168   ;;  %s6475_s16 = smov [#allocation24]  }
 0x11b   : > { %1149 = vmatprep.subr.bf16.mxu0 %v5743_v23  ;;  %v1683_v22 = vunpack.c.l.s4 %v6474_v21  ;;  %s6303_s22 = sshll.u32 %s6475_s16, 4  ;;  %s6304_s22 = int_to_ptr.vmem [resolvable:$false] %s6303_s22 }
 0x11c   : > { %s6305_s7 = scalar_lea.vmem %s6304_s22, 512 }
 0x11d   : > { %5157 = vmatpush3.bf16.msra.mxu1 %v5746_v25  ;;  %v1684_v23 = vunpack.c.0.s8 %v1683_v22  ;;  %v4900_v25 = vld.sshfl [vmem:[#allocation10] sm:$0x33 pattern:$0x75316420] }
 0x11e   : > { %1150 = vmatpush1.bf16.msra.mxu0 %v5745_v24  ;;  %5158 = vmatprep.subr.bf16.mxu1 %v6468_v4 }
 0x11f   : > { %1151 = vmatprep.subr.bf16.mxu0 %v5747_v26  ;;  %v6972_v24 = vsub.s32 %v1684_v23, %v999_v54 }
 0x121   : > { %5159 = vmatpush3.bf16.msra.mxu1 %v5750_v29  ;;  %v6975_v26 = vrot.slane %v4900_v25, %v6972_v24 }
 0x122   : > { %1152 = vmatpush1.bf16.msra.mxu0 %v5749_v28  ;;  %5160 = vmatprep.subr.bf16.mxu1 %v6468_v4 }
 0x123   : > { %1153 = vmatprep.subr.bf16.mxu0 %v5751_v30  ;;  %v1701_v28 = vrot.slane %v6975_v26, %v6939_v55 }
 0x125   : > { %5161 = vmatpush3.bf16.msra.mxu1 %v5754_v32 }
 0x126   : > { %1154 = vmatpush1.bf16.msra.mxu0 %v5753_v31  ;;  %5162 = vmatprep.subr.bf16.mxu1 %v6468_v4 }
 0x127   : > { %1155 = vmatprep.subr.bf16.mxu0 %v5755_v33  ;;  %v1681_v33 = vcombine.high %v4900_v25, %v4900_v25 }
 0x129   : > { %5163 = vmatpush3.bf16.msra.mxu1 %v5758_v35 }
 0x12a   : > { %1156 = vmatpush1.bf16.msra.mxu0 %v5757_v34  ;;  %5186 = vmatprep.subr.bf16.mxu1 %v6468_v4  ;;  %v6982_v34 = vrot.slane %v1681_v33, %v6972_v24 }
 0x12b   : > { %5168 = vmatprep.subr.bf16.mxu0 %v6468_v4 }
 0x12c   : > { %v1705_v35 = vrot.slane %v6982_v34, %v6939_v55 }
 0x195   : > { %v929_v6 = vpop.xlane.xlu0 %928 }
 0x196   : > { %v933_v7 = vmul.f32 0.0078125, %v929_v6 }
 0x198   : > { %v6908_v8 = vsub.f32 %v920_v0, %v933_v7  ;;  %v1009_v0 = vrot.slane %v996_v56, %v1008_v59 }
 0x199   : > { %v931_v9 = vpop.xlane.xlu0 %930 }
 0x19a   : > { %v934_v10 = vmul.f32 0.0078125, %v931_v9  ;;  %v937_v11 = vmul.f32 %v6908_v8, %v6908_v8 }
 0x19c   : > { %v6912_v12 = vsub.f32 %v921_v1, %v934_v10  ;;  %939 = vadd.xlane.f32.xlu1 %v937_v11 }
 0x19e   : > { %v938_v13 = vmul.f32 %v6912_v12, %v6912_v12 }
 0x1a0   : > { %941 = vadd.xlane.f32.xlu1 %v938_v13 }
 0x225   : > { %v940_v36 = vpop.xlane.xlu1 %939 }
 0x226   : > { %v943_v37 = vmul.f32 0.0078125, %v940_v36 }
 0x228   : > { %v945_v38 = vadd.f32 1e-05, %v943_v37 }
 0x229   : > { %v942_v39 = vpop.xlane.xlu1 %941 }
 0x22a   : > { %5847 = vrsqrt.f32 %v945_v38  ;;  %v944_v40 = vmul.f32 0.0078125, %v942_v39 }
 0x22c   : > { %v946_v41 = vadd.f32 1e-05, %v944_v40 }
 0x22e   : > { %5849 = vrsqrt.f32 %v946_v41 }
 0x237   : > { %v5848_v42 = vpop.eup %5847 }
 0x238   : > { %v949_v43 = vmul.f32 %v5848_v42, %v6908_v8 }
 0x23a   : > { %v955_v47 = vmul.f32 %v4866_v44, %v949_v43 }
 0x23b   : > { %v5850_v45 = vpop.eup %5849 }
 0x23c   : > { %v950_v46 = vmul.f32 %v5850_v45, %v6912_v12  ;;  %v961_v50 = vadd.f32 %v4867_v48, %v955_v47 }
 0x23e   : > { %v956_v49 = vmul.f32 %v4866_v44, %v950_v46 }
 0x240   : > { %v962_v51 = vadd.f32 %v4867_v48, %v956_v49 }
 0x242   : > { %v963_v52 = vpack.c.bf16 %v962_v51, %v961_v50 }
 0x244   : > { %1174 = vmatmul.mubr.bf16.vlgmr.msra.gmra.mxu0 %v963_v52  ;;  %5165 = vmatmul.mubr.bf16.vlgmr.msra.gmra.mxu1 %v963_v52 }
 0x245   : > { %5170 = vmatprep.mubr.msk.bf16.mxu0 %vm6470_vm0, %v6468_v4  ;;  %5188 = vmatprep.mubr.msk.bf16.mxu1 %vm6470_vm0, %v6468_v4 }
 0x304   : > { %v1175_v61 = vpop.f32.mrf.mxu0  ;;  %v1218_v62 = vpop.f32.mrf.mxu1 }
 0x305   : > { %v1176_v63 = vadd.f32 %v1175_v61, %v1001_v58  ;;  %v6948_v10 = vadd.f32 %v1218_v62, %v1009_v0 }
 0x306   : > { %v1177_v1 = vpop.f32.mrf.mxu0  ;;  %v5166_v2 = vpop.f32.mrf.mxu1 }
 0x307   : > { %v1178_v3 = vadd.f32 %v1177_v1, %v1005_v60  ;;  %1227 = vrot.lane.b32.xlu1 %v1176_v63, %s6471_s27  ;;  %v1288_v18 = vpack.c.bf16 %v1176_v63, %v1176_v63  ;;  %v1718_v30 = vmul.f32 %v1701_v28, %v1176_v63 }
 0x308   : > { %v1179_v5 = vpop.f32.mrf.mxu0  ;;  %v1221_v6 = vpop.f32.mrf.mxu1 }
 0x309   : > { %v1180_v7 = vadd.f32 %v1179_v5, %v1001_v58  ;;  %v6946_v8 = vadd.f32 %v1221_v6, %v1009_v0  ;;  %v1296_v9 = vpack.c.bf16 %v1178_v3, %v1178_v3  ;;  %v1726_v32 = vsel %vm1304_vm1, %v1718_v30, 0.0 }
 0x30a   : > { %v1181_v11 = vpop.f32.mrf.mxu0  ;;  %v5167_v12 = vpop.f32.mrf.mxu1  ;;  %v1696_v30 = vcombine.high %v6975_v26, %v6975_v26 }
 0x30b   : > { %v1182_v13 = vadd.f32 %v1181_v11, %v1005_v60  ;;  %1229 = vrot.lane.b32.xlu1 %v1180_v7, %s6471_s27  ;;  %v1309_v14 = vsel %vm1304_vm1, %v1296_v9, 0  ;;  %v6954_v15 = vpack.i.bf16 %v6946_v8, %v6948_v10  ;;  %v1289_v20 = vpack.c.bf16 %v1180_v7, %v1180_v7 }
 0x30c   : > { %5169 = vmatpush3.bf16.xpose.msra.mxu0 %v1309_v14  ;;  %v1719_v29 = vmul.f32 %v1701_v28, %v1180_v7  ;;  %v1903_v11 = vpack.c.bf16 %v6948_v10, %v6948_v10  ;;  %v1904_v12 = vpack.c.bf16 %v6946_v8, %v6946_v8 }
 0x30d   : > { %v5607_v16 = vpack.i.bf16 %v1182_v13, %v1178_v3  ;;  %5174 = vmatprep.subr.bf16.mxu0 %v6468_v4  ;;  %v1297_v17 = vpack.c.bf16 %v1182_v13, %v1182_v13 }
 0x30e   : > { %v1729_v31 = vsel %vm1304_vm1, %v1719_v29, 0.0 }
 0x30f   : > { %5608 = vrot.lane.b32.xlu0 %v5607_v16, %s6471_s27  ;;  %5613 = vrot.lane.b32.xlu1 %v5607_v16, %s6472_s13  ;;  %v1355_v19 = vsel %vm1304_vm1, %v1297_v17, 0  ;;  %v1962_v17 = vsel %vm1914_vm2, %v1904_v12, 0 }
 0x313   : > { %1233 = vrot.lane.b32.xlu0 %v1176_v63, %s6472_s13  ;;  %1235 = vrot.lane.b32.xlu1 %v1180_v7, %s6472_s13 }
 0x314   : > { %5171 = vmatmul.mubr.msk.bf16.vlgmr.msra.gmra.mxu0 %vm1304_vm1, %v1288_v18 }
 0x315   : > { %5175 = vmatpush3.bf16.xpose.msra.mxu0 %v1355_v19  ;;  %5176 = vmatprep.mubr.msk.bf16.mxu0 %vm6470_vm0, %v6468_v4 }
 0x316   : > { %5180 = vmatprep.subr.bf16.mxu0 %v6468_v4 }
 0x317   : > { %5618 = vrot.lane.b32.xlu0 %v5607_v16, %s6473_s17  ;;  %1239 = vrot.lane.b32.xlu1 %v1176_v63, %s6473_s17  ;;  %v1916_v16 = vsel %vm1914_vm2, %v1903_v11, 0 }
 0x31b   : > { %1241 = vrot.lane.b32.xlu0 %v1180_v7, %s6473_s17 }
 0x31c   : > { %5177 = vmatmul.mubr.msk.bf16.vlgmr.msra.gmra.mxu0 %vm1304_vm1, %v1289_v20 }
 0x31d   : > { %5182 = vmatprep.mubr.msk.bf16.mxu0 %vm6470_vm0, %v6468_v4 }
 0x33a   : > { %1730 = vadd.xlane.f32.xlu0 %v1729_v31  ;;  %v1709_v31 = vrot.slane %v1696_v30, %v6939_v55 }
 0x33b   : > { %1727 = vadd.xlane.f32.xlu1 %v1726_v32  ;;  %v1697_v32 = vcombine.high %v6982_v34, %v6982_v34 }
 0x33d   : > { %v1713_v34 = vrot.slane %v1697_v32, %v6939_v55 }
 0x379   : > { %v1228_v36 = vpop.permute.xlu1 %1227 }
 0x37a   : > { %v1720_v37 = vmul.f32 %v1705_v35, %v1228_v36  ;;  %v1290_v56 = vpack.c.bf16 %v1228_v36, %v1228_v36 }
 0x37c   : > { %v1732_v38 = vsel %vm1304_vm1, %v1720_v37, 0.0 }
 0x37d   : > { %v1230_v39 = vpop.permute.xlu1 %1229  ;;  %1733 = vadd.xlane.f32.xlu1 %v1732_v38 }
 0x37e   : > { %v6987_v40 = vmul.f32 %v1705_v35, %v1230_v39  ;;  %v1291_v58 = vpack.c.bf16 %v1230_v39, %v1230_v39 }
 0x380   : > { %v1735_v28 = vsel %vm1304_vm1, %v6987_v40, 0.0 }
 0x381   : > { %v5609_v41 = vpop.permute.xlu0 %5608  ;;  %v5614_v46 = vpop.permute.xlu1 %5613 }
 0x382   : > { %v5611_v42 = vunpack.i.h.bf16 %v5609_v41  ;;  %v5610_v43 = vunpack.i.l.bf16 %v5609_v41  ;;  %v5616_v48 = vunpack.i.h.bf16 %v5614_v46  ;;  %v5615_v49 = vunpack.i.l.bf16 %v5614_v46 }
 0x384   : > { %v1299_v44 = vpack.c.bf16 %v5611_v42, %v5611_v42  ;;  %v1298_v45 = vpack.c.bf16 %v5610_v43, %v5610_v43  ;;  %v1301_v52 = vpack.c.bf16 %v5616_v48, %v5616_v48  ;;  %v1300_v53 = vpack.c.bf16 %v5615_v49, %v5615_v49 }
 0x385   : > { %v6989_v47 = vpop.permute.xlu0 %1233  ;;  %v1236_v63 = vpop.permute.xlu1 %1235 }
 0x386   : > { %v1401_v50 = vsel %vm1304_vm1, %v1298_v45, 0  ;;  %v1447_v51 = vsel %vm1304_vm1, %v1299_v44, 0  ;;  %v1493_v61 = vsel %vm1304_vm1, %v1300_v53, 0  ;;  %v1539_v62 = vsel %vm1304_vm1, %v1301_v52, 0 }
 0x387   : > { %5181 = vmatpush3.bf16.xpose.msra.mxu0 %v1401_v50  ;;  %5187 = vmatpush3.bf16.xpose.msra.mxu1 %v1447_v51  ;;  %v1292_v2 = vpack.c.bf16 %v6989_v47, %v6989_v47  ;;  %v1293_v3 = vpack.c.bf16 %v1236_v63, %v1236_v63  ;;  %v1722_v36 = vmul.f32 %v1709_v31, %v6989_v47 }
 0x388   : > { %5192 = vmatprep.subr.bf16.mxu0 %v6468_v4  ;;  %5198 = vmatprep.subr.bf16.mxu1 %v6468_v4  ;;  %v1723_v37 = vmul.f32 %v1709_v31, %v1236_v63 }
 0x389   : > { %v5619_v54 = vpop.permute.xlu0 %5618  ;;  %v1240_v7 = vpop.permute.xlu1 %1239  ;;  %v1738_v44 = vsel %vm1304_vm1, %v1722_v36, 0.0 }
 0x38a   : > { %v5621_v59 = vunpack.i.h.bf16 %v5619_v54  ;;  %v5620_v60 = vunpack.i.l.bf16 %v5619_v54  ;;  %v1294_v13 = vpack.c.bf16 %v1240_v7, %v1240_v7  ;;  %v1741_v43 = vsel %vm1304_vm1, %v1723_v37, 0.0 }
 0x38b   : > { %v1724_v49 = vmul.f32 %v1713_v34, %v1240_v7 }
 0x38c   : > { %v1303_v0 = vpack.c.bf16 %v5621_v59, %v5621_v59  ;;  %v1302_v1 = vpack.c.bf16 %v5620_v60, %v5620_v60 }
 0x38d   : > { %v1242_v9 = vpop.permute.xlu0 %1241 }
 0x38e   : > { %5183 = vmatmul.mubr.msk.bf16.vlgmr.msra.gmra.mxu0 %vm1304_vm1, %v1290_v56  ;;  %5189 = vmatmul.mubr.msk.bf16.vlgmr.msra.gmra.mxu1 %vm1304_vm1, %v1291_v58  ;;  %v1585_v5 = vsel %vm1304_vm1, %v1302_v1, 0  ;;  %v1631_v6 = vsel %vm1304_vm1, %v1303_v0, 0  ;;  %v1295_v14 = vpack.c.bf16 %v1242_v9, %v1242_v9  ;;  %v1725_v50 = vmul.f32 %v1713_v34, %v1242_v9 }
 0x38f   : > { %5193 = vmatpush3.bf16.xpose.msra.mxu0 %v1493_v61  ;;  %5199 = vmatpush3.bf16.xpose.msra.mxu1 %v1539_v62  ;;  %v1744_v61 = vsel %vm1304_vm1, %v1724_v49, 0.0 }
 0x390   : > { %5194 = vmatprep.mubr.msk.bf16.mxu0 %vm6470_vm0, %v6468_v4  ;;  %5200 = vmatprep.mubr.msk.bf16.mxu1 %vm6470_vm0, %v6468_v4  ;;  %v1747_v60 = vsel %vm1304_vm1, %v1725_v50, 0.0 }
 0x391   : > { %5204 = vmatprep.subr.bf16.mxu0 %v6468_v4  ;;  %5210 = vmatprep.subr.bf16.mxu1 %v6468_v4 }
 0x396   : > { %5195 = vmatmul.mubr.msk.bf16.vlgmr.msra.gmra.mxu0 %vm1304_vm1, %v1292_v2  ;;  %5201 = vmatmul.mubr.msk.bf16.vlgmr.msra.gmra.mxu1 %vm1304_vm1, %v1293_v3 }
 0x397   : > { %5205 = vmatpush3.bf16.xpose.msra.mxu0 %v1585_v5  ;;  %5211 = vmatpush3.bf16.xpose.msra.mxu1 %v1631_v6 }
 0x398   : > { %5206 = vmatprep.mubr.msk.bf16.mxu0 %vm6470_vm0, %v6468_v4  ;;  %5212 = vmatprep.mubr.msk.bf16.mxu1 %vm6470_vm0, %v6468_v4 }
 0x399   : > { %5216 = vmatprep.subr.bf16.mxu0 %v6468_v4  ;;  %5222 = vmatprep.subr.bf16.mxu1 %v6468_v4 }
 0x39e   : > { %5207 = vmatmul.mubr.msk.bf16.vlgmr.msra.gmra.mxu0 %vm1304_vm1, %v1294_v13  ;;  %5213 = vmatmul.mubr.msk.bf16.vlgmr.msra.gmra.mxu1 %vm1304_vm1, %v1295_v14 }
 0x39f   : > { %5217 = vmatpush3.bf16.msra.mxu0 %v1916_v16  ;;  %5223 = vmatpush3.bf16.msra.mxu1 %v1962_v17 }
 0x3a0   : > { %5218 = vmatprep.mubr.msk.bf16.mxu0 %vm6470_vm0, %v6468_v4  ;;  %5228 = vmatprep.subr.bf16.mxu0 %v6468_v4 }
 0x3a1   : > { %5224 = vmatprep.mubr.msk.bf16.mxu1 %vm6470_vm0, %v6468_v4  ;;  %5234 = vmatprep.subr.bf16.mxu1 %v6468_v4 }
 0x3c3   : > { %v7066_v56 = vpop.xlane.xlu0 %1730 }
 0x3c4   : > { %v7070_v0 = vpop.xlane.xlu1 %1727 }
 0x3d4   : > { %v7031_v8 = vpop.f32.mrf.mxu0 }
 0x3d5   : > { %v1751_v10 = vsel %vm1750_vm3, %v7031_v8, -inf }
 0x3d6   : > { %1752 = vmax.xlane.f32.xlu0 %v1751_v10  ;;  %v5172_v18 = vpop.f32.mrf.mxu0 }
 0x3d8   : > { %v1348_v19 = vpop.f32.mrf.mxu0 }
 0x3da   : > { %v5173_v20 = vpop.f32.mrf.mxu0 }
 0x3dc   : > { %v7035_v21 = vpop.f32.mrf.mxu0 }
 0x3dd   : > { %v1754_v22 = vsel %vm1750_vm3, %v7035_v21, -inf }
 0x3de   : > { %1755 = vmax.xlane.f32.xlu0 %v1754_v22  ;;  %v5178_v23 = vpop.f32.mrf.mxu0 }
 0x3e0   : > { %v1394_v25 = vpop.f32.mrf.mxu0 }
 0x3e2   : > { %1736 = vadd.xlane.f32.xlu0 %v1735_v28  ;;  %v5179_v29 = vpop.f32.mrf.mxu0 }
 0x44e   : > { %v7046_v33 = vpop.f32.mrf.mxu0  ;;  %v7048_v35 = vpop.f32.mrf.mxu1 }
 0x44f   : > { %v1760_v38 = vsel %vm1750_vm3, %v7048_v35, -inf  ;;  %v1757_v39 = vsel %vm1750_vm3, %v7046_v33, -inf }
 0x450   : > { %v5190_v40 = vpop.f32.mrf.mxu1  ;;  %1761 = vmax.xlane.f32.xlu0 %v1760_v38  ;;  %1758 = vmax.xlane.f32.xlu1 %v1757_v39  ;;  %v5184_v26 = vpop.f32.mrf.mxu0 }
 0x452   : > { %v1440_v41 = vpop.f32.mrf.mxu0  ;;  %v1486_v42 = vpop.f32.mrf.mxu1 }
 0x454   : > { %v5191_v45 = vpop.f32.mrf.mxu1  ;;  %1742 = vadd.xlane.f32.xlu0 %v1741_v43  ;;  %1739 = vadd.xlane.f32.xlu1 %v1738_v44  ;;  %v5185_v46 = vpop.f32.mrf.mxu0 }
 0x456   : > { %v7058_v47 = vpop.f32.mrf.mxu0  ;;  %v7060_v48 = vpop.f32.mrf.mxu1 }
 0x457   : > { %v1766_v51 = vsel %vm1750_vm3, %v7060_v48, -inf  ;;  %v1763_v52 = vsel %vm1750_vm3, %v7058_v47, -inf }
 0x458   : > { %v5202_v53 = vpop.f32.mrf.mxu1  ;;  %1767 = vmax.xlane.f32.xlu0 %v1766_v51  ;;  %1764 = vmax.xlane.f32.xlu1 %v1763_v52  ;;  %v5196_v54 = vpop.f32.mrf.mxu0 }
 0x45a   : > { %v1532_v58 = vpop.f32.mrf.mxu0  ;;  %v1578_v59 = vpop.f32.mrf.mxu1 }
 0x45c   : > { %v5203_v62 = vpop.f32.mrf.mxu1  ;;  %1748 = vadd.xlane.f32.xlu0 %v1747_v60  ;;  %1745 = vadd.xlane.f32.xlu1 %v1744_v61  ;;  %v5197_v63 = vpop.f32.mrf.mxu0 }
 0x45e   : > { %v7072_v1 = vpop.f32.mrf.mxu1  ;;  %v7075_v5 = vpop.f32.mrf.mxu0 }
 0x45f   : > { %v1753_v2 = vpop.xlane.xlu0 %1752  ;;  %v1772_v6 = vsel %vm1750_vm3, %v7072_v1, -inf  ;;  %v1769_v9 = vsel %vm1750_vm3, %v7075_v5, -inf }
 0x460   : > { %v1775_v3 = vmax.f32 %v1753_v2, %v7070_v0  ;;  %v5214_v7 = vpop.f32.mrf.mxu1  ;;  %1773 = vmax.xlane.f32.xlu0 %v1772_v6  ;;  %1770 = vmax.xlane.f32.xlu1 %v1769_v9  ;;  %v5208_v12 = vpop.f32.mrf.mxu0 }
 0x462   : > { %v1783_v11 = vsub.f32 %v7031_v8, %v1775_v3  ;;  %v1670_v13 = vpop.f32.mrf.mxu1  ;;  %v1624_v16 = vpop.f32.mrf.mxu0  ;;  %v1807_v58 = vsub.f32 %v7070_v0, %v1775_v3 }
 0x464   : > { %v1791_v14 = vmul.f32 1.442695, %v1783_v11  ;;  %v5215_v17 = vpop.f32.mrf.mxu1  ;;  %v5209_v10 = vpop.f32.mrf.mxu0  ;;  %v1815_v61 = vmul.f32 1.442695, %v1807_v58 }
 0x466   : > { %5851 = vpow2.f32 %v1791_v14 }
 0x467   : > { %v1756_v18 = vpop.xlane.xlu0 %1755 }
 0x468   : > { %v7083_v19 = vmax.f32 %v1756_v18, %v7066_v56 }
 0x46a   : > { %v1784_v20 = vsub.f32 %v7035_v21, %v7083_v19  ;;  %v1808_v22 = vsub.f32 %v7066_v56, %v7083_v19  ;;  %v7099_v21 = vpop.xlane.xlu1 %1733 }
 0x46b   : > { %v7101_v30 = vpop.xlane.xlu0 %1736 }
 0x46c   : > { %v1793_v23 = vmul.f32 1.442695, %v1784_v20  ;;  %v1817_v12 = vmul.f32 1.442695, %v1808_v22 }
 0x46e   : > { %5853 = vpow2.f32 %v1793_v23 }
 0x473   : > { %v7089_v8 = vpop.eup %5851 }
 0x474   : > { %v1831_v25 = vsel %vm1750_vm3, %v7089_v8, 0.0 }
 0x475   : > { %1832 = vadd.xlane.f32.xlu1 %v1831_v25 }
 0x47b   : > { %v7093_v28 = vpop.eup %5853 }
 0x47c   : > { %v1834_v29 = vsel %vm1750_vm3, %v7093_v28, 0.0 }
 0x47d   : > { %1835 = vadd.xlane.f32.xlu0 %v1834_v29 }
 0x486   : > { %5623 = vrot.lane.b32.xlu1 %v6954_v15, %s6471_s27 }
 0x4d9   : > { %v1762_v31 = vpop.xlane.xlu0 %1761  ;;  %v1759_v32 = vpop.xlane.xlu1 %1758 }
 0x4da   : > { %v7104_v36 = vmax.f32 %v1762_v31, %v7101_v30  ;;  %v7107_v37 = vmax.f32 %v1759_v32, %v7099_v21 }
 0x4dc   : > { %v1786_v38 = vsub.f32 %v7048_v35, %v7104_v36  ;;  %v1810_v39 = vsub.f32 %v7101_v30, %v7104_v36  ;;  %v1785_v40 = vsub.f32 %v7046_v33, %v7107_v37  ;;  %v1809_v26 = vsub.f32 %v7099_v21, %v7107_v37 }
 0x4dd   : > { %v7117_v41 = vpop.xlane.xlu0 %1742  ;;  %v7119_v42 = vpop.xlane.xlu1 %1739 }
 0x4de   : > { %v1797_v34 = vmul.f32 1.442695, %v1786_v38  ;;  %v1795_v43 = vmul.f32 1.442695, %v1785_v40 }
 0x4e0   : > { %5855 = vpow2.f32 %v1797_v34 }
 0x4e1   : > { %v1768_v44 = vpop.xlane.xlu0 %1767  ;;  %v1765_v45 = vpop.xlane.xlu1 %1764  ;;  %5857 = vpow2.f32 %v1795_v43 }
 0x4e2   : > { %v7122_v35 = vmax.f32 %v1768_v44, %v7117_v41  ;;  %v7125_v46 = vmax.f32 %v1765_v45, %v7119_v42 }
 0x4e4   : > { %v1788_v33 = vsub.f32 %v7060_v48, %v7122_v35  ;;  %v1812_v49 = vsub.f32 %v7117_v41, %v7122_v35  ;;  %v1787_v50 = vsub.f32 %v7058_v47, %v7125_v46  ;;  %v1811_v51 = vsub.f32 %v7119_v42, %v7125_v46 }
 0x4e5   : > { %v7135_v52 = vpop.xlane.xlu0 %1748  ;;  %v7137_v53 = vpop.xlane.xlu1 %1745 }
 0x4e6   : > { %v1801_v54 = vmul.f32 1.442695, %v1788_v33  ;;  %v1799_v56 = vmul.f32 1.442695, %v1787_v50 }
 0x4e8   : > { %5859 = vpow2.f32 %v1801_v54 }
 0x4e9   : > { %v1774_v59 = vpop.xlane.xlu0 %1773  ;;  %5861 = vpow2.f32 %v1799_v56  ;;  %v1771_v60 = vpop.xlane.xlu1 %1770 }
 0x4ea   : > { %v7141_v48 = vmax.f32 %v1774_v59, %v7135_v52  ;;  %v7144_v47 = vmax.f32 %v1771_v60, %v7137_v53  ;;  %5863 = vpow2.f32 %v1815_v61  ;;  %v1825_v61 = vmul.f32 1.442695, %v1812_v49 }
 0x4ec   : > { %v1790_v62 = vsub.f32 %v7072_v1, %v7141_v48  ;;  %v1814_v63 = vsub.f32 %v7135_v52, %v7141_v48  ;;  %v1789_v0 = vsub.f32 %v7075_v5, %v7144_v47  ;;  %v1813_v3 = vsub.f32 %v7137_v53, %v7144_v47 }
 0x4ed   : > { %v7150_v2 = vpop.eup %5855 }
 0x4ee   : > { %v1805_v6 = vmul.f32 1.442695, %v1790_v62  ;;  %v1840_v7 = vsel %vm1750_vm3, %v7150_v2, 0.0  ;;  %v7158_v9 = vpop.eup %5857  ;;  %v1803_v11 = vmul.f32 1.442695, %v1789_v0 }
 0x4ef   : > { %1841 = vadd.xlane.f32.xlu0 %v1840_v7  ;;  %v1837_v1 = vsel %vm1750_vm3, %v7158_v9, 0.0  ;;  %v1823_v62 = vmul.f32 1.442695, %v1811_v51  ;;  %v1829_v30 = vmul.f32 1.442695, %v1814_v63 }
 0x4f0   : > { %5865 = vpow2.f32 %v1805_v6  ;;  %1838 = vadd.xlane.f32.xlu1 %v1837_v1  ;;  %v1827_v21 = vmul.f32 1.442695, %v1813_v3 }
 0x4f1   : > { %5867 = vpow2.f32 %v1803_v11 }
 0x4f2   : > { %5869 = vpow2.f32 %v1817_v12 }
 0x4f5   : > { %v7162_v5 = vpop.eup %5859 }
 0x4f6   : > { %v1846_v13 = vsel %vm1750_vm3, %v7162_v5, 0.0  ;;  %v7166_v14 = vpop.eup %5861 }
 0x4f7   : > { %1847 = vadd.xlane.f32.xlu0 %v1846_v13  ;;  %v1843_v16 = vsel %vm1750_vm3, %v7166_v14, 0.0  ;;  %v5864_v17 = vpop.eup %5863 }
 0x4f8   : > { %1844 = vadd.xlane.f32.xlu1 %v1843_v16 }
 0x4fd   : > { %v7170_v10 = vpop.eup %5865 }
 0x4fe   : > { %v1833_v18 = vpop.xlane.xlu1 %1832  ;;  %v1852_v20 = vsel %vm1750_vm3, %v7170_v10, 0.0  ;;  %v7174_v22 = vpop.eup %5867 }
 0x4ff   : > { %v1855_v19 = vadd.f32 %v5864_v17, %v1833_v18  ;;  %1853 = vadd.xlane.f32.xlu0 %v1852_v20  ;;  %v1849_v23 = vsel %vm1750_vm3, %v7174_v22, 0.0  ;;  %v5870_v25 = vpop.eup %5869 }
 0x500   : > { %1850 = vadd.xlane.f32.xlu1 %v1849_v23 }
 0x501   : > { %5871 = vrcp.f32 %v1855_v19 }
 0x502   : > { %v5624_v32 = vpop.permute.xlu1 %5623 }
 0x503   : > { %v5625_v38 = vunpack.i.l.bf16 %v5624_v32  ;;  %v5626_v33 = vunpack.i.h.bf16 %v5624_v32 }
 0x505   : > { %v1905_v34 = vpack.c.bf16 %v5625_v38, %v5625_v38  ;;  %v1906_v54 = vpack.c.bf16 %v5626_v33, %v5626_v33 }
 0x506   : > { %v1836_v29 = vpop.xlane.xlu0 %1835 }
 0x507   : > { %v1856_v31 = vadd.f32 %v5870_v25, %v1836_v29  ;;  %v2008_v50 = vsel %vm1914_vm2, %v1905_v34, 0  ;;  %v2054_v60 = vsel %vm1914_vm2, %v1906_v54, 0 }
 0x509   : > { %5873 = vrcp.f32 %v1856_v31 }
 0x50e   : > { %v5872_v40 = vpop.eup %5871 }
 0x50f   : > { %v7179_v43 = vmul.f32 %v5872_v40, %v7089_v8  ;;  %v7181_v44 = vmul.f32 %v5872_v40, %v5864_v17 }
 0x511   : > { %v1895_v45 = vpack.c.bf16 %v7179_v43, %v7179_v43  ;;  %5633 = vrot.lane.b32.xlu1 %v6954_v15, %s6473_s17 }
 0x513   : > { %5219 = vmatmul.mubr.msk.bf16.vlgmr.msra.gmra.mxu0 %vm1750_vm3, %v1895_v45 }
 0x514   : > { %5229 = vmatpush3.bf16.msra.mxu0 %v2008_v50  ;;  %5230 = vmatprep.mubr.msk.bf16.mxu0 %vm6470_vm0, %v6468_v4 }
 0x515   : > { %5240 = vmatprep.subr.bf16.mxu0 %v6468_v4  ;;  %5628 = vrot.lane.b32.xlu0 %v6954_v15, %s6472_s13  ;;  %v1821_v15 = vmul.f32 1.442695, %v1810_v39 }
 0x516   : > { %v5874_v8 = vpop.eup %5873 }
 0x517   : > { %v1880_v56 = vmul.f32 %v5874_v8, %v7093_v28  ;;  %v7195_v58 = vmul.f32 %v5874_v8, %v5870_v25  ;;  %v1819_v28 = vmul.f32 1.442695, %v1809_v26  ;;  %5875 = vpow2.f32 %v1821_v15 }
 0x519   : > { %v1896_v59 = vpack.c.bf16 %v1880_v56, %v1880_v56  ;;  %5877 = vpow2.f32 %v1819_v28  ;;  %v2493_v16 = vsel %vm1750_vm3, %v1880_v56, 0.0 }
 0x51a   : > { %5879 = vpow2.f32 %v1825_v61 }
 0x51b   : > { %5225 = vmatmul.mubr.msk.bf16.vlgmr.msra.gmra.mxu1 %vm1750_vm3, %v1896_v59  ;;  %5881 = vpow2.f32 %v1823_v62 }
 0x51c   : > { %5235 = vmatpush3.bf16.msra.mxu1 %v2054_v60  ;;  %5236 = vmatprep.mubr.msk.bf16.mxu1 %vm6470_vm0, %v6468_v4  ;;  %5883 = vpow2.f32 %v1829_v30 }
 0x51d   : > { %5246 = vmatprep.subr.bf16.mxu1 %v6468_v4 }
 0x524   : > { %v5876_v36 = vpop.eup %5875 }
 0x526   : > { %v5878_v26 = vpop.eup %5877 }
 0x527   : > { %v5880_v42 = vpop.eup %5879 }
 0x528   : > { %v5882_v51 = vpop.eup %5881 }
 0x529   : > { %v7220_v63 = vpop.eup %5883 }
 0x578   : > { %v1842_v37 = vpop.xlane.xlu0 %1841 }
 0x579   : > { %v1858_v39 = vadd.f32 %v5876_v36, %v1842_v37  ;;  %v1839_v41 = vpop.xlane.xlu1 %1838 }
 0x57a   : > { %v1857_v35 = vadd.f32 %v5878_v26, %v1839_v41 }
 0x57b   : > { %5885 = vrcp.f32 %v1858_v39 }
 0x57c   : > { %5887 = vpow2.f32 %v1827_v21 }
 0x57d   : > { %5889 = vrcp.f32 %v1857_v35 }
 0x580   : > { %v1848_v46 = vpop.xlane.xlu0 %1847 }
 0x581   : > { %v1860_v49 = vadd.f32 %v5880_v42, %v1848_v46  ;;  %v1845_v52 = vpop.xlane.xlu1 %1844 }
 0x582   : > { %v1859_v48 = vadd.f32 %v5882_v51, %v1845_v52 }
 0x583   : > { %5891 = vrcp.f32 %v1860_v49 }
 0x584   : > { %5893 = vrcp.f32 %v1859_v48 }
 0x588   : > { %v5886_v53 = vpop.eup %5885  ;;  %v1854_v47 = vpop.xlane.xlu0 %1853 }
 0x589   : > { %v7222_v0 = vpop.eup %5887  ;;  %v1862_v3 = vadd.f32 %v7220_v63, %v1854_v47  ;;  %v1882_v6 = vmul.f32 %v5886_v53, %v7150_v2  ;;  %v1851_v11 = vpop.xlane.xlu1 %1850  ;;  %v7230_v19 = vmul.f32 %v5886_v53, %v5876_v36  ;;  %v2486_v2 = vsel %vm1750_vm3, %v7179_v43, 0.0 }
 0x58a   : > { %v5890_v7 = vpop.eup %5889  ;;  %v1861_v1 = vadd.f32 %v7222_v0, %v1851_v11 }
 0x58b   : > { %5895 = vrcp.f32 %v1862_v3  ;;  %v1881_v12 = vmul.f32 %v5890_v7, %v7158_v9  ;;  %v1898_v13 = vpack.c.bf16 %v1882_v6, %v1882_v6  ;;  %v2494_v18 = vsel %vm1750_vm3, %v1882_v6, 0.0 }
 0x58c   : > { %v5629_v17 = vpop.permute.xlu0 %5628  ;;  %5897 = vrcp.f32 %v1861_v1  ;;  %v2495_v31 = vadd.f32 %v2494_v18, %v2493_v16  ;;  %v7241_v50 = vmul.f32 %v5890_v7, %v5878_v26  ;;  %v2505_v54 = vadd.f32 %v7230_v19, %v7195_v58 }
 0x58d   : > { %v5631_v20 = vunpack.i.h.bf16 %v5629_v17  ;;  %v5630_v23 = vunpack.i.l.bf16 %v5629_v17  ;;  %v1897_v25 = vpack.c.bf16 %v1881_v12, %v1881_v12  ;;  %5237 = vmatmul.mubr.msk.bf16.vlgmr.msra.gmra.mxu1 %vm1750_vm3, %v1898_v13  ;;  %v5634_v29 = vpop.permute.xlu1 %5633  ;;  %v2487_v9 = vsel %vm1750_vm3, %v1881_v12, 0.0 }
 0x58e   : > { %5248 = vmatprep.mubr.msk.bf16.mxu1 %vm6470_vm0, %v6468_v4  ;;  %v5636_v40 = vunpack.i.h.bf16 %v5634_v29  ;;  %v5635_v34 = vunpack.i.l.bf16 %v5634_v29  ;;  %v2488_v33 = vadd.f32 %v2487_v9, %v2486_v2  ;;  %v2502_v21 = vadd.f32 %v7241_v50, %v7181_v44 }
 0x58f   : > { %v1908_v32 = vpack.c.bf16 %v5631_v20, %v5631_v20  ;;  %v1907_v38 = vpack.c.bf16 %v5630_v23, %v5630_v23  ;;  %5231 = vmatmul.mubr.msk.bf16.vlgmr.msra.gmra.mxu0 %vm1750_vm3, %v1897_v25 }
 0x590   : > { %v5892_v45 = vpop.eup %5891  ;;  %5242 = vmatprep.mubr.msk.bf16.mxu0 %vm6470_vm0, %v6468_v4  ;;  %v1910_v59 = vpack.c.bf16 %v5636_v40, %v5636_v40  ;;  %v1909_v28 = vpack.c.bf16 %v5635_v34, %v5635_v34  ;;  %v5759_v40 = vld [vmem:[#allocation11 + $0x38] sm:$0xff]   ;;  %v5760_v34 = vld [vmem:[#allocation11 + $0x30] sm:$0xff]  }
 0x591   : > { %v2100_v43 = vsel %vm1914_vm2, %v1907_v38, 0  ;;  %v2146_v8 = vsel %vm1914_vm2, %v1908_v32, 0  ;;  %v5894_v56 = vpop.eup %5893  ;;  %v1884_v60 = vmul.f32 %v5892_v45, %v7162_v5  ;;  %v7248_v15 = vmul.f32 %v5892_v45, %v5880_v42  ;;  %v5761_v45 = vld [vmem:[#allocation11 + $0x28] sm:$0xff]  }
 0x592   : > { %5241 = vmatpush3.bf16.msra.mxu0 %v2100_v43  ;;  %5247 = vmatpush3.bf16.msra.mxu1 %v2146_v8  ;;  %v1883_v61 = vmul.f32 %v5894_v56, %v7166_v14  ;;  %v7253_v62 = vmul.f32 %v5894_v56, %v5882_v51  ;;  %v2238_v14 = vsel %vm1914_vm2, %v1910_v59, 0  ;;  %v2192_v42 = vsel %vm1914_vm2, %v1909_v28, 0  ;;  %v5762_v56 = vld [vmem:[#allocation11 + $0x20] sm:$0xff]  }
 0x593   : > { %5252 = vmatprep.subr.bf16.mxu0 %v6468_v4  ;;  %5258 = vmatprep.subr.bf16.mxu1 %v6468_v4  ;;  %v1900_v30 = vpack.c.bf16 %v1884_v60, %v1884_v60  ;;  %v2496_v36 = vsel %vm1750_vm3, %v1884_v60, 0.0  ;;  %v2506_v37 = vadd.f32 %v2505_v54, %v7248_v15  ;;  %v5763_v60 = vld [vmem:[#allocation11 + $0x18] sm:$0xff]  }
 0x594   : > { %v1899_v5 = vpack.c.bf16 %v1883_v61, %v1883_v61  ;;  %v2489_v39 = vsel %vm1750_vm3, %v1883_v61, 0.0  ;;  %v2497_v26 = vadd.f32 %v2496_v36, %v2495_v31  ;;  %v2503_v35 = vadd.f32 %v2502_v21, %v7253_v62 }
 0x595   : > { %v2490_v41 = vadd.f32 %v2489_v39, %v2488_v33  ;;  %5249 = vmatmul.mubr.msk.bf16.vlgmr.msra.gmra.mxu1 %vm1750_vm3, %v1900_v30  ;;  %v4909_v33 = vld.sshfl [vmem:[#allocation10 + $0x4] sm:$0x33 pattern:$0x75316420] }
 0x596   : > { %5259 = vmatpush3.bf16.msra.mxu1 %v2238_v14  ;;  %5260 = vmatprep.mubr.msk.bf16.mxu1 %vm6470_vm0, %v6468_v4  ;;  %v2288_v43 = vcombine.high %v4909_v33, %v4909_v33  ;;  %v2295_v59 = vrot.slane %v4909_v33, %v6972_v24 }
 0x597   : > { %5243 = vmatmul.mubr.msk.bf16.vlgmr.msra.gmra.mxu0 %vm1750_vm3, %v1899_v5  ;;  %5284 = vmatprep.subr.bf16.mxu1 %v6468_v4 }
 0x598   : > { %v5896_v46 = vpop.eup %5895  ;;  %5253 = vmatpush3.bf16.msra.mxu0 %v2192_v42  ;;  %5254 = vmatprep.mubr.msk.bf16.mxu0 %vm6470_vm0, %v6468_v4  ;;  %v2302_v8 = vrot.slane %v2288_v43, %v6972_v24  ;;  %v2303_v30 = vcombine.high %v2295_v59, %v2295_v59  ;;  %v2308_v43 = vrot.slane %v2295_v59, %v6939_v55 }
 0x599   : > { %v1886_v49 = vmul.f32 %v5896_v46, %v7170_v10  ;;  %v7271_v51 = vmul.f32 %v5896_v46, %v7220_v63  ;;  %5264 = vmatprep.subr.bf16.mxu0 %v6468_v4  ;;  %v5898_v52 = vpop.eup %5897 }
 0x59a   : > { %v1885_v48 = vmul.f32 %v5898_v52, %v7174_v22  ;;  %v7278_v3 = vmul.f32 %v5898_v52, %v7222_v0  ;;  %v2312_v54 = vrot.slane %v2302_v8, %v6939_v55  ;;  %v2316_v14 = vrot.slane %v2303_v30, %v6939_v55 }
 0x59b   : > { %v1902_v53 = vpack.c.bf16 %v1886_v49, %v1886_v49  ;;  %v2498_v47 = vsel %vm1750_vm3, %v1886_v49, 0.0  ;;  %v2507_v7 = vadd.f32 %v2506_v37, %v7271_v51  ;;  %v5765_v49 = vld [vmem:[#allocation11 + $0x8] sm:$0xff]  }
 0x59c   : > { %v2499_v6 = vadd.f32 %v2498_v47, %v2497_v26  ;;  %v1901_v10 = vpack.c.bf16 %v1885_v48, %v1885_v48  ;;  %v2491_v63 = vsel %vm1750_vm3, %v1885_v48, 0.0  ;;  %v2504_v11 = vadd.f32 %v2503_v35, %v7278_v3  ;;  %v5764_v35 = vld [vmem:[#allocation11 + $0x10] sm:$0xff]  }
 0x59d   : > { %5261 = vmatmul.mubr.msk.bf16.vlgmr.msra.gmra.mxu1 %vm1750_vm3, %v1902_v53  ;;  %v2492_v1 = vadd.f32 %v2491_v63, %v2490_v41  ;;  %v2509_v12 = vmul.f32 0.25, %v2507_v7  ;;  %v2328_v28 = vmul.f32 %v2312_v54, %v7230_v19  ;;  %v2327_v36 = vmul.f32 %v2312_v54, %v7241_v50 }
 0x59e   : > { %v2501_v22 = vmul.f32 0.25, %v2499_v6  ;;  %v2508_v13 = vmul.f32 0.25, %v2504_v11  ;;  %5300 = vmatprep.mubr.msk.bf16.mxu1 %vm6470_vm0, %v6468_v4  ;;  %v2330_v52 = vmul.f32 %v2316_v14, %v7248_v15  ;;  %v2304_v48 = vcombine.high %v2302_v8, %v2302_v8 }
 0x59f   : > { %5255 = vmatmul.mubr.msk.bf16.vlgmr.msra.gmra.mxu0 %vm1750_vm3, %v1901_v10  ;;  %v2500_v0 = vmul.f32 0.25, %v2492_v1  ;;  %v2329_v53 = vmul.f32 %v2316_v14, %v7253_v62 }
 0x5a0   : > { %v2511_v16 = vsel %vm1750_vm3, %v2501_v22, %v2509_v12  ;;  %5280 = vmatprep.mubr.msk.bf16.mxu0 %vm6470_vm0, %v6468_v4  ;;  %5265 = vmatpush3.bf16.msra.mxu0 %v5759_v40  ;;  %v2320_v1 = vrot.slane %v2304_v48, %v6939_v55  ;;  %v5766_v22 = vld [vmem:[#allocation11] sm:$0xff]  }
 0x5a1   : > { %v2514_v17 = vsel %vm2512_vm4, %v2511_v16, 0.0  ;;  %v2510_v18 = vsel %vm1750_vm3, %v2500_v0, %v2508_v13  ;;  %5266 = vmatprep.subr.bf16.mxu0 %v6468_v4 }
 0x5a2   : > { %2516 = vst [vmem:[%s7292_s12 + $0x8] sm:$0xff] %v2514_v17  ;;  %v2513_v20 = vsel %vm2512_vm4, %v2510_v18, 0.0  ;;  %v2332_v16 = vmul.f32 %v2320_v1, %v7271_v51  ;;  %v2331_v17 = vmul.f32 %v2320_v1, %v7278_v3  ;;  %v2325_v51 = vmul.f32 %v2308_v43, %v7181_v44  ;;  %v5778_v1 = vld [vmem:[#allocation17 + $0x44] ss:$8 sps:$4 sm:$0xff]  }
 0x5a3   : > { %2515 = vst [vmem:[%s7292_s12] sm:$0xff] %v2513_v20  ;;  %v2326_v3 = vmul.f32 %v2308_v43, %v7195_v58  ;;  %v5792_v43 = vld [vmem:[#allocation14 + $0x30] sm:$0xff]  }
 0x5a4   : > { %5267 = vmatpush3.bf16.msra.mxu0 %v5760_v34 }
 0x5a5   : > { %5268 = vmatprep.subr.bf16.mxu0 %v6468_v4 }
 0x5a8   : > { %5269 = vmatpush3.bf16.msra.mxu0 %v5761_v45 }
 0x5a9   : > { %5270 = vmatprep.subr.bf16.mxu0 %v6468_v4 }
 0x5ac   : > { %5271 = vmatpush3.bf16.msra.mxu0 %v5762_v56 }
 0x5ad   : > { %5272 = vmatprep.subr.bf16.mxu0 %v6468_v4 }
 0x5b0   : > { %5273 = vmatpush3.bf16.msra.mxu0 %v5763_v60 }
 0x5b1   : > { %5274 = vmatprep.subr.bf16.mxu0 %v6468_v4 }
 0x5b4   : > { %5275 = vmatpush3.bf16.msra.mxu0 %v5764_v35 }
 0x5b5   : > { %5276 = vmatprep.subr.bf16.mxu0 %v6468_v4 }
 0x5b8   : > { %5277 = vmatpush3.bf16.msra.mxu0 %v5765_v49 }
 0x5b9   : > { %5278 = vmatprep.subr.bf16.mxu0 %v6468_v4 }
 0x5bc   : > { %5279 = vmatpush3.bf16.msra.mxu0 %v5766_v22  ;;  %v5776_v22 = vld [vmem:[#allocation17 + $0x40] ss:$8 sps:$4 sm:$0xff]  }
 0x5d3   : > { %v7296_v23 = vpop.f32.mrf.mxu0 }
 0x5d5   : > { %v5220_v25 = vpop.f32.mrf.mxu0 }
 0x5d7   : > { %v1955_v2 = vpop.f32.mrf.mxu0 }
 0x5d9   : > { %v5221_v29 = vpop.f32.mrf.mxu0 }
 0x5db   : > { %v7298_v9 = vpop.f32.mrf.mxu1 }
 0x5dc   : > { %v2334_v30 = vadd.f32 %v2326_v3, %v7298_v9 }
 0x5dd   : > { %v5226_v31 = vpop.f32.mrf.mxu1 }
 0x5df   : > { %v2001_v32 = vpop.f32.mrf.mxu1 }
 0x5e1   : > { %v5227_v38 = vpop.f32.mrf.mxu1 }
 0x64d   : > { %v2090_v61 = vpop.f32.mrf.mxu1 }
 0x64e   : > { %v2336_v21 = vadd.f32 %v2328_v28, %v2090_v61  ;;  %v2333_v61 = vadd.f32 %v2325_v51, %v7296_v23  ;;  %v925_v51 = vld [vmem:[%s6874_s5 + $0x18] sm:$0xff] }
 0x64f   : > { %v2044_v37 = vpop.f32.mrf.mxu0  ;;  %v5238_v5 = vpop.f32.mrf.mxu1 }
 0x650   : > { %v2335_v39 = vadd.f32 %v2327_v36, %v2044_v37 }
 0x651   : > { %v5232_v26 = vpop.f32.mrf.mxu0  ;;  %v2093_v41 = vpop.f32.mrf.mxu1 }
 0x652   : > { %v5637_v42 = vpack.i.bf16 %v2336_v21, %v2335_v39  ;;  %v4910_v26 = vld [vmem:[#allocation13] ss:$0 sm:$0xff] }
 0x653   : > { %v2047_v19 = vpop.f32.mrf.mxu0  ;;  %v5239_v46 = vpop.f32.mrf.mxu1 }
 0x654   : > { %5638 = vrot.lane.b32.xlu1 %v5637_v42, %s6473_s17  ;;  %v5955_v42 = vld [vmem:[%s6864_s15] sm:$0xff] }
 0x655   : > { %v5233_v50 = vpop.f32.mrf.mxu0  ;;  %v2182_v47 = vpop.f32.mrf.mxu1 }
 0x656   : > { %v2338_v7 = vadd.f32 %v2330_v52, %v2182_v47  ;;  %v5956_v52 = vld [vmem:[%s6864_s15 + $0x8] sm:$0xff] }
 0x657   : > { %v2136_v6 = vpop.f32.mrf.mxu0  ;;  %v5250_v63 = vpop.f32.mrf.mxu1  ;;  %v5769_v47 = vld [vmem:[#allocation17 + $0x74] ss:$8 sps:$4 sm:$0xff]  }
 0x658   : > { %v2337_v10 = vadd.f32 %v2329_v53, %v2136_v6  ;;  %v5767_v53 = vld [vmem:[#allocation17 + $0x70] ss:$8 sps:$4 sm:$0xff]   ;;  %v5772_v6 = vld [vmem:[#allocation17 + $0x64] ss:$8 sps:$4 sm:$0xff]   ;;  %2778 = vmatprep.subr.bf16.mxu0 %v5769_v47 }
 0x659   : > { %v5244_v11 = vpop.f32.mrf.mxu0  ;;  %v2185_v13 = vpop.f32.mrf.mxu1  ;;  %v5788_v63 = vld [vmem:[#allocation14 + $0x38] sm:$0xff]  }
 0x65a   : > { %v5642_v12 = vpack.i.bf16 %v2338_v7, %v2337_v10  ;;  %v5770_v7 = vld [vmem:[#allocation17 + $0x60] ss:$8 sps:$4 sm:$0xff]   ;;  %v5775_v10 = vld [vmem:[#allocation17 + $0x54] ss:$8 sps:$4 sm:$0xff]   ;;  %5285 = vmatpush3.bf16.msra.mxu1 %v5788_v63  ;;  %v5773_v11 = vld [vmem:[#allocation17 + $0x50] ss:$8 sps:$4 sm:$0xff]  }
 0x65b   : > { %v2139_v0 = vpop.f32.mrf.mxu0  ;;  %v5251_v15 = vpop.f32.mrf.mxu1  ;;  %5286 = vmatprep.subr.bf16.mxu1 %v6468_v4  ;;  %v5779_v13 = vld [vmem:[#allocation17 + $0x30] ss:$8 sps:$4 sm:$0xff]  }
 0x65c   : > { %5643 = vrot.lane.b32.xlu1 %v5642_v12, %s6472_s13  ;;  %v5781_v12 = vld [vmem:[#allocation17 + $0x34] ss:$8 sps:$4 sm:$0xff]   ;;  %v5784_v0 = vld [vmem:[#allocation17 + $0x24] ss:$8 sps:$4 sm:$0xff]   ;;  %v5782_v15 = vld [vmem:[#allocation17 + $0x20] ss:$8 sps:$4 sm:$0xff]  }
 0x65d   : > { %v5245_v62 = vpop.f32.mrf.mxu0  ;;  %v2274_v18 = vpop.f32.mrf.mxu1 }
 0x65e   : > { %v2340_v25 = vadd.f32 %v2332_v16, %v2274_v18  ;;  %v5787_v62 = vld [vmem:[#allocation17 + $0x14] ss:$8 sps:$4 sm:$0xff]   ;;  %v5785_v16 = vld [vmem:[#allocation17 + $0x10] ss:$8 sps:$4 sm:$0xff]   ;;  %5287 = vmatpush3.bf16.msra.mxu1 %v5792_v43 }
 0x65f   : > { %v2228_v20 = vpop.f32.mrf.mxu0  ;;  %v5262_v29 = vpop.f32.mrf.mxu1  ;;  %5288 = vmatprep.subr.bf16.mxu1 %v6468_v4 }
 0x660   : > { %v2339_v2 = vadd.f32 %v2331_v17, %v2228_v20 }
 0x661   : > { %v5256_v31 = vpop.f32.mrf.mxu0  ;;  %v2277_v38 = vpop.f32.mrf.mxu1 }
 0x662   : > { %v5647_v32 = vpack.i.bf16 %v2340_v25, %v2339_v2  ;;  %v5791_v38 = vld [vmem:[#allocation17 + $0x4] ss:$8 sps:$4 sm:$0xff]  }
 0x663   : > { %v2231_v40 = vpop.f32.mrf.mxu0  ;;  %v5263_v34 = vpop.f32.mrf.mxu1 }
 0x664   : > { %5648 = vrot.lane.b32.xlu0 %v5647_v32, %s6471_s27  ;;  %v5789_v40 = vld [vmem:[#allocation17] ss:$8 sps:$4 sm:$0xff]   ;;  %v922_v34 = vld [vmem:[%s6874_s5] sm:$0xff] }
 0x665   : > { %v5257_v45 = vpop.f32.mrf.mxu0 }
 0x666   : > { %v923_v45 = vld [vmem:[%s6874_s5 + $0x8] sm:$0xff] }
 0x6c6   : > { %v5639_v33 = vpop.permute.xlu1 %5638 }
 0x6c7   : > { %v5641_v54 = vunpack.i.h.bf16 %v5639_v33  ;;  %v5640_v56 = vunpack.i.l.bf16 %v5639_v33  ;;  %v2668_v33 = vpack.c.bf16 %v923_v45, %v922_v34 }
 0x6c9   : > { %v2366_v21 = vsel %vm1304_vm1, %v2334_v30, %v5641_v54  ;;  %v2365_v59 = vsel %vm1304_vm1, %v2333_v61, %v5640_v56  ;;  %v5793_v54 = vld [vmem:[#allocation14 + $0x28] sm:$0xff]   ;;  %v5794_v56 = vld [vmem:[#allocation14 + $0x20] sm:$0xff]  }
 0x6ca   : > { %5289 = vmatpush3.bf16.msra.mxu1 %v5793_v54  ;;  %v5797_v61 = vld [vmem:[#allocation14 + $0x8] sm:$0xff]   ;;  %v5798_v30 = vld [vmem:[#allocation14] sm:$0xff]  }
 0x6cb   : > { %5290 = vmatprep.subr.bf16.mxu1 %v6468_v4 }
 0x6ce   : > { %v5644_v8 = vpop.permute.xlu1 %5643  ;;  %5291 = vmatpush3.bf16.msra.mxu1 %v5794_v56 }
 0x6cf   : > { %v5646_v60 = vunpack.i.h.bf16 %v5644_v8  ;;  %v5645_v28 = vunpack.i.l.bf16 %v5644_v8  ;;  %v924_v8 = vld [vmem:[%s6874_s5 + $0x10] sm:$0xff]  ;;  %5292 = vmatprep.subr.bf16.mxu1 %v6468_v4  ;;  %s7797_s5 = sshll.u32 %s6616_s23, 8 }
 0x6d0   : > { %v2669_v3 = vpack.c.bf16 %v925_v51, %v924_v8 }
 0x6d1   : > { %v2369_v58 = vsel %vm2367_vm5, %v2366_v21, %v5646_v60  ;;  %v2368_v5 = vsel %vm2367_vm5, %v2365_v59, %v5645_v28  ;;  %v5795_v60 = vld [vmem:[#allocation14 + $0x18] sm:$0xff]   ;;  %v5796_v28 = vld [vmem:[#allocation14 + $0x10] sm:$0xff]  }
 0x6d2   : > { %5293 = vmatpush3.bf16.msra.mxu1 %v5795_v60 }
 0x6d3   : > { %5294 = vmatprep.subr.bf16.mxu1 %v6468_v4 }
 0x6d6   : > { %v5649_v36 = vpop.permute.xlu0 %5648  ;;  %5295 = vmatpush3.bf16.msra.mxu1 %v5796_v28 }
 0x6d7   : > { %v5651_v37 = vunpack.i.h.bf16 %v5649_v36  ;;  %v5650_v44 = vunpack.i.l.bf16 %v5649_v36  ;;  %5296 = vmatprep.subr.bf16.mxu1 %v6468_v4 }
 0x6d9   : > { %v2372_v39 = vsel %vm2370_vm6, %v2369_v58, %v5651_v37  ;;  %v2371_v23 = vsel %vm2370_vm6, %v2368_v5, %v5650_v44 }
 0x6da   : > { %v2373_v9 = vpack.c.bf16 %v2372_v39, %v2371_v23  ;;  %5297 = vmatpush3.bf16.msra.mxu1 %v5797_v61  ;;  %v4919_v23 = vld [vmem:[%s7938_s18 + $0x1] ss:$0 sm:$0xff] }
 0x6db   : > { %5298 = vmatprep.subr.bf16.mxu1 %v6468_v4 }
 0x6dc   : > { %5281 = vmatmul.mubr.bf16.vlgmr.msra.gmra.mxu0 %v2373_v9 }
 0x6dd   : > { %2810 = vmatprep.mubr.bf16.mxu0 %v6469_v27  ;;  %2779 = vmatpush1.bf16.msra.mxu0 %v5767_v53 }
 0x6de   : > { %2780 = vmatprep.subr.bf16.mxu0 %v5772_v6  ;;  %5299 = vmatpush3.bf16.msra.mxu1 %v5798_v30 }
 0x6df   : > { %5304 = vmatprep.subr.bf16.mxu1 %v6468_v4 }
 0x6e1   : > { %2781 = vmatpush1.bf16.msra.mxu0 %v5770_v7 }
 0x6e2   : > { %2782 = vmatprep.subr.bf16.mxu0 %v5775_v10 }
 0x6e5   : > { %2783 = vmatpush1.bf16.msra.mxu0 %v5773_v11 }
 0x6e6   : > { %2784 = vmatprep.subr.bf16.mxu0 %v5778_v1 }
 0x6e9   : > { %2785 = vmatpush1.bf16.msra.mxu0 %v5776_v22 }
 0x6ea   : > { %2786 = vmatprep.subr.bf16.mxu0 %v5781_v12 }
 0x6ed   : > { %2787 = vmatpush1.bf16.msra.mxu0 %v5779_v13 }
 0x6ee   : > { %2788 = vmatprep.subr.bf16.mxu0 %v5784_v0 }
 0x6f1   : > { %2789 = vmatpush1.bf16.msra.mxu0 %v5782_v15 }
 0x6f2   : > { %2790 = vmatprep.subr.bf16.mxu0 %v5787_v62 }
 0x6f5   : > { %2791 = vmatpush1.bf16.msra.mxu0 %v5785_v16 }
 0x6f6   : > { %2792 = vmatprep.subr.bf16.mxu0 %v5791_v38 }
 0x6f9   : > { %2793 = vmatpush1.bf16.msra.mxu0 %v5789_v40  ;;  %v4921_v40 = vld [vmem:[#allocation16] ss:$0 sm:$0xff] }
 0x6fa   : > { %5334 = vmatprep.subr.bf16.mxu0 %v6468_v4 }
 0x6fc   : > { %2811 = vmatmul.mubr.bf16.vlgmr.msra.gmra.mxu0 %v2668_v33 }
 0x6fd   : > { %2820 = vmatprep.mubr.bf16.mxu0 %v6469_v27 }
 0x704   : > { %2821 = vmatmul.mubr.bf16.gmra.mxu0 %v2669_v3 }
 0x705   : > { %5336 = vmatprep.mubr.msk.bf16.mxu0 %vm6470_vm0, %v6468_v4 }
 0x79c   : > { %v2479_v41 = vpop.f32.mrf.mxu0 }
 0x79d   : > { %v2480_v14 = vadd.f32 %v4910_v26, %v2479_v41 }
 0x79e   : > { %v5282_v35 = vpop.f32.mrf.mxu0 }
 0x79f   : > { %v2517_v19 = vadd.f32 %v5955_v42, %v2480_v14  ;;  %v4920_v14 = vld [vmem:[%s7939_s19 + $0x1] ss:$0 sm:$0xff] }
 0x7a0   : > { %v2482_v46 = vpop.f32.mrf.mxu0 }
 0x7a1   : > { %v2483_v49 = vadd.f32 %v4910_v26, %v2482_v46  ;;  %2521 = vadd.xlane.f32.xlu1 %v2517_v19 }
 0x7a2   : > { %v5283_v50 = vpop.f32.mrf.mxu0 }
 0x7a3   : > { %v2518_v48 = vadd.f32 %v5956_v52, %v2483_v49  ;;  %v2686_v49 = vld [vmem:[%s7930_s10] sm:$0x3] }
 0x7a4   : > { %v2691_v50 = vrot.slane %v2686_v49, %v6939_v55  ;;  %v2695_v52 = vrot.slane %v2686_v49, %v6941_v57 }
 0x7a5   : > { %2523 = vadd.xlane.f32.xlu0 %v2518_v48 }
 0x82a   : > { %v2522_v17 = vpop.xlane.xlu1 %2521 }
 0x82b   : > { %v2525_v18 = vmul.f32 0.0078125, %v2522_v17 }
 0x82d   : > { %v2527_v20 = vsub.f32 %v2517_v19, %v2525_v18 }
 0x82e   : > { %v2524_v25 = vpop.xlane.xlu0 %2523 }
 0x82f   : > { %v2526_v2 = vmul.f32 0.0078125, %v2524_v25  ;;  %v2529_v29 = vmul.f32 %v2527_v20, %v2527_v20 }
 0x831   : > { %v2528_v31 = vsub.f32 %v2518_v48, %v2526_v2  ;;  %2531 = vadd.xlane.f32.xlu0 %v2529_v29  ;;  %v2812_v48 = vpop.f32.mrf.mxu0 }
 0x832   : > { %v2813_v47 = vadd.f32 %v2812_v48, %v2691_v50 }
 0x833   : > { %v2530_v32 = vmul.f32 %v2528_v31, %v2528_v31  ;;  %v2814_v53 = vpop.f32.mrf.mxu0 }
 0x834   : > { %v7370_v6 = vadd.f32 %v2814_v53, %v2695_v52 }
 0x835   : > { %2533 = vadd.xlane.f32.xlu0 %v2530_v32  ;;  %v2816_v7 = vpop.f32.mrf.mxu0 }
 0x836   : > { %v2817_v10 = vadd.f32 %v2816_v7, %v2691_v50 }
 0x837   : > { %v2818_v63 = vpop.f32.mrf.mxu0 }
 0x838   : > { %v7372_v11 = vadd.f32 %v2818_v63, %v2695_v52  ;;  %v5652_v1 = vpack.i.bf16 %v2817_v10, %v2813_v47  ;;  %v2942_v22 = vpack.c.bf16 %v2817_v10, %v2813_v47 }
 0x839   : > { %v2822_v12 = vpop.f32.mrf.mxu0 }
 0x83a   : > { %5653 = vrot.lane.b32.xlu1 %v5652_v1, %s6471_s27  ;;  %v2954_v13 = vsel %vm1304_vm1, %v2942_v22, 0  ;;  %v2823_v15 = vadd.f32 %v2822_v12, %v2691_v50  ;;  %v7384_v25 = vpack.i.bf16 %v7372_v11, %v7370_v6 }
 0x83b   : > { %v2824_v0 = vpop.f32.mrf.mxu0 }
 0x83c   : > { %v7376_v62 = vadd.f32 %v2824_v0, %v2695_v52 }
 0x83d   : > { %v2826_v16 = vpop.f32.mrf.mxu0 }
 0x83e   : > { %v2827_v17 = vadd.f32 %v2826_v16, %v2691_v50 }
 0x83f   : > { %v2828_v2 = vpop.f32.mrf.mxu0 }
 0x840   : > { %v5657_v18 = vpack.i.bf16 %v2827_v17, %v2823_v15  ;;  %v7387_v29 = vadd.f32 %v2828_v2, %v2695_v52 }
 0x842   : > { %5658 = vrot.lane.b32.xlu1 %v5657_v18, %s6471_s27  ;;  %v3549_v32 = vpack.c.bf16 %v7387_v29, %v7376_v62  ;;  %v7393_v38 = vpack.i.bf16 %v7387_v29, %v7376_v62 }
 0x846   : > { %5663 = vrot.lane.b32.xlu1 %v5652_v1, %s6472_s13 }
 0x8ac   : > { %v5654_v43 = vpop.permute.xlu1 %5653 }
 0x8ad   : > { %v5656_v51 = vunpack.i.h.bf16 %v5654_v43  ;;  %v5655_v3 = vunpack.i.l.bf16 %v5654_v43 }
 0x8af   : > { %v2944_v61 = vpack.c.bf16 %v5656_v51, %v5655_v3 }
 0x8ba   : > { %v2532_v36 = vpop.xlane.xlu0 %2531 }
 0x8bb   : > { %v2535_v21 = vmul.f32 0.0078125, %v2532_v36  ;;  %v3046_v36 = vsel %vm1304_vm1, %v2944_v61, 0 }
 0x8bd   : > { %v2537_v59 = vadd.f32 1e-05, %v2535_v21  ;;  %v4955_v21 = vld.sshfl [vmem:[%s7931_s11] sm:$0x33 pattern:$0x75316420] }
 0x8be   : > { %v2534_v37 = vpop.xlane.xlu0 %2533 }
 0x8bf   : > { %5899 = vrsqrt.f32 %v2537_v59  ;;  %v2536_v44 = vmul.f32 0.0078125, %v2534_v37  ;;  %v3333_v59 = vrot.slane %v4955_v21, %v6972_v24 }
 0x8c1   : > { %v2538_v58 = vadd.f32 1e-05, %v2536_v44  ;;  %v3346_v37 = vrot.slane %v3333_v59, %v6939_v55  ;;  %v3341_v53 = vcombine.high %v3333_v59, %v3333_v59 }
 0x8c3   : > { %5901 = vrsqrt.f32 %v2538_v58 }
 0x8cc   : > { %v5900_v5 = vpop.eup %5899 }
 0x8cd   : > { %v2541_v39 = vmul.f32 %v5900_v5, %v2527_v20  ;;  %v3548_v20 = vpack.c.bf16 %v7372_v11, %v7370_v6 }
 0x8cf   : > { %v2547_v41 = vmul.f32 %v4919_v23, %v2541_v39 }
 0x8d0   : > { %v5902_v9 = vpop.eup %5901 }
 0x8d1   : > { %v2542_v26 = vmul.f32 %v5902_v9, %v2528_v31  ;;  %v7357_v42 = vadd.f32 %v4920_v14, %v2547_v41  ;;  %v2943_v31 = vpack.c.bf16 %v2827_v17, %v2823_v15  ;;  %v3354_v15 = vrot.slane %v3341_v53, %v6939_v55 }
 0x8d3   : > { %v2548_v35 = vmul.f32 %v4919_v23, %v2542_v26  ;;  %v3000_v60 = vsel %vm1304_vm1, %v2943_v31, 0  ;;  %v3326_v23 = vcombine.high %v4955_v21, %v4955_v21  ;;  %v5659_v26 = vpop.permute.xlu1 %5658 }
 0x8d4   : > { %v5661_v41 = vunpack.i.h.bf16 %v5659_v26 }
 0x8d5   : > { %v7359_v19 = vadd.f32 %v4920_v14, %v2548_v35  ;;  %v7422_v9 = vrot.slane %v3326_v23, %v6972_v24  ;;  %v5660_v14 = vunpack.i.l.bf16 %v5659_v26 }
 0x8d7   : > { %v2555_v46 = vpack.c.bf16 %v7359_v19, %v7357_v42  ;;  %v3350_v35 = vrot.slane %v7422_v9, %v6939_v55  ;;  %v5664_v49 = vpop.permute.xlu1 %5663 }
 0x8d8   : > { %v5666_v47 = vunpack.i.h.bf16 %v5664_v49  ;;  %v5665_v7 = vunpack.i.l.bf16 %v5664_v49 }
 0x8d9   : > { %5301 = vmatmul.mubr.bf16.vlgmr.msra.gmra.mxu1 %v2555_v46  ;;  %v2945_v46 = vpack.c.bf16 %v5661_v41, %v5660_v14 }
 0x8da   : > { %5306 = vmatprep.mubr.msk.bf16.mxu1 %vm6470_vm0, %v6468_v4  ;;  %5305 = vmatpush3.bf16.xpose.msra.mxu1 %v2954_v13  ;;  %v2946_v16 = vpack.c.bf16 %v5666_v47, %v5665_v7 }
 0x8db   : > { %5310 = vmatprep.subr.bf16.mxu1 %v6468_v4  ;;  %v3092_v10 = vsel %vm1304_vm1, %v2945_v46, 0 }
 0x999   : > { %v2661_v34 = vpop.f32.mrf.mxu1 }
 0x99a   : > { %v2662_v45 = vadd.f32 %v4921_v40, %v2661_v34 }
 0x99b   : > { %v5302_v33 = vpop.f32.mrf.mxu1 }
 0x99c   : > { %2833 = vrot.lane.b32.xlu0 %v2662_v45, %s6471_s27  ;;  %v2934_v8 = vpack.c.bf16 %v2662_v45, %v2662_v45  ;;  %v3363_v5 = vmul.f32 %v3346_v37, %v2662_v45  ;;  %v3138_v33 = vsel %vm1304_vm1, %v2946_v16, 0 }
 0x99d   : > { %v2664_v54 = vpop.f32.mrf.mxu1 }
 0x99e   : > { %v2665_v56 = vadd.f32 %v4921_v40, %v2664_v54  ;;  %5307 = vmatmul.mubr.msk.bf16.vlgmr.msra.gmra.mxu1 %vm1304_vm1, %v2934_v8  ;;  %v3371_v39 = vsel %vm1304_vm1, %v3363_v5, 0.0 }
 0x99f   : > { %5311 = vmatpush3.bf16.xpose.msra.mxu1 %v3000_v60  ;;  %v5303_v28 = vpop.f32.mrf.mxu1  ;;  %5312 = vmatprep.mubr.msk.bf16.mxu1 %vm6470_vm0, %v6468_v4 }
 0x9a0   : > { %5668 = vrot.lane.b32.xlu0 %v5657_v18, %s6472_s13  ;;  %2835 = vrot.lane.b32.xlu1 %v2665_v56, %s6471_s27  ;;  %v2935_v30 = vpack.c.bf16 %v2665_v56, %v2665_v56  ;;  %v3364_v44 = vmul.f32 %v3346_v37, %v2665_v56 }
 0x9a1   : > { %5316 = vmatprep.subr.bf16.mxu1 %v6468_v4 }
 0x9a2   : > { %v3374_v58 = vsel %vm1304_vm1, %v3364_v44, 0.0 }
 0x9a4   : > { %2841 = vrot.lane.b32.xlu0 %v2665_v56, %s6472_s13  ;;  %2839 = vrot.lane.b32.xlu1 %v2662_v45, %s6472_s13 }
 0x9a6   : > { %5313 = vmatmul.mubr.msk.bf16.vlgmr.msra.gmra.mxu1 %vm1304_vm1, %v2935_v30 }
 0x9a7   : > { %5317 = vmatpush3.bf16.xpose.msra.mxu1 %v3046_v36  ;;  %5318 = vmatprep.mubr.msk.bf16.mxu1 %vm6470_vm0, %v6468_v4 }
 0x9a8   : > { %5678 = vrot.lane.b32.xlu0 %v5657_v18, %s6473_s17  ;;  %5673 = vrot.lane.b32.xlu1 %v5652_v1, %s6473_s17 }
 0x9a9   : > { %5322 = vmatprep.subr.bf16.mxu1 %v6468_v4 }
 0x9ac   : > { %2847 = vrot.lane.b32.xlu0 %v2665_v56, %s6473_s17  ;;  %2845 = vrot.lane.b32.xlu1 %v2662_v45, %s6473_s17 }
 0x9cb   : > { %3375 = vadd.xlane.f32.xlu0 %v3374_v58 }
 0x9d0   : > { %3372 = vadd.xlane.f32.xlu1 %v3371_v39 }
 0xa0e   : > { %v2834_v50 = vpop.permute.xlu0 %2833 }
 0xa0f   : > { %v2936_v52 = vpack.c.bf16 %v2834_v50, %v2834_v50  ;;  %v3365_v48 = vmul.f32 %v3350_v35, %v2834_v50 }
 0xa11   : > { %5319 = vmatmul.mubr.msk.bf16.vlgmr.msra.gmra.mxu1 %vm1304_vm1, %v2936_v52  ;;  %v3377_v63 = vsel %vm1304_vm1, %v3365_v48, 0.0 }
 0xa12   : > { %5323 = vmatpush3.bf16.xpose.msra.mxu1 %v3092_v10  ;;  %v5669_v1 = vpop.permute.xlu0 %5668  ;;  %3378 = vadd.xlane.f32.xlu1 %v3377_v63  ;;  %v2836_v22 = vpop.permute.xlu1 %2835 }
 0xa13   : > { %v5671_v12 = vunpack.i.h.bf16 %v5669_v1  ;;  %v5670_v13 = vunpack.i.l.bf16 %v5669_v1  ;;  %v7429_v0 = vmul.f32 %v3350_v35, %v2836_v22  ;;  %5324 = vmatprep.mubr.msk.bf16.mxu1 %vm6470_vm0, %v6468_v4  ;;  %5328 = vmatprep.subr.bf16.mxu1 %v6468_v4  ;;  %v2937_v31 = vpack.c.bf16 %v2836_v22, %v2836_v22 }
 0xa14   : > { %v3342_v35 = vcombine.high %v7422_v9, %v7422_v9 }
 0xa15   : > { %v2947_v17 = vpack.c.bf16 %v5671_v12, %v5670_v13  ;;  %v3380_v41 = vsel %vm1304_vm1, %v7429_v0, 0.0 }
 0xa16   : > { %v2842_v18 = vpop.permute.xlu0 %2841  ;;  %v2840_v2 = vpop.permute.xlu1 %2839  ;;  %v3358_v46 = vrot.slane %v3342_v35, %v6939_v55 }
 0xa17   : > { %v7435_v40 = vmul.f32 %v3354_v15, %v2842_v18  ;;  %v3367_v34 = vmul.f32 %v3354_v15, %v2840_v2  ;;  %v3184_v45 = vsel %vm1304_vm1, %v2947_v17, 0  ;;  %v2939_v30 = vpack.c.bf16 %v2842_v18, %v2842_v18 }
 0xa18   : > { %5335 = vmatpush3.bf16.xpose.msra.mxu0 %v3184_v45  ;;  %v2938_v36 = vpack.c.bf16 %v2840_v2, %v2840_v2 }
 0xa19   : > { %5325 = vmatmul.mubr.msk.bf16.vlgmr.msra.gmra.mxu1 %vm1304_vm1, %v2937_v31  ;;  %v3383_v43 = vsel %vm1304_vm1, %v3367_v34, 0.0  ;;  %5346 = vmatprep.subr.bf16.mxu0 %v6468_v4  ;;  %v3386_v22 = vsel %vm1304_vm1, %v7435_v40, 0.0 }
 0xa1a   : > { %5329 = vmatpush3.bf16.xpose.msra.mxu1 %v3138_v33  ;;  %v5679_v8 = vpop.permute.xlu0 %5678  ;;  %3384 = vadd.xlane.f32.xlu1 %v3383_v43  ;;  %v5674_v51 = vpop.permute.xlu1 %5673 }
 0xa1b   : > { %v5681_v3 = vunpack.i.h.bf16 %v5679_v8  ;;  %v5680_v54 = vunpack.i.l.bf16 %v5679_v8  ;;  %v5676_v56 = vunpack.i.h.bf16 %v5674_v51  ;;  %v5675_v60 = vunpack.i.l.bf16 %v5674_v51  ;;  %5330 = vmatprep.mubr.msk.bf16.mxu1 %vm6470_vm0, %v6468_v4  ;;  %5340 = vmatprep.subr.bf16.mxu1 %v6468_v4 }
 0xa1d   : > { %v2949_v28 = vpack.c.bf16 %v5681_v3, %v5680_v54  ;;  %v2948_v61 = vpack.c.bf16 %v5676_v56, %v5675_v60 }
 0xa1e   : > { %v2848_v37 = vpop.permute.xlu0 %2847  ;;  %v2846_v44 = vpop.permute.xlu1 %2845 }
 0xa1f   : > { %5337 = vmatmul.mubr.msk.bf16.vlgmr.msra.gmra.mxu0 %vm1304_vm1, %v2939_v30  ;;  %v3276_v21 = vsel %vm1304_vm1, %v2949_v28, 0  ;;  %v3230_v59 = vsel %vm1304_vm1, %v2948_v61, 0  ;;  %v2941_v58 = vpack.c.bf16 %v2848_v37, %v2848_v37  ;;  %v2940_v5 = vpack.c.bf16 %v2846_v44, %v2846_v44 }
 0xa20   : > { %5347 = vmatpush3.bf16.xpose.msra.mxu0 %v3276_v21  ;;  %5348 = vmatprep.mubr.msk.bf16.mxu0 %vm6470_vm0, %v6468_v4  ;;  %v3369_v50 = vmul.f32 %v3358_v46, %v2846_v44  ;;  %v3370_v15 = vmul.f32 %v3358_v46, %v2848_v37 }
 0xa21   : > { %5331 = vmatmul.mubr.msk.bf16.vlgmr.msra.gmra.mxu1 %vm1304_vm1, %v2938_v36  ;;  %5358 = vmatprep.subr.bf16.mxu0 %v6468_v4 }
 0xa22   : > { %5341 = vmatpush3.bf16.xpose.msra.mxu1 %v3230_v59  ;;  %5342 = vmatprep.mubr.msk.bf16.mxu1 %vm6470_vm0, %v6468_v4  ;;  %v3389_v47 = vsel %vm1304_vm1, %v3369_v50, 0.0  ;;  %v3392_v45 = vsel %vm1304_vm1, %v3370_v15, 0.0 }
 0xa23   : > { %5352 = vmatprep.subr.bf16.mxu1 %v6468_v4 }
 0xa27   : > { %5349 = vmatmul.mubr.msk.bf16.vlgmr.msra.gmra.mxu0 %vm1304_vm1, %v2941_v58 }
 0xa28   : > { %5359 = vmatpush3.bf16.msra.mxu0 %v3549_v32  ;;  %5360 = vmatprep.mubr.msk.bf16.mxu0 %vm6470_vm0, %v6468_v4 }
 0xa29   : > { %5343 = vmatmul.mubr.msk.bf16.vlgmr.msra.gmra.mxu1 %vm1304_vm1, %v2940_v5  ;;  %5370 = vmatprep.subr.bf16.mxu0 %v6468_v4 }
 0xa2a   : > { %5353 = vmatpush3.bf16.msra.mxu1 %v3548_v20  ;;  %5354 = vmatprep.mubr.msk.bf16.mxu1 %vm6470_vm0, %v6468_v4 }
 0xa2b   : > { %5364 = vmatprep.subr.bf16.mxu1 %v6468_v4 }
 0xa54   : > { %v7501_v8 = vpop.xlane.xlu0 %3375 }
 0xa5e   : > { %v7469_v39 = vpop.f32.mrf.mxu1 }
 0xa5f   : > { %v3396_v62 = vsel %vm3395_vm7, %v7469_v39, -inf }
 0xa60   : > { %3397 = vmax.xlane.f32.xlu0 %v3396_v62  ;;  %v5308_v29 = vpop.f32.mrf.mxu1  ;;  %v7513_v62 = vpop.xlane.xlu1 %3372 }
 0xa62   : > { %v2993_v6 = vpop.f32.mrf.mxu1 }
 0xa64   : > { %v5309_v11 = vpop.f32.mrf.mxu1 }
 0xa66   : > { %v3036_v20 = vpop.f32.mrf.mxu1 }
 0xa67   : > { %v3399_v32 = vsel %vm3395_vm7, %v3036_v20, -inf }
 0xa68   : > { %3400 = vmax.xlane.f32.xlu0 %v3399_v32  ;;  %v5314_v23 = vpop.f32.mrf.mxu1 }
 0xa6a   : > { %v3039_v26 = vpop.f32.mrf.mxu1 }
 0xa6c   : > { %3381 = vadd.xlane.f32.xlu0 %v3380_v41  ;;  %v5315_v14 = vpop.f32.mrf.mxu1 }
 0xa9b   : > { %v7528_v41 = vpop.xlane.xlu1 %3378 }
 0xaa3   : > { %v7530_v14 = vpop.xlane.xlu1 %3384 }
 0xad1   : > { %v7479_v49 = vpop.f32.mrf.mxu1 }
 0xad2   : > { %v3402_v52 = vsel %vm3395_vm7, %v7479_v49, -inf }
 0xad3   : > { %3403 = vmax.xlane.f32.xlu1 %v3402_v52  ;;  %v5320_v48 = vpop.f32.mrf.mxu1 }
 0xad5   : > { %v3085_v53 = vpop.f32.mrf.mxu1 }
 0xad7   : > { %3390 = vadd.xlane.f32.xlu1 %v3389_v47  ;;  %v5321_v7 = vpop.f32.mrf.mxu1 }
 0xad9   : > { %v7484_v10 = vpop.f32.mrf.mxu1 }
 0xada   : > { %v3405_v9 = vsel %vm3395_vm7, %v7484_v10, -inf }
 0xadb   : > { %3406 = vmax.xlane.f32.xlu0 %v3405_v9  ;;  %v5326_v63 = vpop.f32.mrf.mxu1 }
 0xadd   : > { %v3131_v1 = vpop.f32.mrf.mxu1 }
 0xadf   : > { %3387 = vadd.xlane.f32.xlu0 %v3386_v22  ;;  %v5327_v12 = vpop.f32.mrf.mxu1  ;;  %v7490_v13 = vpop.f32.mrf.mxu0 }
 0xae0   : > { %v3411_v17 = vsel %vm3395_vm7, %v7490_v13, -inf }
 0xae1   : > { %v7492_v0 = vpop.f32.mrf.mxu1  ;;  %v5338_v16 = vpop.f32.mrf.mxu0 }
 0xae2   : > { %v3408_v18 = vsel %vm3395_vm7, %v7492_v0, -inf }
 0xae3   : > { %3412 = vmax.xlane.f32.xlu0 %v3411_v17  ;;  %3409 = vmax.xlane.f32.xlu1 %v3408_v18  ;;  %v5332_v2 = vpop.f32.mrf.mxu1  ;;  %v3223_v31 = vpop.f32.mrf.mxu0 }
 0xae5   : > { %v3177_v34 = vpop.f32.mrf.mxu1  ;;  %v5339_v40 = vpop.f32.mrf.mxu0 }
 0xae7   : > { %3393 = vadd.xlane.f32.xlu0 %v3392_v45  ;;  %v5333_v33 = vpop.f32.mrf.mxu1  ;;  %v7499_v43 = vpop.f32.mrf.mxu0 }
 0xae8   : > { %v3417_v54 = vsel %vm3395_vm7, %v7499_v43, -inf }
 0xae9   : > { %v7503_v51 = vpop.f32.mrf.mxu1  ;;  %v5350_v3 = vpop.f32.mrf.mxu0 }
 0xaea   : > { %v3414_v56 = vsel %vm3395_vm7, %v7503_v51, -inf  ;;  %v3398_v61 = vpop.xlane.xlu0 %3397 }
 0xaeb   : > { %3418 = vmax.xlane.f32.xlu0 %v3417_v54  ;;  %3415 = vmax.xlane.f32.xlu1 %v3414_v56  ;;  %v5344_v60 = vpop.f32.mrf.mxu1  ;;  %v3315_v28 = vpop.f32.mrf.mxu0  ;;  %v7516_v29 = vmax.f32 %v3398_v61, %v7513_v62 }
 0xaed   : > { %v3269_v30 = vpop.f32.mrf.mxu1  ;;  %v5351_v36 = vpop.f32.mrf.mxu0 }
 0xaef   : > { %v5345_v21 = vpop.f32.mrf.mxu1 }
 0xaf1   : > { %v3401_v59 = vpop.xlane.xlu0 %3400 }
 0xaf2   : > { %v3421_v37 = vmax.f32 %v3401_v59, %v7501_v8 }
 0xaf4   : > { %v3429_v44 = vsub.f32 %v3036_v20, %v3421_v37  ;;  %v3453_v58 = vsub.f32 %v7501_v8, %v3421_v37  ;;  %v3428_v20 = vsub.f32 %v7469_v39, %v7516_v29  ;;  %v3452_v37 = vsub.f32 %v7513_v62, %v7516_v29 }
 0xaf5   : > { %v7537_v50 = vpop.xlane.xlu0 %3381 }
 0xaf6   : > { %v3438_v5 = vmul.f32 1.442695, %v3429_v44  ;;  %v3436_v32 = vmul.f32 1.442695, %v3428_v20  ;;  %v3462_v54 = vmul.f32 1.442695, %v3453_v58 }
 0xaf8   : > { %5903 = vpow2.f32 %v3438_v5  ;;  %v3460_v5 = vmul.f32 1.442695, %v3452_v37 }
 0xaf9   : > { %5905 = vpow2.f32 %v3436_v32 }
 0xafc   : > { %5683 = vrot.lane.b32.xlu1 %v7384_v25, %s6471_s27 }
 0xb05   : > { %v7518_v6 = vpop.eup %5903 }
 0xb06   : > { %v3479_v11 = vsel %vm3395_vm7, %v7518_v6, 0.0  ;;  %v7524_v23 = vpop.eup %5905 }
 0xb07   : > { %3480 = vadd.xlane.f32.xlu0 %v3479_v11  ;;  %v3476_v26 = vsel %vm3395_vm7, %v7524_v23, 0.0 }
 0xb20   : > { %3477 = vadd.xlane.f32.xlu1 %v3476_v26 }
 0xb5c   : > { %v3404_v35 = vpop.xlane.xlu1 %3403 }
 0xb5d   : > { %v7533_v46 = vmax.f32 %v3404_v35, %v7528_v41 }
 0xb5f   : > { %v3430_v39 = vsub.f32 %v7479_v49, %v7533_v46 }
 0xb60   : > { %v7544_v7 = vpop.xlane.xlu1 %3390 }
 0xb61   : > { %v3440_v52 = vmul.f32 1.442695, %v3430_v39 }
 0xb63   : > { %5907 = vpow2.f32 %v3440_v52 }
 0xb64   : > { %v3407_v48 = vpop.xlane.xlu0 %3406 }
 0xb65   : > { %v7540_v53 = vmax.f32 %v3407_v48, %v7537_v50 }
 0xb67   : > { %v3455_v47 = vsub.f32 %v7537_v50, %v7540_v53  ;;  %v3431_v49 = vsub.f32 %v7484_v10, %v7540_v53 }
 0xb68   : > { %v7546_v9 = vpop.xlane.xlu0 %3387 }
 0xb69   : > { %v3442_v10 = vmul.f32 1.442695, %v3431_v49 }
 0xb6c   : > { %v3413_v63 = vpop.xlane.xlu0 %3412  ;;  %v3410_v1 = vpop.xlane.xlu1 %3409 }
 0xb6d   : > { %v7551_v22 = vmax.f32 %v3413_v63, %v7546_v9  ;;  %v7554_v12 = vmax.f32 %v3410_v1, %v7530_v14 }
 0xb6f   : > { %v3433_v15 = vsub.f32 %v7490_v13, %v7551_v22  ;;  %v3457_v16 = vsub.f32 %v7546_v9, %v7551_v22  ;;  %v3456_v17 = vsub.f32 %v7530_v14, %v7554_v12  ;;  %v3432_v59 = vsub.f32 %v7492_v0, %v7554_v12 }
 0xb70   : > { %v7562_v18 = vpop.eup %5907  ;;  %v7564_v2 = vpop.xlane.xlu0 %3393 }
 0xb71   : > { %v3446_v31 = vmul.f32 1.442695, %v3433_v15  ;;  %v3482_v34 = vsel %vm3395_vm7, %v7562_v18, 0.0  ;;  %v3444_v44 = vmul.f32 1.442695, %v3432_v59 }
 0xb72   : > { %3483 = vadd.xlane.f32.xlu1 %v3482_v34  ;;  %v3466_v59 = vmul.f32 1.442695, %v3455_v47 }
 0xb73   : > { %5909 = vpow2.f32 %v3446_v31 }
 0xb74   : > { %v3419_v40 = vpop.xlane.xlu0 %3418  ;;  %v3416_v45 = vpop.xlane.xlu1 %3415  ;;  %5911 = vpow2.f32 %v3442_v10 }
 0xb75   : > { %v7569_v13 = vmax.f32 %v3419_v40, %v7564_v2  ;;  %v7572_v33 = vmax.f32 %v3416_v45, %v7544_v7  ;;  %5913 = vpow2.f32 %v3462_v54 }
 0xb77   : > { %v3459_v8 = vsub.f32 %v7564_v2, %v7569_v13  ;;  %v3458_v3 = vsub.f32 %v7544_v7, %v7572_v33  ;;  %v3434_v58 = vsub.f32 %v7503_v51, %v7572_v33  ;;  %v3435_v62 = vsub.f32 %v7499_v43, %v7569_v13 }
 0xb78   : > { %v5684_v29 = vpop.permute.xlu1 %5683 }
 0xb79   : > { %v3448_v11 = vmul.f32 1.442695, %v3434_v58  ;;  %v3450_v26 = vmul.f32 1.442695, %v3435_v62  ;;  %v5686_v15 = vunpack.i.h.bf16 %v5684_v29  ;;  %v5685_v10 = vunpack.i.l.bf16 %v5684_v29 }
 0xb7a   : > { %v3472_v14 = vmul.f32 1.442695, %v3458_v3 }
 0xb7b   : > { %v3550_v54 = vpack.c.bf16 %v5686_v15, %v5685_v10 }
 0xb80   : > { %v7578_v56 = vpop.eup %5909 }
 0xb81   : > { %v3491_v60 = vsel %vm3395_vm7, %v7578_v56, 0.0  ;;  %v7582_v28 = vpop.eup %5911 }
 0xb82   : > { %3492 = vadd.xlane.f32.xlu0 %v3491_v60  ;;  %v3485_v61 = vsel %vm3395_vm7, %v7582_v28, 0.0  ;;  %v5914_v30 = vpop.eup %5913 }
 0xb83   : > { %5693 = vrot.lane.b32.xlu1 %v7384_v25, %s6472_s13 }
 0xb86   : > { %3486 = vadd.xlane.f32.xlu0 %v3485_v61  ;;  %v3470_v61 = vmul.f32 1.442695, %v3457_v16 }
 0xb87   : > { %5698 = vrot.lane.b32.xlu1 %v7393_v38, %s6472_s13 }
 0xb90   : > { %v3481_v36 = vpop.xlane.xlu0 %3480 }
 0xb91   : > { %v3501_v21 = vadd.f32 %v5914_v30, %v3481_v36 }
 0xb93   : > { %5915 = vrcp.f32 %v3501_v21 }
 0xb94   : > { %5917 = vpow2.f32 %v3444_v44 }
 0xb95   : > { %5919 = vpow2.f32 %v3460_v5 }
 0xb96   : > { %5921 = vpow2.f32 %v3448_v11 }
 0xb97   : > { %5923 = vpow2.f32 %v3450_v26 }
 0xb9c   : > { %5688 = vrot.lane.b32.xlu0 %v7393_v38, %s6471_s27 }
 0xba0   : > { %v5916_v20 = vpop.eup %5915 }
 0xba1   : > { %v7599_v32 = vmul.f32 %v5916_v20, %v7518_v6  ;;  %v7601_v0 = vmul.f32 %v5916_v20, %v5914_v30  ;;  %v7610_v35 = vpop.eup %5917 }
 0xba2   : > { %v5920_v39 = vpop.eup %5919  ;;  %v3488_v48 = vsel %vm3395_vm7, %v7610_v35, 0.0 }
 0xba3   : > { %v3541_v51 = vpack.c.bf16 %v7599_v32, %v7599_v32  ;;  %v7614_v43 = vpop.eup %5921 }
 0xba4   : > { %v3494_v63 = vsel %vm3395_vm7, %v7614_v43, 0.0  ;;  %v7618_v1 = vpop.eup %5923 }
 0xba5   : > { %5361 = vmatmul.mubr.msk.bf16.vlgmr.msra.gmra.mxu0 %vm3395_vm7, %v3541_v51  ;;  %v3497_v31 = vsel %vm3395_vm7, %v7618_v1, 0.0 }
 0xba6   : > { %5372 = vmatprep.mubr.msk.bf16.mxu0 %vm6470_vm0, %v6468_v4 }
 0xba9   : > { %v3478_v6 = vpop.xlane.xlu1 %3477 }
 0xbaa   : > { %v3500_v52 = vadd.f32 %v5920_v39, %v3478_v6 }
 0xbab   : > { %3489 = vadd.xlane.f32.xlu1 %v3488_v48 }
 0xbac   : > { %5925 = vrcp.f32 %v3500_v52 }
 0xbaf   : > { %3495 = vadd.xlane.f32.xlu1 %v3494_v63 }
 0xbb9   : > { %v5926_v49 = vpop.eup %5925 }
 0xbba   : > { %v3524_v34 = vmul.f32 %v5926_v49, %v7524_v23  ;;  %v7623_v40 = vmul.f32 %v5926_v49, %v5920_v39  ;;  %v3454_v23 = vsub.f32 %v7528_v41, %v7533_v46 }
 0xbbb   : > { %3498 = vadd.xlane.f32.xlu0 %v3497_v31 }
 0xbbc   : > { %v3540_v45 = vpack.c.bf16 %v3524_v34, %v3524_v34  ;;  %v3464_v60 = vmul.f32 1.442695, %v3454_v23  ;;  %v4104_v5 = vsel %vm3395_vm7, %v3524_v34, 0.0  ;;  %v4111_v34 = vsel %vm3395_vm7, %v7599_v32, 0.0 }
 0xbbe   : > { %5355 = vmatmul.mubr.msk.bf16.vlgmr.msra.gmra.mxu1 %vm3395_vm7, %v3540_v45  ;;  %5927 = vpow2.f32 %v3464_v60 }
 0xbbf   : > { %5365 = vmatpush3.bf16.msra.mxu1 %v3550_v54  ;;  %5366 = vmatprep.mubr.msk.bf16.mxu1 %vm6470_vm0, %v6468_v4  ;;  %5929 = vpow2.f32 %v3470_v61 }
 0xbc0   : > { %5376 = vmatprep.subr.bf16.mxu1 %v6468_v4  ;;  %5703 = vrot.lane.b32.xlu1 %v7384_v25, %s6473_s17 }
 0xbcb   : > { %v5928_v30 = vpop.eup %5927 }
 0xbd1   : > { %5708 = vrot.lane.b32.xlu0 %v7393_v38, %s6473_s17  ;;  %v5930_v38 = vpop.eup %5929 }
 0xbfb   : > { %v3484_v36 = vpop.xlane.xlu1 %3483 }
 0xbfc   : > { %v3502_v21 = vadd.f32 %v5928_v30, %v3484_v36 }
 0xbfe   : > { %5931 = vrcp.f32 %v3502_v21 }
 0xbff   : > { %5933 = vpow2.f32 %v3466_v59  ;;  %v5694_v25 = vpop.permute.xlu1 %5693 }
 0xc00   : > { %v5696_v46 = vunpack.i.h.bf16 %v5694_v25  ;;  %v5695_v44 = vunpack.i.l.bf16 %v5694_v25 }
 0xc02   : > { %v3552_v11 = vpack.c.bf16 %v5696_v46, %v5695_v44 }
 0xc03   : > { %v5699_v6 = vpop.permute.xlu1 %5698 }
 0xc04   : > { %v5701_v63 = vunpack.i.h.bf16 %v5699_v6  ;;  %v5700_v49 = vunpack.i.l.bf16 %v5699_v6 }
 0xc06   : > { %v3553_v60 = vpack.c.bf16 %v5701_v63, %v5700_v49 }
 0xc0b   : > { %v3493_v37 = vpop.xlane.xlu0 %3492  ;;  %v5932_v41 = vpop.eup %5931 }
 0xc0c   : > { %v3505_v58 = vadd.f32 %v5930_v38, %v3493_v37  ;;  %v3526_v9 = vmul.f32 %v5932_v41, %v7562_v18  ;;  %v7642_v22 = vmul.f32 %v5932_v41, %v5928_v30  ;;  %v5934_v16 = vpop.eup %5933  ;;  %v3468_v30 = vmul.f32 1.442695, %v3456_v17 }
 0xc0d   : > { %v3474_v17 = vmul.f32 1.442695, %v3459_v8 }
 0xc0e   : > { %5935 = vrcp.f32 %v3505_v58  ;;  %v3542_v53 = vpack.c.bf16 %v3526_v9, %v3526_v9  ;;  %v4105_v47 = vsel %vm3395_vm7, %v3526_v9, 0.0  ;;  %v4120_v2 = vadd.f32 %v7642_v22, %v7623_v40 }
 0xc0f   : > { %v3487_v50 = vpop.xlane.xlu0 %3486  ;;  %v7646_v62 = vadd.f32 %v4105_v47, %v4104_v5 }
 0xc10   : > { %v3503_v20 = vadd.f32 %v5934_v16, %v3487_v50  ;;  %5367 = vmatmul.mubr.msk.bf16.vlgmr.msra.gmra.mxu1 %vm3395_vm7, %v3542_v53 }
 0xc11   : > { %5377 = vmatpush3.bf16.msra.mxu1 %v3552_v11  ;;  %5378 = vmatprep.mubr.msk.bf16.mxu1 %vm6470_vm0, %v6468_v4 }
 0xc12   : > { %5937 = vrcp.f32 %v3503_v20  ;;  %5388 = vmatprep.subr.bf16.mxu1 %v6468_v4 }
 0xc13   : > { %v5689_v18 = vpop.permute.xlu0 %5688  ;;  %5939 = vpow2.f32 %v3468_v30 }
 0xc14   : > { %v5691_v51 = vunpack.i.h.bf16 %v5689_v18  ;;  %v5690_v29 = vunpack.i.l.bf16 %v5689_v18  ;;  %5941 = vpow2.f32 %v3472_v14 }
 0xc15   : > { %5943 = vpow2.f32 %v3474_v17 }
 0xc16   : > { %v3551_v26 = vpack.c.bf16 %v5691_v51, %v5690_v29 }
 0xc18   : > { %5371 = vmatpush3.bf16.msra.mxu0 %v3551_v26 }
 0xc19   : > { %5382 = vmatprep.subr.bf16.mxu0 %v6468_v4 }
 0xc1b   : > { %v5936_v39 = vpop.eup %5935 }
 0xc1c   : > { %v7653_v52 = vmul.f32 %v5936_v39, %v5930_v38  ;;  %v3529_v10 = vmul.f32 %v5936_v39, %v7578_v56 }
 0xc1e   : > { %v4114_v56 = vsel %vm3395_vm7, %v3529_v10, 0.0  ;;  %v3545_v12 = vpack.c.bf16 %v3529_v10, %v3529_v10 }
 0xc1f   : > { %v5938_v48 = vpop.eup %5937 }
 0xc20   : > { %v3527_v15 = vmul.f32 %v5938_v48, %v7582_v28  ;;  %v7657_v31 = vmul.f32 %v5938_v48, %v5934_v16  ;;  %v5940_v36 = vpop.eup %5939 }
 0xc21   : > { %v5942_v25 = vpop.eup %5941 }
 0xc22   : > { %v3543_v45 = vpack.c.bf16 %v3527_v15, %v3527_v15  ;;  %v4112_v54 = vsel %vm3395_vm7, %v3527_v15, 0.0  ;;  %v4123_v23 = vadd.f32 %v7657_v31, %v7601_v0  ;;  %v5944_v3 = vpop.eup %5943 }
 0xc23   : > { %v4113_v61 = vadd.f32 %v4112_v54, %v4111_v34 }
 0xc24   : > { %5373 = vmatmul.mubr.msk.bf16.vlgmr.msra.gmra.mxu0 %vm3395_vm7, %v3543_v45  ;;  %v7670_v28 = vadd.f32 %v4123_v23, %v7653_v52 }
 0xc25   : > { %5383 = vmatpush3.bf16.msra.mxu0 %v3553_v60  ;;  %5384 = vmatprep.mubr.msk.bf16.mxu0 %vm6470_vm0, %v6468_v4  ;;  %v7674_v32 = vadd.f32 %v4114_v56, %v4113_v61 }
 0xc26   : > { %5394 = vmatprep.subr.bf16.mxu0 %v6468_v4 }
 0xc2c   : > { %5385 = vmatmul.mubr.msk.bf16.vlgmr.msra.gmra.mxu0 %vm3395_vm7, %v3545_v12 }
 0xc2d   : > { %5396 = vmatprep.mubr.msk.bf16.mxu0 %vm6470_vm0, %v6468_v4 }
 0xc34   : > { %v3490_v21 = vpop.xlane.xlu1 %3489 }
 0xc35   : > { %v3504_v59 = vadd.f32 %v5940_v36, %v3490_v21 }
 0xc37   : > { %5945 = vrcp.f32 %v3504_v59 }
 0xc38   : > { %v3496_v38 = vpop.xlane.xlu1 %3495 }
 0xc39   : > { %v3506_v7 = vadd.f32 %v5942_v25, %v3496_v38 }
 0xc3b   : > { %5947 = vrcp.f32 %v3506_v7 }
 0xc3c   : > { %v5704_v33 = vpop.permute.xlu1 %5703 }
 0xc3d   : > { %v5706_v46 = vunpack.i.h.bf16 %v5704_v33  ;;  %v5705_v44 = vunpack.i.l.bf16 %v5704_v33 }
 0xc3f   : > { %v3554_v47 = vpack.c.bf16 %v5706_v46, %v5705_v44  ;;  %v5800_v44 = vld [vmem:[#allocation19 + $0x30] sm:$0xff]  }
 0xc44   : > { %v3499_v37 = vpop.xlane.xlu0 %3498  ;;  %v5946_v41 = vpop.eup %5945 }
 0xc45   : > { %v3507_v58 = vadd.f32 %v5944_v3, %v3499_v37  ;;  %v3528_v9 = vmul.f32 %v5946_v41, %v7610_v35  ;;  %v7689_v13 = vmul.f32 %v5946_v41, %v5940_v36  ;;  %v5799_v41 = vld [vmem:[#allocation19 + $0x38] sm:$0xff]  }
 0xc47   : > { %5949 = vrcp.f32 %v3507_v58  ;;  %v3544_v16 = vpack.c.bf16 %v3528_v9, %v3528_v9  ;;  %v4107_v5 = vsel %vm3395_vm7, %v3528_v9, 0.0  ;;  %v4121_v50 = vadd.f32 %v4120_v2, %v7689_v13 }
 0xc48   : > { %v5709_v8 = vpop.permute.xlu0 %5708  ;;  %v5948_v53 = vpop.eup %5947  ;;  %v4108_v18 = vadd.f32 %v4107_v5, %v7646_v62 }
 0xc49   : > { %v5711_v11 = vunpack.i.h.bf16 %v5709_v8  ;;  %v5710_v20 = vunpack.i.l.bf16 %v5709_v8  ;;  %5379 = vmatmul.mubr.msk.bf16.vlgmr.msra.gmra.mxu1 %vm3395_vm7, %v3544_v16  ;;  %v3530_v35 = vmul.f32 %v5948_v53, %v7614_v43  ;;  %v7696_v51 = vmul.f32 %v5948_v53, %v5942_v25  ;;  %v5801_v8 = vld [vmem:[#allocation19 + $0x28] sm:$0xff]  }
 0xc4a   : > { %5389 = vmatpush3.bf16.msra.mxu1 %v3554_v47  ;;  %5390 = vmatprep.mubr.msk.bf16.mxu1 %vm6470_vm0, %v6468_v4 }
 0xc4b   : > { %v3555_v29 = vpack.c.bf16 %v5711_v11, %v5710_v20  ;;  %v4109_v26 = vsel %vm3395_vm7, %v3530_v35, 0.0  ;;  %v4122_v39 = vadd.f32 %v4121_v50, %v7696_v51  ;;  %5400 = vmatprep.subr.bf16.mxu1 %v6468_v4  ;;  %v3546_v43 = vpack.c.bf16 %v3530_v35, %v3530_v35 }
 0xc4c   : > { %v4110_v62 = vadd.f32 %v4109_v26, %v4108_v18  ;;  %v5802_v26 = vld [vmem:[#allocation19 + $0x20] sm:$0xff]  }
 0xc4d   : > { %5395 = vmatpush3.bf16.msra.mxu0 %v3555_v29  ;;  %v4126_v6 = vmul.f32 0.25, %v4122_v39 }
 0xc4e   : > { %v4118_v48 = vmul.f32 0.25, %v4110_v62  ;;  %v5803_v62 = vld [vmem:[#allocation19 + $0x18] sm:$0xff]  }
 0xc50   : > { %v4128_v63 = vsel %vm3395_vm7, %v4118_v48, %v4126_v6 }
 0xc51   : > { %5391 = vmatmul.mubr.msk.bf16.vlgmr.msra.gmra.mxu1 %vm3395_vm7, %v3546_v43  ;;  %v4131_v49 = vsel %vm4130_vm8, %v4128_v63, 0.0  ;;  %v5804_v63 = vld [vmem:[#allocation19 + $0x10] sm:$0xff]  }
 0xc52   : > { %4133 = vst [vmem:[%s7707_s20] sm:$0xff] %v4131_v49  ;;  %5416 = vmatprep.mubr.msk.bf16.mxu1 %vm6470_vm0, %v6468_v4  ;;  %5401 = vmatpush3.bf16.msra.mxu1 %v5799_v41 }
 0xc53   : > { %5402 = vmatprep.subr.bf16.mxu1 %v6468_v4 }
 0xc54   : > { %v5950_v15 = vpop.eup %5949 }
 0xc55   : > { %v3531_v10 = vmul.f32 %v5950_v15, %v7618_v1  ;;  %v7713_v34 = vmul.f32 %v5950_v15, %v5944_v3 }
 0xc56   : > { %5403 = vmatpush3.bf16.msra.mxu1 %v5800_v44 }
 0xc57   : > { %v3547_v45 = vpack.c.bf16 %v3531_v10, %v3531_v10  ;;  %v4116_v54 = vsel %vm3395_vm7, %v3531_v10, 0.0  ;;  %v4125_v23 = vadd.f32 %v7670_v28, %v7713_v34  ;;  %5404 = vmatprep.subr.bf16.mxu1 %v6468_v4 }
 0xc58   : > { %v4117_v60 = vadd.f32 %v4116_v54, %v7674_v32  ;;  %v5805_v54 = vld [vmem:[#allocation19 + $0x8] sm:$0xff]  }
 0xc59   : > { %5397 = vmatmul.mubr.msk.bf16.vlgmr.msra.gmra.mxu0 %vm3395_vm7, %v3547_v45  ;;  %v4127_v61 = vmul.f32 0.25, %v4125_v23 }
 0xc5a   : > { %v4119_v30 = vmul.f32 0.25, %v4117_v60  ;;  %4314 = vmatprep.mubr.bf16.mxu0 %v6469_v27  ;;  %v4964_v27 = vld.sshfl [vmem:[%s7931_s11 + $0x4] sm:$0x33 pattern:$0x75316420]  ;;  %5405 = vmatpush3.bf16.msra.mxu1 %v5801_v8 }
 0xc5b   : > { %v3908_v33 = vcombine.high %v4964_v27, %v4964_v27  ;;  %5406 = vmatprep.subr.bf16.mxu1 %v6468_v4  ;;  %v3915_v35 = vrot.slane %v4964_v27, %v6972_v24 }
 0xc5c   : > { %v4129_v56 = vsel %vm3395_vm7, %v4119_v30, %v4127_v61  ;;  %v5806_v30 = vld [vmem:[#allocation19] sm:$0xff]  }
 0xc5d   : > { %v4132_v1 = vsel %vm4130_vm8, %v4129_v56, 0.0  ;;  %v3922_v37 = vrot.slane %v3908_v33, %v6972_v24  ;;  %v3923_v29 = vcombine.high %v3915_v35, %v3915_v35 }
 0xc5e   : > { %4134 = vst [vmem:[%s7707_s20 + $0x8] sm:$0xff] %v4132_v1  ;;  %5407 = vmatpush3.bf16.msra.mxu1 %v5802_v26  ;;  %v5807_v26 = vld [vmem:[#allocation20 + $0x70] ss:$8 sps:$4 sm:$0xff]  }
 0xc5f   : > { %v3932_v46 = vrot.slane %v3922_v37, %v6939_v55  ;;  %v3936_v39 = vrot.slane %v3923_v29, %v6939_v55  ;;  %5408 = vmatprep.subr.bf16.mxu1 %v6468_v4 }
 0xc61   : > { %v3947_v58 = vmul.f32 %v3932_v46, %v7642_v22  ;;  %v3948_v9 = vmul.f32 %v3932_v46, %v7657_v31  ;;  %v3950_v6 = vmul.f32 %v3936_v39, %v7653_v52  ;;  %v3949_v48 = vmul.f32 %v3936_v39, %v7689_v13  ;;  %v5809_v39 = vld [vmem:[#allocation20 + $0x74] ss:$8 sps:$4 sm:$0xff]  }
 0xc62   : > { %5409 = vmatpush3.bf16.msra.mxu1 %v5803_v62  ;;  %v3924_v52 = vcombine.high %v3922_v37, %v3922_v37  ;;  %4282 = vmatprep.subr.bf16.mxu0 %v5809_v39 }
 0xc63   : > { %5410 = vmatprep.subr.bf16.mxu1 %v6468_v4  ;;  %4283 = vmatpush1.bf16.msra.mxu0 %v5807_v26 }
 0xc64   : > { %v3940_v13 = vrot.slane %v3924_v52, %v6939_v55  ;;  %v5821_v52 = vld [vmem:[#allocation20 + $0x34] ss:$8 sps:$4 sm:$0xff]  }
 0xc65   : > { %v7724_v14 = vpop.f32.mrf.mxu0 }
 0xc66   : > { %5411 = vmatpush3.bf16.msra.mxu1 %v5804_v63  ;;  %v3951_v1 = vmul.f32 %v3940_v13, %v7696_v51 }
 0xc67   : > { %v5362_v12 = vpop.f32.mrf.mxu0  ;;  %5412 = vmatprep.subr.bf16.mxu1 %v6468_v4 }
 0xc69   : > { %v3639_v17 = vpop.f32.mrf.mxu0 }
 0xc6a   : > { %5413 = vmatpush3.bf16.msra.mxu1 %v5805_v54  ;;  %v3952_v17 = vmul.f32 %v3940_v13, %v7713_v34  ;;  %v5818_v54 = vld [vmem:[#allocation20 + $0x44] ss:$8 sps:$4 sm:$0xff]  }
 0xc6b   : > { %v5363_v36 = vpop.f32.mrf.mxu0  ;;  %5414 = vmatprep.subr.bf16.mxu1 %v6468_v4  ;;  %v5824_v13 = vld [vmem:[#allocation20 + $0x24] ss:$8 sps:$4 sm:$0xff]  }
 0xc6e   : > { %5415 = vmatpush3.bf16.msra.mxu1 %v5806_v30  ;;  %v5827_v30 = vld [vmem:[#allocation20 + $0x14] ss:$8 sps:$4 sm:$0xff]  }
 0xc7e   : > { %v7726_v21 = vpop.f32.mrf.mxu1 }
 0xc80   : > { %v5356_v28 = vpop.f32.mrf.mxu1 }
 0xc82   : > { %v3596_v32 = vpop.f32.mrf.mxu1 }
 0xc84   : > { %v5357_v59 = vpop.f32.mrf.mxu1 }
 0xcd0   : > { %v3679_v25 = vpop.f32.mrf.mxu1 }
 0xcd1   : > { %v3955_v16 = vadd.f32 %v3947_v58, %v3679_v25 }
 0xcd2   : > { %v5368_v38 = vpop.f32.mrf.mxu1 }
 0xcd4   : > { %v3682_v7 = vpop.f32.mrf.mxu1 }
 0xcd5   : > { %v3928_v7 = vrot.slane %v3915_v35, %v6939_v55 }
 0xcd6   : > { %v5369_v3 = vpop.f32.mrf.mxu1 }
 0xcd7   : > { %v3946_v3 = vmul.f32 %v3928_v7, %v7601_v0  ;;  %v3945_v51 = vmul.f32 %v3928_v7, %v7623_v40  ;;  %v5839_v7 = vld [vmem:[#allocation22 + $0x58] sm:$0xff]  }
 0xcd9   : > { %v3954_v44 = vadd.f32 %v3946_v3, %v7724_v14  ;;  %v3953_v58 = vadd.f32 %v3945_v51, %v7726_v21 }
 0xce4   : > { %v3722_v2 = vpop.f32.mrf.mxu0 }
 0xce5   : > { %v3956_v5 = vadd.f32 %v3948_v9, %v3722_v2 }
 0xce6   : > { %v5374_v50 = vpop.f32.mrf.mxu0 }
 0xce7   : > { %v5712_v53 = vpack.i.bf16 %v3956_v5, %v3955_v16 }
 0xce8   : > { %v3725_v47 = vpop.f32.mrf.mxu0 }
 0xce9   : > { %5713 = vrot.lane.b32.xlu1 %v5712_v53, %s6473_s17  ;;  %s7812_s17 = scalar_lea.sflag [#allocation25], %s790_s14 }
 0xcea   : > { %v5375_v11 = vpop.f32.mrf.mxu0 }
 0xcec   : > { %v3808_v20 = vpop.f32.mrf.mxu0 }
 0xced   : > { %v3958_v49 = vadd.f32 %v3950_v6, %v3808_v20 }
 0xcee   : > { %v5386_v22 = vpop.f32.mrf.mxu0 }
 0xcf0   : > { %v3811_v18 = vpop.f32.mrf.mxu0 }
 0xcf2   : > { %v5387_v31 = vpop.f32.mrf.mxu0 }
 0xd09   : > { %v3765_v43 = vpop.f32.mrf.mxu1 }
 0xd0a   : > { %v3957_v15 = vadd.f32 %v3949_v48, %v3765_v43 }
 0xd0b   : > { %v5380_v24 = vpop.f32.mrf.mxu1 }
 0xd0c   : > { %v5717_v10 = vpack.i.bf16 %v3958_v49, %v3957_v15  ;;  %v5812_v15 = vld [vmem:[#allocation20 + $0x64] ss:$8 sps:$4 sm:$0xff]   ;;  %v5810_v24 = vld [vmem:[#allocation20 + $0x60] ss:$8 sps:$4 sm:$0xff]  }
 0xd0d   : > { %v3768_v45 = vpop.f32.mrf.mxu1  ;;  %4284 = vmatprep.subr.bf16.mxu0 %v5812_v15 }
 0xd0e   : > { %5718 = vrot.lane.b32.xlu0 %v5717_v10, %s6472_s13  ;;  %s8017_s13 = sld [smem:[#allocation50_spill]]  ;;  %4285 = vmatpush1.bf16.msra.mxu0 %v5810_v24  ;;  %v5815_v10 = vld [vmem:[#allocation20 + $0x54] ss:$8 sps:$4 sm:$0xff]   ;;  %v5813_v45 = vld [vmem:[#allocation20 + $0x50] ss:$8 sps:$4 sm:$0xff]  }
 0xd0f   : > { %v5381_v23 = vpop.f32.mrf.mxu1  ;;  %4286 = vmatprep.subr.bf16.mxu0 %v5815_v10 }
 0xd10   : > { %v5816_v23 = vld [vmem:[#allocation20 + $0x40] ss:$8 sps:$4 sm:$0xff]  }
 0xd11   : > { %v3851_v60 = vpop.f32.mrf.mxu1 }
 0xd12   : > { %v3959_v28 = vadd.f32 %v3951_v1, %v3851_v60  ;;  %4287 = vmatpush1.bf16.msra.mxu0 %v5813_v45  ;;  %v5819_v60 = vld [vmem:[#allocation20 + $0x30] ss:$8 sps:$4 sm:$0xff]   ;;  %v5830_v1 = vld [vmem:[#allocation20 + $0x4] ss:$8 sps:$4 sm:$0xff]  }
 0xd13   : > { %v5392_v61 = vpop.f32.mrf.mxu1  ;;  %4288 = vmatprep.subr.bf16.mxu0 %v5818_v54 }
 0xd14   : > { %v4965_v14 = vld [vmem:[%s8017_s13] ss:$0 sm:$0xff]  ;;  %v5822_v61 = vld [vmem:[#allocation20 + $0x20] ss:$8 sps:$4 sm:$0xff]   ;;  %s4551_s13 = sshll.u32 %s7292_s12, 4  ;;  %s7808_s13 = int_to_ptr.vmem [resolvable:$true] %s4551_s13 }
 0xd15   : > { %v3854_v56 = vpop.f32.mrf.mxu1  ;;  %s6299_s20 = scalar_lea.vmem %s7808_s13, 256  ;;  %p6306_p1 = scmp.lt.s32.totalorder %s7808_s13, %s6304_s22 }
 0xd16   : > { %4289 = vmatpush1.bf16.msra.mxu0 %v5816_v23  ;;  %v5825_v56 = vld [vmem:[#allocation20 + $0x10] ss:$8 sps:$4 sm:$0xff]   ;;  %p6300_p5 = scmp.ne.s32.totalorder %s7808_s13, %s6299_s20  ;;  %p6307_p3 = scmp.lt.s32.totalorder %s6305_s7, %s6299_s20 }
 0xd17   : > { %v5393_v12 = vpop.f32.mrf.mxu1  ;;  %4290 = vmatprep.subr.bf16.mxu0 %v5821_v52 }
 0xd18   : > { %v5828_v12 = vld [vmem:[#allocation20] ss:$8 sps:$4 sm:$0xff]   ;;  %p6301_p10 = pnand %p6300_p5, %p8020_p7  ;;  %p6308_p8 = por %p6307_p3, %p6306_p1 }
 0xd19   : > { %v3894_v36 = vpop.f32.mrf.mxu0 }
 0xd1a   : > { %v3960_v32 = vadd.f32 %v3952_v17, %v3894_v36  ;;  %4291 = vmatpush1.bf16.msra.mxu0 %v5819_v60  ;;  %v5831_v17 = vld [vmem:[#allocation22 + $0x78] sm:$0xff]   ;;  %p6302_p0 = pneg %p6301_p10 }
 0xd1b   : > { %v5398_v59 = vpop.f32.mrf.mxu0  ;;  %4292 = vmatprep.subr.bf16.mxu0 %v5824_v13  ;;  %v5832_v36 = vld [vmem:[#allocation22 + $0x38] sm:$0xff]   ;;  %5126 = vmatprep.subr.bf16.mxu1 %v5831_v17 }
 0xd1c   : > { %v5722_v25 = vpack.i.bf16 %v3960_v32, %v3959_v28  ;;  %v5833_v28 = vld [vmem:[#allocation22 + $0x70] sm:$0xff]   ;;  %v5835_v59 = vld [vmem:[#allocation22 + $0x68] sm:$0xff]   ;;  %p6309_p9 = pnand %p6308_p8, %p6302_p0 }
 0xd1d   : > { %v3897_v38 = vpop.f32.mrf.mxu0  ;;  %v5834_v32 = vld [vmem:[#allocation22 + $0x30] sm:$0xff]  }
 0xd1e   : > { %5723 = vrot.lane.b32.xlu1 %v5722_v25, %s6471_s27  ;;  %4293 = vmatpush1.bf16.msra.mxu0 %v5822_v61  ;;  %v5836_v25 = vld [vmem:[#allocation22 + $0x28] sm:$0xff]   ;;  %v5837_v38 = vld [vmem:[#allocation22 + $0x60] sm:$0xff]   ;;  %s7803_s27 = scalar_lea.hbm %s8019_s26, %s7797_s5 }
 0xd1f   : > { %v5399_v4 = vpop.f32.mrf.mxu0  ;;  %4294 = vmatprep.subr.bf16.mxu0 %v5827_v30 }
 0xd20   : > { %v5838_v4 = vld [vmem:[#allocation22 + $0x20] sm:$0xff]  }
 0xd22   : > { %4295 = vmatpush1.bf16.msra.mxu0 %v5825_v56 }
 0xd23   : > { %4296 = vmatprep.subr.bf16.mxu0 %v5830_v1 }
 0xd26   : > { %4297 = vmatpush1.bf16.msra.mxu0 %v5828_v12 }
 0xd5b   : > { %v5714_v27 = vpop.permute.xlu1 %5713 }
 0xd5c   : > { %v5716_v37 = vunpack.i.h.bf16 %v5714_v27  ;;  %v5715_v41 = vunpack.i.l.bf16 %v5714_v27  ;;  %v5840_v27 = vld [vmem:[#allocation22 + $0x18] sm:$0xff]  }
 0xd5e   : > { %v3986_v2 = vsel %vm1304_vm1, %v3954_v44, %v5716_v37  ;;  %v3985_v8 = vsel %vm1304_vm1, %v3953_v58, %v5715_v41  ;;  %v4974_v58 = vld [vmem:[%s7938_s18 + $0x2] ss:$0 sm:$0xff] }
 0xd80   : > { %v5719_v33 = vpop.permute.xlu0 %5718 }
 0xd81   : > { %v5721_v34 = vunpack.i.h.bf16 %v5719_v33  ;;  %v5720_v46 = vunpack.i.l.bf16 %v5719_v33 }
 0xd83   : > { %v3988_v50 = vsel %vm2367_vm5, %v3986_v2, %v5721_v34  ;;  %v3987_v0 = vsel %vm2367_vm5, %v3985_v8, %v5720_v46 }
 0xd90   : > { %v5724_v9 = vpop.permute.xlu1 %5723 }
 0xd91   : > { %v5726_v16 = vunpack.i.h.bf16 %v5724_v9  ;;  %v5725_v5 = vunpack.i.l.bf16 %v5724_v9 }
 0xd93   : > { %v3990_v40 = vsel %vm2370_vm6, %v3988_v50, %v5726_v16  ;;  %v3989_v53 = vsel %vm2370_vm6, %v3987_v0, %v5725_v5  ;;  %v4975_v16 = vld [vmem:[%s7939_s19 + $0x2] ss:$0 sm:$0xff] }
 0xd94   : > { %v3991_v47 = vpack.c.bf16 %v3990_v40, %v3989_v53  ;;  %v5841_v53 = vld [vmem:[#allocation22 + $0x50] sm:$0xff]  }
 0xd96   : > { %5417 = vmatmul.mubr.bf16.vlgmr.msra.gmra.mxu1 %v3991_v47  ;;  %v5842_v47 = vld [vmem:[#allocation22 + $0x10] sm:$0xff]  }
 0xd97   : > { %5127 = vmatpush3.bf16.msra.mxu1 %v5832_v36 }
 0xd98   : > { %5128 = vmatprep.subr.bf16.mxu1 %v5833_v28 }
 0xd9b   : > { %5129 = vmatpush3.bf16.msra.mxu1 %v5834_v32 }
 0xd9c   : > { %5130 = vmatprep.subr.bf16.mxu1 %v5835_v59 }
 0xd9f   : > { %5131 = vmatpush3.bf16.msra.mxu1 %v5836_v25 }
 0xda0   : > { %5132 = vmatprep.subr.bf16.mxu1 %v5837_v38 }
 0xda3   : > { %5133 = vmatpush3.bf16.msra.mxu1 %v5838_v4 }
 0xda4   : > { %5134 = vmatprep.subr.bf16.mxu1 %v5839_v7 }
 0xda7   : > { %5135 = vmatpush3.bf16.msra.mxu1 %v5840_v27 }
 0xda8   : > { %5136 = vmatprep.subr.bf16.mxu1 %v5841_v53 }
 0xdab   : > { %5137 = vmatpush3.bf16.msra.mxu1 %v5842_v47 }
 0xe56   : > { %v4097_v21 = vpop.f32.mrf.mxu1 }
 0xe57   : > { %v4098_v11 = vadd.f32 %v4965_v14, %v4097_v21  ;;  %v5844_v21 = vld [vmem:[#allocation22 + $0x8] sm:$0xff]  }
 0xe58   : > { %v5418_v20 = vpop.f32.mrf.mxu1 }
 0xe59   : > { %v4135_v22 = vadd.f32 %v4098_v11, %v7357_v42  ;;  %v5845_v11 = vld [vmem:[#allocation22 + $0x40] sm:$0xff]  }
 0xe5a   : > { %v4100_v18 = vpop.f32.mrf.mxu1  ;;  %v5846_v20 = vld [vmem:[#allocation22] sm:$0xff]  }
 0xe5b   : > { %v4101_v31 = vadd.f32 %v4965_v14, %v4100_v18  ;;  %4139 = vadd.xlane.f32.xlu0 %v4135_v22  ;;  %v5843_v14 = vld [vmem:[#allocation22 + $0x48] sm:$0xff]  }
 0xe5c   : > { %v5419_v35 = vpop.f32.mrf.mxu1  ;;  %5138 = vmatprep.subr.bf16.mxu1 %v5843_v14 }
 0xe5d   : > { %v4136_v29 = vadd.f32 %v4101_v31, %v7359_v19  ;;  %5139 = vmatpush3.bf16.msra.mxu1 %v5844_v21 }
 0xe5e   : > { %5140 = vmatprep.subr.bf16.mxu1 %v5845_v11 }
 0xe5f   : > { %4141 = vadd.xlane.f32.xlu1 %v4136_v29 }
 0xe61   : > { %5141 = vmatpush3.bf16.msra.mxu1 %v5846_v20 }
 0xee4   : > { %v4140_v62 = vpop.xlane.xlu0 %4139 }
 0xee5   : > { %v4143_v6 = vmul.f32 0.0078125, %v4140_v62 }
 0xee7   : > { %v7768_v48 = vsub.f32 %v4135_v22, %v4143_v6  ;;  %v4190_v22 = vld [vmem:[%s8018_s1] sm:$0x3] }
 0xee8   : > { %v4142_v43 = vpop.xlane.xlu1 %4141  ;;  %v4199_v31 = vrot.slane %v4190_v22, %v6941_v57  ;;  %v4195_v35 = vrot.slane %v4190_v22, %v6939_v55 }
 0xee9   : > { %v4144_v63 = vmul.f32 0.0078125, %v4142_v43  ;;  %v4147_v42 = vmul.f32 %v7768_v48, %v7768_v48 }
 0xeeb   : > { %v7772_v49 = vsub.f32 %v4136_v29, %v4144_v63  ;;  %4149 = vadd.xlane.f32.xlu0 %v4147_v42 }
 0xeed   : > { %v4148_v19 = vmul.f32 %v7772_v49, %v7772_v49 }
 0xeef   : > { %4151 = vadd.xlane.f32.xlu0 %v4148_v19 }
 0xf74   : > { %v4150_v33 = vpop.xlane.xlu0 %4149 }
 0xf75   : > { %v4153_v3 = vmul.f32 0.0078125, %v4150_v33 }
 0xf77   : > { %v4155_v51 = vadd.f32 1e-05, %v4153_v3 }
 0xf78   : > { %v4152_v37 = vpop.xlane.xlu0 %4151 }
 0xf79   : > { %5951 = vrsqrt.f32 %v4155_v51  ;;  %v4154_v41 = vmul.f32 0.0078125, %v4152_v37 }
 0xf7b   : > { %v4156_v34 = vadd.f32 1e-05, %v4154_v41 }
 0xf7d   : > { %5953 = vrsqrt.f32 %v4156_v34 }
 0xf86   : > { %v5952_v46 = vpop.eup %5951 }
 0xf87   : > { %v4159_v44 = vmul.f32 %v5952_v46, %v7768_v48 }
 0xf89   : > { %v4165_v8 = vmul.f32 %v4974_v58, %v4159_v44 }
 0xf8a   : > { %v5954_v9 = vpop.eup %5953 }
 0xf8b   : > { %v4160_v2 = vmul.f32 %v5954_v9, %v7772_v49  ;;  %v7784_v50 = vadd.f32 %v4975_v16, %v4165_v8 }
 0xf8d   : > { %v4166_v5 = vmul.f32 %v4974_v58, %v4160_v2 }
 0xf8f   : > { %v7786_v0 = vadd.f32 %v4975_v16, %v4166_v5 }
 0xf91   : > { %v4173_v40 = vpack.c.bf16 %v7786_v0, %v7784_v50 }
 0xf93   : > { %4315 = vmatmul.mubr.bf16.vlgmr.msra.gmra.mxu0 %v4173_v40 }
0x1053   : > { %v4316_v18 = vpop.f32.mrf.mxu0 }
0x1054   : > { %v4317_v6 = vadd.f32 %v4316_v18, %v4195_v35 }
0x1055   : > { %v4318_v29 = vpop.f32.mrf.mxu0 }
0x1056   : > { %v4319_v39 = vadd.f32 %v4318_v29, %v4199_v31  ;;  %v4325_v19 = vmax.f32 %v4317_v6, 0.0 }
0x1057   : > { %v4320_v26 = vpop.f32.mrf.mxu0 }
0x1058   : > { %v4321_v62 = vadd.f32 %v4320_v26, %v4195_v35  ;;  %v4326_v42 = vmax.f32 %v4319_v39, 0.0 }
0x1059   : > { %v4322_v48 = vpop.f32.mrf.mxu0 }
0x105a   : > { %v4323_v43 = vadd.f32 %v4322_v48, %v4199_v31  ;;  %v4327_v63 = vmax.f32 %v4321_v62, 0.0 }
0x105c   : > { %v4328_v49 = vmax.f32 %v4323_v43, 0.0  ;;  %v4329_v57 = vpack.c.bf16 %v4327_v63, %v4325_v19 }
0x105e   : > { %v4330_v15 = vpack.c.bf16 %v4328_v49, %v4326_v42 }
0x1060   : > { %4498 = vmatprep.mubr.bf16.mxu1 %v4330_v15 }
0x1061   : > { %4499 = vmatmul.mubr.bf16.vlgmr.msra.gmra.mxu1 %v4329_v57 }
0x1062   : > { %6312 = shalt.err (!%p6309_p9)
}
0x1063   : > { %s6313_s23 = scalar_lea.hbm %s7803_s27, 256  ;;  %s6317_s6 = scalar_lea.hbm %s8019_s26, 512 }
0x1064   : > { %p6314_p4 = scmp.ne.s32.totalorder %s7803_s27, %s6313_s23  ;;  %p6318_p2 = scmp.lt.s32.totalorder %s7803_s27, %s8019_s26 }
0x1065   : > { %p6319_p6 = scmp.lt.s32.totalorder %s6317_s6, %s6313_s23 }
0x1066   : > { %p6315_p12 = pnand %p6314_p4, %p8020_p7 }
0x1067   : > { %p6320_p11 = por %p6319_p6, %p6318_p2 }
0x1068   : > { %p6316_p13 = pneg %p6315_p12 }
0x106a   : > { %p6321_p5 = pnand %p6320_p11, %p6316_p13 }
0x106c   : > { %6324 = shalt.err (!%p6321_p5)
}
0x106d   : > { %s6476_s9 = smov 128   ;;  %s6477_s4 = smov 8  }
0x106e   : > { %5469 = dma.vmem_to_hbm [thread:$0]  (%p8020_p7), %s7808_s13, 256, %s7803_s27, %s7812_s17, %s6476_s9, %s6476_s9, %s6477_s4  }
0x106f   : > { %s8021_s22 = sld [smem:[#allocation57_spill]]  ;;  %s6325_s23 = scalar_lea.vmem %s7806_s0, 256 }
0x1070   : > { %p6326_p10 = scmp.ne.s32.totalorder %s7806_s0, %s6325_s23  ;;  %s6478_s14 = smov [#allocation26]  }
0x1071   : > { %s6329_s12 = sshll.u32 %s6478_s14, 4  ;;  %s6330_s12 = int_to_ptr.vmem [resolvable:$false] %s6329_s12 }
0x1072   : > { %p6327_p0 = pnand %p6326_p10, %p8020_p7  ;;  %s6331_s6 = scalar_lea.vmem %s6330_s12, 512 }
0x1073   : > { %p6332_p3 = scmp.lt.s32.totalorder %s7806_s0, %s6330_s12  ;;  %p6333_p8 = scmp.lt.s32.totalorder %s6331_s6, %s6325_s23 }
0x1074   : > { %p6328_p1 = pneg %p6327_p0 }
0x1075   : > { %s4566_s7 = scalar_lea.hbm %s8021_s22, %s7797_s5  ;;  %p6334_p9 = por %p6333_p8, %p6332_p3 }
0x1077   : > { %p6335_p4 = pnand %p6334_p9, %p6328_p1 }
0x1079   : > { %6338 = shalt.err (!%p6335_p4)
}
0x107a   : > { %s6339_s15 = scalar_lea.hbm %s4566_s7, 256  ;;  %s6343_s1 = scalar_lea.hbm %s8021_s22, 512 }
0x107b   : > { %p6340_p12 = scmp.ne.s32.totalorder %s4566_s7, %s6339_s15  ;;  %p6344_p6 = scmp.lt.s32.totalorder %s4566_s7, %s8021_s22 }
0x107c   : > { %p6345_p11 = scmp.lt.s32.totalorder %s6343_s1, %s6339_s15 }
0x107d   : > { %p6341_p13 = pnand %p6340_p12, %p8020_p7 }
0x107e   : > { %p6346_p5 = por %p6345_p11, %p6344_p6 }
0x107f   : > { %p6342_p2 = pneg %p6341_p13 }
0x1081   : > { %p6347_p10 = pnand %p6346_p5, %p6342_p2 }
0x1083   : > { %6350 = shalt.err (!%p6347_p10)
}
0x1084   : > { %5470 = dma.vmem_to_hbm [thread:$0]  (%p8020_p7), %s7806_s0, 256, %s4566_s7, %s7812_s17, %s6476_s9, %s6476_s9, %s6477_s4  }
0x1085   : > { %s8022_s12 = sld [smem:[#allocation54_spill]]  ;;  %s899_s6 = scalar_lea.vmem [#allocation23], %s6860_s8 }
0x1086   : > { %s4535_s15 = sshll.u32 %s899_s6, 4  ;;  %s8023_s7 = sld [smem:[#allocation55_spill]]  ;;  %s7867_s15 = int_to_ptr.vmem [resolvable:$true] %s4535_s15 }
0x1087   : > { %s4512_s13 = scalar_lea.sflag [#allocation4], %s6857_s29  ;;  %s6351_s1 = scalar_lea.vmem %s7867_s15, 256 }
0x1088   : > { %p6352_p0 = scmp.ne.s32.totalorder %s7867_s15, %s6351_s1  ;;  %s6479_s8 = smov [#allocation23]  }
0x1089   : > { %s6355_s20 = sshll.u32 %s6479_s8, 4  ;;  %s6356_s20 = int_to_ptr.vmem [resolvable:$false] %s6355_s20 }
0x108a   : > { %p6353_p1 = pnand %p6352_p0, %p8020_p7  ;;  %s6357_s16 = scalar_lea.vmem %s6356_s20, 512 }
0x108b   : > { %v4992_v24 = vld [vmem:[%s8022_s12] ss:$0 sm:$0xff]  ;;  %p6358_p8 = scmp.lt.s32.totalorder %s7867_s15, %s6356_s20  ;;  %p6359_p9 = scmp.lt.s32.totalorder %s6357_s16, %s6351_s1 }
0x108c   : > { %s7874_s27 = scalar_lea.hbm %s8023_s7, %s7797_s5  ;;  %p6354_p3 = pneg %p6353_p1 }
0x108d   : > { %p6360_p4 = por %p6359_p9, %p6358_p8 }
0x108f   : > { %p6361_p12 = pnand %p6360_p4, %p6354_p3 }
0x1121   : > { %v5142_v55 = vpop.f32.mrf.mxu1 }
0x1123   : > { %v5143_v10 = vpop.f32.mrf.mxu1 }
0x1124   : > { %v5144_v45 = vadd.f32 %v5143_v10, %v5142_v55 }
0x1125   : > { %v5145_v54 = vpop.f32.mrf.mxu1 }
0x1126   : > { %v4501_v23 = vadd.f32 %v5144_v45, %v4992_v24 }
0x1127   : > { %v5146_v52 = vpop.f32.mrf.mxu1 }
0x1128   : > { %v4507_v60 = vadd.f32 %v4501_v23, %v7784_v50  ;;  %v5147_v13 = vadd.f32 %v5146_v52, %v5145_v54 }
0x112a   : > { %4509 = vst [vmem:[%s899_s6] sm:$0xff] %v4507_v60  ;;  %v4504_v61 = vadd.f32 %v5147_v13, %v4992_v24 }
0x112c   : > { %v4508_v30 = vadd.f32 %v4504_v61, %v7786_v0 }
0x112e   : > { %4510 = vst [vmem:[%s899_s6 + $0x8] sm:$0xff] %v4508_v30 }
0x112f   : > { %6364 = shalt.err (!%p6361_p12)
}
0x1130   : > { %s6365_s5 = scalar_lea.hbm %s7874_s27, 256  ;;  %s6369_s14 = scalar_lea.hbm %s8023_s7, 512 }
0x1131   : > { %p6366_p13 = scmp.ne.s32.totalorder %s7874_s27, %s6365_s5  ;;  %p6370_p11 = scmp.lt.s32.totalorder %s7874_s27, %s8023_s7 }
0x1132   : > { %p6371_p5 = scmp.lt.s32.totalorder %s6369_s14, %s6365_s5 }
0x1133   : > { %p6367_p2 = pnand %p6366_p13, %p8020_p7 }
0x1134   : > { %p6372_p10 = por %p6371_p5, %p6370_p11 }
0x1135   : > { %p6368_p6 = pneg %p6367_p2 }
0x1137   : > { %p6373_p0 = pnand %p6372_p10, %p6368_p6 }
0x1139   : > { %6376 = shalt.err (!%p6373_p0)
}
0x113a   : > { %5468 = dma.vmem_to_hbm [thread:$0]  (%p8020_p7), %s7867_s15, 256, %s7874_s27, %s4512_s13, %s6476_s9, %s6476_s9, %s6477_s4  }
0x113b PF: > { %s4582_s0 = sand.u32 1, %s6435_s3   ;;  %p8024_p1 = scmp.ne.s32.totalorder %s7996_s24, 0 }
0x113c   : > { %p8025_p3 = scmp.ge.s32.totalorder %s6447_s30, 2  ;;  %s4583_s17 = scalar_lea.sflag [#allocation4], %s4582_s0 }
0x113e   : > { %p5516_p8 = pnand %p8025_p3, %p8024_p1 }
0x1140   : > { %p5517_p9 = pneg %p5516_p8 }
0x1142   : > { %6426 = dma.done.wait (%p5517_p9), %s4583_s17, 256  }
0x1143   : > { %6428 = vsyncadd (%p5517_p9), %s4583_s17, 4294967040  ;;  %s8026_s21 = sadd.s32 4294967294, %s6447_s30  }
0x1144   : > { %s4591_s1 = sand.u32 1, %s8026_s21  }
0x1145   : > { %s4592_s8 = scalar_lea.sflag [#allocation25], %s4591_s1 }
0x1146   : > { %6430 = dma.done.wait (%p5517_p9), %s4592_s8, 512  }
0x1147   : > { %6432 = vsyncadd (%p5517_p9), %s4592_s8, 4294966784  ;;  %s8027_s9 = sld [smem:[#allocation37_spill]]  ;;  %p47_p7 = scmp.ge.s32.totalorder %s6740_s2, 4  }
0x1148   : > { %s8028_s29 = sld [smem:[#allocation38_spill]]  ;;  %s8029_s3 = smov %s6439_s28 }
0x1149   : > { %s8031_s30 = smov %s6740_s2  ;;  %49 = sbr.rel (!%p47_p7) target bundleno = 34 (0x22), region = 236 }
0x114d   : > { %s8030_s28 = smov %s8027_s9 }
0x114e   :  { %4606 = vsyncpa [#allocation3], 1 }
0x114f   :  { %4608 = vsyncpa [#allocation3 + $0x1], 1 }
0x1150   :  { %4609 = vsyncpa [#allocation6], 1 }
0x1151   :  { %4611 = vsyncpa [#allocation6 + $0x1], 1 }
0x1152   :  { %4612 = vsyncpa [#allocation9], 1 }
0x1153   :  { %4613 = vsyncpa [#allocation12], 1 }
0x1154   :  { %4614 = vsyncpa [#allocation15], 1 }
0x1155   :  { %4615 = vsyncpa [#allocation18], 1 }
0x1156   :  { %4616 = vsyncpa [#allocation21], 1 }
0x1157   :  { %4617 = vsyncpa [#allocation4], 1 }
0x1158   :  { %4619 = vsyncpa [#allocation4 + $0x1], 1 }
0x1159   :  { %4620 = vsyncpa [#allocation25], 1 }
0x115a   :  { %4622 = vsyncpa [#allocation25 + $0x1], 1 }

</bundles_post_ra>
